<compile_context>
chip_gen: v7x
topology: tpu7x:2x2x1
jax: 0.10.0
libtpu: 0.0.40
codegen_flags: <defaults>
</compile_context>

<pallas_src>
import numpy as np
import jax
import jax.numpy as jnp
from jax.experimental import pallas as pl
from jax.experimental.pallas import tpu as pltpu

_TB = 32              # samples per grid step (multiple of 8; 7*_TB rows/step)
_C1, _C2, _FC = 10, 20, 50
_L1 = 14 * _C1        # 140 lanes: (out-col, out-chan) interleaved, conv1 stage
_L2 = 7 * _C2         # 140 lanes: (out-col, out-chan) interleaved, conv2 stage
_R = 7 * _TB          # rows per grid step (row = u*_TB + b, "h-major")


# ----------------------------------------------------------------------------
# Constant column-tap selectors used to build the banded weight matrices on the
# host (pure layout bookkeeping, built once with numpy).
# ----------------------------------------------------------------------------
def _build_selectors():
    # conv1: band row = column of the 32-wide padded image.
    s1 = np.zeros((2, 5, 32, 14), np.float32)            # (dw, kj, col, wp)
    for dw in range(2):
        for kj in range(5):
            for wp in range(14):
                s1[dw, kj, 2 * wp + dw + kj, wp] = 1.0
    # conv2: band row = x1 column 0..13; taps that hit the zero padding of the
    # 18-wide padded x1 frame are dropped (their contribution is 0).
    s2 = np.zeros((2, 5, 14, 7), np.float32)              # (dw, kj, col, wp2)
    for dw in range(2):
        for kj in range(5):
            for wp2 in range(7):
                r = 2 * wp2 + dw + kj - 2
                if 0 <= r <= 13:
                    s2[dw, kj, r, wp2] = 1.0
    return s1, s2


_S1, _S2 = _build_selectors()


# ----------------------------------------------------------------------------
# Fused kernel (one batch tile of _TB samples per grid step)
# ----------------------------------------------------------------------------
def _net2_kernel(xcat_ref, w1_ref, b1_ref, w2_ref, b2_ref, w3_ref, b3_ref,
                 w4_ref, b4_ref,
                 out_ref, x1_ref, x2_ref, x3_ref):
    f32 = jnp.float32
    TB, R = _TB, _R

    # ---- conv1 + 2x2 maxpool + relu -----------------------------------------
    # Row taps are already K-concatenated on the host (K = 5*32 = 160); the
    # pool-row offset dh and pool-col offset dw are separate matmuls feeding an
    # elementwise max (bias is hoisted out of the pool-max).
    # x1_ref block layout: [rr, (1+u)*TB + b, wp*10 + c]; row-blocks 0 and 8
    # are the zero padding that conv2's +-1 row windows need.
    zpad = jnp.zeros((TB, _L1), x1_ref.dtype)
    for rr in range(2):
        x1_ref[rr, 0:TB, :] = zpad
        x1_ref[rr, 8 * TB:9 * TB, :] = zpad
        acc = None
        for dh in range(2):
            lhs = xcat_ref[rr, dh]                              # (R, 160) bf16
            for dw in range(2):
                t = jnp.dot(lhs, w1_ref[dw], preferred_element_type=f32)
                acc = t if acc is None else jnp.maximum(acc, t)
        x1v = jnp.maximum(acc + b1_ref[...], 0.0)               # (R, 140) f32
        x1_ref[rr, TB:8 * TB, :] = x1v.astype(x1_ref.dtype)

    # ---- conv2 + 2x2 maxpool + relu -----------------------------------------
    # The window for row tap s = dh + kij is a contiguous slice of the padded
    # x1 block: rows [(s//2)*TB : (s//2 + 7)*TB] of phase rr = s % 2.
    pooled = None
    for dh in range(2):
        for dw in range(2):
            acc = None
            for kij in range(5):
                s = dh + kij
                win = x1_ref[s % 2, (s // 2) * TB:(s // 2 + 7) * TB, :]
                t = jnp.dot(win, w2_ref[dw, kij], preferred_element_type=f32)
                acc = t if acc is None else acc + t
            pooled = acc if pooled is None else jnp.maximum(pooled, acc)
    x2v = jnp.maximum(pooled + b2_ref[...], 0.0)                # (R, 140) f32
    x2_ref[...] = x2v.astype(x2_ref.dtype)

    # ---- fc1 + relu (LHS slabs read straight back from the x2 block) --------
    x3 = jnp.zeros((TB, _FC), f32)
    for h in range(7):
        x3 = x3 + jnp.dot(x2_ref[h * TB:(h + 1) * TB, :], w3_ref[h],
                          preferred_element_type=f32)
    x3 = jnp.maximum(x3 + b3_ref[...], 0.0)                     # (TB, 50)
    x3_ref[...] = x3

    # TODO(synk): training-mode dropout (stochastic masking) omitted; this is
    # the eval-mode identity (F.dropout with training=False).

    # ---- fc2 + log_softmax (tiny; kept in f32) -------------------------------
    logits = jnp.dot(x3, w4_ref[...], preferred_element_type=f32) + b4_ref[...]
    m = jnp.max(logits, axis=-1, keepdims=True)
    shifted = logits - m
    lse = jnp.log(jnp.sum(jnp.exp(shifted), axis=-1, keepdims=True))
    out_ref[...] = shifted - lse


# ----------------------------------------------------------------------------
# Host wrapper
# ----------------------------------------------------------------------------
@jax.jit
def net2_forward(x, params):
    """x: (B, 1, 28, 28) float32 NCHW.  Returns (output, x1, x2, x3) like Net2."""
    c1w, c1b, c2w, c2b, f1w, f1b, f2w, f2b = params
    B = x.shape[0]
    TB, R = _TB, _R
    nb = -(-B // TB)
    Bp = nb * TB

    # ---- cheap host-side layout prep (no 25x im2col blowup) ------------------
    xpad = jnp.pad(x[:, 0], ((0, Bp - B), (2, 2), (2, 2)))      # (Bp, 32, 32)

    # conv1 LHS: K-concat of the 5 row taps, h-major rows (row = u*TB + b)
    base = 4 * np.arange(7)[:, None] + np.arange(5)[None, :]    # (7, 5)

    def _lhs(rr, dh):
        g = xpad[:, base + 2 * rr + dh, :]                      # (Bp, 7, 5, 32)
        g = g.reshape(nb, TB, 7, 160).transpose(0, 2, 1, 3)     # (nb, 7, TB, 160)
        return g.reshape(nb * R, 160)

    xcat = jnp.stack([jnp.stack([_lhs(rr, dh) for dh in range(2)])
                      for rr in range(2)]).astype(jnp.bfloat16)  # (2, 2, nb*R, 160)

    # banded conv weights (fold column taps + out-channels; conv1 also folds
    # the 5 row taps into K to match the host-side K-concat of the input)
    w1b = jnp.einsum('djrw,ckj->dkrwc', _S1, c1w[:, 0]) \
             .reshape(2, 160, _L1).astype(jnp.bfloat16)          # (dw, 160, 140)
    w2b = jnp.einsum('djrw,ockj->dkrcwo', _S2, c2w) \
             .reshape(2, 5, _L1, _L2).astype(jnp.bfloat16)       # (dw, kij, 140, 140)
    b1r = jnp.tile(c1b, 14)[None, :]                             # (1, 140) f32
    b2r = jnp.tile(c2b, 7)[None, :]                              # (1, 140) f32
    w3m = f1w.reshape(_FC, _C2, 7, 7).transpose(2, 3, 1, 0) \
             .reshape(7, _L2, _FC).astype(jnp.bfloat16)          # (hp2, 140, 50)
    b3r = f1b[None, :]                                           # (1, 50) f32
    w4m = f2w.T                                                  # (50, 10) f32
    b4r = f2b[None, :]                                           # (1, 10) f32

    flops = int(2 * nb * R * (8 * 160 * _L1 + 20 * _L1 * _L2)
                + 2 * Bp * (7 * _L2 * _FC + _FC * 10))
    bytes_accessed = int(2 * (xcat.size + w1b.size + w2b.size + w3m.size)
                         + 4 * (w4m.size + 2 * _L1 + _FC + 10)
                         + 2 * (2 * nb * 9 * TB * _L1 + nb * R * _L2)
                         + 4 * Bp * (10 + _FC))

    grid_spec = pltpu.PrefetchScalarGridSpec(
        num_scalar_prefetch=0,
        grid=(nb,),
        in_specs=[
            pl.BlockSpec((2, 2, R, 160), lambda i: (0, 0, i, 0)),
            pl.BlockSpec((2, 160, _L1), lambda i: (0, 0, 0)),
            pl.BlockSpec((1, _L1), lambda i: (0, 0)),
            pl.BlockSpec((2, 5, _L1, _L2), lambda i: (0, 0, 0, 0)),
            pl.BlockSpec((1, _L2), lambda i: (0, 0)),
            pl.BlockSpec((7, _L2, _FC), lambda i: (0, 0, 0)),
            pl.BlockSpec((1, _FC), lambda i: (0, 0)),
            pl.BlockSpec((_FC, 10), lambda i: (0, 0)),
            pl.BlockSpec((1, 10), lambda i: (0, 0)),
        ],
        out_specs=[
            pl.BlockSpec((TB, 10), lambda i: (i, 0)),
            pl.BlockSpec((2, 9 * TB, _L1), lambda i: (0, i, 0)),
            pl.BlockSpec((R, _L2), lambda i: (i, 0)),
            pl.BlockSpec((TB, _FC), lambda i: (i, 0)),
        ],
    )

    out, x1o, x2o, x3o = pl.pallas_call(
        _net2_kernel,
        grid_spec=grid_spec,
        out_shape=(
            jax.ShapeDtypeStruct((Bp, 10), jnp.float32),
            jax.ShapeDtypeStruct((2, nb * 9 * TB, _L1), jnp.bfloat16),
            jax.ShapeDtypeStruct((nb * R, _L2), jnp.bfloat16),
            jax.ShapeDtypeStruct((Bp, _FC), jnp.float32),
        ),
        compiler_params=pltpu.CompilerParams(
            dimension_semantics=("parallel",)),
        cost_estimate=pl.CostEstimate(
            flops=flops, transcendentals=int(Bp * 11),
            bytes_accessed=bytes_accessed),
    )(xcat, w1b, b1r, w2b, b2r, w3m, b3r, w4m, b4r)

    # ---- tiny host-side NCHW rearrangement of the lane-dense slabs -----------
    x1 = (x1o.reshape(2, nb, 9, TB, 14, _C1)[:, :, 1:8]     # drop pad row-blocks
              .transpose(1, 3, 5, 2, 0, 4)                  # (nb, b, c, u, rr, wp)
              .reshape(Bp, _C1, 14, 14).astype(jnp.float32))[:B]
    x2 = (x2o.reshape(nb, 7, TB, 7, _C2)                    # (nb, hp2, b, wp2, c2)
              .transpose(0, 2, 4, 1, 3)
              .reshape(Bp, _C2, 7, 7).astype(jnp.float32))[:B]
    return out[:B], x1, x2, x3o[:B]


# ----------------------------------------------------------------------------
# Pure-JAX reference (high precision) and parameter init
# ----------------------------------------------------------------------------
def _net2_reference(x, params):
    c1w, c1b, c2w, c2b, f1w, f1b, f2w, f2b = params
    dn = ('NCHW', 'OIHW', 'NCHW')
    hi = jax.lax.Precision.HIGHEST
    y1 = jax.lax.conv_general_dilated(x, c1w, (1, 1), ((2, 2), (2, 2)),
                                      dimension_numbers=dn, precision=hi)
    y1 = y1 + c1b[None, :, None, None]
    x1 = jnp.maximum(jax.lax.reduce_window(
        y1, -jnp.inf, jax.lax.max, (1, 1, 2, 2), (1, 1, 2, 2), 'VALID'), 0.0)
    y2 = jax.lax.conv_general_dilated(x1, c2w, (1, 1), ((2, 2), (2, 2)),
                                      dimension_numbers=dn, precision=hi)
    y2 = y2 + c2b[None, :, None, None]
    x2 = jnp.maximum(jax.lax.reduce_window(
        y2, -jnp.inf, jax.lax.max, (1, 1, 2, 2), (1, 1, 2, 2), 'VALID'), 0.0)
    x3 = jnp.maximum(jnp.dot(x2.reshape(x.shape[0], -1), f1w.T, precision=hi) + f1b, 0.0)
    logits = jnp.dot(x3, f2w.T, precision=hi) + f2b
    return jax.nn.log_softmax(logits, axis=1), x1, x2, x3


def init_params(key, n_filters=10, filter_size=5, fc_units=50):
    ks = jax.random.split(key, 8)
    k = filter_size
    c1w = jax.random.normal(ks[0], (n_filters, 1, k, k), jnp.float32) / np.sqrt(k * k)
    c1b = 0.01 * jax.random.normal(ks[1], (n_filters,), jnp.float32)
    c2w = jax.random.normal(ks[2], (2 * n_filters, n_filters, k, k),
                            jnp.float32) / np.sqrt(n_filters * k * k)
    c2b = 0.01 * jax.random.normal(ks[3], (2 * n_filters,), jnp.float32)
    f1in = 2 * n_filters * 7 * 7
    f1w = jax.random.normal(ks[4], (fc_units, f1in), jnp.float32) / np.sqrt(f1in)
    f1b = 0.01 * jax.random.normal(ks[5], (fc_units,), jnp.float32)
    f2w = jax.random.normal(ks[6], (10, fc_units), jnp.float32) / np.sqrt(fc_units)
    f2b = 0.01 * jax.random.normal(ks[7], (10,), jnp.float32)
    return (c1w, c1b, c2w, c2b, f1w, f1b, f2w, f2b)


if __name__ == "__main__":
    key = jax.random.PRNGKey(0)
    kx, kp = jax.random.split(key)
    B = 48  # pads to 64 -> a 2-step "parallel" grid (TB=32) + batch padding
    x = jax.random.normal(kx, (B, 1, 28, 28), jnp.float32)
    params = init_params(kp)

    output, x1, x2, x3 = net2_forward(x, params)
    jax.block_until_ready((output, x1, x2, x3))

    assert output.shape == (B, 10)
    assert x1.shape == (B, _C1, 14, 14)
    assert x2.shape == (B, _C2, 7, 7)
    assert x3.shape == (B, _FC)
    assert bool(jnp.allclose(jnp.sum(jnp.exp(output), axis=1), 1.0, atol=1e-4))

    r_out, r_x1, r_x2, r_x3 = _net2_reference(x, params)
    # bf16 MXU matmuls in conv1/conv2/fc1 -> slightly looser tolerance than f32
    for got, ref in ((output, r_out), (x1, r_x1), (x2, r_x2), (x3, r_x3)):
        assert bool(jnp.allclose(got, ref, rtol=5e-2, atol=7.5e-2)), \
            float(jnp.max(jnp.abs(got - ref)))

    print("KERNEL_OK")
</pallas_src>

<mosaic_0001>
module attributes {stable_mosaic.version = 11 : i64} {
  func.func @_net2_kernel(%arg0: i32, %arg1: memref<2x2x224x160xbf16, #tpu.memory_space<vmem>>, %arg2: memref<2x160x140xbf16, #tpu.memory_space<vmem>>, %arg3: memref<1x140xf32, #tpu.memory_space<vmem>>, %arg4: memref<2x5x140x140xbf16, #tpu.memory_space<vmem>>, %arg5: memref<1x140xf32, #tpu.memory_space<vmem>>, %arg6: memref<7x140x50xbf16, #tpu.memory_space<vmem>>, %arg7: memref<1x50xf32, #tpu.memory_space<vmem>>, %arg8: memref<50x10xf32, #tpu.memory_space<vmem>>, %arg9: memref<1x10xf32, #tpu.memory_space<vmem>>, %arg10: memref<32x10xf32, #tpu.memory_space<vmem>>, %arg11: memref<2x288x140xbf16, #tpu.memory_space<vmem>>, %arg12: memref<224x140xbf16, #tpu.memory_space<vmem>>, %arg13: memref<32x50xf32, #tpu.memory_space<vmem>>) attributes {dimension_semantics = [#tpu.dimension_semantics<parallel>], iteration_bounds = array<i64: 2>, scalar_prefetch = 0 : i64, scratch_operands = 0 : i64, tpu.core_type = #tpu.core_type<tc>, window_params = [{transform_indices = @transform_0, window_bounds = array<i64: 2, 2, 224, 160>}, {pipeline_mode = #tpu.pipeline_mode<synchronous>, transform_indices = @transform_1, window_bounds = array<i64: 2, 160, 140>}, {pipeline_mode = #tpu.pipeline_mode<synchronous>, transform_indices = @transform_2, window_bounds = array<i64: 1, 140>}, {pipeline_mode = #tpu.pipeline_mode<synchronous>, transform_indices = @transform_3, window_bounds = array<i64: 2, 5, 140, 140>}, {pipeline_mode = #tpu.pipeline_mode<synchronous>, transform_indices = @transform_4, window_bounds = array<i64: 1, 140>}, {pipeline_mode = #tpu.pipeline_mode<synchronous>, transform_indices = @transform_5, window_bounds = array<i64: 7, 140, 50>}, {pipeline_mode = #tpu.pipeline_mode<synchronous>, transform_indices = @transform_6, window_bounds = array<i64: 1, 50>}, {pipeline_mode = #tpu.pipeline_mode<synchronous>, transform_indices = @transform_7, window_bounds = array<i64: 50, 10>}, {pipeline_mode = #tpu.pipeline_mode<synchronous>, transform_indices = @transform_8, window_bounds = array<i64: 1, 10>}, {transform_indices = @transform_9, window_bounds = array<i64: 32, 10>}, {transform_indices = @transform_10, window_bounds = array<i64: 2, 288, 140>}, {transform_indices = @transform_11, window_bounds = array<i64: 224, 140>}, {transform_indices = @transform_12, window_bounds = array<i64: 32, 50>}]} {
    %cst = arith.constant 0.000000e+00 : bf16
    %0 = vector.broadcast %cst : bf16 to vector<32x140xbf16>
    %c0 = arith.constant 0 : index
    %c0_0 = arith.constant 0 : index
    %c0_1 = arith.constant 0 : index
    %1 = vector.load %arg11[%c0, %c0_0, %c0_1] : memref<2x288x140xbf16, #tpu.memory_space<vmem>>, vector<1x32x140xbf16>
    %2 = vector.shape_cast %1 : vector<1x32x140xbf16> to vector<32x140xbf16>
    %3 = vector.shape_cast %0 : vector<32x140xbf16> to vector<1x32x140xbf16>
    tpu.vector_store %arg11[%c0, %c0_0, %c0_1], %3 {strides = array<i32>} : memref<2x288x140xbf16, #tpu.memory_space<vmem>>, vector<1x32x140xbf16>,
    %c0_2 = arith.constant 0 : index
    %c256 = arith.constant 256 : index
    %c0_3 = arith.constant 0 : index
    %4 = vector.load %arg11[%c0_2, %c256, %c0_3] : memref<2x288x140xbf16, #tpu.memory_space<vmem>>, vector<1x32x140xbf16>
    %5 = vector.shape_cast %4 : vector<1x32x140xbf16> to vector<32x140xbf16>
    %6 = vector.shape_cast %0 : vector<32x140xbf16> to vector<1x32x140xbf16>
    tpu.vector_store %arg11[%c0_2, %c256, %c0_3], %6 {strides = array<i32>} : memref<2x288x140xbf16, #tpu.memory_space<vmem>>, vector<1x32x140xbf16>,
    %c0_4 = arith.constant 0 : index
    %c0_5 = arith.constant 0 : index
    %c0_6 = arith.constant 0 : index
    %c0_7 = arith.constant 0 : index
    %7 = vector.load %arg1[%c0_4, %c0_5, %c0_6, %c0_7] : memref<2x2x224x160xbf16, #tpu.memory_space<vmem>>, vector<1x1x224x160xbf16>
    %8 = vector.shape_cast %7 : vector<1x1x224x160xbf16> to vector<224x160xbf16>
    %c0_8 = arith.constant 0 : index
    %c0_9 = arith.constant 0 : index
    %c0_10 = arith.constant 0 : index
    %9 = vector.load %arg2[%c0_8, %c0_9, %c0_10] : memref<2x160x140xbf16, #tpu.memory_space<vmem>>, vector<1x160x140xbf16>
    %10 = vector.shape_cast %9 : vector<1x160x140xbf16> to vector<160x140xbf16>
    %cst_11 = arith.constant dense<0.000000e+00> : vector<224x140xf32>
    %11 = tpu.matmul %8, %10, %cst_11 {dimension_numbers = #tpu.dot_dimension_numbers<[1], [0], [0], [1], [0, 0, 1, 1], [], []>} : vector<224x160xbf16>, vector<160x140xbf16>, vector<224x140xf32> -> vector<224x140xf32>
    %c1 = arith.constant 1 : index
    %c0_12 = arith.constant 0 : index
    %c0_13 = arith.constant 0 : index
    %12 = vector.load %arg2[%c1, %c0_12, %c0_13] : memref<2x160x140xbf16, #tpu.memory_space<vmem>>, vector<1x160x140xbf16>
    %13 = vector.shape_cast %12 : vector<1x160x140xbf16> to vector<160x140xbf16>
    %cst_14 = arith.constant dense<0.000000e+00> : vector<224x140xf32>
    %14 = tpu.matmul %8, %13, %cst_14 {dimension_numbers = #tpu.dot_dimension_numbers<[1], [0], [0], [1], [0, 0, 1, 1], [], []>} : vector<224x160xbf16>, vector<160x140xbf16>, vector<224x140xf32> -> vector<224x140xf32>
    %15 = arith.maximumf %11, %14 : vector<224x140xf32>
    %c0_15 = arith.constant 0 : index
    %c1_16 = arith.constant 1 : index
    %c0_17 = arith.constant 0 : index
    %c0_18 = arith.constant 0 : index
    %16 = vector.load %arg1[%c0_15, %c1_16, %c0_17, %c0_18] : memref<2x2x224x160xbf16, #tpu.memory_space<vmem>>, vector<1x1x224x160xbf16>
    %17 = vector.shape_cast %16 : vector<1x1x224x160xbf16> to vector<224x160xbf16>
    %c0_19 = arith.constant 0 : index
    %c0_20 = arith.constant 0 : index
    %c0_21 = arith.constant 0 : index
    %18 = vector.load %arg2[%c0_19, %c0_20, %c0_21] : memref<2x160x140xbf16, #tpu.memory_space<vmem>>, vector<1x160x140xbf16>
    %19 = vector.shape_cast %18 : vector<1x160x140xbf16> to vector<160x140xbf16>
    %cst_22 = arith.constant dense<0.000000e+00> : vector<224x140xf32>
    %20 = tpu.matmul %17, %19, %cst_22 {dimension_numbers = #tpu.dot_dimension_numbers<[1], [0], [0], [1], [0, 0, 1, 1], [], []>} : vector<224x160xbf16>, vector<160x140xbf16>, vector<224x140xf32> -> vector<224x140xf32>
    %21 = arith.maximumf %15, %20 : vector<224x140xf32>
    %c1_23 = arith.constant 1 : index
    %c0_24 = arith.constant 0 : index
    %c0_25 = arith.constant 0 : index
    %22 = vector.load %arg2[%c1_23, %c0_24, %c0_25] : memref<2x160x140xbf16, #tpu.memory_space<vmem>>, vector<1x160x140xbf16>
    %23 = vector.shape_cast %22 : vector<1x160x140xbf16> to vector<160x140xbf16>
    %cst_26 = arith.constant dense<0.000000e+00> : vector<224x140xf32>
    %24 = tpu.matmul %17, %23, %cst_26 {dimension_numbers = #tpu.dot_dimension_numbers<[1], [0], [0], [1], [0, 0, 1, 1], [], []>} : vector<224x160xbf16>, vector<160x140xbf16>, vector<224x140xf32> -> vector<224x140xf32>
    %25 = arith.maximumf %21, %24 : vector<224x140xf32>
    %c0_27 = arith.constant 0 : index
    %c0_28 = arith.constant 0 : index
    %26 = vector.load %arg3[%c0_27, %c0_28] : memref<1x140xf32, #tpu.memory_space<vmem>>, vector<1x140xf32>
    %27 = vector.broadcast %26 : vector<1x140xf32> to vector<224x140xf32>
    %28 = arith.addf %25, %27 : vector<224x140xf32>
    %cst_29 = arith.constant 0.000000e+00 : f32
    %29 = vector.broadcast %cst_29 : f32 to vector<224x140xf32>
    %30 = arith.maximumf %28, %29 : vector<224x140xf32>
    %31 = arith.truncf %30 : vector<224x140xf32> to vector<224x140xbf16>
    %c0_30 = arith.constant 0 : index
    %c32 = arith.constant 32 : index
    %c0_31 = arith.constant 0 : index
    %32 = vector.load %arg11[%c0_30, %c32, %c0_31] : memref<2x288x140xbf16, #tpu.memory_space<vmem>>, vector<1x224x140xbf16>
    %33 = vector.shape_cast %32 : vector<1x224x140xbf16> to vector<224x140xbf16>
    %34 = vector.shape_cast %31 : vector<224x140xbf16> to vector<1x224x140xbf16>
    tpu.vector_store %arg11[%c0_30, %c32, %c0_31], %34 {strides = array<i32>} : memref<2x288x140xbf16, #tpu.memory_space<vmem>>, vector<1x224x140xbf16>,
    %c1_32 = arith.constant 1 : index
    %c0_33 = arith.constant 0 : index
    %c0_34 = arith.constant 0 : index
    %35 = vector.load %arg11[%c1_32, %c0_33, %c0_34] : memref<2x288x140xbf16, #tpu.memory_space<vmem>>, vector<1x32x140xbf16>
    %36 = vector.shape_cast %35 : vector<1x32x140xbf16> to vector<32x140xbf16>
    %37 = vector.shape_cast %0 : vector<32x140xbf16> to vector<1x32x140xbf16>
    tpu.vector_store %arg11[%c1_32, %c0_33, %c0_34], %37 {strides = array<i32>} : memref<2x288x140xbf16, #tpu.memory_space<vmem>>, vector<1x32x140xbf16>,
    %c1_35 = arith.constant 1 : index
    %c256_36 = arith.constant 256 : index
    %c0_37 = arith.constant 0 : index
    %38 = vector.load %arg11[%c1_35, %c256_36, %c0_37] : memref<2x288x140xbf16, #tpu.memory_space<vmem>>, vector<1x32x140xbf16>
    %39 = vector.shape_cast %38 : vector<1x32x140xbf16> to vector<32x140xbf16>
    %40 = vector.shape_cast %0 : vector<32x140xbf16> to vector<1x32x140xbf16>
    tpu.vector_store %arg11[%c1_35, %c256_36, %c0_37], %40 {strides = array<i32>} : memref<2x288x140xbf16, #tpu.memory_space<vmem>>, vector<1x32x140xbf16>,
    %c1_38 = arith.constant 1 : index
    %c0_39 = arith.constant 0 : index
    %c0_40 = arith.constant 0 : index
    %c0_41 = arith.constant 0 : index
    %41 = vector.load %arg1[%c1_38, %c0_39, %c0_40, %c0_41] : memref<2x2x224x160xbf16, #tpu.memory_space<vmem>>, vector<1x1x224x160xbf16>
    %42 = vector.shape_cast %41 : vector<1x1x224x160xbf16> to vector<224x160xbf16>
    %c0_42 = arith.constant 0 : index
    %c0_43 = arith.constant 0 : index
    %c0_44 = arith.constant 0 : index
    %43 = vector.load %arg2[%c0_42, %c0_43, %c0_44] : memref<2x160x140xbf16, #tpu.memory_space<vmem>>, vector<1x160x140xbf16>
    %44 = vector.shape_cast %43 : vector<1x160x140xbf16> to vector<160x140xbf16>
    %cst_45 = arith.constant dense<0.000000e+00> : vector<224x140xf32>
    %45 = tpu.matmul %42, %44, %cst_45 {dimension_numbers = #tpu.dot_dimension_numbers<[1], [0], [0], [1], [0, 0, 1, 1], [], []>} : vector<224x160xbf16>, vector<160x140xbf16>, vector<224x140xf32> -> vector<224x140xf32>
    %c1_46 = arith.constant 1 : index
    %c0_47 = arith.constant 0 : index
    %c0_48 = arith.constant 0 : index
    %46 = vector.load %arg2[%c1_46, %c0_47, %c0_48] : memref<2x160x140xbf16, #tpu.memory_space<vmem>>, vector<1x160x140xbf16>
    %47 = vector.shape_cast %46 : vector<1x160x140xbf16> to vector<160x140xbf16>
    %cst_49 = arith.constant dense<0.000000e+00> : vector<224x140xf32>
    %48 = tpu.matmul %42, %47, %cst_49 {dimension_numbers = #tpu.dot_dimension_numbers<[1], [0], [0], [1], [0, 0, 1, 1], [], []>} : vector<224x160xbf16>, vector<160x140xbf16>, vector<224x140xf32> -> vector<224x140xf32>
    %49 = arith.maximumf %45, %48 : vector<224x140xf32>
    %c1_50 = arith.constant 1 : index
    %c1_51 = arith.constant 1 : index
    %c0_52 = arith.constant 0 : index
    %c0_53 = arith.constant 0 : index
    %50 = vector.load %arg1[%c1_50, %c1_51, %c0_52, %c0_53] : memref<2x2x224x160xbf16, #tpu.memory_space<vmem>>, vector<1x1x224x160xbf16>
    %51 = vector.shape_cast %50 : vector<1x1x224x160xbf16> to vector<224x160xbf16>
    %c0_54 = arith.constant 0 : index
    %c0_55 = arith.constant 0 : index
    %c0_56 = arith.constant 0 : index
    %52 = vector.load %arg2[%c0_54, %c0_55, %c0_56] : memref<2x160x140xbf16, #tpu.memory_space<vmem>>, vector<1x160x140xbf16>
    %53 = vector.shape_cast %52 : vector<1x160x140xbf16> to vector<160x140xbf16>
    %cst_57 = arith.constant dense<0.000000e+00> : vector<224x140xf32>
    %54 = tpu.matmul %51, %53, %cst_57 {dimension_numbers = #tpu.dot_dimension_numbers<[1], [0], [0], [1], [0, 0, 1, 1], [], []>} : vector<224x160xbf16>, vector<160x140xbf16>, vector<224x140xf32> -> vector<224x140xf32>
    %55 = arith.maximumf %49, %54 : vector<224x140xf32>
    %c1_58 = arith.constant 1 : index
    %c0_59 = arith.constant 0 : index
    %c0_60 = arith.constant 0 : index
    %56 = vector.load %arg2[%c1_58, %c0_59, %c0_60] : memref<2x160x140xbf16, #tpu.memory_space<vmem>>, vector<1x160x140xbf16>
    %57 = vector.shape_cast %56 : vector<1x160x140xbf16> to vector<160x140xbf16>
    %cst_61 = arith.constant dense<0.000000e+00> : vector<224x140xf32>
    %58 = tpu.matmul %51, %57, %cst_61 {dimension_numbers = #tpu.dot_dimension_numbers<[1], [0], [0], [1], [0, 0, 1, 1], [], []>} : vector<224x160xbf16>, vector<160x140xbf16>, vector<224x140xf32> -> vector<224x140xf32>
    %59 = arith.maximumf %55, %58 : vector<224x140xf32>
    %c0_62 = arith.constant 0 : index
    %c0_63 = arith.constant 0 : index
    %60 = vector.load %arg3[%c0_62, %c0_63] : memref<1x140xf32, #tpu.memory_space<vmem>>, vector<1x140xf32>
    %61 = vector.broadcast %60 : vector<1x140xf32> to vector<224x140xf32>
    %62 = arith.addf %59, %61 : vector<224x140xf32>
    %cst_64 = arith.constant 0.000000e+00 : f32
    %63 = vector.broadcast %cst_64 : f32 to vector<224x140xf32>
    %64 = arith.maximumf %62, %63 : vector<224x140xf32>
    %65 = arith.truncf %64 : vector<224x140xf32> to vector<224x140xbf16>
    %c1_65 = arith.constant 1 : index
    %c32_66 = arith.constant 32 : index
    %c0_67 = arith.constant 0 : index
    %66 = vector.load %arg11[%c1_65, %c32_66, %c0_67] : memref<2x288x140xbf16, #tpu.memory_space<vmem>>, vector<1x224x140xbf16>
    %67 = vector.shape_cast %66 : vector<1x224x140xbf16> to vector<224x140xbf16>
    %68 = vector.shape_cast %65 : vector<224x140xbf16> to vector<1x224x140xbf16>
    tpu.vector_store %arg11[%c1_65, %c32_66, %c0_67], %68 {strides = array<i32>} : memref<2x288x140xbf16, #tpu.memory_space<vmem>>, vector<1x224x140xbf16>,
    %c0_68 = arith.constant 0 : index
    %c0_69 = arith.constant 0 : index
    %c0_70 = arith.constant 0 : index
    %69 = vector.load %arg11[%c0_68, %c0_69, %c0_70] : memref<2x288x140xbf16, #tpu.memory_space<vmem>>, vector<1x224x140xbf16>
    %70 = vector.shape_cast %69 : vector<1x224x140xbf16> to vector<224x140xbf16>
    %c0_71 = arith.constant 0 : index
    %c0_72 = arith.constant 0 : index
    %c0_73 = arith.constant 0 : index
    %c0_74 = arith.constant 0 : index
    %71 = vector.load %arg4[%c0_71, %c0_72, %c0_73, %c0_74] : memref<2x5x140x140xbf16, #tpu.memory_space<vmem>>, vector<1x1x140x140xbf16>
    %72 = vector.shape_cast %71 : vector<1x1x140x140xbf16> to vector<140x140xbf16>
    %cst_75 = arith.constant dense<0.000000e+00> : vector<224x140xf32>
    %73 = tpu.matmul %70, %72, %cst_75 {dimension_numbers = #tpu.dot_dimension_numbers<[1], [0], [0], [1], [0, 0, 1, 1], [], []>} : vector<224x140xbf16>, vector<140x140xbf16>, vector<224x140xf32> -> vector<224x140xf32>
    %c1_76 = arith.constant 1 : index
    %c0_77 = arith.constant 0 : index
    %c0_78 = arith.constant 0 : index
    %74 = vector.load %arg11[%c1_76, %c0_77, %c0_78] : memref<2x288x140xbf16, #tpu.memory_space<vmem>>, vector<1x224x140xbf16>
    %75 = vector.shape_cast %74 : vector<1x224x140xbf16> to vector<224x140xbf16>
    %c0_79 = arith.constant 0 : index
    %c1_80 = arith.constant 1 : index
    %c0_81 = arith.constant 0 : index
    %c0_82 = arith.constant 0 : index
    %76 = vector.load %arg4[%c0_79, %c1_80, %c0_81, %c0_82] : memref<2x5x140x140xbf16, #tpu.memory_space<vmem>>, vector<1x1x140x140xbf16>
    %77 = vector.shape_cast %76 : vector<1x1x140x140xbf16> to vector<140x140xbf16>
    %cst_83 = arith.constant dense<0.000000e+00> : vector<224x140xf32>
    %78 = tpu.matmul %75, %77, %cst_83 {dimension_numbers = #tpu.dot_dimension_numbers<[1], [0], [0], [1], [0, 0, 1, 1], [], []>} : vector<224x140xbf16>, vector<140x140xbf16>, vector<224x140xf32> -> vector<224x140xf32>
    %79 = arith.addf %73, %78 : vector<224x140xf32>
    %c0_84 = arith.constant 0 : index
    %c32_85 = arith.constant 32 : index
    %c0_86 = arith.constant 0 : index
    %80 = vector.load %arg11[%c0_84, %c32_85, %c0_86] : memref<2x288x140xbf16, #tpu.memory_space<vmem>>, vector<1x224x140xbf16>
    %81 = vector.shape_cast %80 : vector<1x224x140xbf16> to vector<224x140xbf16>
    %c0_87 = arith.constant 0 : index
    %c2 = arith.constant 2 : index
    %c0_88 = arith.constant 0 : index
    %c0_89 = arith.constant 0 : index
    %82 = vector.load %arg4[%c0_87, %c2, %c0_88, %c0_89] : memref<2x5x140x140xbf16, #tpu.memory_space<vmem>>, vector<1x1x140x140xbf16>
    %83 = vector.shape_cast %82 : vector<1x1x140x140xbf16> to vector<140x140xbf16>
    %cst_90 = arith.constant dense<0.000000e+00> : vector<224x140xf32>
    %84 = tpu.matmul %81, %83, %cst_90 {dimension_numbers = #tpu.dot_dimension_numbers<[1], [0], [0], [1], [0, 0, 1, 1], [], []>} : vector<224x140xbf16>, vector<140x140xbf16>, vector<224x140xf32> -> vector<224x140xf32>
    %85 = arith.addf %79, %84 : vector<224x140xf32>
    %c1_91 = arith.constant 1 : index
    %c32_92 = arith.constant 32 : index
    %c0_93 = arith.constant 0 : index
    %86 = vector.load %arg11[%c1_91, %c32_92, %c0_93] : memref<2x288x140xbf16, #tpu.memory_space<vmem>>, vector<1x224x140xbf16>
    %87 = vector.shape_cast %86 : vector<1x224x140xbf16> to vector<224x140xbf16>
    %c0_94 = arith.constant 0 : index
    %c3 = arith.constant 3 : index
    %c0_95 = arith.constant 0 : index
    %c0_96 = arith.constant 0 : index
    %88 = vector.load %arg4[%c0_94, %c3, %c0_95, %c0_96] : memref<2x5x140x140xbf16, #tpu.memory_space<vmem>>, vector<1x1x140x140xbf16>
    %89 = vector.shape_cast %88 : vector<1x1x140x140xbf16> to vector<140x140xbf16>
    %cst_97 = arith.constant dense<0.000000e+00> : vector<224x140xf32>
    %90 = tpu.matmul %87, %89, %cst_97 {dimension_numbers = #tpu.dot_dimension_numbers<[1], [0], [0], [1], [0, 0, 1, 1], [], []>} : vector<224x140xbf16>, vector<140x140xbf16>, vector<224x140xf32> -> vector<224x140xf32>
    %91 = arith.addf %85, %90 : vector<224x140xf32>
    %c0_98 = arith.constant 0 : index
    %c64 = arith.constant 64 : index
    %c0_99 = arith.constant 0 : index
    %92 = vector.load %arg11[%c0_98, %c64, %c0_99] : memref<2x288x140xbf16, #tpu.memory_space<vmem>>, vector<1x224x140xbf16>
    %93 = vector.shape_cast %92 : vector<1x224x140xbf16> to vector<224x140xbf16>
    %c0_100 = arith.constant 0 : index
    %c4 = arith.constant 4 : index
    %c0_101 = arith.constant 0 : index
    %c0_102 = arith.constant 0 : index
    %94 = vector.load %arg4[%c0_100, %c4, %c0_101, %c0_102] : memref<2x5x140x140xbf16, #tpu.memory_space<vmem>>, vector<1x1x140x140xbf16>
    %95 = vector.shape_cast %94 : vector<1x1x140x140xbf16> to vector<140x140xbf16>
    %cst_103 = arith.constant dense<0.000000e+00> : vector<224x140xf32>
    %96 = tpu.matmul %93, %95, %cst_103 {dimension_numbers = #tpu.dot_dimension_numbers<[1], [0], [0], [1], [0, 0, 1, 1], [], []>} : vector<224x140xbf16>, vector<140x140xbf16>, vector<224x140xf32> -> vector<224x140xf32>
    %97 = arith.addf %91, %96 : vector<224x140xf32>
    %c0_104 = arith.constant 0 : index
    %c0_105 = arith.constant 0 : index
    %c0_106 = arith.constant 0 : index
    %98 = vector.load %arg11[%c0_104, %c0_105, %c0_106] : memref<2x288x140xbf16, #tpu.memory_space<vmem>>, vector<1x224x140xbf16>
    %99 = vector.shape_cast %98 : vector<1x224x140xbf16> to vector<224x140xbf16>
    %c1_107 = arith.constant 1 : index
    %c0_108 = arith.constant 0 : index
    %c0_109 = arith.constant 0 : index
    %c0_110 = arith.constant 0 : index
    %100 = vector.load %arg4[%c1_107, %c0_108, %c0_109, %c0_110] : memref<2x5x140x140xbf16, #tpu.memory_space<vmem>>, vector<1x1x140x140xbf16>
    %101 = vector.shape_cast %100 : vector<1x1x140x140xbf16> to vector<140x140xbf16>
    %cst_111 = arith.constant dense<0.000000e+00> : vector<224x140xf32>
    %102 = tpu.matmul %99, %101, %cst_111 {dimension_numbers = #tpu.dot_dimension_numbers<[1], [0], [0], [1], [0, 0, 1, 1], [], []>} : vector<224x140xbf16>, vector<140x140xbf16>, vector<224x140xf32> -> vector<224x140xf32>
    %c1_112 = arith.constant 1 : index
    %c0_113 = arith.constant 0 : index
    %c0_114 = arith.constant 0 : index
    %103 = vector.load %arg11[%c1_112, %c0_113, %c0_114] : memref<2x288x140xbf16, #tpu.memory_space<vmem>>, vector<1x224x140xbf16>
    %104 = vector.shape_cast %103 : vector<1x224x140xbf16> to vector<224x140xbf16>
    %c1_115 = arith.constant 1 : index
    %c1_116 = arith.constant 1 : index
    %c0_117 = arith.constant 0 : index
    %c0_118 = arith.constant 0 : index
    %105 = vector.load %arg4[%c1_115, %c1_116, %c0_117, %c0_118] : memref<2x5x140x140xbf16, #tpu.memory_space<vmem>>, vector<1x1x140x140xbf16>
    %106 = vector.shape_cast %105 : vector<1x1x140x140xbf16> to vector<140x140xbf16>
    %cst_119 = arith.constant dense<0.000000e+00> : vector<224x140xf32>
    %107 = tpu.matmul %104, %106, %cst_119 {dimension_numbers = #tpu.dot_dimension_numbers<[1], [0], [0], [1], [0, 0, 1, 1], [], []>} : vector<224x140xbf16>, vector<140x140xbf16>, vector<224x140xf32> -> vector<224x140xf32>
    %108 = arith.addf %102, %107 : vector<224x140xf32>
    %c0_120 = arith.constant 0 : index
    %c32_121 = arith.constant 32 : index
    %c0_122 = arith.constant 0 : index
    %109 = vector.load %arg11[%c0_120, %c32_121, %c0_122] : memref<2x288x140xbf16, #tpu.memory_space<vmem>>, vector<1x224x140xbf16>
    %110 = vector.shape_cast %109 : vector<1x224x140xbf16> to vector<224x140xbf16>
    %c1_123 = arith.constant 1 : index
    %c2_124 = arith.constant 2 : index
    %c0_125 = arith.constant 0 : index
    %c0_126 = arith.constant 0 : index
    %111 = vector.load %arg4[%c1_123, %c2_124, %c0_125, %c0_126] : memref<2x5x140x140xbf16, #tpu.memory_space<vmem>>, vector<1x1x140x140xbf16>
    %112 = vector.shape_cast %111 : vector<1x1x140x140xbf16> to vector<140x140xbf16>
    %cst_127 = arith.constant dense<0.000000e+00> : vector<224x140xf32>
    %113 = tpu.matmul %110, %112, %cst_127 {dimension_numbers = #tpu.dot_dimension_numbers<[1], [0], [0], [1], [0, 0, 1, 1], [], []>} : vector<224x140xbf16>, vector<140x140xbf16>, vector<224x140xf32> -> vector<224x140xf32>
    %114 = arith.addf %108, %113 : vector<224x140xf32>
    %c1_128 = arith.constant 1 : index
    %c32_129 = arith.constant 32 : index
    %c0_130 = arith.constant 0 : index
    %115 = vector.load %arg11[%c1_128, %c32_129, %c0_130] : memref<2x288x140xbf16, #tpu.memory_space<vmem>>, vector<1x224x140xbf16>
    %116 = vector.shape_cast %115 : vector<1x224x140xbf16> to vector<224x140xbf16>
    %c1_131 = arith.constant 1 : index
    %c3_132 = arith.constant 3 : index
    %c0_133 = arith.constant 0 : index
    %c0_134 = arith.constant 0 : index
    %117 = vector.load %arg4[%c1_131, %c3_132, %c0_133, %c0_134] : memref<2x5x140x140xbf16, #tpu.memory_space<vmem>>, vector<1x1x140x140xbf16>
    %118 = vector.shape_cast %117 : vector<1x1x140x140xbf16> to vector<140x140xbf16>
    %cst_135 = arith.constant dense<0.000000e+00> : vector<224x140xf32>
    %119 = tpu.matmul %116, %118, %cst_135 {dimension_numbers = #tpu.dot_dimension_numbers<[1], [0], [0], [1], [0, 0, 1, 1], [], []>} : vector<224x140xbf16>, vector<140x140xbf16>, vector<224x140xf32> -> vector<224x140xf32>
    %120 = arith.addf %114, %119 : vector<224x140xf32>
    %c0_136 = arith.constant 0 : index
    %c64_137 = arith.constant 64 : index
    %c0_138 = arith.constant 0 : index
    %121 = vector.load %arg11[%c0_136, %c64_137, %c0_138] : memref<2x288x140xbf16, #tpu.memory_space<vmem>>, vector<1x224x140xbf16>
    %122 = vector.shape_cast %121 : vector<1x224x140xbf16> to vector<224x140xbf16>
    %c1_139 = arith.constant 1 : index
    %c4_140 = arith.constant 4 : index
    %c0_141 = arith.constant 0 : index
    %c0_142 = arith.constant 0 : index
    %123 = vector.load %arg4[%c1_139, %c4_140, %c0_141, %c0_142] : memref<2x5x140x140xbf16, #tpu.memory_space<vmem>>, vector<1x1x140x140xbf16>
    %124 = vector.shape_cast %123 : vector<1x1x140x140xbf16> to vector<140x140xbf16>
    %cst_143 = arith.constant dense<0.000000e+00> : vector<224x140xf32>
    %125 = tpu.matmul %122, %124, %cst_143 {dimension_numbers = #tpu.dot_dimension_numbers<[1], [0], [0], [1], [0, 0, 1, 1], [], []>} : vector<224x140xbf16>, vector<140x140xbf16>, vector<224x140xf32> -> vector<224x140xf32>
    %126 = arith.addf %120, %125 : vector<224x140xf32>
    %127 = arith.maximumf %97, %126 : vector<224x140xf32>
    %c1_144 = arith.constant 1 : index
    %c0_145 = arith.constant 0 : index
    %c0_146 = arith.constant 0 : index
    %128 = vector.load %arg11[%c1_144, %c0_145, %c0_146] : memref<2x288x140xbf16, #tpu.memory_space<vmem>>, vector<1x224x140xbf16>
    %129 = vector.shape_cast %128 : vector<1x224x140xbf16> to vector<224x140xbf16>
    %c0_147 = arith.constant 0 : index
    %c0_148 = arith.constant 0 : index
    %c0_149 = arith.constant 0 : index
    %c0_150 = arith.constant 0 : index
    %130 = vector.load %arg4[%c0_147, %c0_148, %c0_149, %c0_150] : memref<2x5x140x140xbf16, #tpu.memory_space<vmem>>, vector<1x1x140x140xbf16>
    %131 = vector.shape_cast %130 : vector<1x1x140x140xbf16> to vector<140x140xbf16>
    %cst_151 = arith.constant dense<0.000000e+00> : vector<224x140xf32>
    %132 = tpu.matmul %129, %131, %cst_151 {dimension_numbers = #tpu.dot_dimension_numbers<[1], [0], [0], [1], [0, 0, 1, 1], [], []>} : vector<224x140xbf16>, vector<140x140xbf16>, vector<224x140xf32> -> vector<224x140xf32>
    %c0_152 = arith.constant 0 : index
    %c32_153 = arith.constant 32 : index
    %c0_154 = arith.constant 0 : index
    %133 = vector.load %arg11[%c0_152, %c32_153, %c0_154] : memref<2x288x140xbf16, #tpu.memory_space<vmem>>, vector<1x224x140xbf16>
    %134 = vector.shape_cast %133 : vector<1x224x140xbf16> to vector<224x140xbf16>
    %c0_155 = arith.constant 0 : index
    %c1_156 = arith.constant 1 : index
    %c0_157 = arith.constant 0 : index
    %c0_158 = arith.constant 0 : index
    %135 = vector.load %arg4[%c0_155, %c1_156, %c0_157, %c0_158] : memref<2x5x140x140xbf16, #tpu.memory_space<vmem>>, vector<1x1x140x140xbf16>
    %136 = vector.shape_cast %135 : vector<1x1x140x140xbf16> to vector<140x140xbf16>
    %cst_159 = arith.constant dense<0.000000e+00> : vector<224x140xf32>
    %137 = tpu.matmul %134, %136, %cst_159 {dimension_numbers = #tpu.dot_dimension_numbers<[1], [0], [0], [1], [0, 0, 1, 1], [], []>} : vector<224x140xbf16>, vector<140x140xbf16>, vector<224x140xf32> -> vector<224x140xf32>
    %138 = arith.addf %132, %137 : vector<224x140xf32>
    %c1_160 = arith.constant 1 : index
    %c32_161 = arith.constant 32 : index
    %c0_162 = arith.constant 0 : index
    %139 = vector.load %arg11[%c1_160, %c32_161, %c0_162] : memref<2x288x140xbf16, #tpu.memory_space<vmem>>, vector<1x224x140xbf16>
    %140 = vector.shape_cast %139 : vector<1x224x140xbf16> to vector<224x140xbf16>
    %c0_163 = arith.constant 0 : index
    %c2_164 = arith.constant 2 : index
    %c0_165 = arith.constant 0 : index
    %c0_166 = arith.constant 0 : index
    %141 = vector.load %arg4[%c0_163, %c2_164, %c0_165, %c0_166] : memref<2x5x140x140xbf16, #tpu.memory_space<vmem>>, vector<1x1x140x140xbf16>
    %142 = vector.shape_cast %141 : vector<1x1x140x140xbf16> to vector<140x140xbf16>
    %cst_167 = arith.constant dense<0.000000e+00> : vector<224x140xf32>
    %143 = tpu.matmul %140, %142, %cst_167 {dimension_numbers = #tpu.dot_dimension_numbers<[1], [0], [0], [1], [0, 0, 1, 1], [], []>} : vector<224x140xbf16>, vector<140x140xbf16>, vector<224x140xf32> -> vector<224x140xf32>
    %144 = arith.addf %138, %143 : vector<224x140xf32>
    %c0_168 = arith.constant 0 : index
    %c64_169 = arith.constant 64 : index
    %c0_170 = arith.constant 0 : index
    %145 = vector.load %arg11[%c0_168, %c64_169, %c0_170] : memref<2x288x140xbf16, #tpu.memory_space<vmem>>, vector<1x224x140xbf16>
    %146 = vector.shape_cast %145 : vector<1x224x140xbf16> to vector<224x140xbf16>
    %c0_171 = arith.constant 0 : index
    %c3_172 = arith.constant 3 : index
    %c0_173 = arith.constant 0 : index
    %c0_174 = arith.constant 0 : index
    %147 = vector.load %arg4[%c0_171, %c3_172, %c0_173, %c0_174] : memref<2x5x140x140xbf16, #tpu.memory_space<vmem>>, vector<1x1x140x140xbf16>
    %148 = vector.shape_cast %147 : vector<1x1x140x140xbf16> to vector<140x140xbf16>
    %cst_175 = arith.constant dense<0.000000e+00> : vector<224x140xf32>
    %149 = tpu.matmul %146, %148, %cst_175 {dimension_numbers = #tpu.dot_dimension_numbers<[1], [0], [0], [1], [0, 0, 1, 1], [], []>} : vector<224x140xbf16>, vector<140x140xbf16>, vector<224x140xf32> -> vector<224x140xf32>
    %150 = arith.addf %144, %149 : vector<224x140xf32>
    %c1_176 = arith.constant 1 : index
    %c64_177 = arith.constant 64 : index
    %c0_178 = arith.constant 0 : index
    %151 = vector.load %arg11[%c1_176, %c64_177, %c0_178] : memref<2x288x140xbf16, #tpu.memory_space<vmem>>, vector<1x224x140xbf16>
    %152 = vector.shape_cast %151 : vector<1x224x140xbf16> to vector<224x140xbf16>
    %c0_179 = arith.constant 0 : index
    %c4_180 = arith.constant 4 : index
    %c0_181 = arith.constant 0 : index
    %c0_182 = arith.constant 0 : index
    %153 = vector.load %arg4[%c0_179, %c4_180, %c0_181, %c0_182] : memref<2x5x140x140xbf16, #tpu.memory_space<vmem>>, vector<1x1x140x140xbf16>
    %154 = vector.shape_cast %153 : vector<1x1x140x140xbf16> to vector<140x140xbf16>
    %cst_183 = arith.constant dense<0.000000e+00> : vector<224x140xf32>
    %155 = tpu.matmul %152, %154, %cst_183 {dimension_numbers = #tpu.dot_dimension_numbers<[1], [0], [0], [1], [0, 0, 1, 1], [], []>} : vector<224x140xbf16>, vector<140x140xbf16>, vector<224x140xf32> -> vector<224x140xf32>
    %156 = arith.addf %150, %155 : vector<224x140xf32>
    %157 = arith.maximumf %127, %156 : vector<224x140xf32>
    %c1_184 = arith.constant 1 : index
    %c0_185 = arith.constant 0 : index
    %c0_186 = arith.constant 0 : index
    %158 = vector.load %arg11[%c1_184, %c0_185, %c0_186] : memref<2x288x140xbf16, #tpu.memory_space<vmem>>, vector<1x224x140xbf16>
    %159 = vector.shape_cast %158 : vector<1x224x140xbf16> to vector<224x140xbf16>
    %c1_187 = arith.constant 1 : index
    %c0_188 = arith.constant 0 : index
    %c0_189 = arith.constant 0 : index
    %c0_190 = arith.constant 0 : index
    %160 = vector.load %arg4[%c1_187, %c0_188, %c0_189, %c0_190] : memref<2x5x140x140xbf16, #tpu.memory_space<vmem>>, vector<1x1x140x140xbf16>
    %161 = vector.shape_cast %160 : vector<1x1x140x140xbf16> to vector<140x140xbf16>
    %cst_191 = arith.constant dense<0.000000e+00> : vector<224x140xf32>
    %162 = tpu.matmul %159, %161, %cst_191 {dimension_numbers = #tpu.dot_dimension_numbers<[1], [0], [0], [1], [0, 0, 1, 1], [], []>} : vector<224x140xbf16>, vector<140x140xbf16>, vector<224x140xf32> -> vector<224x140xf32>
    %c0_192 = arith.constant 0 : index
    %c32_193 = arith.constant 32 : index
    %c0_194 = arith.constant 0 : index
    %163 = vector.load %arg11[%c0_192, %c32_193, %c0_194] : memref<2x288x140xbf16, #tpu.memory_space<vmem>>, vector<1x224x140xbf16>
    %164 = vector.shape_cast %163 : vector<1x224x140xbf16> to vector<224x140xbf16>
    %c1_195 = arith.constant 1 : index
    %c1_196 = arith.constant 1 : index
    %c0_197 = arith.constant 0 : index
    %c0_198 = arith.constant 0 : index
    %165 = vector.load %arg4[%c1_195, %c1_196, %c0_197, %c0_198] : memref<2x5x140x140xbf16, #tpu.memory_space<vmem>>, vector<1x1x140x140xbf16>
    %166 = vector.shape_cast %165 : vector<1x1x140x140xbf16> to vector<140x140xbf16>
    %cst_199 = arith.constant dense<0.000000e+00> : vector<224x140xf32>
    %167 = tpu.matmul %164, %166, %cst_199 {dimension_numbers = #tpu.dot_dimension_numbers<[1], [0], [0], [1], [0, 0, 1, 1], [], []>} : vector<224x140xbf16>, vector<140x140xbf16>, vector<224x140xf32> -> vector<224x140xf32>
    %168 = arith.addf %162, %167 : vector<224x140xf32>
    %c1_200 = arith.constant 1 : index
    %c32_201 = arith.constant 32 : index
    %c0_202 = arith.constant 0 : index
    %169 = vector.load %arg11[%c1_200, %c32_201, %c0_202] : memref<2x288x140xbf16, #tpu.memory_space<vmem>>, vector<1x224x140xbf16>
    %170 = vector.shape_cast %169 : vector<1x224x140xbf16> to vector<224x140xbf16>
    %c1_203 = arith.constant 1 : index
    %c2_204 = arith.constant 2 : index
    %c0_205 = arith.constant 0 : index
    %c0_206 = arith.constant 0 : index
    %171 = vector.load %arg4[%c1_203, %c2_204, %c0_205, %c0_206] : memref<2x5x140x140xbf16, #tpu.memory_space<vmem>>, vector<1x1x140x140xbf16>
    %172 = vector.shape_cast %171 : vector<1x1x140x140xbf16> to vector<140x140xbf16>
    %cst_207 = arith.constant dense<0.000000e+00> : vector<224x140xf32>
    %173 = tpu.matmul %170, %172, %cst_207 {dimension_numbers = #tpu.dot_dimension_numbers<[1], [0], [0], [1], [0, 0, 1, 1], [], []>} : vector<224x140xbf16>, vector<140x140xbf16>, vector<224x140xf32> -> vector<224x140xf32>
    %174 = arith.addf %168, %173 : vector<224x140xf32>
    %c0_208 = arith.constant 0 : index
    %c64_209 = arith.constant 64 : index
    %c0_210 = arith.constant 0 : index
    %175 = vector.load %arg11[%c0_208, %c64_209, %c0_210] : memref<2x288x140xbf16, #tpu.memory_space<vmem>>, vector<1x224x140xbf16>
    %176 = vector.shape_cast %175 : vector<1x224x140xbf16> to vector<224x140xbf16>
    %c1_211 = arith.constant 1 : index
    %c3_212 = arith.constant 3 : index
    %c0_213 = arith.constant 0 : index
    %c0_214 = arith.constant 0 : index
    %177 = vector.load %arg4[%c1_211, %c3_212, %c0_213, %c0_214] : memref<2x5x140x140xbf16, #tpu.memory_space<vmem>>, vector<1x1x140x140xbf16>
    %178 = vector.shape_cast %177 : vector<1x1x140x140xbf16> to vector<140x140xbf16>
    %cst_215 = arith.constant dense<0.000000e+00> : vector<224x140xf32>
    %179 = tpu.matmul %176, %178, %cst_215 {dimension_numbers = #tpu.dot_dimension_numbers<[1], [0], [0], [1], [0, 0, 1, 1], [], []>} : vector<224x140xbf16>, vector<140x140xbf16>, vector<224x140xf32> -> vector<224x140xf32>
    %180 = arith.addf %174, %179 : vector<224x140xf32>
    %c1_216 = arith.constant 1 : index
    %c64_217 = arith.constant 64 : index
    %c0_218 = arith.constant 0 : index
    %181 = vector.load %arg11[%c1_216, %c64_217, %c0_218] : memref<2x288x140xbf16, #tpu.memory_space<vmem>>, vector<1x224x140xbf16>
    %182 = vector.shape_cast %181 : vector<1x224x140xbf16> to vector<224x140xbf16>
    %c1_219 = arith.constant 1 : index
    %c4_220 = arith.constant 4 : index
    %c0_221 = arith.constant 0 : index
    %c0_222 = arith.constant 0 : index
    %183 = vector.load %arg4[%c1_219, %c4_220, %c0_221, %c0_222] : memref<2x5x140x140xbf16, #tpu.memory_space<vmem>>, vector<1x1x140x140xbf16>
    %184 = vector.shape_cast %183 : vector<1x1x140x140xbf16> to vector<140x140xbf16>
    %cst_223 = arith.constant dense<0.000000e+00> : vector<224x140xf32>
    %185 = tpu.matmul %182, %184, %cst_223 {dimension_numbers = #tpu.dot_dimension_numbers<[1], [0], [0], [1], [0, 0, 1, 1], [], []>} : vector<224x140xbf16>, vector<140x140xbf16>, vector<224x140xf32> -> vector<224x140xf32>
    %186 = arith.addf %180, %185 : vector<224x140xf32>
    %187 = arith.maximumf %157, %186 : vector<224x140xf32>
    %c0_224 = arith.constant 0 : index
    %c0_225 = arith.constant 0 : index
    %188 = vector.load %arg5[%c0_224, %c0_225] : memref<1x140xf32, #tpu.memory_space<vmem>>, vector<1x140xf32>
    %189 = vector.broadcast %188 : vector<1x140xf32> to vector<224x140xf32>
    %190 = arith.addf %187, %189 : vector<224x140xf32>
    %cst_226 = arith.constant 0.000000e+00 : f32
    %191 = vector.broadcast %cst_226 : f32 to vector<224x140xf32>
    %192 = arith.maximumf %190, %191 : vector<224x140xf32>
    %193 = arith.truncf %192 : vector<224x140xf32> to vector<224x140xbf16>
    %c0_227 = arith.constant 0 : index
    %c0_228 = arith.constant 0 : index
    %194 = vector.load %arg12[%c0_227, %c0_228] : memref<224x140xbf16, #tpu.memory_space<vmem>>, vector<224x140xbf16>
    tpu.vector_store %arg12[%c0_227, %c0_228], %193 {strides = array<i32>} : memref<224x140xbf16, #tpu.memory_space<vmem>>, vector<224x140xbf16>,
    %cst_229 = arith.constant 0.000000e+00 : f32
    %195 = vector.broadcast %cst_229 : f32 to vector<32x50xf32>
    %c0_230 = arith.constant 0 : index
    %c0_231 = arith.constant 0 : index
    %196 = vector.load %arg12[%c0_230, %c0_231] : memref<224x140xbf16, #tpu.memory_space<vmem>>, vector<32x140xbf16>
    %c0_232 = arith.constant 0 : index
    %c0_233 = arith.constant 0 : index
    %c0_234 = arith.constant 0 : index
    %197 = vector.load %arg6[%c0_232, %c0_233, %c0_234] : memref<7x140x50xbf16, #tpu.memory_space<vmem>>, vector<1x140x50xbf16>
    %198 = vector.shape_cast %197 : vector<1x140x50xbf16> to vector<140x50xbf16>
    %cst_235 = arith.constant dense<0.000000e+00> : vector<32x50xf32>
    %199 = tpu.matmul %196, %198, %cst_235 {dimension_numbers = #tpu.dot_dimension_numbers<[1], [0], [0], [1], [0, 0, 1, 1], [], []>} : vector<32x140xbf16>, vector<140x50xbf16>, vector<32x50xf32> -> vector<32x50xf32>
    %200 = arith.addf %195, %199 : vector<32x50xf32>
    %c32_236 = arith.constant 32 : index
    %c0_237 = arith.constant 0 : index
    %201 = vector.load %arg12[%c32_236, %c0_237] : memref<224x140xbf16, #tpu.memory_space<vmem>>, vector<32x140xbf16>
    %c1_238 = arith.constant 1 : index
    %c0_239 = arith.constant 0 : index
    %c0_240 = arith.constant 0 : index
    %202 = vector.load %arg6[%c1_238, %c0_239, %c0_240] : memref<7x140x50xbf16, #tpu.memory_space<vmem>>, vector<1x140x50xbf16>
    %203 = vector.shape_cast %202 : vector<1x140x50xbf16> to vector<140x50xbf16>
    %cst_241 = arith.constant dense<0.000000e+00> : vector<32x50xf32>
    %204 = tpu.matmul %201, %203, %cst_241 {dimension_numbers = #tpu.dot_dimension_numbers<[1], [0], [0], [1], [0, 0, 1, 1], [], []>} : vector<32x140xbf16>, vector<140x50xbf16>, vector<32x50xf32> -> vector<32x50xf32>
    %205 = arith.addf %200, %204 : vector<32x50xf32>
    %c64_242 = arith.constant 64 : index
    %c0_243 = arith.constant 0 : index
    %206 = vector.load %arg12[%c64_242, %c0_243] : memref<224x140xbf16, #tpu.memory_space<vmem>>, vector<32x140xbf16>
    %c2_244 = arith.constant 2 : index
    %c0_245 = arith.constant 0 : index
    %c0_246 = arith.constant 0 : index
    %207 = vector.load %arg6[%c2_244, %c0_245, %c0_246] : memref<7x140x50xbf16, #tpu.memory_space<vmem>>, vector<1x140x50xbf16>
    %208 = vector.shape_cast %207 : vector<1x140x50xbf16> to vector<140x50xbf16>
    %cst_247 = arith.constant dense<0.000000e+00> : vector<32x50xf32>
    %209 = tpu.matmul %206, %208, %cst_247 {dimension_numbers = #tpu.dot_dimension_numbers<[1], [0], [0], [1], [0, 0, 1, 1], [], []>} : vector<32x140xbf16>, vector<140x50xbf16>, vector<32x50xf32> -> vector<32x50xf32>
    %210 = arith.addf %205, %209 : vector<32x50xf32>
    %c96 = arith.constant 96 : index
    %c0_248 = arith.constant 0 : index
    %211 = vector.load %arg12[%c96, %c0_248] : memref<224x140xbf16, #tpu.memory_space<vmem>>, vector<32x140xbf16>
    %c3_249 = arith.constant 3 : index
    %c0_250 = arith.constant 0 : index
    %c0_251 = arith.constant 0 : index
    %212 = vector.load %arg6[%c3_249, %c0_250, %c0_251] : memref<7x140x50xbf16, #tpu.memory_space<vmem>>, vector<1x140x50xbf16>
    %213 = vector.shape_cast %212 : vector<1x140x50xbf16> to vector<140x50xbf16>
    %cst_252 = arith.constant dense<0.000000e+00> : vector<32x50xf32>
    %214 = tpu.matmul %211, %213, %cst_252 {dimension_numbers = #tpu.dot_dimension_numbers<[1], [0], [0], [1], [0, 0, 1, 1], [], []>} : vector<32x140xbf16>, vector<140x50xbf16>, vector<32x50xf32> -> vector<32x50xf32>
    %215 = arith.addf %210, %214 : vector<32x50xf32>
    %c128 = arith.constant 128 : index
    %c0_253 = arith.constant 0 : index
    %216 = vector.load %arg12[%c128, %c0_253] : memref<224x140xbf16, #tpu.memory_space<vmem>>, vector<32x140xbf16>
    %c4_254 = arith.constant 4 : index
    %c0_255 = arith.constant 0 : index
    %c0_256 = arith.constant 0 : index
    %217 = vector.load %arg6[%c4_254, %c0_255, %c0_256] : memref<7x140x50xbf16, #tpu.memory_space<vmem>>, vector<1x140x50xbf16>
    %218 = vector.shape_cast %217 : vector<1x140x50xbf16> to vector<140x50xbf16>
    %cst_257 = arith.constant dense<0.000000e+00> : vector<32x50xf32>
    %219 = tpu.matmul %216, %218, %cst_257 {dimension_numbers = #tpu.dot_dimension_numbers<[1], [0], [0], [1], [0, 0, 1, 1], [], []>} : vector<32x140xbf16>, vector<140x50xbf16>, vector<32x50xf32> -> vector<32x50xf32>
    %220 = arith.addf %215, %219 : vector<32x50xf32>
    %c160 = arith.constant 160 : index
    %c0_258 = arith.constant 0 : index
    %221 = vector.load %arg12[%c160, %c0_258] : memref<224x140xbf16, #tpu.memory_space<vmem>>, vector<32x140xbf16>
    %c5 = arith.constant 5 : index
    %c0_259 = arith.constant 0 : index
    %c0_260 = arith.constant 0 : index
    %222 = vector.load %arg6[%c5, %c0_259, %c0_260] : memref<7x140x50xbf16, #tpu.memory_space<vmem>>, vector<1x140x50xbf16>
    %223 = vector.shape_cast %222 : vector<1x140x50xbf16> to vector<140x50xbf16>
    %cst_261 = arith.constant dense<0.000000e+00> : vector<32x50xf32>
    %224 = tpu.matmul %221, %223, %cst_261 {dimension_numbers = #tpu.dot_dimension_numbers<[1], [0], [0], [1], [0, 0, 1, 1], [], []>} : vector<32x140xbf16>, vector<140x50xbf16>, vector<32x50xf32> -> vector<32x50xf32>
    %225 = arith.addf %220, %224 : vector<32x50xf32>
    %c192 = arith.constant 192 : index
    %c0_262 = arith.constant 0 : index
    %226 = vector.load %arg12[%c192, %c0_262] : memref<224x140xbf16, #tpu.memory_space<vmem>>, vector<32x140xbf16>
    %c6 = arith.constant 6 : index
    %c0_263 = arith.constant 0 : index
    %c0_264 = arith.constant 0 : index
    %227 = vector.load %arg6[%c6, %c0_263, %c0_264] : memref<7x140x50xbf16, #tpu.memory_space<vmem>>, vector<1x140x50xbf16>
    %228 = vector.shape_cast %227 : vector<1x140x50xbf16> to vector<140x50xbf16>
    %cst_265 = arith.constant dense<0.000000e+00> : vector<32x50xf32>
    %229 = tpu.matmul %226, %228, %cst_265 {dimension_numbers = #tpu.dot_dimension_numbers<[1], [0], [0], [1], [0, 0, 1, 1], [], []>} : vector<32x140xbf16>, vector<140x50xbf16>, vector<32x50xf32> -> vector<32x50xf32>
    %230 = arith.addf %225, %229 : vector<32x50xf32>
    %c0_266 = arith.constant 0 : index
    %c0_267 = arith.constant 0 : index
    %231 = vector.load %arg7[%c0_266, %c0_267] : memref<1x50xf32, #tpu.memory_space<vmem>>, vector<1x50xf32>
    %232 = vector.broadcast %231 : vector<1x50xf32> to vector<32x50xf32>
    %233 = arith.addf %230, %232 : vector<32x50xf32>
    %cst_268 = arith.constant 0.000000e+00 : f32
    %234 = vector.broadcast %cst_268 : f32 to vector<32x50xf32>
    %235 = arith.maximumf %233, %234 : vector<32x50xf32>
    %c0_269 = arith.constant 0 : index
    %c0_270 = arith.constant 0 : index
    %236 = vector.load %arg13[%c0_269, %c0_270] : memref<32x50xf32, #tpu.memory_space<vmem>>, vector<32x50xf32>
    tpu.vector_store %arg13[%c0_269, %c0_270], %235 {strides = array<i32>} : memref<32x50xf32, #tpu.memory_space<vmem>>, vector<32x50xf32>,
    %c0_271 = arith.constant 0 : index
    %c0_272 = arith.constant 0 : index
    %237 = vector.load %arg8[%c0_271, %c0_272] : memref<50x10xf32, #tpu.memory_space<vmem>>, vector<50x10xf32>
    %cst_273 = arith.constant dense<0.000000e+00> : vector<32x10xf32>
    %238 = tpu.matmul %235, %237, %cst_273 {dimension_numbers = #tpu.dot_dimension_numbers<[1], [0], [0], [1], [0, 0, 1, 1], [], []>} : vector<32x50xf32>, vector<50x10xf32>, vector<32x10xf32> -> vector<32x10xf32>
    %c0_274 = arith.constant 0 : index
    %c0_275 = arith.constant 0 : index
    %239 = vector.load %arg9[%c0_274, %c0_275] : memref<1x10xf32, #tpu.memory_space<vmem>>, vector<1x10xf32>
    %240 = vector.broadcast %239 : vector<1x10xf32> to vector<32x10xf32>
    %241 = arith.addf %238, %240 : vector<32x10xf32>
    %cst_276 = arith.constant dense<0xFF800000> : vector<32xf32>
    %242 = vector.multi_reduction <maximumf>, %241, %cst_276 [1] : vector<32x10xf32> to vector<32xf32>
    %243 = vector.shape_cast %242 : vector<32xf32> to vector<32x1xf32>
    %244 = vector.broadcast %243 : vector<32x1xf32> to vector<32x10xf32>
    %245 = arith.subf %241, %244 : vector<32x10xf32>
    %246 = math.exp %245 : vector<32x10xf32>
    %cst_277 = arith.constant dense<0.000000e+00> : vector<32xf32>
    %247 = vector.multi_reduction <add>, %246, %cst_277 [1] : vector<32x10xf32> to vector<32xf32>
    %248 = vector.shape_cast %247 : vector<32xf32> to vector<32x1xf32>
    %249 = math.log %248 : vector<32x1xf32>
    %250 = vector.broadcast %249 : vector<32x1xf32> to vector<32x10xf32>
    %251 = arith.subf %245, %250 : vector<32x10xf32>
    %c0_278 = arith.constant 0 : index
    %c0_279 = arith.constant 0 : index
    %252 = vector.load %arg10[%c0_278, %c0_279] : memref<32x10xf32, #tpu.memory_space<vmem>>, vector<32x10xf32>
    tpu.vector_store %arg10[%c0_278, %c0_279], %251 {strides = array<i32>} : memref<32x10xf32, #tpu.memory_space<vmem>>, vector<32x10xf32>,
    return
  }
  func.func @transform_0(%arg0: i32) -> (i32, i32, i32, i32) {
    %c0_i32 = arith.constant 0 : i32
    %c0_i32_0 = arith.constant 0 : i32
    %c0_i32_1 = arith.constant 0 : i32
    %c0_i32_2 = arith.constant 0 : i32
    return %c0_i32, %c0_i32_0, %arg0, %c0_i32_1 : i32, i32, i32, i32
  }
  func.func @transform_1(%arg0: i32) -> (i32, i32, i32) {
    %c0_i32 = arith.constant 0 : i32
    %c0_i32_0 = arith.constant 0 : i32
    %c0_i32_1 = arith.constant 0 : i32
    %c0_i32_2 = arith.constant 0 : i32
    return %c0_i32, %c0_i32_0, %c0_i32_1 : i32, i32, i32
  }
  func.func @transform_2(%arg0: i32) -> (i32, i32) {
    %c0_i32 = arith.constant 0 : i32
    %c0_i32_0 = arith.constant 0 : i32
    %c0_i32_1 = arith.constant 0 : i32
    return %c0_i32, %c0_i32_0 : i32, i32
  }
  func.func @transform_3(%arg0: i32) -> (i32, i32, i32, i32) {
    %c0_i32 = arith.constant 0 : i32
    %c0_i32_0 = arith.constant 0 : i32
    %c0_i32_1 = arith.constant 0 : i32
    %c0_i32_2 = arith.constant 0 : i32
    %c0_i32_3 = arith.constant 0 : i32
    return %c0_i32, %c0_i32_0, %c0_i32_1, %c0_i32_2 : i32, i32, i32, i32
  }
  func.func @transform_4(%arg0: i32) -> (i32, i32) {
    %c0_i32 = arith.constant 0 : i32
    %c0_i32_0 = arith.constant 0 : i32
    %c0_i32_1 = arith.constant 0 : i32
    return %c0_i32, %c0_i32_0 : i32, i32
  }
  func.func @transform_5(%arg0: i32) -> (i32, i32, i32) {
    %c0_i32 = arith.constant 0 : i32
    %c0_i32_0 = arith.constant 0 : i32
    %c0_i32_1 = arith.constant 0 : i32
    %c0_i32_2 = arith.constant 0 : i32
    return %c0_i32, %c0_i32_0, %c0_i32_1 : i32, i32, i32
  }
  func.func @transform_6(%arg0: i32) -> (i32, i32) {
    %c0_i32 = arith.constant 0 : i32
    %c0_i32_0 = arith.constant 0 : i32
    %c0_i32_1 = arith.constant 0 : i32
    return %c0_i32, %c0_i32_0 : i32, i32
  }
  func.func @transform_7(%arg0: i32) -> (i32, i32) {
    %c0_i32 = arith.constant 0 : i32
    %c0_i32_0 = arith.constant 0 : i32
    %c0_i32_1 = arith.constant 0 : i32
    return %c0_i32, %c0_i32_0 : i32, i32
  }
  func.func @transform_8(%arg0: i32) -> (i32, i32) {
    %c0_i32 = arith.constant 0 : i32
    %c0_i32_0 = arith.constant 0 : i32
    %c0_i32_1 = arith.constant 0 : i32
    return %c0_i32, %c0_i32_0 : i32, i32
  }
  func.func @transform_9(%arg0: i32) -> (i32, i32) {
    %c0_i32 = arith.constant 0 : i32
    %c0_i32_0 = arith.constant 0 : i32
    return %arg0, %c0_i32 : i32, i32
  }
  func.func @transform_10(%arg0: i32) -> (i32, i32, i32) {
    %c0_i32 = arith.constant 0 : i32
    %c0_i32_0 = arith.constant 0 : i32
    %c0_i32_1 = arith.constant 0 : i32
    return %c0_i32, %arg0, %c0_i32_0 : i32, i32, i32
  }
  func.func @transform_11(%arg0: i32) -> (i32, i32) {
    %c0_i32 = arith.constant 0 : i32
    %c0_i32_0 = arith.constant 0 : i32
    return %arg0, %c0_i32 : i32, i32
  }
  func.func @transform_12(%arg0: i32) -> (i32, i32) {
    %c0_i32 = arith.constant 0 : i32
    %c0_i32_0 = arith.constant 0 : i32
    return %arg0, %c0_i32 : i32, i32
  }
}

</mosaic_0001>

<bundles_post_ra>
// kernel: tile.13
= control target key start
LH: loop header
LB: loop body
LE: loop exit
PB: predicated region body
PF: predicated region fallthrough
CT: control target
= control target key end

     0   :  { %s28_s0 = inlined_call_operand.vmem [shape: f32[10], index: 0, kind: input, shape index: {}]   ;;  %s29_s1 = inlined_call_operand.vmem [shape: f32[14,10], index: 1, kind: output, shape index: {}]  }
   0x1   :  { %v4_v0 = vld [vmem:[%s28_s0] ss:$0 sm:$0xff] }
   0x2   :  { %5 = vst [vmem:[%s29_s1] sm:$0xff] %v4_v0  ;;  %8 = vst [vmem:[%s29_s1 + $0x8] sm:$0xff] %v4_v0 }

// kernel: tile.14
= control target key start
LH: loop header
LB: loop body
LE: loop exit
PB: predicated region body
PF: predicated region fallthrough
CT: control target
= control target key end

     0   :  { %vm9_vm0 = vcmask 64512   ;;  %s130_s12 = smov 120   ;;  %s131_s13 = smov 100   ;;  %vm3_vm1 = vcmask 80896   ;;  %vm13_vm2 = vcmask 15360   ;;  %vm16_vm3 = vcmask 1048512   ;;  %s204_s0 = inlined_call_operand.vmem [shape: f32[14,10], index: 0, kind: input, shape index: {}]   ;;  %s205_s1 = inlined_call_operand.vmem [shape: f32[1,140], index: 1, kind: output, shape index: {}]  }
   0x1   :  { %v102_v0 = vld [vmem:[%s204_s0 + $0xc] sm:$0x1]   ;;  %v105_v3 = vld [vmem:[%s204_s0 + $0xa] sm:$0x1]   ;;  %v104_v4 = vld [vmem:[%s204_s0 + $0xb] sm:$0x1]  }
   0x2   :  { %v103_v1 = vld [vmem:[%s204_s0 + $0xc] sm:$0x1]   ;;  %26 = vrot.lane.b32.xlu1 %v105_v3, %s131_s13  ;;  %v106_v5 = vld [vmem:[%s204_s0 + $0x9] sm:$0x1]   ;;  %s132_s18 = smov 110   ;;  %s133_s19 = smov 90  }
   0x3   :  { %v10_v2 = vsel %vm9_vm0, %v103_v1, %v102_v0  ;;  %v107_v6 = vld [vmem:[%s204_s0 + $0x8] sm:$0x1]   ;;  %v108_v7 = vld [vmem:[%s204_s0 + $0x7] sm:$0x1]   ;;  %v2_v8 = vld [vmem:[%s204_s0] sm:$0x1]  }
   0x4   :  { %11 = vrot.lane.b32.xlu0 %v10_v2, %s130_s12  ;;  %4 = vst.msk [vmem:[#allocation0] sm:$0x1] %vm3_vm1, %v2_v8   ;;  %s134_s26 = smov 80   ;;  %s135_s27 = smov 70   ;;  %v109_v9 = vld [vmem:[%s204_s0 + $0x6] sm:$0x1]  }
   0x5   :  { %v110_v10 = vld [vmem:[%s204_s0 + $0x5] sm:$0x1]   ;;  %s136_s3 = smov 60   ;;  %s137_s4 = smov 50   ;;  %v111_v11 = vld [vmem:[%s204_s0 + $0x4] sm:$0x1]  }
   0x6   :  { %32 = vrot.lane.b32.xlu1 %v106_v5, %s133_s19  ;;  %v112_v12 = vld [vmem:[%s204_s0 + $0x3] sm:$0x1]   ;;  %s138_s9 = smov 40   ;;  %s139_s10 = smov 30   ;;  %v113_v13 = vld [vmem:[%s204_s0 + $0x2] sm:$0x1]  }
   0x7   :  { %v114_v14 = vld [vmem:[%s204_s0 + $0x1] sm:$0x1]   ;;  %s140_s15 = smov 20   ;;  %s141_s16 = smov 10   ;;  %v115_v15 = vld [vmem:[%s204_s0 + $0xd] sm:$0x1]  }
   0x8   :  { %20 = vrot.lane.b32.xlu0 %v104_v4, %s132_s18  ;;  %s142_s0 = smov 2   ;;  %vm22_vm4 = vcmask 982896   ;;  %vm28_vm5 = vcmask 900896   ;;  %vm34_vm6 = vcmask 818896   ;;  %vm40_vm7 = vcmask 736896  }
   0x9   :  { %vm46_vm8 = vcmask 654896   ;;  %vm52_vm9 = vcmask 572896   ;;  %vm58_vm10 = vcmask 490896   ;;  %vm64_vm11 = vcmask 408896  }
   0xa   :  { %44 = vrot.lane.b32.xlu1 %v108_v7, %s135_s27  ;;  %vm70_vm12 = vcmask 326896   ;;  %vm76_vm13 = vcmask 244896   ;;  %vm82_vm14 = vcmask 162896   ;;  %vm88_vm15 = vcmask 97296  }
   0xc   :  { %38 = vrot.lane.b32.xlu0 %v107_v6, %s134_s26 }
   0xe   :  { %56 = vrot.lane.b32.xlu1 %v110_v10, %s137_s4 }
  0x10   :  { %50 = vrot.lane.b32.xlu0 %v109_v9, %s136_s3 }
  0x12   :  { %68 = vrot.lane.b32.xlu1 %v112_v12, %s139_s10 }
  0x14   :  { %62 = vrot.lane.b32.xlu0 %v111_v11, %s138_s9 }
  0x16   :  { %80 = vrot.lane.b32.xlu1 %v114_v14, %s141_s16 }
  0x18   :  { %74 = vrot.lane.b32.xlu0 %v113_v13, %s140_s15 }
  0x1c   :  { %86 = vrot.lane.b32.xlu0 %v115_v15, %s142_s0 }
  0x74   :  { %v27_v17 = vpop.permute.xlu1 %26  }
  0x76   :  { %v12_v16 = vpop.permute.xlu0 %11  }
  0x77   :  { %15 = vst.msk [vmem:[#allocation0 + $0x8] sm:$0x1] %vm13_vm2, %v12_v16  }
  0x78   :  { %17 = vst.msk [vmem:[#allocation0] sm:$0x1] %vm16_vm3, %v12_v16   ;;  %v33_v19 = vpop.permute.xlu1 %32  }
  0x7a   :  { %v21_v18 = vpop.permute.xlu0 %20  }
  0x7b   :  { %23 = vst.msk [vmem:[#allocation0] sm:$0x1] %vm22_vm4, %v21_v18  }
  0x7c   :  { %29 = vst.msk [vmem:[#allocation0] sm:$0x1] %vm28_vm5, %v27_v17   ;;  %v45_v21 = vpop.permute.xlu1 %44  }
  0x7d   :  { %35 = vst.msk [vmem:[#allocation0] sm:$0x1] %vm34_vm6, %v33_v19  }
  0x7e   :  { %v39_v20 = vpop.permute.xlu0 %38  }
  0x7f   :  { %41 = vst.msk [vmem:[#allocation0] sm:$0x1] %vm40_vm7, %v39_v20  }
  0x80   :  { %47 = vst.msk [vmem:[#allocation0] sm:$0x1] %vm46_vm8, %v45_v21   ;;  %v57_v23 = vpop.permute.xlu1 %56  }
  0x82   :  { %v51_v22 = vpop.permute.xlu0 %50  }
  0x83   :  { %53 = vst.msk [vmem:[#allocation0] sm:$0x1] %vm52_vm9, %v51_v22  }
  0x84   :  { %59 = vst.msk [vmem:[#allocation0] sm:$0x1] %vm58_vm10, %v57_v23   ;;  %v69_v25 = vpop.permute.xlu1 %68  }
  0x86   :  { %v63_v24 = vpop.permute.xlu0 %62  }
  0x87   :  { %65 = vst.msk [vmem:[#allocation0] sm:$0x1] %vm64_vm11, %v63_v24  }
  0x88   :  { %71 = vst.msk [vmem:[#allocation0] sm:$0x1] %vm70_vm12, %v69_v25   ;;  %v81_v27 = vpop.permute.xlu1 %80  }
  0x8a   :  { %v75_v26 = vpop.permute.xlu0 %74  }
  0x8b   :  { %77 = vst.msk [vmem:[#allocation0] sm:$0x1] %vm76_vm13, %v75_v26  }
  0x8c   :  { %83 = vst.msk [vmem:[#allocation0] sm:$0x1] %vm82_vm14, %v81_v27  }
  0x8e   :  { %v87_v28 = vpop.permute.xlu0 %86  }
  0x8f   :  { %90 = vst.msk [vmem:[#allocation0 + $0x8] sm:$0x1] %vm88_vm15, %v87_v28  }
  0x93   :  { %v94_v29 = vld [vmem:[#allocation0] sm:$0x1] }
  0x94   :  { %96 = vst [vmem:[%s205_s1] sm:$0x1] %v94_v29 }
  0x96   :  { %v98_v30 = vld [vmem:[#allocation0 + $0x8] sm:$0x1] }
  0x97   :  { %116 = vst [vmem:[%s205_s1 + $0x1] sm:$0x1] %v98_v30 }

// kernel: tile.18
= control target key start
LH: loop header
LB: loop body
LE: loop exit
PB: predicated region body
PF: predicated region fallthrough
CT: control target
= control target key end

     0   :  { %s22_s0 = inlined_call_operand.vmem [shape: f32[20], index: 0, kind: input, shape index: {}]   ;;  %s23_s1 = inlined_call_operand.vmem [shape: f32[7,20], index: 1, kind: output, shape index: {}]  }
   0x1   :  { %v4_v0 = vld [vmem:[%s22_s0] ss:$0 sm:$0xff] }
   0x2   :  { %5 = vst [vmem:[%s23_s1] sm:$0xff] %v4_v0 }

// kernel: tile.19
= control target key start
LH: loop header
LB: loop body
LE: loop exit
PB: predicated region body
PF: predicated region fallthrough
CT: control target
= control target key end

     0   :  { %vm9_vm0 = vcmask 64512   ;;  %s73_s12 = smov 120   ;;  %s74_s13 = smov 80   ;;  %vm3_vm1 = vcmask 162816   ;;  %vm13_vm2 = vcmask 97280   ;;  %vm16_vm3 = vcmask 1048512   ;;  %s119_s0 = inlined_call_operand.vmem [shape: f32[7,20], index: 0, kind: input, shape index: {}]   ;;  %s120_s1 = inlined_call_operand.vmem [shape: f32[1,140], index: 1, kind: output, shape index: {}]  }
   0x1   :  { %v59_v0 = vld [vmem:[%s119_s0 + $0x6] sm:$0x1]   ;;  %v62_v3 = vld [vmem:[%s119_s0 + $0x4] sm:$0x1]   ;;  %v61_v4 = vld [vmem:[%s119_s0 + $0x5] sm:$0x1]  }
   0x2   :  { %v60_v1 = vld [vmem:[%s119_s0 + $0x6] sm:$0x1]   ;;  %26 = vrot.lane.b32.xlu1 %v62_v3, %s74_s13  ;;  %v63_v5 = vld [vmem:[%s119_s0 + $0x3] sm:$0x1]   ;;  %v2_v6 = vld [vmem:[%s119_s0] sm:$0x1]  }
   0x3   :  { %v10_v2 = vsel %vm9_vm0, %v60_v1, %v59_v0  ;;  %4 = vst.msk [vmem:[#allocation0] sm:$0x1] %vm3_vm1, %v2_v6   ;;  %s75_s20 = smov 100   ;;  %s76_s21 = smov 60   ;;  %v64_v7 = vld [vmem:[%s119_s0 + $0x2] sm:$0x1]  }
   0x4   :  { %11 = vrot.lane.b32.xlu0 %v10_v2, %s73_s12  ;;  %v65_v8 = vld [vmem:[%s119_s0 + $0x1] sm:$0x1]   ;;  %s77_s0 = smov 40   ;;  %s78_s26 = smov 20   ;;  %vm22_vm4 = vcmask 982816   ;;  %vm28_vm5 = vcmask 818816  }
   0x5   :  { %vm34_vm6 = vcmask 654816   ;;  %vm40_vm7 = vcmask 490816   ;;  %vm46_vm8 = vcmask 326816  }
   0x6   :  { %32 = vrot.lane.b32.xlu1 %v63_v5, %s76_s21 }
   0x8   :  { %20 = vrot.lane.b32.xlu0 %v61_v4, %s75_s20 }
   0xa   :  { %44 = vrot.lane.b32.xlu1 %v65_v8, %s78_s26 }
   0xc   :  { %38 = vrot.lane.b32.xlu0 %v64_v7, %s77_s0 }
  0x74   :  { %v27_v10 = vpop.permute.xlu1 %26  }
  0x76   :  { %v12_v9 = vpop.permute.xlu0 %11  }
  0x77   :  { %15 = vst.msk [vmem:[#allocation0 + $0x8] sm:$0x1] %vm13_vm2, %v12_v9  }
  0x78   :  { %17 = vst.msk [vmem:[#allocation0] sm:$0x1] %vm16_vm3, %v12_v9   ;;  %v33_v12 = vpop.permute.xlu1 %32  }
  0x7a   :  { %v21_v11 = vpop.permute.xlu0 %20  }
  0x7b   :  { %23 = vst.msk [vmem:[#allocation0] sm:$0x1] %vm22_vm4, %v21_v11  }
  0x7c   :  { %29 = vst.msk [vmem:[#allocation0] sm:$0x1] %vm28_vm5, %v27_v10   ;;  %v45_v15 = vpop.permute.xlu1 %44  }
  0x7d   :  { %35 = vst.msk [vmem:[#allocation0] sm:$0x1] %vm34_vm6, %v33_v12  }
  0x7e   :  { %v55_v13 = vld [vmem:[#allocation0 + $0x8] sm:$0x1]  ;;  %v39_v14 = vpop.permute.xlu0 %38  }
  0x7f   :  { %66 = vst [vmem:[%s120_s1 + $0x1] sm:$0x1] %v55_v13  ;;  %41 = vst.msk [vmem:[#allocation0] sm:$0x1] %vm40_vm7, %v39_v14  }
  0x80   :  { %47 = vst.msk [vmem:[#allocation0] sm:$0x1] %vm46_vm8, %v45_v15  }
  0x87   :  { %v51_v16 = vld [vmem:[#allocation0] sm:$0x1] }
  0x88   :  { %53 = vst [vmem:[%s120_s1] sm:$0x1] %v51_v16 }

// kernel: net2_forward.1
= control target key start
LH: loop header
LB: loop body
LE: loop exit
PB: predicated region body
PF: predicated region fallthrough
CT: control target
= control target key end

     0   :  { %s17207_s21 = smov 0   ;;  %s17209_s22 = smov 0   ;;  %s22715_s0 = inlined_call_operand.vmem [shape: bf16[2,2,448,160], index: 0, kind: input, shape index: {}]   ;;  %s22716_s1 = inlined_call_operand.vmem [shape: bf16[2,160,140], index: 1, kind: input, shape index: {}]   ;;  %s22717_s2 = inlined_call_operand.vmem [shape: f32[1,140], index: 2, kind: input, shape index: {}]   ;;  %s22718_s3 = inlined_call_operand.vmem [shape: bf16[2,5,140,140], index: 3, kind: input, shape index: {}]   ;;  %s22719_s4 = inlined_call_operand.vmem [shape: f32[1,140], index: 4, kind: input, shape index: {}]   ;;  %s22720_s5 = inlined_call_operand.vmem [shape: bf16[7,140,50], index: 5, kind: input, shape index: {}]   ;;  %s22721_s6 = inlined_call_operand.vmem [shape: f32[1,50], index: 6, kind: input, shape index: {}]   ;;  %s22722_s7 = inlined_call_operand.vmem [shape: f32[50,10], index: 7, kind: input, shape index: {}]   ;;  %s22723_s8 = inlined_call_operand.vmem [shape: f32[1,10], index: 8, kind: input, shape index: {}]   ;;  %s22724_s9 = inlined_call_operand.vmem [shape: f32[64,10], index: 9, kind: output, shape index: {0}]   ;;  %s22725_s10 = inlined_call_operand.vmem [shape: bf16[2,576,140], index: 10, kind: output, shape index: {1}]   ;;  %s22726_s11 = inlined_call_operand.vmem [shape: bf16[448,140], index: 11, kind: output, shape index: {2}]   ;;  %s22727_s12 = inlined_call_operand.vmem [shape: f32[64,50], index: 12, kind: output, shape index: {3}]  }
   0x1   :  { %s17211_s23 = smov 0  }
   0x2 LB: > { %s17223_s24 = sadd.s32 4294967295, %s17139_s23   ;;  %s17226_s25 = sadd.s32 1, %s17139_s23   ;;  %s17139_s23 = sphi %s17211_s23, %s23534_s23   ;;  %s17135_s22 = sphi %s17209_s22, %s23533_s22   ;;  %s17131_s21 = sphi %s17207_s21, %s23532_s21  }
   0x3   : > { %s27_s26 = ssub.s32 %s17139_s23, %s17226_s25  ;;  %s30_s27 = sadd.s32 1, %s17135_s22 }
   0x4   : > { %p28_p0 = scmp.eq.s32.totalorder %s27_s26, 0  ;;  %p37_p1 = scmp.ne.s32.totalorder %s17135_s22, %s17131_s21 }
   0x5   : > { %p38_p2 = scmp.eq.s32.totalorder %s17139_s23, 0  ;;  %p261_p3 = scmp.eq.s32.totalorder %s17223_s24, 1 }
   0x6   : > { %s17236_s28 = scalar_select %p28_p0, %s17135_s22, %s30_s27  }
   0x7   : > { %p39_p4 = por %p38_p2, %p37_p1  ;;  %p17238_p5 = por %p261_p3, %p37_p1 }
   0x8   : > { %p13270_p6 = scmp.ge.s32.totalorder %s17139_s23, 2 }
   0xa   : > { %359 = sbr.rel (%p13270_p6) target bundleno = 78 (0x4e), region = 48 }
  0x11   : > { %362 = sbr.rel (!%p39_p4) target bundleno = 78 (0x4e), region = 52  ;;  %s364_s30 = sand.u32 (%p39_p4), 1, %s17135_s22  }
  0x12   : > { %s15035_s13 = smul.u32 (%p39_p4), 224, %s17139_s23 }
  0x13   : > { %s15976_s14 = smul.u32 (%p39_p4), 896, %s364_s30 }
  0x14   : > { %s17248_s17 = scalar_lea.vmem (%p39_p4), %s22715_s0, %s15035_s13 }
  0x15   : > { %v620_v0 = vld [vmem:[%s17248_s17] sm:$0xff] (%p39_p4)  ;;  %v622_v1 = vld [vmem:[%s17248_s17 + $0x8] sm:$0xff] (%p39_p4)  ;;  %v624_v2 = vld [vmem:[%s17248_s17 + $0x10] sm:$0xff] (%p39_p4)  ;;  %s17253_s18 = scalar_lea.vmem (%p39_p4), [#allocation2], %s15976_s14 }
  0x16   : > { %621 = vst [vmem:[%s17253_s18] sm:$0xff] (%p39_p4), %v620_v0  ;;  %623 = vst [vmem:[%s17253_s18 + $0x8] sm:$0xff] (%p39_p4), %v622_v1  ;;  %v626_v3 = vld [vmem:[%s17248_s17 + $0x18] sm:$0xff] (%p39_p4)  ;;  %v628_v4 = vld [vmem:[%s17248_s17 + $0x20] sm:$0xff] (%p39_p4) }
  0x17   : > { %625 = vst [vmem:[%s17253_s18 + $0x10] sm:$0xff] (%p39_p4), %v624_v2  ;;  %v630_v5 = vld [vmem:[%s17248_s17 + $0x28] sm:$0xff] (%p39_p4)  ;;  %627 = vst [vmem:[%s17253_s18 + $0x18] sm:$0xff] (%p39_p4), %v626_v3  ;;  %v632_v6 = vld [vmem:[%s17248_s17 + $0x30] sm:$0xff] (%p39_p4) }
  0x18   : > { %629 = vst [vmem:[%s17253_s18 + $0x20] sm:$0xff] %v628_v4  ;;  %631 = vst [vmem:[%s17253_s18 + $0x28] sm:$0xff] %v630_v5  ;;  %v634_v7 = vld [vmem:[%s17248_s17 + $0x38] sm:$0xff]  ;;  %v636_v8 = vld [vmem:[%s17248_s17 + $0x40] sm:$0xff] }
  0x19   : > { %633 = vst [vmem:[%s17253_s18 + $0x30] sm:$0xff] %v632_v6  ;;  %635 = vst [vmem:[%s17253_s18 + $0x38] sm:$0xff] %v634_v7  ;;  %v638_v9 = vld [vmem:[%s17248_s17 + $0x48] sm:$0xff]  ;;  %v640_v10 = vld [vmem:[%s17248_s17 + $0x50] sm:$0xff] }
  0x1a   : > { %637 = vst [vmem:[%s17253_s18 + $0x40] sm:$0xff] %v636_v8  ;;  %v642_v11 = vld [vmem:[%s17248_s17 + $0x58] sm:$0xff]  ;;  %639 = vst [vmem:[%s17253_s18 + $0x48] sm:$0xff] %v638_v9  ;;  %v644_v12 = vld [vmem:[%s17248_s17 + $0x60] sm:$0xff] }
  0x1b   : > { %641 = vst [vmem:[%s17253_s18 + $0x50] sm:$0xff] %v640_v10  ;;  %643 = vst [vmem:[%s17253_s18 + $0x58] sm:$0xff] %v642_v11  ;;  %v646_v13 = vld [vmem:[%s17248_s17 + $0x68] sm:$0xff]  ;;  %v648_v14 = vld [vmem:[%s17248_s17 + $0x70] sm:$0xff] }
  0x1c   : > { %645 = vst [vmem:[%s17253_s18 + $0x60] sm:$0xff] %v644_v12  ;;  %647 = vst [vmem:[%s17253_s18 + $0x68] sm:$0xff] %v646_v13  ;;  %v650_v15 = vld [vmem:[%s17248_s17 + $0x78] sm:$0xff]  ;;  %v652_v16 = vld [vmem:[%s17248_s17 + $0x80] sm:$0xff] }
  0x1d   : > { %649 = vst [vmem:[%s17253_s18 + $0x70] sm:$0xff] %v648_v14  ;;  %v654_v17 = vld [vmem:[%s17248_s17 + $0x88] sm:$0xff]  ;;  %651 = vst [vmem:[%s17253_s18 + $0x78] sm:$0xff] %v650_v15  ;;  %v656_v18 = vld [vmem:[%s17248_s17 + $0x90] sm:$0xff] }
  0x1e   : > { %653 = vst [vmem:[%s17253_s18 + $0x80] sm:$0xff] %v652_v16  ;;  %655 = vst [vmem:[%s17253_s18 + $0x88] sm:$0xff] %v654_v17  ;;  %v658_v19 = vld [vmem:[%s17248_s17 + $0x98] sm:$0xff]  ;;  %v660_v20 = vld [vmem:[%s17248_s17 + $0xa0] sm:$0xff] }
  0x1f   : > { %657 = vst [vmem:[%s17253_s18 + $0x90] sm:$0xff] %v656_v18  ;;  %659 = vst [vmem:[%s17253_s18 + $0x98] sm:$0xff] %v658_v19  ;;  %v662_v21 = vld [vmem:[%s17248_s17 + $0xa8] sm:$0xff]  ;;  %v664_v22 = vld [vmem:[%s17248_s17 + $0xb0] sm:$0xff] }
  0x20   : > { %661 = vst [vmem:[%s17253_s18 + $0xa0] sm:$0xff] %v660_v20  ;;  %v666_v23 = vld [vmem:[%s17248_s17 + $0xb8] sm:$0xff]  ;;  %663 = vst [vmem:[%s17253_s18 + $0xa8] sm:$0xff] %v662_v21  ;;  %v668_v24 = vld [vmem:[%s17248_s17 + $0xc0] sm:$0xff] }
  0x21   : > { %665 = vst [vmem:[%s17253_s18 + $0xb0] sm:$0xff] %v664_v22  ;;  %667 = vst [vmem:[%s17253_s18 + $0xb8] sm:$0xff] %v666_v23  ;;  %v670_v25 = vld [vmem:[%s17248_s17 + $0xc8] sm:$0xff]  ;;  %v672_v26 = vld [vmem:[%s17248_s17 + $0xd0] sm:$0xff] }
  0x22   : > { %669 = vst [vmem:[%s17253_s18 + $0xc0] sm:$0xff] %v668_v24  ;;  %671 = vst [vmem:[%s17253_s18 + $0xc8] sm:$0xff] %v670_v25  ;;  %v674_v27 = vld [vmem:[%s17248_s17 + $0xd8] sm:$0xff]  ;;  %v676_v28 = vld [vmem:[%s17248_s17 + $0x1c0] sm:$0xff] }
  0x23   : > { %673 = vst [vmem:[%s17253_s18 + $0xd0] sm:$0xff] %v672_v26  ;;  %v678_v29 = vld [vmem:[%s17248_s17 + $0x1c8] sm:$0xff]  ;;  %675 = vst [vmem:[%s17253_s18 + $0xd8] sm:$0xff] %v674_v27  ;;  %v680_v30 = vld [vmem:[%s17248_s17 + $0x1d0] sm:$0xff] }
  0x24   : > { %677 = vst [vmem:[%s17253_s18 + $0xe0] sm:$0xff] %v676_v28  ;;  %679 = vst [vmem:[%s17253_s18 + $0xe8] sm:$0xff] %v678_v29  ;;  %v682_v31 = vld [vmem:[%s17248_s17 + $0x1d8] sm:$0xff]  ;;  %v684_v32 = vld [vmem:[%s17248_s17 + $0x1e0] sm:$0xff] }
  0x25   : > { %681 = vst [vmem:[%s17253_s18 + $0xf0] sm:$0xff] %v680_v30  ;;  %683 = vst [vmem:[%s17253_s18 + $0xf8] sm:$0xff] %v682_v31  ;;  %v686_v33 = vld [vmem:[%s17248_s17 + $0x1e8] sm:$0xff]  ;;  %v688_v34 = vld [vmem:[%s17248_s17 + $0x1f0] sm:$0xff] }
  0x26   : > { %685 = vst [vmem:[%s17253_s18 + $0x100] sm:$0xff] %v684_v32  ;;  %v690_v35 = vld [vmem:[%s17248_s17 + $0x1f8] sm:$0xff]  ;;  %687 = vst [vmem:[%s17253_s18 + $0x108] sm:$0xff] %v686_v33  ;;  %v692_v36 = vld [vmem:[%s17248_s17 + $0x200] sm:$0xff] }
  0x27   : > { %689 = vst [vmem:[%s17253_s18 + $0x110] sm:$0xff] %v688_v34  ;;  %691 = vst [vmem:[%s17253_s18 + $0x118] sm:$0xff] %v690_v35  ;;  %v694_v37 = vld [vmem:[%s17248_s17 + $0x208] sm:$0xff]  ;;  %v696_v38 = vld [vmem:[%s17248_s17 + $0x210] sm:$0xff] }
  0x28   : > { %693 = vst [vmem:[%s17253_s18 + $0x120] sm:$0xff] %v692_v36  ;;  %695 = vst [vmem:[%s17253_s18 + $0x128] sm:$0xff] %v694_v37  ;;  %v698_v39 = vld [vmem:[%s17248_s17 + $0x218] sm:$0xff]  ;;  %v700_v40 = vld [vmem:[%s17248_s17 + $0x220] sm:$0xff] }
  0x29   : > { %697 = vst [vmem:[%s17253_s18 + $0x130] sm:$0xff] %v696_v38  ;;  %v702_v41 = vld [vmem:[%s17248_s17 + $0x228] sm:$0xff]  ;;  %699 = vst [vmem:[%s17253_s18 + $0x138] sm:$0xff] %v698_v39  ;;  %v704_v42 = vld [vmem:[%s17248_s17 + $0x230] sm:$0xff] }
  0x2a   : > { %701 = vst [vmem:[%s17253_s18 + $0x140] sm:$0xff] %v700_v40  ;;  %703 = vst [vmem:[%s17253_s18 + $0x148] sm:$0xff] %v702_v41  ;;  %v706_v43 = vld [vmem:[%s17248_s17 + $0x238] sm:$0xff]  ;;  %v708_v44 = vld [vmem:[%s17248_s17 + $0x240] sm:$0xff] }
  0x2b   : > { %705 = vst [vmem:[%s17253_s18 + $0x150] sm:$0xff] %v704_v42  ;;  %707 = vst [vmem:[%s17253_s18 + $0x158] sm:$0xff] %v706_v43  ;;  %v710_v45 = vld [vmem:[%s17248_s17 + $0x248] sm:$0xff]  ;;  %v712_v46 = vld [vmem:[%s17248_s17 + $0x250] sm:$0xff] }
  0x2c   : > { %709 = vst [vmem:[%s17253_s18 + $0x160] sm:$0xff] %v708_v44  ;;  %v714_v47 = vld [vmem:[%s17248_s17 + $0x258] sm:$0xff]  ;;  %711 = vst [vmem:[%s17253_s18 + $0x168] sm:$0xff] %v710_v45  ;;  %v716_v48 = vld [vmem:[%s17248_s17 + $0x260] sm:$0xff] }
  0x2d   : > { %713 = vst [vmem:[%s17253_s18 + $0x170] sm:$0xff] %v712_v46  ;;  %715 = vst [vmem:[%s17253_s18 + $0x178] sm:$0xff] %v714_v47  ;;  %v718_v49 = vld [vmem:[%s17248_s17 + $0x268] sm:$0xff]  ;;  %v720_v50 = vld [vmem:[%s17248_s17 + $0x270] sm:$0xff] }
  0x2e   : > { %717 = vst [vmem:[%s17253_s18 + $0x180] sm:$0xff] %v716_v48  ;;  %719 = vst [vmem:[%s17253_s18 + $0x188] sm:$0xff] %v718_v49  ;;  %v722_v51 = vld [vmem:[%s17248_s17 + $0x278] sm:$0xff]  ;;  %v724_v52 = vld [vmem:[%s17248_s17 + $0x280] sm:$0xff] }
  0x2f   : > { %721 = vst [vmem:[%s17253_s18 + $0x190] sm:$0xff] %v720_v50  ;;  %v726_v53 = vld [vmem:[%s17248_s17 + $0x288] sm:$0xff]  ;;  %723 = vst [vmem:[%s17253_s18 + $0x198] sm:$0xff] %v722_v51  ;;  %v728_v54 = vld [vmem:[%s17248_s17 + $0x290] sm:$0xff] }
  0x30   : > { %725 = vst [vmem:[%s17253_s18 + $0x1a0] sm:$0xff] %v724_v52  ;;  %727 = vst [vmem:[%s17253_s18 + $0x1a8] sm:$0xff] %v726_v53  ;;  %v730_v55 = vld [vmem:[%s17248_s17 + $0x298] sm:$0xff]  ;;  %v732_v56 = vld [vmem:[%s17248_s17 + $0x380] sm:$0xff] }
  0x31   : > { %729 = vst [vmem:[%s17253_s18 + $0x1b0] sm:$0xff] %v728_v54  ;;  %731 = vst [vmem:[%s17253_s18 + $0x1b8] sm:$0xff] %v730_v55  ;;  %v734_v57 = vld [vmem:[%s17248_s17 + $0x388] sm:$0xff]  ;;  %v736_v58 = vld [vmem:[%s17248_s17 + $0x390] sm:$0xff] }
  0x32   : > { %733 = vst [vmem:[%s17253_s18 + $0x1c0] sm:$0xff] %v732_v56  ;;  %v738_v59 = vld [vmem:[%s17248_s17 + $0x398] sm:$0xff]  ;;  %735 = vst [vmem:[%s17253_s18 + $0x1c8] sm:$0xff] %v734_v57  ;;  %v740_v60 = vld [vmem:[%s17248_s17 + $0x3a0] sm:$0xff] }
  0x33   : > { %737 = vst [vmem:[%s17253_s18 + $0x1d0] sm:$0xff] %v736_v58  ;;  %739 = vst [vmem:[%s17253_s18 + $0x1d8] sm:$0xff] %v738_v59  ;;  %v742_v61 = vld [vmem:[%s17248_s17 + $0x3a8] sm:$0xff]  ;;  %v744_v62 = vld [vmem:[%s17248_s17 + $0x3b0] sm:$0xff] }
  0x34   : > { %741 = vst [vmem:[%s17253_s18 + $0x1e0] sm:$0xff] %v740_v60  ;;  %743 = vst [vmem:[%s17253_s18 + $0x1e8] sm:$0xff] %v742_v61  ;;  %v746_v63 = vld [vmem:[%s17248_s17 + $0x3b8] sm:$0xff]  ;;  %v748_v0 = vld [vmem:[%s17248_s17 + $0x3c0] sm:$0xff] }
  0x35   : > { %745 = vst [vmem:[%s17253_s18 + $0x1f0] sm:$0xff] %v744_v62  ;;  %v750_v1 = vld [vmem:[%s17248_s17 + $0x3c8] sm:$0xff]  ;;  %747 = vst [vmem:[%s17253_s18 + $0x1f8] sm:$0xff] %v746_v63  ;;  %v752_v2 = vld [vmem:[%s17248_s17 + $0x3d0] sm:$0xff] }
  0x36   : > { %749 = vst [vmem:[%s17253_s18 + $0x200] sm:$0xff] %v748_v0  ;;  %751 = vst [vmem:[%s17253_s18 + $0x208] sm:$0xff] %v750_v1  ;;  %v754_v3 = vld [vmem:[%s17248_s17 + $0x3d8] sm:$0xff]  ;;  %v756_v4 = vld [vmem:[%s17248_s17 + $0x3e0] sm:$0xff] }
  0x37   : > { %753 = vst [vmem:[%s17253_s18 + $0x210] sm:$0xff] %v752_v2  ;;  %755 = vst [vmem:[%s17253_s18 + $0x218] sm:$0xff] %v754_v3  ;;  %v758_v5 = vld [vmem:[%s17248_s17 + $0x3e8] sm:$0xff]  ;;  %v760_v6 = vld [vmem:[%s17248_s17 + $0x3f0] sm:$0xff] }
  0x38   : > { %757 = vst [vmem:[%s17253_s18 + $0x220] sm:$0xff] %v756_v4  ;;  %v762_v7 = vld [vmem:[%s17248_s17 + $0x3f8] sm:$0xff]  ;;  %759 = vst [vmem:[%s17253_s18 + $0x228] sm:$0xff] %v758_v5  ;;  %v764_v8 = vld [vmem:[%s17248_s17 + $0x400] sm:$0xff] }
  0x39   : > { %761 = vst [vmem:[%s17253_s18 + $0x230] sm:$0xff] %v760_v6  ;;  %763 = vst [vmem:[%s17253_s18 + $0x238] sm:$0xff] %v762_v7  ;;  %v766_v9 = vld [vmem:[%s17248_s17 + $0x408] sm:$0xff]  ;;  %v768_v10 = vld [vmem:[%s17248_s17 + $0x410] sm:$0xff] }
  0x3a   : > { %765 = vst [vmem:[%s17253_s18 + $0x240] sm:$0xff] %v764_v8  ;;  %767 = vst [vmem:[%s17253_s18 + $0x248] sm:$0xff] %v766_v9  ;;  %v770_v11 = vld [vmem:[%s17248_s17 + $0x418] sm:$0xff]  ;;  %v772_v12 = vld [vmem:[%s17248_s17 + $0x420] sm:$0xff] }
  0x3b   : > { %769 = vst [vmem:[%s17253_s18 + $0x250] sm:$0xff] %v768_v10  ;;  %v774_v13 = vld [vmem:[%s17248_s17 + $0x428] sm:$0xff]  ;;  %771 = vst [vmem:[%s17253_s18 + $0x258] sm:$0xff] %v770_v11  ;;  %v776_v14 = vld [vmem:[%s17248_s17 + $0x430] sm:$0xff] }
  0x3c   : > { %773 = vst [vmem:[%s17253_s18 + $0x260] sm:$0xff] %v772_v12  ;;  %775 = vst [vmem:[%s17253_s18 + $0x268] sm:$0xff] %v774_v13  ;;  %v778_v15 = vld [vmem:[%s17248_s17 + $0x438] sm:$0xff]  ;;  %v780_v16 = vld [vmem:[%s17248_s17 + $0x440] sm:$0xff] }
  0x3d   : > { %777 = vst [vmem:[%s17253_s18 + $0x270] sm:$0xff] %v776_v14  ;;  %779 = vst [vmem:[%s17253_s18 + $0x278] sm:$0xff] %v778_v15  ;;  %v782_v17 = vld [vmem:[%s17248_s17 + $0x448] sm:$0xff]  ;;  %v784_v18 = vld [vmem:[%s17248_s17 + $0x450] sm:$0xff] }
  0x3e   : > { %781 = vst [vmem:[%s17253_s18 + $0x280] sm:$0xff] %v780_v16  ;;  %v786_v19 = vld [vmem:[%s17248_s17 + $0x458] sm:$0xff]  ;;  %783 = vst [vmem:[%s17253_s18 + $0x288] sm:$0xff] %v782_v17  ;;  %v788_v20 = vld [vmem:[%s17248_s17 + $0x540] sm:$0xff] }
  0x3f   : > { %785 = vst [vmem:[%s17253_s18 + $0x290] sm:$0xff] %v784_v18  ;;  %787 = vst [vmem:[%s17253_s18 + $0x298] sm:$0xff] %v786_v19  ;;  %v790_v21 = vld [vmem:[%s17248_s17 + $0x548] sm:$0xff]  ;;  %v792_v22 = vld [vmem:[%s17248_s17 + $0x550] sm:$0xff] }
  0x40   : > { %789 = vst [vmem:[%s17253_s18 + $0x2a0] sm:$0xff] %v788_v20  ;;  %791 = vst [vmem:[%s17253_s18 + $0x2a8] sm:$0xff] %v790_v21  ;;  %v794_v23 = vld [vmem:[%s17248_s17 + $0x558] sm:$0xff]  ;;  %v796_v24 = vld [vmem:[%s17248_s17 + $0x560] sm:$0xff] }
  0x41   : > { %793 = vst [vmem:[%s17253_s18 + $0x2b0] sm:$0xff] %v792_v22  ;;  %v798_v25 = vld [vmem:[%s17248_s17 + $0x568] sm:$0xff]  ;;  %795 = vst [vmem:[%s17253_s18 + $0x2b8] sm:$0xff] %v794_v23  ;;  %v800_v26 = vld [vmem:[%s17248_s17 + $0x570] sm:$0xff] }
  0x42   : > { %797 = vst [vmem:[%s17253_s18 + $0x2c0] sm:$0xff] %v796_v24  ;;  %799 = vst [vmem:[%s17253_s18 + $0x2c8] sm:$0xff] %v798_v25  ;;  %v802_v27 = vld [vmem:[%s17248_s17 + $0x578] sm:$0xff]  ;;  %v804_v28 = vld [vmem:[%s17248_s17 + $0x580] sm:$0xff] }
  0x43   : > { %801 = vst [vmem:[%s17253_s18 + $0x2d0] sm:$0xff] %v800_v26  ;;  %803 = vst [vmem:[%s17253_s18 + $0x2d8] sm:$0xff] %v802_v27  ;;  %v806_v29 = vld [vmem:[%s17248_s17 + $0x588] sm:$0xff]  ;;  %v808_v30 = vld [vmem:[%s17248_s17 + $0x590] sm:$0xff] }
  0x44   : > { %805 = vst [vmem:[%s17253_s18 + $0x2e0] sm:$0xff] %v804_v28  ;;  %v810_v31 = vld [vmem:[%s17248_s17 + $0x598] sm:$0xff]  ;;  %807 = vst [vmem:[%s17253_s18 + $0x2e8] sm:$0xff] %v806_v29  ;;  %v812_v32 = vld [vmem:[%s17248_s17 + $0x5a0] sm:$0xff] }
  0x45   : > { %809 = vst [vmem:[%s17253_s18 + $0x2f0] sm:$0xff] %v808_v30  ;;  %811 = vst [vmem:[%s17253_s18 + $0x2f8] sm:$0xff] %v810_v31  ;;  %v814_v33 = vld [vmem:[%s17248_s17 + $0x5a8] sm:$0xff]  ;;  %v816_v34 = vld [vmem:[%s17248_s17 + $0x5b0] sm:$0xff] }
  0x46   : > { %813 = vst [vmem:[%s17253_s18 + $0x300] sm:$0xff] %v812_v32  ;;  %815 = vst [vmem:[%s17253_s18 + $0x308] sm:$0xff] %v814_v33  ;;  %v818_v35 = vld [vmem:[%s17248_s17 + $0x5b8] sm:$0xff]  ;;  %v820_v36 = vld [vmem:[%s17248_s17 + $0x5c0] sm:$0xff] }
  0x47   : > { %817 = vst [vmem:[%s17253_s18 + $0x310] sm:$0xff] %v816_v34  ;;  %v822_v37 = vld [vmem:[%s17248_s17 + $0x5c8] sm:$0xff]  ;;  %819 = vst [vmem:[%s17253_s18 + $0x318] sm:$0xff] %v818_v35  ;;  %v824_v38 = vld [vmem:[%s17248_s17 + $0x5d0] sm:$0xff] }
  0x48   : > { %821 = vst [vmem:[%s17253_s18 + $0x320] sm:$0xff] %v820_v36  ;;  %823 = vst [vmem:[%s17253_s18 + $0x328] sm:$0xff] %v822_v37  ;;  %v826_v39 = vld [vmem:[%s17248_s17 + $0x5d8] sm:$0xff]  ;;  %v828_v40 = vld [vmem:[%s17248_s17 + $0x5e0] sm:$0xff] }
  0x49   : > { %825 = vst [vmem:[%s17253_s18 + $0x330] sm:$0xff] %v824_v38  ;;  %827 = vst [vmem:[%s17253_s18 + $0x338] sm:$0xff] %v826_v39  ;;  %v830_v41 = vld [vmem:[%s17248_s17 + $0x5e8] sm:$0xff]  ;;  %v832_v42 = vld [vmem:[%s17248_s17 + $0x5f0] sm:$0xff] }
  0x4a   : > { %829 = vst [vmem:[%s17253_s18 + $0x340] sm:$0xff] %v828_v40  ;;  %v834_v43 = vld [vmem:[%s17248_s17 + $0x5f8] sm:$0xff]  ;;  %831 = vst [vmem:[%s17253_s18 + $0x348] sm:$0xff] %v830_v41  ;;  %v836_v44 = vld [vmem:[%s17248_s17 + $0x600] sm:$0xff] }
  0x4b   : > { %833 = vst [vmem:[%s17253_s18 + $0x350] sm:$0xff] %v832_v42  ;;  %835 = vst [vmem:[%s17253_s18 + $0x358] sm:$0xff] %v834_v43  ;;  %v838_v45 = vld [vmem:[%s17248_s17 + $0x608] sm:$0xff]  ;;  %v840_v46 = vld [vmem:[%s17248_s17 + $0x610] sm:$0xff] }
  0x4c   : > { %837 = vst [vmem:[%s17253_s18 + $0x360] sm:$0xff] %v836_v44  ;;  %839 = vst [vmem:[%s17253_s18 + $0x368] sm:$0xff] %v838_v45  ;;  %v842_v47 = vld [vmem:[%s17248_s17 + $0x618] sm:$0xff] }
  0x4d   : > { %841 = vst [vmem:[%s17253_s18 + $0x370] sm:$0xff] %v840_v46  ;;  %843 = vst [vmem:[%s17253_s18 + $0x378] sm:$0xff] %v842_v47 }
  0x4e PF: > { %p13273_p7 = scmp.ge.s32.totalorder %s17139_s23, 1  ;;  %p848_p8 = scmp.lt.s32.totalorder %s17139_s23, 3 }
  0x50   : > { %p849_p9 = pnand %p13273_p7, %p848_p8 }
  0x52   : > { %852 = sbr.rel (%p849_p9) target bundleno = 2817 (0xb01), region = 90 }
  0x59   : > { %v17481_v48 = vld [vmem:[%s22716_s1 + $0x4] ss:$8 sps:$4 sm:$0xff]   ;;  %v17492_v50 = vld [vmem:[%s22716_s1] ss:$8 sps:$4 sm:$0xff]   ;;  %v17503_v52 = vld [vmem:[%s22716_s1 + $0x14] ss:$8 sps:$4 sm:$0xff]  }
  0x5a   : > { %v17486_v49 = vld [vmem:[%s22716_s1 + $0xa4] ss:$8 sps:$4 sm:$0xff]   ;;  %1261 = vmatprep.subr.bf16.mxu0 %v17481_v48  ;;  %v17497_v51 = vld [vmem:[%s22716_s1 + $0xa0] ss:$8 sps:$4 sm:$0xff]   ;;  %v17510_v53 = vld [vmem:[%s22716_s1 + $0xb4] ss:$8 sps:$4 sm:$0xff]  }
  0x5b   : > { %1555 = vmatprep.subr.bf16.mxu1 %v17486_v49  ;;  %1262 = vmatpush1.bf16.msra.mxu0 %v17492_v50  ;;  %v17515_v54 = vld [vmem:[%s22716_s1 + $0x10] ss:$8 sps:$4 sm:$0xff]   ;;  %v17527_v56 = vld [vmem:[%s22716_s1 + $0x24] ss:$8 sps:$4 sm:$0xff]   ;;  %v17537_v58 = vld [vmem:[%s22716_s1 + $0x20] ss:$8 sps:$4 sm:$0xff]  }
  0x5c   : > { %1556 = vmatpush1.bf16.msra.mxu1 %v17497_v51  ;;  %1263 = vmatprep.subr.bf16.mxu0 %v17503_v52  ;;  %v17521_v55 = vld [vmem:[%s22716_s1 + $0xb0] ss:$8 sps:$4 sm:$0xff]   ;;  %v17532_v57 = vld [vmem:[%s22716_s1 + $0xc4] ss:$8 sps:$4 sm:$0xff]   ;;  %v17542_v59 = vld [vmem:[%s22716_s1 + $0xc0] ss:$8 sps:$4 sm:$0xff]  }
  0x5d   : > { %1557 = vmatprep.subr.bf16.mxu1 %v17510_v53  ;;  %v17549_v60 = vld [vmem:[%s22716_s1 + $0x34] ss:$8 sps:$4 sm:$0xff]   ;;  %v17561_v62 = vld [vmem:[%s22716_s1 + $0x30] ss:$8 sps:$4 sm:$0xff]   ;;  %v17573_v0 = vld [vmem:[%s22716_s1 + $0x44] ss:$8 sps:$4 sm:$0xff]  }
  0x5e   : > { %v17556_v61 = vld [vmem:[%s22716_s1 + $0xd4] ss:$8 sps:$4 sm:$0xff]   ;;  %v17568_v63 = vld [vmem:[%s22716_s1 + $0xd0] ss:$8 sps:$4 sm:$0xff]   ;;  %v17580_v1 = vld [vmem:[%s22716_s1 + $0xe4] ss:$8 sps:$4 sm:$0xff]  }
  0x5f   : > { %1264 = vmatpush1.bf16.msra.mxu0 %v17515_v54  ;;  %v17585_v2 = vld [vmem:[%s22716_s1 + $0x40] ss:$8 sps:$4 sm:$0xff]   ;;  %v17597_v4 = vld [vmem:[%s22716_s1 + $0x54] ss:$8 sps:$4 sm:$0xff]   ;;  %s855_s15 = sand.u32 1, %s17131_s21   ;;  %vm1218_vm0 = vcmask 261120  }
  0x60   : > { %1558 = vmatpush1.bf16.msra.mxu1 %v17521_v55  ;;  %1265 = vmatprep.subr.bf16.mxu0 %v17527_v56  ;;  %v17590_v3 = vld [vmem:[%s22716_s1 + $0xe0] ss:$8 sps:$4 sm:$0xff]   ;;  %v17604_v5 = vld [vmem:[%s22716_s1 + $0xf4] ss:$8 sps:$4 sm:$0xff]   ;;  %v17610_v6 = vld [vmem:[%s22716_s1 + $0x50] ss:$8 sps:$4 sm:$0xff]  }
  0x61   : > { %1559 = vmatprep.subr.bf16.mxu1 %v17532_v57  ;;  %v17617_v7 = vld [vmem:[%s22716_s1 + $0xf0] ss:$8 sps:$4 sm:$0xff]   ;;  %v17622_v8 = vld [vmem:[%s22716_s1 + $0x64] ss:$8 sps:$4 sm:$0xff]   ;;  %s15977_s27 = smul.u32 896, %s855_s15  ;;  %vm933_vm1 = vcmask 1043456  }
  0x62   : > { %v17631_v9 = vld [vmem:[%s22716_s1 + $0x104] ss:$8 sps:$4 sm:$0xff]   ;;  %v17636_v10 = vld [vmem:[%s22716_s1 + $0x60] ss:$8 sps:$4 sm:$0xff]   ;;  %v17648_v12 = vld [vmem:[%s22716_s1 + $0x74] ss:$8 sps:$4 sm:$0xff]  }
  0x63   : > { %1266 = vmatpush1.bf16.msra.mxu0 %v17537_v58  ;;  %v17641_v11 = vld [vmem:[%s22716_s1 + $0x100] ss:$8 sps:$4 sm:$0xff]   ;;  %v17655_v13 = vld [vmem:[%s22716_s1 + $0x114] ss:$8 sps:$4 sm:$0xff]   ;;  %v17660_v14 = vld [vmem:[%s22716_s1 + $0x70] ss:$8 sps:$4 sm:$0xff]  }
  0x64   : > { %1560 = vmatpush1.bf16.msra.mxu1 %v17542_v59  ;;  %1267 = vmatprep.subr.bf16.mxu0 %v17549_v60  ;;  %s17662_s23 = scalar_lea.vmem [#allocation2], %s15977_s27  ;;  %v17667_v15 = vld [vmem:[%s22716_s1 + $0x110] ss:$8 sps:$4 sm:$0xff]   ;;  %v17675_v17 = vld [vmem:[%s22716_s1 + $0x84] ss:$8 sps:$4 sm:$0xff]   ;;  %s18575_s27 = smul.u32 576, %s855_s15 }
  0x65   : > { %1561 = vmatprep.subr.bf16.mxu1 %v17556_v61  ;;  %v16066_v16 = vld [vmem:[%s17662_s23 + $0x4] ss:$8 sps:$4 sm:$0xff]   ;;  %v17689_v19 = vld [vmem:[%s22716_s1 + $0x80] ss:$8 sps:$4 sm:$0xff]   ;;  %v17701_v21 = vld [vmem:[%s22716_s1 + $0x94] ss:$8 sps:$4 sm:$0xff]  }
  0x66   : > { %v17682_v18 = vld [vmem:[%s22716_s1 + $0x124] ss:$8 sps:$4 sm:$0xff]   ;;  %13328 = vmatprep.mubr.msk.bf16.mxu0 %vm1218_vm0, %v16066_v16  ;;  %13382 = vmatprep.mubr.msk.bf16.mxu1 %vm1218_vm0, %v16066_v16  ;;  %v17694_v20 = vld [vmem:[%s22716_s1 + $0x120] ss:$8 sps:$4 sm:$0xff]   ;;  %v17708_v22 = vld [vmem:[%s22716_s1 + $0x134] ss:$8 sps:$4 sm:$0xff]  }
  0x67   : > { %1268 = vmatpush1.bf16.msra.mxu0 %v17561_v62  ;;  %v17713_v23 = vld [vmem:[%s22716_s1 + $0x90] ss:$8 sps:$4 sm:$0xff]   ;;  %v16064_v25 = vld [vmem:[%s17662_s23] ss:$8 sps:$4 sm:$0xff]   ;;  %v16067_v26 = vld [vmem:[%s17662_s23 + $0x14] ss:$8 sps:$4 sm:$0xff]  }
  0x68   : > { %1562 = vmatpush1.bf16.msra.mxu1 %v17568_v63  ;;  %1269 = vmatprep.subr.bf16.mxu0 %v17573_v0  ;;  %v17720_v24 = vld [vmem:[%s22716_s1 + $0x130] ss:$8 sps:$4 sm:$0xff]   ;;  %v16070_v28 = vld [vmem:[%s17662_s23 + $0x24] ss:$8 sps:$4 sm:$0xff]   ;;  %v16072_v29 = vld [vmem:[%s17662_s23 + $0x20] ss:$8 sps:$4 sm:$0xff]  }
  0x69   : > { %1563 = vmatprep.subr.bf16.mxu1 %v17580_v1  ;;  %v16069_v27 = vld [vmem:[%s17662_s23 + $0x10] ss:$8 sps:$4 sm:$0xff]   ;;  %v16073_v30 = vld [vmem:[%s17662_s23 + $0x34] ss:$8 sps:$4 sm:$0xff]   ;;  %v16076_v32 = vld [vmem:[%s17662_s23 + $0x44] ss:$8 sps:$4 sm:$0xff]  }
  0x6a   : > { %v16075_v31 = vld [vmem:[%s17662_s23 + $0x30] ss:$8 sps:$4 sm:$0xff]   ;;  %v16078_v33 = vld [vmem:[%s17662_s23 + $0x40] ss:$8 sps:$4 sm:$0xff]   ;;  %v16079_v34 = vld [vmem:[%s17662_s23 + $0x54] ss:$8 sps:$4 sm:$0xff]  }
  0x6b   : > { %1270 = vmatpush1.bf16.msra.mxu0 %v17585_v2  ;;  %v16081_v35 = vld [vmem:[%s17662_s23 + $0x50] ss:$8 sps:$4 sm:$0xff]   ;;  %v16082_v36 = vld [vmem:[%s17662_s23 + $0x64] ss:$8 sps:$4 sm:$0xff]   ;;  %v16084_v37 = vld [vmem:[%s17662_s23 + $0x60] ss:$8 sps:$4 sm:$0xff]  }
  0x6c   : > { %1564 = vmatpush1.bf16.msra.mxu1 %v17590_v3  ;;  %1271 = vmatprep.subr.bf16.mxu0 %v17597_v4  ;;  %v16085_v38 = vld [vmem:[%s17662_s23 + $0x74] ss:$8 sps:$4 sm:$0xff]   ;;  %v16087_v39 = vld [vmem:[%s17662_s23 + $0x70] ss:$8 sps:$4 sm:$0xff]   ;;  %v16088_v40 = vld [vmem:[%s17662_s23 + $0x84] ss:$8 sps:$4 sm:$0xff]  }
  0x6d   : > { %1565 = vmatprep.subr.bf16.mxu1 %v17604_v5  ;;  %v16090_v41 = vld [vmem:[%s17662_s23 + $0x80] ss:$8 sps:$4 sm:$0xff]   ;;  %v16091_v42 = vld [vmem:[%s17662_s23 + $0x94] ss:$8 sps:$4 sm:$0xff]   ;;  %v16093_v43 = vld [vmem:[%s17662_s23 + $0x90] ss:$8 sps:$4 sm:$0xff]  }
  0x6e   : > { %v16094_v44 = vld [vmem:[%s17662_s23 + $0xa4] ss:$8 sps:$4 sm:$0xff]   ;;  %v16096_v45 = vld [vmem:[%s17662_s23 + $0xa0] ss:$8 sps:$4 sm:$0xff]   ;;  %v16097_v46 = vld [vmem:[%s17662_s23 + $0xb4] ss:$8 sps:$4 sm:$0xff]  }
  0x6f   : > { %1272 = vmatpush1.bf16.msra.mxu0 %v17610_v6  ;;  %v16099_v47 = vld [vmem:[%s17662_s23 + $0xb0] ss:$8 sps:$4 sm:$0xff]   ;;  %v16118_v16 = vld [vmem:[%s17662_s23 + $0x124] ss:$8 sps:$4 sm:$0xff]   ;;  %vm934_vm2 = vcmask 97284   ;;  %s18605_s26 = scalar_lea.vmem [#allocation3], %s18575_s27 }
  0x70   : > { %1566 = vmatpush1.bf16.msra.mxu1 %v17617_v7  ;;  %1273 = vmatprep.subr.bf16.mxu0 %v17622_v8  ;;  %vm18583_vm3 = vmor %vm934_vm2, %vm933_vm1  ;;  %vm4932_vm4 = vcmask 1045504   ;;  %vm4889_vm5 = vcmask 97280   ;;  %s919_s16 = smul.u32 28, %s17223_s24  ;;  %vm12638_vm6 = vcmask 1041408   ;;  %s13274_s14 = sshll.u32 %s17223_s24, 2  ;;  %vm12607_vm7 = vcmask 408576  }
  0x71   : > { %1567 = vmatprep.subr.bf16.mxu1 %v17631_v9  ;;  %p913_p11 = scmp.lt.s32.totalorder %s13274_s14, 7  ;;  %vm12727_vm8 = vcmask 80896  }
  0x72   : > { %p920_p10 = scmp.lt.s32.totalorder %s919_s16, 55 }
  0x73   : > { %1274 = vmatpush1.bf16.msra.mxu0 %v17636_v10  ;;  %s23538_s14 = smov (!%p913_p11, %s13274_s14), 7 }
  0x74   : > { %1568 = vmatpush1.bf16.msra.mxu1 %v17641_v11  ;;  %1275 = vmatprep.subr.bf16.mxu0 %v17648_v12  ;;  %s23536_s16 = smov (!%p920_p10, %s919_s16), 55  ;;  %s13275_s18 = sshll.u32 %s23538_s14, 3 }
  0x75   : > { %1569 = vmatprep.subr.bf16.mxu1 %v17655_v13  ;;  %s14948_s27 = sshll.u32 %s23536_s16, 3  ;;  %s916_s13 = scalar_lea.vmem %s22724_s9, %s13275_s18 }
  0x76   : > { %s15036_s14 = smul.u32 (%p17238_p5), 288, %s17223_s24 }
  0x77   : > { %1276 = vmatpush1.bf16.msra.mxu0 %v17660_v14 }
  0x78   : > { %1570 = vmatpush1.bf16.msra.mxu1 %v17667_v15  ;;  %1277 = vmatprep.subr.bf16.mxu0 %v17675_v17  ;;  %s22565_s17 = scalar_lea.vmem (%p17238_p5), %s22725_s10, %s15036_s14 }
  0x79   : > { %1571 = vmatprep.subr.bf16.mxu1 %v17682_v18 }
  0x7b   : > { %1278 = vmatpush1.bf16.msra.mxu0 %v17689_v19 }
  0x7c   : > { %1572 = vmatpush1.bf16.msra.mxu1 %v17694_v20  ;;  %1279 = vmatprep.subr.bf16.mxu0 %v17701_v21 }
  0x7d   : > { %1573 = vmatprep.subr.bf16.mxu1 %v17708_v22 }
  0x7f   : > { %1280 = vmatpush1.bf16.msra.mxu0 %v17713_v23 }
  0x80   : > { %1574 = vmatpush1.bf16.msra.mxu1 %v17720_v24  ;;  %1981 = vmatprep.subr.bf16.mxu0 %v17481_v48 }
  0x81   : > { %2210 = vmatprep.subr.bf16.mxu1 %v17486_v49 }
  0x82   : > { %1294 = vmatmul.mubr.bf16.vlgmr.msra.gmra.mrb[0].mxu0 %v16064_v25 }
  0x83   : > { %1588 = vmatmul.mubr.bf16.vlgmr.msra.gmra.mrb[0].mxu1 %v16064_v25  ;;  %1982 = vmatpush1.bf16.msra.mxu0 %v17492_v50  ;;  %v16103_v50 = vld [vmem:[%s17662_s23 + $0xd4] ss:$8 sps:$4 sm:$0xff]  }
  0x84   : > { %2211 = vmatpush1.bf16.msra.mxu1 %v17497_v51  ;;  %13329 = vmatprep.mubr.msk.bf16.mxu0 %vm1218_vm0, %v16067_v26  ;;  %v16105_v51 = vld [vmem:[%s17662_s23 + $0xd0] ss:$8 sps:$4 sm:$0xff]   ;;  %v18006_v25 = vld [vmem:[%s22716_s1 + $0x114] ss:$8 sps:$4 sm:$0xff]  }
  0x85   : > { %13383 = vmatprep.mubr.msk.bf16.mxu1 %vm1218_vm0, %v16067_v26  ;;  %1983 = vmatprep.subr.bf16.mxu0 %v17503_v52  ;;  %v16108_v52 = vld [vmem:[%s17662_s23 + $0xe4] ss:$8 sps:$4 sm:$0xff]   ;;  %v16121_v26 = vld [vmem:[%s17662_s23 + $0x134] ss:$8 sps:$4 sm:$0xff]  }
  0x86   : > { %2212 = vmatprep.subr.bf16.mxu1 %v17510_v53  ;;  %v16106_v53 = vld [vmem:[%s17662_s23 + $0xe0] ss:$8 sps:$4 sm:$0xff]  }
  0x87   : > { %1984 = vmatpush1.bf16.msra.mxu0 %v17515_v54  ;;  %v16109_v54 = vld [vmem:[%s17662_s23 + $0xf4] ss:$8 sps:$4 sm:$0xff]  }
  0x88   : > { %2213 = vmatpush1.bf16.msra.mxu1 %v17521_v55  ;;  %1985 = vmatprep.subr.bf16.mxu0 %v17527_v56  ;;  %v17829_v55 = vld [vmem:[%s22716_s1] ss:$8 sps:$4 sm:$0xff]  }
  0x89   : > { %2214 = vmatprep.subr.bf16.mxu1 %v17532_v57  ;;  %v17835_v56 = vld [vmem:[%s22716_s1 + $0xa0] ss:$8 sps:$4 sm:$0xff]   ;;  %v16111_v57 = vld [vmem:[%s17662_s23 + $0xf0] ss:$8 sps:$4 sm:$0xff]  }
  0x8a   : > { %1304 = vmatmul.mubr.bf16.gmra.mrb[4].mxu0 %v16069_v27 }
  0x8b   : > { %1598 = vmatmul.mubr.bf16.gmra.mrb[4].mxu1 %v16069_v27  ;;  %13330 = vmatprep.mubr.msk.bf16.mxu0 %vm1218_vm0, %v16070_v28  ;;  %v18013_v27 = vld [vmem:[%s22716_s1 + $0x70] ss:$8 sps:$4 sm:$0xff]  }
  0x8c   : > { %13384 = vmatprep.mubr.msk.bf16.mxu1 %vm1218_vm0, %v16070_v28  ;;  %1986 = vmatpush1.bf16.msra.mxu0 %v17537_v58  ;;  %v17844_v58 = vld [vmem:[%s22716_s1 + $0x14] ss:$8 sps:$4 sm:$0xff]   ;;  %v18019_v28 = vld [vmem:[%s22716_s1 + $0x110] ss:$8 sps:$4 sm:$0xff]  }
  0x8d   : > { %2215 = vmatpush1.bf16.msra.mxu1 %v17542_v59  ;;  %1987 = vmatprep.subr.bf16.mxu0 %v17549_v60  ;;  %v17850_v59 = vld [vmem:[%s22716_s1 + $0xb4] ss:$8 sps:$4 sm:$0xff]   ;;  %v17856_v60 = vld [vmem:[%s22716_s1 + $0x10] ss:$8 sps:$4 sm:$0xff]  }
  0x8e   : > { %2216 = vmatprep.subr.bf16.mxu1 %v17556_v61  ;;  %v16112_v61 = vld [vmem:[%s17662_s23 + $0x104] ss:$8 sps:$4 sm:$0xff]  }
  0x90   : > { %1988 = vmatpush1.bf16.msra.mxu0 %v17561_v62  ;;  %v17863_v62 = vld [vmem:[%s22716_s1 + $0xb0] ss:$8 sps:$4 sm:$0xff]  }
  0x91   : > { %2217 = vmatpush1.bf16.msra.mxu1 %v17568_v63  ;;  %1989 = vmatprep.subr.bf16.mxu0 %v17573_v0  ;;  %v17869_v63 = vld [vmem:[%s22716_s1 + $0x24] ss:$8 sps:$4 sm:$0xff]  }
  0x92   : > { %2218 = vmatprep.subr.bf16.mxu1 %v17580_v1  ;;  %1314 = vmatmul.mubr.bf16.gmra.mrb[8].mxu0 %v16072_v29  ;;  %v17875_v0 = vld [vmem:[%s22716_s1 + $0xc4] ss:$8 sps:$4 sm:$0xff]   ;;  %v16114_v1 = vld [vmem:[%s17662_s23 + $0x100] ss:$8 sps:$4 sm:$0xff]  }
  0x93   : > { %1608 = vmatmul.mubr.bf16.gmra.mrb[8].mxu1 %v16072_v29  ;;  %13331 = vmatprep.mubr.msk.bf16.mxu0 %vm1218_vm0, %v16073_v30  ;;  %v18025_v29 = vld [vmem:[%s22716_s1 + $0x84] ss:$8 sps:$4 sm:$0xff]  }
  0x94   : > { %13385 = vmatprep.mubr.msk.bf16.mxu1 %vm1218_vm0, %v16073_v30  ;;  %1990 = vmatpush1.bf16.msra.mxu0 %v17585_v2  ;;  %v17884_v2 = vld [vmem:[%s22716_s1 + $0x20] ss:$8 sps:$4 sm:$0xff]   ;;  %v18031_v30 = vld [vmem:[%s22716_s1 + $0x124] ss:$8 sps:$4 sm:$0xff]  }
  0x95   : > { %2219 = vmatpush1.bf16.msra.mxu1 %v17590_v3  ;;  %1991 = vmatprep.subr.bf16.mxu0 %v17597_v4  ;;  %v17890_v3 = vld [vmem:[%s22716_s1 + $0xc0] ss:$8 sps:$4 sm:$0xff]   ;;  %v17896_v4 = vld [vmem:[%s22716_s1 + $0x34] ss:$8 sps:$4 sm:$0xff]  }
  0x96   : > { %2220 = vmatprep.subr.bf16.mxu1 %v17604_v5  ;;  %v17902_v5 = vld [vmem:[%s22716_s1 + $0xd4] ss:$8 sps:$4 sm:$0xff]  }
  0x98   : > { %1992 = vmatpush1.bf16.msra.mxu0 %v17610_v6  ;;  %v16115_v6 = vld [vmem:[%s17662_s23 + $0x114] ss:$8 sps:$4 sm:$0xff]  }
  0x99   : > { %2221 = vmatpush1.bf16.msra.mxu1 %v17617_v7  ;;  %1993 = vmatprep.subr.bf16.mxu0 %v17622_v8  ;;  %v17909_v7 = vld [vmem:[%s22716_s1 + $0x30] ss:$8 sps:$4 sm:$0xff]  }
  0x9a   : > { %2222 = vmatprep.subr.bf16.mxu1 %v17631_v9  ;;  %1324 = vmatmul.mubr.bf16.gmra.mrb[12].mxu0 %v16075_v31  ;;  %v17915_v8 = vld [vmem:[%s22716_s1 + $0xd0] ss:$8 sps:$4 sm:$0xff]   ;;  %v17921_v9 = vld [vmem:[%s22716_s1 + $0x44] ss:$8 sps:$4 sm:$0xff]  }
  0x9b   : > { %1618 = vmatmul.mubr.bf16.gmra.mrb[12].mxu1 %v16075_v31  ;;  %13332 = vmatprep.mubr.msk.bf16.mxu0 %vm1218_vm0, %v16076_v32  ;;  %v18039_v31 = vld [vmem:[%s22716_s1 + $0x80] ss:$8 sps:$4 sm:$0xff]  }
  0x9c   : > { %13386 = vmatprep.mubr.msk.bf16.mxu1 %vm1218_vm0, %v16076_v32  ;;  %1994 = vmatpush1.bf16.msra.mxu0 %v17636_v10  ;;  %v17927_v10 = vld [vmem:[%s22716_s1 + $0xe4] ss:$8 sps:$4 sm:$0xff]   ;;  %v18045_v32 = vld [vmem:[%s22716_s1 + $0x120] ss:$8 sps:$4 sm:$0xff]  }
  0x9d   : > { %2223 = vmatpush1.bf16.msra.mxu1 %v17641_v11  ;;  %1995 = vmatprep.subr.bf16.mxu0 %v17648_v12  ;;  %v16117_v11 = vld [vmem:[%s17662_s23 + $0x110] ss:$8 sps:$4 sm:$0xff]   ;;  %v17936_v12 = vld [vmem:[%s22716_s1 + $0x40] ss:$8 sps:$4 sm:$0xff]  }
  0x9e   : > { %2224 = vmatprep.subr.bf16.mxu1 %v17655_v13  ;;  %v17942_v13 = vld [vmem:[%s22716_s1 + $0xe0] ss:$8 sps:$4 sm:$0xff]  }
  0xa0   : > { %1996 = vmatpush1.bf16.msra.mxu0 %v17660_v14  ;;  %v17948_v14 = vld [vmem:[%s22716_s1 + $0x54] ss:$8 sps:$4 sm:$0xff]  }
  0xa1   : > { %2225 = vmatpush1.bf16.msra.mxu1 %v17667_v15  ;;  %1997 = vmatprep.subr.bf16.mxu0 %v17675_v17  ;;  %v17954_v15 = vld [vmem:[%s22716_s1 + $0xf4] ss:$8 sps:$4 sm:$0xff]   ;;  %v17961_v17 = vld [vmem:[%s22716_s1 + $0x50] ss:$8 sps:$4 sm:$0xff]  }
  0xa2   : > { %2226 = vmatprep.subr.bf16.mxu1 %v17682_v18  ;;  %1334 = vmatmul.mubr.bf16.gmra.mrb[16].mxu0 %v16078_v33  ;;  %v17967_v18 = vld [vmem:[%s22716_s1 + $0xf0] ss:$8 sps:$4 sm:$0xff]  }
  0xa3   : > { %1628 = vmatmul.mubr.bf16.gmra.mrb[16].mxu1 %v16078_v33  ;;  %13333 = vmatprep.mubr.msk.bf16.mxu0 %vm1218_vm0, %v16079_v34  ;;  %v18051_v33 = vld [vmem:[%s22716_s1 + $0x94] ss:$8 sps:$4 sm:$0xff]  }
  0xa4   : > { %13387 = vmatprep.mubr.msk.bf16.mxu1 %vm1218_vm0, %v16079_v34  ;;  %1998 = vmatpush1.bf16.msra.mxu0 %v17689_v19  ;;  %v17973_v19 = vld [vmem:[%s22716_s1 + $0x64] ss:$8 sps:$4 sm:$0xff]   ;;  %v18057_v34 = vld [vmem:[%s22716_s1 + $0x134] ss:$8 sps:$4 sm:$0xff]  }
  0xa5   : > { %2227 = vmatpush1.bf16.msra.mxu1 %v17694_v20  ;;  %1999 = vmatprep.subr.bf16.mxu0 %v17701_v21  ;;  %v17979_v20 = vld [vmem:[%s22716_s1 + $0x104] ss:$8 sps:$4 sm:$0xff]   ;;  %v16120_v21 = vld [vmem:[%s17662_s23 + $0x120] ss:$8 sps:$4 sm:$0xff]  }
  0xa6   : > { %2228 = vmatprep.subr.bf16.mxu1 %v17708_v22  ;;  %v17988_v22 = vld [vmem:[%s22716_s1 + $0x60] ss:$8 sps:$4 sm:$0xff]  }
  0xa8   : > { %2000 = vmatpush1.bf16.msra.mxu0 %v17713_v23  ;;  %v17994_v23 = vld [vmem:[%s22716_s1 + $0x100] ss:$8 sps:$4 sm:$0xff]  }
  0xa9   : > { %2229 = vmatpush1.bf16.msra.mxu1 %v17720_v24  ;;  %3085 = vmatprep.subr.bf16.mxu0 %v17481_v48  ;;  %v16100_v48 = vld [vmem:[%s17662_s23 + $0xc4] ss:$8 sps:$4 sm:$0xff]   ;;  %v18000_v24 = vld [vmem:[%s22716_s1 + $0x74] ss:$8 sps:$4 sm:$0xff]  }
  0xaa   : > { %3378 = vmatprep.subr.bf16.mxu1 %v17486_v49  ;;  %1344 = vmatmul.mubr.bf16.gmra.mrb[20].mxu0 %v16081_v35  ;;  %v16102_v49 = vld [vmem:[%s17662_s23 + $0xc0] ss:$8 sps:$4 sm:$0xff]  }
  0xab   : > { %1638 = vmatmul.mubr.bf16.gmra.mrb[20].mxu1 %v16081_v35  ;;  %13334 = vmatprep.mubr.msk.bf16.mxu0 %vm1218_vm0, %v16082_v36  ;;  %v16123_v35 = vld [vmem:[%s17662_s23 + $0x130] ss:$8 sps:$4 sm:$0xff]  }
  0xac   : > { %13388 = vmatprep.mubr.msk.bf16.mxu1 %vm1218_vm0, %v16082_v36  ;;  %v16124_v36 = vld [vmem:[%s17662_s23 + $0x144] ss:$8 sps:$4 sm:$0xff]  }
  0xb2   : > { %1354 = vmatmul.mubr.bf16.gmra.mrb[24].mxu0 %v16084_v37 }
  0xb3   : > { %1648 = vmatmul.mubr.bf16.gmra.mrb[24].mxu1 %v16084_v37  ;;  %13335 = vmatprep.mubr.msk.bf16.mxu0 %vm1218_vm0, %v16085_v38  ;;  %v18065_v37 = vld [vmem:[%s22716_s1 + $0x90] ss:$8 sps:$4 sm:$0xff]  }
  0xb4   : > { %13389 = vmatprep.mubr.msk.bf16.mxu1 %vm1218_vm0, %v16085_v38  ;;  %v18071_v38 = vld [vmem:[%s22716_s1 + $0x130] ss:$8 sps:$4 sm:$0xff]  }
  0xba   : > { %1364 = vmatmul.mubr.bf16.gmra.mrb[28].mxu0 %v16087_v39 }
  0xbb   : > { %1658 = vmatmul.mubr.bf16.gmra.mrb[28].mxu1 %v16087_v39  ;;  %13336 = vmatprep.mubr.msk.bf16.mxu0 %vm1218_vm0, %v16088_v40  ;;  %v16864_v39 = vld [vmem:[%s22716_s1 + $0x4] ss:$8 sps:$4 sm:$0xff]  }
  0xbc   : > { %13390 = vmatprep.mubr.msk.bf16.mxu1 %vm1218_vm0, %v16088_v40  ;;  %v16865_v40 = vld [vmem:[%s22716_s1 + $0xa4] ss:$8 sps:$4 sm:$0xff]  }
  0xc2   : > { %1374 = vmatmul.mubr.bf16.gmra.mrb[32].mxu0 %v16090_v41 }
  0xc3   : > { %1668 = vmatmul.mubr.bf16.gmra.mrb[32].mxu1 %v16090_v41  ;;  %13337 = vmatprep.mubr.msk.bf16.mxu0 %vm1218_vm0, %v16091_v42  ;;  %v16126_v41 = vld [vmem:[%s17662_s23 + $0x140] ss:$8 sps:$4 sm:$0xff]  }
  0xc4   : > { %13391 = vmatprep.mubr.msk.bf16.mxu1 %vm1218_vm0, %v16091_v42  ;;  %v16127_v42 = vld [vmem:[%s17662_s23 + $0x154] ss:$8 sps:$4 sm:$0xff]  }
  0xca   : > { %1384 = vmatmul.mubr.bf16.gmra.mrb[36].mxu0 %v16093_v43 }
  0xcb   : > { %1678 = vmatmul.mubr.bf16.gmra.mrb[36].mxu1 %v16093_v43  ;;  %13338 = vmatprep.mubr.msk.bf16.mxu0 %vm1218_vm0, %v16094_v44  ;;  %v16129_v43 = vld [vmem:[%s17662_s23 + $0x150] ss:$8 sps:$4 sm:$0xff]  }
  0xcc   : > { %13392 = vmatprep.mubr.msk.bf16.mxu1 %vm1218_vm0, %v16094_v44  ;;  %v16130_v44 = vld [vmem:[%s17662_s23 + $0x164] ss:$8 sps:$4 sm:$0xff]  }
  0xd2   : > { %1394 = vmatmul.mubr.bf16.gmra.mrb[40].mxu0 %v16096_v45 }
  0xd3   : > { %1688 = vmatmul.mubr.bf16.gmra.mrb[40].mxu1 %v16096_v45  ;;  %13339 = vmatprep.mubr.msk.bf16.mxu0 %vm1218_vm0, %v16097_v46  ;;  %v16132_v45 = vld [vmem:[%s17662_s23 + $0x160] ss:$8 sps:$4 sm:$0xff]  }
  0xd4   : > { %13393 = vmatprep.mubr.msk.bf16.mxu1 %vm1218_vm0, %v16097_v46  ;;  %v16133_v46 = vld [vmem:[%s17662_s23 + $0x174] ss:$8 sps:$4 sm:$0xff]  }
  0xda   : > { %1404 = vmatmul.mubr.bf16.gmra.mrb[44].mxu0 %v16099_v47 }
  0xdb   : > { %1698 = vmatmul.mubr.bf16.gmra.mrb[44].mxu1 %v16099_v47  ;;  %13340 = vmatprep.mubr.msk.bf16.mxu0 %vm1218_vm0, %v16100_v48  ;;  %v16135_v47 = vld [vmem:[%s17662_s23 + $0x170] ss:$8 sps:$4 sm:$0xff]  }
  0xdc   : > { %13394 = vmatprep.mubr.msk.bf16.mxu1 %vm1218_vm0, %v16100_v48  ;;  %v16136_v48 = vld [vmem:[%s17662_s23 + $0x184] ss:$8 sps:$4 sm:$0xff]  }
  0xe2   : > { %1414 = vmatmul.mubr.bf16.gmra.mrb[48].mxu0 %v16102_v49 }
  0xe3   : > { %1708 = vmatmul.mubr.bf16.gmra.mrb[48].mxu1 %v16102_v49  ;;  %13341 = vmatprep.mubr.msk.bf16.mxu0 %vm1218_vm0, %v16103_v50  ;;  %v16138_v49 = vld [vmem:[%s17662_s23 + $0x180] ss:$8 sps:$4 sm:$0xff]  }
  0xe4   : > { %13395 = vmatprep.mubr.msk.bf16.mxu1 %vm1218_vm0, %v16103_v50  ;;  %v16139_v50 = vld [vmem:[%s17662_s23 + $0x194] ss:$8 sps:$4 sm:$0xff]  }
  0xea   : > { %1424 = vmatmul.mubr.bf16.gmra.mrb[52].mxu0 %v16105_v51 }
  0xeb   : > { %1718 = vmatmul.mubr.bf16.gmra.mrb[52].mxu1 %v16105_v51  ;;  %13452 = vmatprep.mubr.msk.bf16.mxu0 %vm1218_vm0, %v16108_v52  ;;  %v16141_v51 = vld [vmem:[%s17662_s23 + $0x190] ss:$8 sps:$4 sm:$0xff]  }
  0xec   : > { %13466 = vmatprep.mubr.msk.bf16.mxu1 %vm1218_vm0, %v16108_v52  ;;  %v16142_v52 = vld [vmem:[%s17662_s23 + $0x1a4] ss:$8 sps:$4 sm:$0xff]  }
  0xf2   : > { %2014 = vmatmul.mubr.bf16.vlgmr.msra.gmra.mrb[56].mxu0 %v16106_v53 }
  0xf3   : > { %2243 = vmatmul.mubr.bf16.vlgmr.msra.gmra.mrb[56].mxu1 %v16106_v53  ;;  %3086 = vmatpush1.bf16.msra.mxu0 %v17829_v55  ;;  %v16144_v53 = vld [vmem:[%s17662_s23 + $0x1a0] ss:$8 sps:$4 sm:$0xff]  }
  0xf4   : > { %3379 = vmatpush1.bf16.msra.mxu1 %v17835_v56  ;;  %13453 = vmatprep.mubr.msk.bf16.mxu0 %vm1218_vm0, %v16109_v54 }
  0xf5   : > { %13467 = vmatprep.mubr.msk.bf16.mxu1 %vm1218_vm0, %v16109_v54  ;;  %3087 = vmatprep.subr.bf16.mxu0 %v17844_v58  ;;  %v16145_v54 = vld [vmem:[%s17662_s23 + $0x1b4] ss:$8 sps:$4 sm:$0xff]  }
  0xf6   : > { %3380 = vmatprep.subr.bf16.mxu1 %v17850_v59 }
  0xf7   : > { %3088 = vmatpush1.bf16.msra.mxu0 %v17856_v60 }
  0xf8   : > { %3381 = vmatpush1.bf16.msra.mxu1 %v17863_v62  ;;  %3089 = vmatprep.subr.bf16.mxu0 %v17869_v63 }
  0xf9   : > { %3382 = vmatprep.subr.bf16.mxu1 %v17875_v0 }
  0xfa   : > { %2024 = vmatmul.mubr.bf16.gmra.mrb[60].mxu0 %v16111_v57 }
  0xfb   : > { %2253 = vmatmul.mubr.bf16.gmra.mrb[60].mxu1 %v16111_v57  ;;  %13454 = vmatprep.mubr.msk.bf16.mxu0 %vm1218_vm0, %v16112_v61 }
  0xfc   : > { %13468 = vmatprep.mubr.msk.bf16.mxu1 %vm1218_vm0, %v16112_v61  ;;  %3090 = vmatpush1.bf16.msra.mxu0 %v17884_v2 }
  0xfd   : > { %3383 = vmatpush1.bf16.msra.mxu1 %v17890_v3  ;;  %3091 = vmatprep.subr.bf16.mxu0 %v17896_v4 }
  0xfe   : > { %3384 = vmatprep.subr.bf16.mxu1 %v17902_v5 }
 0x100   : > { %3092 = vmatpush1.bf16.msra.mxu0 %v17909_v7 }
 0x101   : > { %3385 = vmatpush1.bf16.msra.mxu1 %v17915_v8  ;;  %3093 = vmatprep.subr.bf16.mxu0 %v17921_v9 }
 0x102   : > { %3386 = vmatprep.subr.bf16.mxu1 %v17927_v10  ;;  %2034 = vmatmul.mubr.bf16.gmra.mrb[64].mxu0 %v16114_v1 }
 0x103   : > { %2263 = vmatmul.mubr.bf16.gmra.mrb[64].mxu1 %v16114_v1  ;;  %13455 = vmatprep.mubr.msk.bf16.mxu0 %vm1218_vm0, %v16115_v6 }
 0x104   : > { %13469 = vmatprep.mubr.msk.bf16.mxu1 %vm1218_vm0, %v16115_v6  ;;  %3094 = vmatpush1.bf16.msra.mxu0 %v17936_v12 }
 0x105   : > { %3387 = vmatpush1.bf16.msra.mxu1 %v17942_v13  ;;  %3095 = vmatprep.subr.bf16.mxu0 %v17948_v14 }
 0x106   : > { %3388 = vmatprep.subr.bf16.mxu1 %v17954_v15 }
 0x108   : > { %3096 = vmatpush1.bf16.msra.mxu0 %v17961_v17 }
 0x109   : > { %3389 = vmatpush1.bf16.msra.mxu1 %v17967_v18  ;;  %3097 = vmatprep.subr.bf16.mxu0 %v17973_v19 }
 0x10a   : > { %3390 = vmatprep.subr.bf16.mxu1 %v17979_v20  ;;  %2044 = vmatmul.mubr.bf16.gmra.mrb[68].mxu0 %v16117_v11 }
 0x10b   : > { %2273 = vmatmul.mubr.bf16.gmra.mrb[68].mxu1 %v16117_v11  ;;  %13456 = vmatprep.mubr.msk.bf16.mxu0 %vm1218_vm0, %v16118_v16 }
 0x10c   : > { %13470 = vmatprep.mubr.msk.bf16.mxu1 %vm1218_vm0, %v16118_v16  ;;  %3098 = vmatpush1.bf16.msra.mxu0 %v17988_v22  ;;  %v16147_v16 = vld [vmem:[%s17662_s23 + $0x1b0] ss:$8 sps:$4 sm:$0xff]  }
 0x10d   : > { %3391 = vmatpush1.bf16.msra.mxu1 %v17994_v23  ;;  %3099 = vmatprep.subr.bf16.mxu0 %v18000_v24 }
 0x10e   : > { %3392 = vmatprep.subr.bf16.mxu1 %v18006_v25 }
 0x110   : > { %3100 = vmatpush1.bf16.msra.mxu0 %v18013_v27 }
 0x111   : > { %3393 = vmatpush1.bf16.msra.mxu1 %v18019_v28  ;;  %3101 = vmatprep.subr.bf16.mxu0 %v18025_v29 }
 0x112   : > { %3394 = vmatprep.subr.bf16.mxu1 %v18031_v30  ;;  %2054 = vmatmul.mubr.bf16.gmra.mrb[72].mxu0 %v16120_v21 }
 0x113   : > { %2283 = vmatmul.mubr.bf16.gmra.mrb[72].mxu1 %v16120_v21  ;;  %13457 = vmatprep.mubr.msk.bf16.mxu0 %vm1218_vm0, %v16121_v26 }
 0x114   : > { %13471 = vmatprep.mubr.msk.bf16.mxu1 %vm1218_vm0, %v16121_v26  ;;  %3102 = vmatpush1.bf16.msra.mxu0 %v18039_v31 }
 0x115   : > { %3395 = vmatpush1.bf16.msra.mxu1 %v18045_v32  ;;  %3103 = vmatprep.subr.bf16.mxu0 %v18051_v33 }
 0x116   : > { %3396 = vmatprep.subr.bf16.mxu1 %v18057_v34 }
 0x118   : > { %3104 = vmatpush1.bf16.msra.mxu0 %v18065_v37 }
 0x119   : > { %3397 = vmatpush1.bf16.msra.mxu1 %v18071_v38  ;;  %3804 = vmatprep.subr.bf16.mxu0 %v16864_v39 }
 0x11a   : > { %4033 = vmatprep.subr.bf16.mxu1 %v16865_v40  ;;  %2064 = vmatmul.mubr.bf16.gmra.mrb[76].mxu0 %v16123_v35 }
 0x11b   : > { %2293 = vmatmul.mubr.bf16.gmra.mrb[76].mxu1 %v16123_v35  ;;  %13458 = vmatprep.mubr.msk.bf16.mxu0 %vm1218_vm0, %v16124_v36 }
 0x11c   : > { %13472 = vmatprep.mubr.msk.bf16.mxu1 %vm1218_vm0, %v16124_v36  ;;  %v16150_v36 = vld [vmem:[%s17662_s23 + $0x1c4] ss:$8 sps:$4 sm:$0xff]  }
 0x122   : > { %2074 = vmatmul.mubr.bf16.gmra.mrb[80].mxu0 %v16126_v41 }
 0x123   : > { %2303 = vmatmul.mubr.bf16.gmra.mrb[80].mxu1 %v16126_v41  ;;  %13459 = vmatprep.mubr.msk.bf16.mxu0 %vm1218_vm0, %v16127_v42 }
 0x124   : > { %13473 = vmatprep.mubr.msk.bf16.mxu1 %vm1218_vm0, %v16127_v42 }
 0x12a   : > { %2084 = vmatmul.mubr.bf16.gmra.mrb[84].mxu0 %v16129_v43 }
 0x12b   : > { %2313 = vmatmul.mubr.bf16.gmra.mrb[84].mxu1 %v16129_v43  ;;  %13460 = vmatprep.mubr.msk.bf16.mxu0 %vm1218_vm0, %v16130_v44 }
 0x12c   : > { %13474 = vmatprep.mubr.msk.bf16.mxu1 %vm1218_vm0, %v16130_v44 }
 0x132   : > { %2094 = vmatmul.mubr.bf16.gmra.mrb[88].mxu0 %v16132_v45 }
 0x133   : > { %2323 = vmatmul.mubr.bf16.gmra.mrb[88].mxu1 %v16132_v45  ;;  %13461 = vmatprep.mubr.msk.bf16.mxu0 %vm1218_vm0, %v16133_v46 }
 0x134   : > { %13475 = vmatprep.mubr.msk.bf16.mxu1 %vm1218_vm0, %v16133_v46 }
 0x13a   : > { %2104 = vmatmul.mubr.bf16.gmra.mrb[92].mxu0 %v16135_v47 }
 0x13b   : > { %2333 = vmatmul.mubr.bf16.gmra.mrb[92].mxu1 %v16135_v47  ;;  %13462 = vmatprep.mubr.msk.bf16.mxu0 %vm1218_vm0, %v16136_v48 }
 0x13c   : > { %13476 = vmatprep.mubr.msk.bf16.mxu1 %vm1218_vm0, %v16136_v48  ;;  %v16148_v48 = vld [vmem:[%s17662_s23 + $0x1c0] ss:$8 sps:$4 sm:$0xff]  }
 0x142   : > { %2114 = vmatmul.mubr.bf16.gmra.mrb[96].mxu0 %v16138_v49 }
 0x143   : > { %2343 = vmatmul.mubr.bf16.gmra.mrb[96].mxu1 %v16138_v49  ;;  %13463 = vmatprep.mubr.msk.bf16.mxu0 %vm1218_vm0, %v16139_v50 }
 0x144   : > { %13477 = vmatprep.mubr.msk.bf16.mxu1 %vm1218_vm0, %v16139_v50 }
 0x14a   : > { %2124 = vmatmul.mubr.bf16.gmra.mrb[100].mxu0 %v16141_v51 }
 0x14b   : > { %2353 = vmatmul.mubr.bf16.gmra.mrb[100].mxu1 %v16141_v51  ;;  %13464 = vmatprep.mubr.msk.bf16.mxu0 %vm1218_vm0, %v16142_v52 }
 0x14c   : > { %13478 = vmatprep.mubr.msk.bf16.mxu1 %vm1218_vm0, %v16142_v52 }
 0x152   : > { %2134 = vmatmul.mubr.bf16.gmra.mrb[104].mxu0 %v16144_v53 }
 0x153   : > { %2363 = vmatmul.mubr.bf16.gmra.mrb[104].mxu1 %v16144_v53  ;;  %13465 = vmatprep.mubr.msk.bf16.mxu0 %vm1218_vm0, %v16145_v54 }
 0x154   : > { %13479 = vmatprep.mubr.msk.bf16.mxu1 %vm1218_vm0, %v16145_v54 }
 0x155   : > { %v18110_v57 = vpop.f32.mrb[0].mxu0 }
 0x156   : > { %v18112_v61 = vpop.f32.mrb[0].mxu1  ;;  %v18116_v6 = vpop.f32.mrb[1].mxu0 }
 0x157   : > { %v18118_v11 = vpop.f32.mrb[1].mxu1  ;;  %v18123_v26 = vpop.f32.mrb[2].mxu0 }
 0x158   : > { %v18125_v35 = vpop.f32.mrb[2].mxu1  ;;  %v18130_v40 = vpop.f32.mrb[3].mxu0 }
 0x159   : > { %v18132_v41 = vpop.f32.mrb[3].mxu1 }
 0x15a   : > { %2144 = vmatmul.mubr.bf16.gmra.mrb[108].mxu0 %v16147_v16 }
 0x15b   : > { %2373 = vmatmul.mubr.bf16.gmra.mrb[108].mxu1 %v16147_v16  ;;  %13592 = vmatprep.mubr.msk.bf16.mxu0 %vm1218_vm0, %v16150_v36  ;;  %v16151_v16 = vld [vmem:[%s17662_s23 + $0x1d4] ss:$8 sps:$4 sm:$0xff]  }
 0x15c   : > { %13646 = vmatprep.mubr.msk.bf16.mxu1 %vm1218_vm0, %v16150_v36 }
 0x15d   : > { %v18138_v43 = vpop.f32.mrb[4].mxu0 }
 0x15e   : > { %v18140_v44 = vpop.f32.mrb[4].mxu1  ;;  %v18144_v46 = vpop.f32.mrb[5].mxu0 }
 0x15f   : > { %v18146_v47 = vpop.f32.mrb[5].mxu1  ;;  %v18151_v50 = vpop.f32.mrb[6].mxu0 }
 0x160   : > { %v18153_v51 = vpop.f32.mrb[6].mxu1  ;;  %v18157_v53 = vpop.f32.mrb[7].mxu0 }
 0x161   : > { %v18159_v54 = vpop.f32.mrb[7].mxu1 }
 0x162   : > { %3118 = vmatmul.mubr.bf16.vlgmr.msra.gmra.mrb[112].mxu0 %v16148_v48 }
 0x163   : > { %3411 = vmatmul.mubr.bf16.vlgmr.msra.gmra.mrb[112].mxu1 %v16148_v48  ;;  %3805 = vmatpush1.bf16.msra.mxu0 %v17829_v55 }
 0x164   : > { %4034 = vmatpush1.bf16.msra.mxu1 %v17835_v56  ;;  %13593 = vmatprep.mubr.msk.bf16.mxu0 %vm1218_vm0, %v16151_v16  ;;  %v16153_v56 = vld [vmem:[%s17662_s23 + $0x1d0] ss:$8 sps:$4 sm:$0xff]  }
 0x165   : > { %13647 = vmatprep.mubr.msk.bf16.mxu1 %vm1218_vm0, %v16151_v16  ;;  %v18168_v52 = vpop.f32.mrb[8].mxu0  ;;  %3806 = vmatprep.subr.bf16.mxu0 %v17844_v58  ;;  %v16154_v58 = vld [vmem:[%s17662_s23 + $0x1e4] ss:$8 sps:$4 sm:$0xff]  }
 0x166   : > { %v18170_v49 = vpop.f32.mrb[8].mxu1  ;;  %4035 = vmatprep.subr.bf16.mxu1 %v17850_v59  ;;  %v18176_v36 = vpop.f32.mrb[9].mxu0  ;;  %v16157_v59 = vld [vmem:[%s17662_s23 + $0x1f4] ss:$8 sps:$4 sm:$0xff]  }
 0x167   : > { %v18178_v55 = vpop.f32.mrb[9].mxu1  ;;  %v18183_v16 = vpop.f32.mrb[10].mxu0  ;;  %3807 = vmatpush1.bf16.msra.mxu0 %v17856_v60 }
 0x168   : > { %v18185_v42 = vpop.f32.mrb[10].mxu1  ;;  %4036 = vmatpush1.bf16.msra.mxu1 %v17863_v62  ;;  %v18192_v48 = vpop.f32.mrb[11].mxu0  ;;  %3808 = vmatprep.subr.bf16.mxu0 %v17869_v63 }
 0x169   : > { %v18194_v39 = vpop.f32.mrb[11].mxu1  ;;  %4037 = vmatprep.subr.bf16.mxu1 %v17875_v0 }
 0x16a   : > { %3128 = vmatmul.mubr.bf16.gmra.mrb[116].mxu0 %v16153_v56 }
 0x16b   : > { %3421 = vmatmul.mubr.bf16.gmra.mrb[116].mxu1 %v16153_v56  ;;  %13594 = vmatprep.mubr.msk.bf16.mxu0 %vm1218_vm0, %v16154_v58 }
 0x16c   : > { %13648 = vmatprep.mubr.msk.bf16.mxu1 %vm1218_vm0, %v16154_v58  ;;  %3809 = vmatpush1.bf16.msra.mxu0 %v17884_v2  ;;  %v16156_v58 = vld [vmem:[%s17662_s23 + $0x1e0] ss:$8 sps:$4 sm:$0xff]  }
 0x16d   : > { %4038 = vmatpush1.bf16.msra.mxu1 %v17890_v3  ;;  %v18204_v60 = vpop.f32.mrb[12].mxu0  ;;  %3810 = vmatprep.subr.bf16.mxu0 %v17896_v4  ;;  %v16160_v4 = vld [vmem:[%s17662_s23 + $0x204] ss:$8 sps:$4 sm:$0xff]  }
 0x16e   : > { %v18206_v62 = vpop.f32.mrb[12].mxu1  ;;  %4039 = vmatprep.subr.bf16.mxu1 %v17902_v5  ;;  %v18212_v0 = vpop.f32.mrb[13].mxu0 }
 0x16f   : > { %v18214_v56 = vpop.f32.mrb[13].mxu1  ;;  %v18219_v3 = vpop.f32.mrb[14].mxu0 }
 0x170   : > { %v18221_v45 = vpop.f32.mrb[14].mxu1  ;;  %v18226_v5 = vpop.f32.mrb[15].mxu0  ;;  %3811 = vmatpush1.bf16.msra.mxu0 %v17909_v7 }
 0x171   : > { %v18228_v21 = vpop.f32.mrb[15].mxu1  ;;  %4040 = vmatpush1.bf16.msra.mxu1 %v17915_v8  ;;  %3812 = vmatprep.subr.bf16.mxu0 %v17921_v9 }
 0x172   : > { %4041 = vmatprep.subr.bf16.mxu1 %v17927_v10  ;;  %3138 = vmatmul.mubr.bf16.gmra.mrb[120].mxu0 %v16156_v58 }
 0x173   : > { %3431 = vmatmul.mubr.bf16.gmra.mrb[120].mxu1 %v16156_v58  ;;  %13595 = vmatprep.mubr.msk.bf16.mxu0 %vm1218_vm0, %v16157_v59 }
 0x174   : > { %13649 = vmatprep.mubr.msk.bf16.mxu1 %vm1218_vm0, %v16157_v59  ;;  %3813 = vmatpush1.bf16.msra.mxu0 %v17936_v12  ;;  %v16159_v59 = vld [vmem:[%s17662_s23 + $0x1f0] ss:$8 sps:$4 sm:$0xff]  }
 0x175   : > { %4042 = vmatpush1.bf16.msra.mxu1 %v17942_v13  ;;  %v18240_v7 = vpop.f32.mrb[16].mxu0  ;;  %3814 = vmatprep.subr.bf16.mxu0 %v17948_v14  ;;  %v16163_v14 = vld [vmem:[%s17662_s23 + $0x214] ss:$8 sps:$4 sm:$0xff]  }
 0x176   : > { %v18242_v8 = vpop.f32.mrb[16].mxu1  ;;  %4043 = vmatprep.subr.bf16.mxu1 %v17954_v15  ;;  %v18248_v10 = vpop.f32.mrb[17].mxu0 }
 0x177   : > { %v18250_v58 = vpop.f32.mrb[17].mxu1  ;;  %v18255_v13 = vpop.f32.mrb[18].mxu0 }
 0x178   : > { %v18257_v63 = vpop.f32.mrb[18].mxu1  ;;  %v18262_v15 = vpop.f32.mrb[19].mxu0  ;;  %3815 = vmatpush1.bf16.msra.mxu0 %v17961_v17 }
 0x179   : > { %v18264_v2 = vpop.f32.mrb[19].mxu1  ;;  %4044 = vmatpush1.bf16.msra.mxu1 %v17967_v18  ;;  %3816 = vmatprep.subr.bf16.mxu0 %v17973_v19  ;;  %v16169_v19 = vld [vmem:[%s17662_s23 + $0x234] ss:$8 sps:$4 sm:$0xff]  }
 0x17a   : > { %4045 = vmatprep.subr.bf16.mxu1 %v17979_v20  ;;  %3148 = vmatmul.mubr.bf16.gmra.mrb[124].mxu0 %v16159_v59 }
 0x17b   : > { %3441 = vmatmul.mubr.bf16.gmra.mrb[124].mxu1 %v16159_v59  ;;  %13596 = vmatprep.mubr.msk.bf16.mxu0 %vm1218_vm0, %v16160_v4 }
 0x17c   : > { %13650 = vmatprep.mubr.msk.bf16.mxu1 %vm1218_vm0, %v16160_v4  ;;  %3817 = vmatpush1.bf16.msra.mxu0 %v17988_v22  ;;  %v16162_v4 = vld [vmem:[%s17662_s23 + $0x200] ss:$8 sps:$4 sm:$0xff]  }
 0x17d   : > { %4046 = vmatpush1.bf16.msra.mxu1 %v17994_v23  ;;  %v18276_v17 = vpop.f32.mrb[20].mxu0  ;;  %3818 = vmatprep.subr.bf16.mxu0 %v18000_v24 }
 0x17e   : > { %v18278_v18 = vpop.f32.mrb[20].mxu1  ;;  %4047 = vmatprep.subr.bf16.mxu1 %v18006_v25  ;;  %v18284_v20 = vpop.f32.mrb[21].mxu0 }
 0x17f   : > { %v18286_v59 = vpop.f32.mrb[21].mxu1  ;;  %v18291_v23 = vpop.f32.mrb[22].mxu0 }
 0x180   : > { %22942 = vst [vmem:[#allocation4_spill] sm:$0xff] %v18291_v23  ;;  %v18293_v9 = vpop.f32.mrb[22].mxu1  ;;  %v18298_v25 = vpop.f32.mrb[23].mxu0  ;;  %3819 = vmatpush1.bf16.msra.mxu0 %v18013_v27 }
 0x181   : > { %22943 = vst [vmem:[#allocation5_spill] sm:$0xff] %v18293_v9  ;;  %22944 = vst [vmem:[#allocation6_spill] sm:$0xff] %v18298_v25  ;;  %v18300_v12 = vpop.f32.mrb[23].mxu1  ;;  %4048 = vmatpush1.bf16.msra.mxu1 %v18019_v28  ;;  %3820 = vmatprep.subr.bf16.mxu0 %v18025_v29  ;;  %v23014_v9 = vmax.f32 %v18130_v40, %v18132_v41 }
 0x182   : > { %22945 = vst [vmem:[#allocation7_spill] sm:$0xff] %v18300_v12  ;;  %4049 = vmatprep.subr.bf16.mxu1 %v18031_v30  ;;  %3158 = vmatmul.mubr.bf16.gmra.mrb[128].mxu0 %v16162_v4  ;;  %v16192_v12 = vld [vmem:[%s17662_s23 + $0x2a4] ss:$8 sps:$4 sm:$0xff]  }
 0x183   : > { %3451 = vmatmul.mubr.bf16.gmra.mrb[128].mxu1 %v16162_v4  ;;  %13597 = vmatprep.mubr.msk.bf16.mxu0 %vm1218_vm0, %v16163_v14  ;;  %v16165_v4 = vld [vmem:[%s17662_s23 + $0x210] ss:$8 sps:$4 sm:$0xff]  }
 0x184   : > { %13651 = vmatprep.mubr.msk.bf16.mxu1 %vm1218_vm0, %v16163_v14  ;;  %3821 = vmatpush1.bf16.msra.mxu0 %v18039_v31  ;;  %v16172_v14 = vld [vmem:[%s17662_s23 + $0x244] ss:$8 sps:$4 sm:$0xff]  }
 0x185   : > { %4050 = vmatpush1.bf16.msra.mxu1 %v18045_v32  ;;  %v18312_v27 = vpop.f32.mrb[24].mxu0  ;;  %3822 = vmatprep.subr.bf16.mxu0 %v18051_v33  ;;  %v16166_v32 = vld [vmem:[%s17662_s23 + $0x224] ss:$8 sps:$4 sm:$0xff]  }
 0x186   : > { %22946 = vst [vmem:[#allocation8_spill] sm:$0xff] %v18312_v27  ;;  %v18314_v28 = vpop.f32.mrb[24].mxu1  ;;  %4051 = vmatprep.subr.bf16.mxu1 %v18057_v34  ;;  %v18318_v29 = vpop.f32.mrb[25].mxu0 }
 0x187   : > { %22947 = vst [vmem:[#allocation9_spill] sm:$0xff] %v18314_v28  ;;  %22948 = vst [vmem:[#allocation10_spill] sm:$0xff] %v18318_v29  ;;  %v18320_v30 = vpop.f32.mrb[25].mxu1  ;;  %v18325_v22 = vpop.f32.mrb[26].mxu0 }
 0x188   : > { %22949 = vst [vmem:[#allocation11_spill] sm:$0xff] %v18320_v30  ;;  %22950 = vst [vmem:[#allocation12_spill] sm:$0xff] %v18325_v22  ;;  %v18327_v31 = vpop.f32.mrb[26].mxu1  ;;  %v18332_v33 = vpop.f32.mrb[27].mxu0  ;;  %3823 = vmatpush1.bf16.msra.mxu0 %v18065_v37  ;;  %v16175_v22 = vld [vmem:[%s17662_s23 + $0x254] ss:$8 sps:$4 sm:$0xff]  }
 0x189   : > { %22951 = vst [vmem:[#allocation13_spill] sm:$0xff] %v18327_v31  ;;  %22952 = vst [vmem:[#allocation14_spill] sm:$0xff] %v18332_v33  ;;  %v18334_v34 = vpop.f32.mrb[27].mxu1  ;;  %4052 = vmatpush1.bf16.msra.mxu1 %v18071_v38  ;;  %v16168_v38 = vld [vmem:[%s17662_s23 + $0x220] ss:$8 sps:$4 sm:$0xff]  }
 0x18a   : > { %22953 = vst [vmem:[#allocation15_spill] sm:$0xff] %v18334_v34  ;;  %3168 = vmatmul.mubr.bf16.gmra.mrb[132].mxu0 %v16165_v4 }
 0x18b   : > { %3461 = vmatmul.mubr.bf16.gmra.mrb[132].mxu1 %v16165_v4  ;;  %13598 = vmatprep.mubr.msk.bf16.mxu0 %vm1218_vm0, %v16166_v32 }
 0x18c   : > { %13652 = vmatprep.mubr.msk.bf16.mxu1 %vm1218_vm0, %v16166_v32 }
 0x18d   : > { %v18344_v24 = vpop.f32.mrb[28].mxu0 }
 0x18e   : > { %22954 = vst [vmem:[#allocation16_spill] sm:$0xff] %v18344_v24  ;;  %v18346_v1 = vpop.f32.mrb[28].mxu1  ;;  %v18348_v37 = vpop.f32.mrb[29].mxu0  ;;  %v16171_v24 = vld [vmem:[%s17662_s23 + $0x230] ss:$8 sps:$4 sm:$0xff]  }
 0x18f   : > { %22955 = vst [vmem:[#allocation17_spill] sm:$0xff] %v18346_v1  ;;  %22956 = vst [vmem:[#allocation18_spill] sm:$0xff] %v18348_v37  ;;  %v18350_v30 = vpop.f32.mrb[29].mxu1  ;;  %v18355_v31 = vpop.f32.mrb[30].mxu0 }
 0x190   : > { %22957 = vst [vmem:[#allocation19_spill] sm:$0xff] %v18350_v30  ;;  %22958 = vst [vmem:[#allocation20_spill] sm:$0xff] %v18355_v31  ;;  %v18357_v4 = vpop.f32.mrb[30].mxu1  ;;  %v18362_v34 = vpop.f32.mrb[31].mxu0  ;;  %v16178_v31 = vld [vmem:[%s17662_s23 + $0x264] ss:$8 sps:$4 sm:$0xff]  }
 0x191   : > { %22959 = vst [vmem:[#allocation21_spill] sm:$0xff] %v18357_v4  ;;  %22960 = vst [vmem:[#allocation22_spill] sm:$0xff] %v18362_v34  ;;  %v18364_v33 = vpop.f32.mrb[31].mxu1 }
 0x192   : > { %22961 = vst [vmem:[#allocation23_spill] sm:$0xff] %v18364_v33  ;;  %3178 = vmatmul.mubr.bf16.gmra.mrb[136].mxu0 %v16168_v38 }
 0x193   : > { %3471 = vmatmul.mubr.bf16.gmra.mrb[136].mxu1 %v16168_v38  ;;  %13599 = vmatprep.mubr.msk.bf16.mxu0 %vm1218_vm0, %v16169_v19 }
 0x194   : > { %13653 = vmatprep.mubr.msk.bf16.mxu1 %vm1218_vm0, %v16169_v19 }
 0x195   : > { %v18372_v1 = vpop.f32.mrb[32].mxu0 }
 0x196   : > { %22962 = vst [vmem:[#allocation24_spill] sm:$0xff] %v18372_v1  ;;  %v18374_v32 = vpop.f32.mrb[32].mxu1  ;;  %v18376_v30 = vpop.f32.mrb[33].mxu0  ;;  %v16174_v1 = vld [vmem:[%s17662_s23 + $0x240] ss:$8 sps:$4 sm:$0xff]  }
 0x197   : > { %22963 = vst [vmem:[#allocation25_spill] sm:$0xff] %v18374_v32  ;;  %22964 = vst [vmem:[#allocation26_spill] sm:$0xff] %v18376_v30  ;;  %v18378_v37 = vpop.f32.mrb[33].mxu1  ;;  %v18383_v4 = vpop.f32.mrb[34].mxu0 }
 0x198   : > { %22965 = vst [vmem:[#allocation27_spill] sm:$0xff] %v18378_v37  ;;  %22966 = vst [vmem:[#allocation28_spill] sm:$0xff] %v18383_v4  ;;  %v18385_v38 = vpop.f32.mrb[34].mxu1  ;;  %v18390_v33 = vpop.f32.mrb[35].mxu0  ;;  %v16181_v4 = vld [vmem:[%s17662_s23 + $0x274] ss:$8 sps:$4 sm:$0xff]  }
 0x199   : > { %22967 = vst [vmem:[#allocation29_spill] sm:$0xff] %v18385_v38  ;;  %22968 = vst [vmem:[#allocation30_spill] sm:$0xff] %v18390_v33  ;;  %v18392_v34 = vpop.f32.mrb[35].mxu1 }
 0x19a   : > { %22969 = vst [vmem:[#allocation31_spill] sm:$0xff] %v18392_v34  ;;  %3188 = vmatmul.mubr.bf16.gmra.mrb[140].mxu0 %v16171_v24 }
 0x19b   : > { %3481 = vmatmul.mubr.bf16.gmra.mrb[140].mxu1 %v16171_v24  ;;  %13600 = vmatprep.mubr.msk.bf16.mxu0 %vm1218_vm0, %v16172_v14 }
 0x19c   : > { %13654 = vmatprep.mubr.msk.bf16.mxu1 %vm1218_vm0, %v16172_v14 }
 0x19d   : > { %v18400_v32 = vpop.f32.mrb[36].mxu0 }
 0x19e   : > { %22970 = vst [vmem:[#allocation32_spill] sm:$0xff] %v18400_v32  ;;  %v18402_v19 = vpop.f32.mrb[36].mxu1  ;;  %v18404_v37 = vpop.f32.mrb[37].mxu0  ;;  %v16177_v32 = vld [vmem:[%s17662_s23 + $0x250] ss:$8 sps:$4 sm:$0xff]  }
 0x19f   : > { %22971 = vst [vmem:[#allocation33_spill] sm:$0xff] %v18402_v19  ;;  %22972 = vst [vmem:[#allocation34_spill] sm:$0xff] %v18404_v37  ;;  %v18406_v30 = vpop.f32.mrb[37].mxu1  ;;  %v18411_v38 = vpop.f32.mrb[38].mxu0 }
 0x1a0   : > { %22973 = vst [vmem:[#allocation35_spill] sm:$0xff] %v18406_v30  ;;  %22974 = vst [vmem:[#allocation36_spill] sm:$0xff] %v18411_v38  ;;  %v18413_v24 = vpop.f32.mrb[38].mxu1  ;;  %v18418_v34 = vpop.f32.mrb[39].mxu0 }
 0x1a1   : > { %22975 = vst [vmem:[#allocation37_spill] sm:$0xff] %v18413_v24  ;;  %22976 = vst [vmem:[#allocation38_spill] sm:$0xff] %v18418_v34  ;;  %v18420_v33 = vpop.f32.mrb[39].mxu1 }
 0x1a2   : > { %22977 = vst [vmem:[#allocation39_spill] sm:$0xff] %v18420_v33  ;;  %3198 = vmatmul.mubr.bf16.gmra.mrb[144].mxu0 %v16174_v1 }
 0x1a3   : > { %3491 = vmatmul.mubr.bf16.gmra.mrb[144].mxu1 %v16174_v1  ;;  %13601 = vmatprep.mubr.msk.bf16.mxu0 %vm1218_vm0, %v16175_v22 }
 0x1a4   : > { %13655 = vmatprep.mubr.msk.bf16.mxu1 %vm1218_vm0, %v16175_v22 }
 0x1a5   : > { %v18428_v19 = vpop.f32.mrb[40].mxu0 }
 0x1a6   : > { %22978 = vst [vmem:[#allocation40_spill] sm:$0xff] %v18428_v19  ;;  %v18430_v14 = vpop.f32.mrb[40].mxu1  ;;  %v18432_v30 = vpop.f32.mrb[41].mxu0  ;;  %v16180_v19 = vld [vmem:[%s17662_s23 + $0x260] ss:$8 sps:$4 sm:$0xff]  }
 0x1a7   : > { %22979 = vst [vmem:[#allocation41_spill] sm:$0xff] %v18430_v14  ;;  %22980 = vst [vmem:[#allocation42_spill] sm:$0xff] %v18432_v30  ;;  %v18434_v37 = vpop.f32.mrb[41].mxu1  ;;  %v18439_v24 = vpop.f32.mrb[42].mxu0 }
 0x1a8   : > { %22981 = vst [vmem:[#allocation43_spill] sm:$0xff] %v18434_v37  ;;  %22982 = vst [vmem:[#allocation44_spill] sm:$0xff] %v18439_v24  ;;  %v18441_v1 = vpop.f32.mrb[42].mxu1  ;;  %v18446_v33 = vpop.f32.mrb[43].mxu0 }
 0x1a9   : > { %22983 = vst [vmem:[#allocation45_spill] sm:$0xff] %v18441_v1  ;;  %22984 = vst [vmem:[#allocation46_spill] sm:$0xff] %v18446_v33  ;;  %v18448_v34 = vpop.f32.mrb[43].mxu1 }
 0x1aa   : > { %22985 = vst [vmem:[#allocation47_spill] sm:$0xff] %v18448_v34  ;;  %3208 = vmatmul.mubr.bf16.gmra.mrb[148].mxu0 %v16177_v32 }
 0x1ab   : > { %3501 = vmatmul.mubr.bf16.gmra.mrb[148].mxu1 %v16177_v32  ;;  %13602 = vmatprep.mubr.msk.bf16.mxu0 %vm1218_vm0, %v16178_v31 }
 0x1ac   : > { %13656 = vmatprep.mubr.msk.bf16.mxu1 %vm1218_vm0, %v16178_v31 }
 0x1ad   : > { %v18456_v14 = vpop.f32.mrb[44].mxu0 }
 0x1ae   : > { %22986 = vst [vmem:[#allocation48_spill] sm:$0xff] %v18456_v14  ;;  %v18458_v22 = vpop.f32.mrb[44].mxu1  ;;  %v18460_v37 = vpop.f32.mrb[45].mxu0  ;;  %v16183_v14 = vld [vmem:[%s17662_s23 + $0x270] ss:$8 sps:$4 sm:$0xff]  }
 0x1af   : > { %22987 = vst [vmem:[#allocation49_spill] sm:$0xff] %v18458_v22  ;;  %22988 = vst [vmem:[#allocation50_spill] sm:$0xff] %v18460_v37  ;;  %v18462_v30 = vpop.f32.mrb[45].mxu1  ;;  %v18467_v1 = vpop.f32.mrb[46].mxu0 }
 0x1b0   : > { %22989 = vst [vmem:[#allocation51_spill] sm:$0xff] %v18462_v30  ;;  %22990 = vst [vmem:[#allocation52_spill] sm:$0xff] %v18467_v1  ;;  %v18469_v32 = vpop.f32.mrb[46].mxu1  ;;  %v18474_v34 = vpop.f32.mrb[47].mxu0  ;;  %v16186_v1 = vld [vmem:[%s17662_s23 + $0x280] ss:$8 sps:$4 sm:$0xff]  }
 0x1b1   : > { %22991 = vst [vmem:[#allocation53_spill] sm:$0xff] %v18469_v32  ;;  %22992 = vst [vmem:[#allocation54_spill] sm:$0xff] %v18474_v34  ;;  %v18476_v33 = vpop.f32.mrb[47].mxu1 }
 0x1b2   : > { %22993 = vst [vmem:[#allocation55_spill] sm:$0xff] %v18476_v33  ;;  %3218 = vmatmul.mubr.bf16.gmra.mrb[152].mxu0 %v16180_v19 }
 0x1b3   : > { %3511 = vmatmul.mubr.bf16.gmra.mrb[152].mxu1 %v16180_v19  ;;  %13603 = vmatprep.mubr.msk.bf16.mxu0 %vm1218_vm0, %v16181_v4  ;;  %v16184_v19 = vld [vmem:[%s17662_s23 + $0x284] ss:$8 sps:$4 sm:$0xff]  }
 0x1b4   : > { %13657 = vmatprep.mubr.msk.bf16.mxu1 %vm1218_vm0, %v16181_v4 }
 0x1b5   : > { %v18484_v22 = vpop.f32.mrb[48].mxu0 }
 0x1b6   : > { %22994 = vst [vmem:[#allocation56_spill] sm:$0xff] %v18484_v22  ;;  %v18486_v31 = vpop.f32.mrb[48].mxu1  ;;  %v18488_v30 = vpop.f32.mrb[49].mxu0 }
 0x1b7   : > { %22995 = vst [vmem:[#allocation57_spill] sm:$0xff] %v18486_v31  ;;  %22996 = vst [vmem:[#allocation58_spill] sm:$0xff] %v18488_v30  ;;  %v18490_v37 = vpop.f32.mrb[49].mxu1  ;;  %v18495_v32 = vpop.f32.mrb[50].mxu0  ;;  %v2441_v31 = vlaneseq }
 0x1b8   : > { %22997 = vst [vmem:[#allocation59_spill] sm:$0xff] %v18490_v37  ;;  %22998 = vst [vmem:[#allocation60_spill] sm:$0xff] %v18495_v32  ;;  %v18497_v38 = vpop.f32.mrb[50].mxu1  ;;  %v18502_v33 = vpop.f32.mrb[51].mxu0  ;;  %v16234_v32 = vld [vmem:[%s22718_s3 + $0x94] ss:$8 sps:$4 sm:$0xff]  }
 0x1b9   : > { %22999 = vst [vmem:[#allocation61_spill] sm:$0xff] %v18497_v38  ;;  %23000 = vst [vmem:[#allocation62_spill] sm:$0xff] %v18502_v33  ;;  %v18504_v34 = vpop.f32.mrb[51].mxu1  ;;  %v2442_v38 = vshrl.u32 %v2441_v31, 7  ;;  %v16187_v33 = vld [vmem:[%s17662_s23 + $0x294] ss:$8 sps:$4 sm:$0xff]   ;;  %4939 = vmatprep.subr.bf16.mxu0 %v16234_v32  ;;  %v23011_v31 = vmax.f32 %v18110_v57, %v18112_v61  ;;  %v23013_v57 = vmax.f32 %v18123_v26, %v18125_v35 }
 0x1ba   : > { %23001 = vst [vmem:[#allocation63_spill] sm:$0xff] %v18504_v34  ;;  %3228 = vmatmul.mubr.bf16.gmra.mrb[156].mxu0 %v16183_v14 }
 0x1bb   : > { %3521 = vmatmul.mubr.bf16.gmra.mrb[156].mxu1 %v16183_v14  ;;  %13604 = vmatprep.mubr.msk.bf16.mxu0 %vm1218_vm0, %v16184_v19 }
 0x1bc   : > { %13658 = vmatprep.mubr.msk.bf16.mxu1 %vm1218_vm0, %v16184_v19  ;;  %v16237_v19 = vld [vmem:[%s22718_s3 + $0x364] ss:$8 sps:$4 sm:$0xff]  }
 0x1bd   : > { %v18512_v22 = vpop.f32.mrb[52].mxu0  ;;  %7293 = vmatprep.subr.bf16.mxu1 %v16237_v19 }
 0x1be   : > { %23002 = vst [vmem:[#allocation64_spill] sm:$0xff] %v18512_v22  ;;  %v18514_v4 = vpop.f32.mrb[52].mxu1  ;;  %v18516_v37 = vpop.f32.mrb[53].mxu0 }
 0x1bf   : > { %23003 = vst [vmem:[#allocation65_spill] sm:$0xff] %v18514_v4  ;;  %23004 = vst [vmem:[#allocation66_spill] sm:$0xff] %v18516_v37  ;;  %v18518_v30 = vpop.f32.mrb[53].mxu1  ;;  %v18523_v34 = vpop.f32.mrb[54].mxu0  ;;  %v2439_v37 = vld [vmem:[%s22717_s2] sm:$0x3] }
 0x1c0   : > { %23005 = vst [vmem:[#allocation67_spill] sm:$0xff] %v18518_v30  ;;  %23006 = vst [vmem:[#allocation68_spill] sm:$0xff] %v18523_v34  ;;  %v18525_v14 = vpop.f32.mrb[54].mxu1  ;;  %v18533_v29 = vpop.f32.mrb[55].mxu0  ;;  %v18544_v30 = vsub.s32 0, %v2442_v38  ;;  %v18549_v4 = vsub.s32 1, %v2442_v38  ;;  %v23012_v38 = vmax.f32 %v18116_v6, %v18118_v11 }
 0x1c1   : > { %23007 = vst [vmem:[#allocation69_spill] sm:$0xff] %v18525_v14  ;;  %23008 = vst [vmem:[#allocation70_spill] sm:$0xff] %v18533_v29  ;;  %v18535_v28 = vpop.f32.mrb[55].mxu1  ;;  %v16189_v34 = vld [vmem:[%s17662_s23 + $0x290] ss:$8 sps:$4 sm:$0xff]  }
 0x1c2   : > { %23009 = vst [vmem:[#allocation71_spill] sm:$0xff] %v18535_v28  ;;  %3238 = vmatmul.mubr.bf16.gmra.mrb[160].mxu0 %v16186_v1  ;;  %23010 = vst [vmem:[#allocation72_spill] sm:$0xff] %v18544_v30  ;;  %v18557_v28 = vrot.slane %v2439_v37, %v18544_v30 }
 0x1c3   : > { %3531 = vmatmul.mubr.bf16.gmra.mrb[160].mxu1 %v16186_v1  ;;  %13605 = vmatprep.mubr.msk.bf16.mxu0 %vm1218_vm0, %v16187_v33 }
 0x1c4   : > { %13659 = vmatprep.mubr.msk.bf16.mxu1 %vm1218_vm0, %v16187_v33  ;;  %v18564_v33 = vrot.slane %v2439_v37, %v18549_v4 }
 0x1c5   : > { %v2015_v32 = vpop.f32.mrb[56].mxu0 }
 0x1c6   : > { %v2244_v24 = vpop.f32.mrb[56].mxu1  ;;  %v2154_v1 = vmax.f32 %v23011_v31, %v2015_v32  ;;  %v2017_v29 = vpop.f32.mrb[57].mxu0 }
 0x1c7   : > { %v2246_v14 = vpop.f32.mrb[57].mxu1  ;;  %v2155_v22 = vmax.f32 %v23012_v38, %v2017_v29  ;;  %v2019_v19 = vpop.f32.mrb[58].mxu0  ;;  %v23018_v38 = vmax.f32 %v18144_v46, %v18146_v47 }
 0x1c8   : > { %v2248_v27 = vpop.f32.mrb[58].mxu1  ;;  %v2383_v25 = vmax.f32 %v2154_v1, %v2244_v24  ;;  %v2156_v61 = vmax.f32 %v23013_v57, %v2019_v19  ;;  %v2021_v31 = vpop.f32.mrb[59].mxu0 }
 0x1c9   : > { %v2250_v32 = vpop.f32.mrb[59].mxu1  ;;  %v2384_v30 = vmax.f32 %v2155_v22, %v2246_v14  ;;  %v2157_v23 = vmax.f32 %v23014_v9, %v2021_v31  ;;  %v16190_v22 = vld [vmem:[%s17662_s23 + $0x2a0] ss:$8 sps:$4 sm:$0xff]   ;;  %v16193_v31 = vld [vmem:[%s17662_s23 + $0x2b4] ss:$8 sps:$4 sm:$0xff]  }
 0x1ca   : > { %v2451_v6 = vadd.f32 %v18557_v28, %v2383_v25  ;;  %v2385_v11 = vmax.f32 %v2156_v61, %v2248_v27  ;;  %3248 = vmatmul.mubr.bf16.gmra.mrb[164].mxu0 %v16189_v34 }
 0x1cb   : > { %3541 = vmatmul.mubr.bf16.gmra.mrb[164].mxu1 %v16189_v34  ;;  %v2452_v26 = vadd.f32 %v18564_v33, %v2384_v30  ;;  %v2386_v35 = vmax.f32 %v2157_v23, %v2250_v32  ;;  %13716 = vmatprep.mubr.msk.bf16.mxu0 %vm1218_vm0, %v16192_v12  ;;  %v23017_v23 = vmax.f32 %v18138_v43, %v18140_v44  ;;  %v16803_v34 = vld [vmem:[%s22720_s5 + $0x1d8] sm:$0xff]  }
 0x1cc   : > { %13730 = vmatprep.mubr.msk.bf16.mxu1 %vm1218_vm0, %v16192_v12  ;;  %v2507_v40 = vmax.f32 %v2451_v6, 0.0  ;;  %v2453_v41 = vadd.f32 %v18557_v28, %v2385_v11  ;;  %v23019_v6 = vmax.f32 %v18151_v50, %v18153_v51  ;;  %v23020_v50 = vmax.f32 %v18157_v53, %v18159_v54 }
 0x1cd   : > { %v2508_v9 = vmax.f32 %v2452_v26, 0.0  ;;  %v2454_v25 = vadd.f32 %v18564_v33, %v2386_v35  ;;  %v2025_v27 = vpop.f32.mrb[60].mxu0  ;;  %v16232_v26 = vld [vmem:[%s22718_s3 + $0x90] ss:$8 sps:$4 sm:$0xff]   ;;  %v16235_v35 = vld [vmem:[%s22718_s3 + $0x360] ss:$8 sps:$4 sm:$0xff]  }
 0x1ce   : > { %v2254_v29 = vpop.f32.mrb[60].mxu1  ;;  %v2509_v37 = vmax.f32 %v2453_v41, 0.0  ;;  %v2158_v30 = vmax.f32 %v23017_v23, %v2025_v27  ;;  %v2027_v12 = vpop.f32.mrb[61].mxu0  ;;  %v16243_v41 = vld [vmem:[%s22718_s3 + $0x374] ss:$8 sps:$4 sm:$0xff]  }
 0x1cf   : > { %v2256_v24 = vpop.f32.mrb[61].mxu1  ;;  %v14949_v14 = vpack.c.bf16 %v2508_v9, %v2507_v40  ;;  %v2510_v1 = vmax.f32 %v2454_v25, 0.0  ;;  %v2159_v19 = vmax.f32 %v23018_v38, %v2027_v12  ;;  %v2029_v57 = vpop.f32.mrb[62].mxu0  ;;  %v16240_v40 = vld [vmem:[%s22718_s3 + $0xa4] ss:$8 sps:$4 sm:$0xff]  }
 0x1d0   : > { %v2258_v61 = vpop.f32.mrb[62].mxu1  ;;  %v2387_v32 = vmax.f32 %v2158_v30, %v2254_v29  ;;  %v2160_v11 = vmax.f32 %v23019_v6, %v2029_v57  ;;  %v2031_v43 = vpop.f32.mrb[63].mxu0  ;;  %v16241_v23 = vld [vmem:[%s22718_s3 + $0x370] ss:$8 sps:$4 sm:$0xff]   ;;  %v23022_v6 = vmax.f32 %v18176_v36, %v18178_v55  ;;  %v16246_v36 = vld [vmem:[%s22718_s3 + $0xb4] ss:$8 sps:$4 sm:$0xff]  }
 0x1d1   : > { %v2260_v44 = vpop.f32.mrb[63].mxu1  ;;  %2731 = vst.msk [vmem:[%s18605_s26 + $0x20] sm:$0xff] %vm18583_vm3, %v14949_v14  ;;  %v14950_v46 = vpack.c.bf16 %v2510_v1, %v2509_v37  ;;  %v2388_v47 = vmax.f32 %v2159_v19, %v2256_v24  ;;  %v2161_v51 = vmax.f32 %v23020_v50, %v2031_v43  ;;  %v16238_v37 = vld [vmem:[%s22718_s3 + $0xa0] ss:$8 sps:$4 sm:$0xff]   ;;  %v23021_v1 = vmax.f32 %v18168_v52, %v18170_v49  ;;  %v16244_v50 = vld [vmem:[%s22718_s3 + $0xb0] ss:$8 sps:$4 sm:$0xff]  }
 0x1d2   : > { %v2455_v9 = vadd.f32 %v18557_v28, %v2387_v32  ;;  %v2389_v25 = vmax.f32 %v2160_v11, %v2258_v61  ;;  %3837 = vmatmul.mubr.bf16.vlgmr.msra.gmra.mrb[168].mxu0 %v16190_v22  ;;  %v16195_v61 = vld [vmem:[%s17662_s23 + $0x2b0] ss:$8 sps:$4 sm:$0xff]  }
 0x1d3   : > { %4066 = vmatmul.mubr.bf16.vlgmr.msra.gmra.mrb[168].mxu1 %v16190_v22  ;;  %2732 = vst.msk [vmem:[%s18605_s26 + $0x28] sm:$0xff] %vm18583_vm3, %v14950_v46  ;;  %v2456_v27 = vadd.f32 %v18564_v33, %v2388_v47  ;;  %v2390_v53 = vmax.f32 %v2161_v51, %v2260_v44  ;;  %13717 = vmatprep.mubr.msk.bf16.mxu0 %vm1218_vm0, %v16193_v31 }
 0x1d4   : > { %13731 = vmatprep.mubr.msk.bf16.mxu1 %vm1218_vm0, %v16193_v31  ;;  %v2511_v54 = vmax.f32 %v2455_v9, 0.0  ;;  %v2457_v29 = vadd.f32 %v18557_v28, %v2389_v25  ;;  %4940 = vmatpush1.bf16.msra.mxu0 %v16232_v26  ;;  %v16196_v26 = vld [vmem:[%s17662_s23 + $0x2c4] ss:$8 sps:$4 sm:$0xff]   ;;  %v23023_v46 = vmax.f32 %v18183_v16, %v18185_v42  ;;  %v23024_v42 = vmax.f32 %v18192_v48, %v18194_v39 }
 0x1d5   : > { %7294 = vmatpush1.bf16.msra.mxu1 %v16235_v35  ;;  %v2512_v30 = vmax.f32 %v2456_v27, 0.0  ;;  %v2458_v12 = vadd.f32 %v18564_v33, %v2390_v53  ;;  %v2035_v24 = vpop.f32.mrb[64].mxu0  ;;  %4941 = vmatprep.subr.bf16.mxu0 %v16240_v40  ;;  %v16247_v40 = vld [vmem:[%s22718_s3 + $0x380] ss:$8 sps:$4 sm:$0xff]  }
 0x1d6   : > { %v2264_v22 = vpop.f32.mrb[64].mxu1  ;;  %7295 = vmatprep.subr.bf16.mxu1 %v16243_v41  ;;  %v2513_v14 = vmax.f32 %v2457_v29, 0.0  ;;  %v2162_v38 = vmax.f32 %v23021_v1, %v2035_v24  ;;  %v2037_v19 = vpop.f32.mrb[65].mxu0  ;;  %v16249_v41 = vld [vmem:[%s22718_s3 + $0x384] ss:$8 sps:$4 sm:$0xff]  }
 0x1d7   : > { %v2266_v57 = vpop.f32.mrb[65].mxu1  ;;  %v14951_v31 = vpack.c.bf16 %v2512_v30, %v2511_v54  ;;  %v2514_v32 = vmax.f32 %v2458_v12, 0.0  ;;  %v2163_v11 = vmax.f32 %v23022_v6, %v2037_v19  ;;  %v2039_v43 = vpop.f32.mrb[66].mxu0  ;;  %v23025_v12 = vmax.f32 %v18204_v60, %v18206_v62  ;;  %v16198_v1 = vld [vmem:[%s17662_s23 + $0x2c0] ss:$8 sps:$4 sm:$0xff]  }
 0x1d8   : > { %v2268_v44 = vpop.f32.mrb[66].mxu1  ;;  %v2391_v35 = vmax.f32 %v2162_v38, %v2264_v22  ;;  %v2164_v47 = vmax.f32 %v23023_v46, %v2039_v43  ;;  %v2041_v49 = vpop.f32.mrb[67].mxu0  ;;  %4942 = vmatpush1.bf16.msra.mxu0 %v16238_v37  ;;  %v16199_v6 = vld [vmem:[%s17662_s23 + $0x2d4] ss:$8 sps:$4 sm:$0xff]   ;;  %v23027_v43 = vmax.f32 %v18219_v3, %v18221_v45  ;;  %v16250_v46 = vld [vmem:[%s22718_s3 + $0xc0] ss:$8 sps:$4 sm:$0xff]  }
 0x1d9   : > { %v2270_v52 = vpop.f32.mrb[67].mxu1  ;;  %7296 = vmatpush1.bf16.msra.mxu1 %v16241_v23  ;;  %2733 = vst.msk [vmem:[%s18605_s26 + $0x30] sm:$0xff] %vm18583_vm3, %v14951_v31  ;;  %v14952_v55 = vpack.c.bf16 %v2514_v32, %v2513_v14  ;;  %v2392_v51 = vmax.f32 %v2163_v11, %v2266_v57  ;;  %v2165_v16 = vmax.f32 %v23024_v42, %v2041_v49  ;;  %v16252_v45 = vld [vmem:[%s22718_s3 + $0xc4] ss:$8 sps:$4 sm:$0xff]  }
 0x1da   : > { %v2459_v9 = vadd.f32 %v18557_v28, %v2391_v35  ;;  %v2393_v25 = vmax.f32 %v2164_v47, %v2268_v44  ;;  %3847 = vmatmul.mubr.bf16.gmra.mrb[172].mxu0 %v16195_v61  ;;  %4943 = vmatprep.subr.bf16.mxu0 %v16246_v36  ;;  %v23026_v57 = vmax.f32 %v18212_v0, %v18214_v56 }
 0x1db   : > { %4076 = vmatmul.mubr.bf16.gmra.mrb[172].mxu1 %v16195_v61  ;;  %2734 = vst.msk [vmem:[%s18605_s26 + $0x38] sm:$0xff] %vm18583_vm3, %v14952_v55  ;;  %v2460_v27 = vadd.f32 %v18564_v33, %v2392_v51  ;;  %v2394_v39 = vmax.f32 %v2165_v16, %v2270_v52  ;;  %13718 = vmatprep.mubr.msk.bf16.mxu0 %vm1218_vm0, %v16196_v26 }
 0x1dc   : > { %13732 = vmatprep.mubr.msk.bf16.mxu1 %vm1218_vm0, %v16196_v26  ;;  %v2515_v48 = vmax.f32 %v2459_v9, 0.0  ;;  %v2461_v53 = vadd.f32 %v18557_v28, %v2393_v25  ;;  %7297 = vmatprep.subr.bf16.mxu1 %v16249_v41  ;;  %v23028_v0 = vmax.f32 %v18226_v5, %v18228_v21  ;;  %v23029_v16 = vmax.f32 %v18240_v7, %v18242_v8  ;;  %v16201_v25 = vld [vmem:[%s17662_s23 + $0x2d0] ss:$8 sps:$4 sm:$0xff]  }
 0x1dd   : > { %v2516_v54 = vmax.f32 %v2460_v27, 0.0  ;;  %v2462_v29 = vadd.f32 %v18564_v33, %v2394_v39  ;;  %v2045_v37 = vpop.f32.mrb[68].mxu0  ;;  %4944 = vmatpush1.bf16.msra.mxu0 %v16244_v50  ;;  %7298 = vmatpush1.bf16.msra.mxu1 %v16247_v40 }
 0x1de   : > { %v2274_v23 = vpop.f32.mrb[68].mxu1  ;;  %v2517_v30 = vmax.f32 %v2461_v53, 0.0  ;;  %v2166_v24 = vmax.f32 %v23025_v12, %v2045_v37  ;;  %v2047_v22 = vpop.f32.mrb[69].mxu0  ;;  %4945 = vmatprep.subr.bf16.mxu0 %v16252_v45  ;;  %v16202_v37 = vld [vmem:[%s17662_s23 + $0x2e4] ss:$8 sps:$4 sm:$0xff]  }
 0x1df   : > { %v2276_v14 = vpop.f32.mrb[69].mxu1  ;;  %v14953_v38 = vpack.c.bf16 %v2516_v54, %v2515_v48  ;;  %v2518_v19 = vmax.f32 %v2462_v29, 0.0  ;;  %v2167_v61 = vmax.f32 %v23026_v57, %v2047_v22  ;;  %v2049_v31 = vpop.f32.mrb[70].mxu0  ;;  %v23030_v48 = vmax.f32 %v18248_v10, %v18250_v58 }
 0x1e0   : > { %v2278_v32 = vpop.f32.mrb[70].mxu1  ;;  %v2395_v11 = vmax.f32 %v2166_v24, %v2274_v23  ;;  %v2168_v44 = vmax.f32 %v23027_v43, %v2049_v31  ;;  %v2051_v60 = vpop.f32.mrb[71].mxu0  ;;  %v16255_v24 = vld [vmem:[%s22718_s3 + $0x394] ss:$8 sps:$4 sm:$0xff]   ;;  %v23032_v22 = vmax.f32 %v18262_v15, %v18264_v2 }
 0x1e1   : > { %v2280_v62 = vpop.f32.mrb[71].mxu1  ;;  %2735 = vst.msk [vmem:[%s18605_s26 + $0x40] sm:$0xff] %vm18583_vm3, %v14953_v38  ;;  %v14954_v26 = vpack.c.bf16 %v2518_v19, %v2517_v30  ;;  %v2396_v35 = vmax.f32 %v2167_v61, %v2276_v14  ;;  %v2169_v56 = vmax.f32 %v23028_v0, %v2051_v60  ;;  %4946 = vmatpush1.bf16.msra.mxu0 %v16250_v46 }
 0x1e2   : > { %v2463_v3 = vadd.f32 %v18557_v28, %v2395_v11  ;;  %v2397_v47 = vmax.f32 %v2168_v44, %v2278_v32  ;;  %3857 = vmatmul.mubr.bf16.gmra.mrb[176].mxu0 %v16198_v1  ;;  %v23031_v30 = vmax.f32 %v18255_v13, %v18257_v63  ;;  %v16253_v63 = vld [vmem:[%s22718_s3 + $0x390] ss:$8 sps:$4 sm:$0xff]   ;;  %7299 = vmatprep.subr.bf16.mxu1 %v16255_v24 }
 0x1e3   : > { %4086 = vmatmul.mubr.bf16.gmra.mrb[176].mxu1 %v16198_v1  ;;  %2736 = vst.msk [vmem:[%s18605_s26 + $0x48] sm:$0xff] %vm18583_vm3, %v14954_v26  ;;  %v2464_v49 = vadd.f32 %v18564_v33, %v2396_v35  ;;  %v2398_v21 = vmax.f32 %v2169_v56, %v2280_v62  ;;  %13719 = vmatprep.mubr.msk.bf16.mxu0 %vm1218_vm0, %v16199_v6  ;;  %v16204_v62 = vld [vmem:[%s17662_s23 + $0x2e0] ss:$8 sps:$4 sm:$0xff]  }
 0x1e4   : > { %13733 = vmatprep.mubr.msk.bf16.mxu1 %vm1218_vm0, %v16199_v6  ;;  %v2519_v5 = vmax.f32 %v2463_v3, 0.0  ;;  %v2465_v52 = vadd.f32 %v18557_v28, %v2397_v47  ;;  %7300 = vmatpush1.bf16.msra.mxu1 %v16253_v63  ;;  %v23033_v11 = vmax.f32 %v18276_v17, %v18278_v18  ;;  %v23034_v0 = vmax.f32 %v18284_v20, %v18286_v59  ;;  %v16205_v3 = vld [vmem:[%s17662_s23 + $0x2f4] ss:$8 sps:$4 sm:$0xff]  }
 0x1e5   : > { %v2520_v50 = vmax.f32 %v2464_v49, 0.0  ;;  %v2466_v36 = vadd.f32 %v18564_v33, %v2398_v21  ;;  %v2055_v55 = vpop.f32.mrb[72].mxu0  ;;  %v23035_v49 = vld [vmem:[#allocation4_spill] sm:$0xff]  ;;  %v23036_v21 = vld [vmem:[#allocation5_spill] sm:$0xff] }
 0x1e6   : > { %v2284_v51 = vpop.f32.mrb[72].mxu1  ;;  %v2521_v42 = vmax.f32 %v2465_v52, 0.0  ;;  %v2170_v40 = vmax.f32 %v23029_v16, %v2055_v55  ;;  %v2057_v41 = vpop.f32.mrb[73].mxu0  ;;  %v23038_v55 = vld [vmem:[#allocation6_spill] sm:$0xff] }
 0x1e7   : > { %v2286_v9 = vpop.f32.mrb[73].mxu1  ;;  %v14955_v27 = vpack.c.bf16 %v2520_v50, %v2519_v5  ;;  %v2522_v39 = vmax.f32 %v2466_v36, 0.0  ;;  %v2171_v53 = vmax.f32 %v23030_v48, %v2057_v41  ;;  %v2059_v54 = vpop.f32.mrb[74].mxu0  ;;  %v23037_v5 = vmax.f32 %v23035_v49, %v23036_v21  ;;  %v16258_v16 = vld [vmem:[%s22718_s3 + $0xd4] ss:$8 sps:$4 sm:$0xff]  }
 0x1e8   : > { %v2288_v29 = vpop.f32.mrb[74].mxu1  ;;  %v2399_v23 = vmax.f32 %v2170_v40, %v2284_v51  ;;  %v2172_v7 = vmax.f32 %v23031_v30, %v2059_v54  ;;  %v2061_v8 = vpop.f32.mrb[75].mxu0  ;;  %v23039_v51 = vld [vmem:[#allocation7_spill] sm:$0xff]  ;;  %v16259_v40 = vld [vmem:[%s22718_s3 + $0x3a0] ss:$8 sps:$4 sm:$0xff]   ;;  %4947 = vmatprep.subr.bf16.mxu0 %v16258_v16 }
 0x1e9   : > { %v2290_v12 = vpop.f32.mrb[75].mxu1  ;;  %2737 = vst.msk [vmem:[%s18605_s26 + $0x50] sm:$0xff] %vm18583_vm3, %v14955_v27  ;;  %v14956_v10 = vpack.c.bf16 %v2522_v39, %v2521_v42  ;;  %v2400_v58 = vmax.f32 %v2171_v53, %v2286_v9  ;;  %v2173_v14 = vmax.f32 %v23032_v22, %v2061_v8  ;;  %v23040_v20 = vmax.f32 %v23038_v55, %v23039_v51  ;;  %v16256_v42 = vld [vmem:[%s22718_s3 + $0xd0] ss:$8 sps:$4 sm:$0xff]   ;;  %v23042_v8 = vld [vmem:[#allocation9_spill] sm:$0xff]  ;;  %v23053_v55 = vld [vmem:[#allocation16_spill] sm:$0xff] }
 0x1ea   : > { %v2467_v13 = vadd.f32 %v18557_v28, %v2399_v23  ;;  %v2401_v1 = vmax.f32 %v2172_v7, %v2288_v29  ;;  %3867 = vmatmul.mubr.bf16.gmra.mrb[180].mxu0 %v16201_v25  ;;  %v23041_v7 = vld [vmem:[#allocation8_spill] sm:$0xff]  ;;  %v16207_v22 = vld [vmem:[%s17662_s23 + $0x2f0] ss:$8 sps:$4 sm:$0xff]   ;;  %v23054_v51 = vld [vmem:[#allocation17_spill] sm:$0xff] }
 0x1eb   : > { %4096 = vmatmul.mubr.bf16.gmra.mrb[180].mxu1 %v16201_v25  ;;  %2738 = vst.msk [vmem:[%s18605_s26 + $0x58] sm:$0xff] %vm18583_vm3, %v14956_v10  ;;  %v2468_v38 = vadd.f32 %v18564_v33, %v2400_v58  ;;  %v2402_v19 = vmax.f32 %v2173_v14, %v2290_v12  ;;  %13720 = vmatprep.mubr.msk.bf16.mxu0 %vm1218_vm0, %v16202_v37  ;;  %v16261_v25 = vld [vmem:[%s22718_s3 + $0x3a4] ss:$8 sps:$4 sm:$0xff]  }
 0x1ec   : > { %13734 = vmatprep.mubr.msk.bf16.mxu1 %vm1218_vm0, %v16202_v37  ;;  %v2523_v2 = vmax.f32 %v2467_v13, 0.0  ;;  %v2469_v15 = vadd.f32 %v18557_v28, %v2401_v1  ;;  %7301 = vmatprep.subr.bf16.mxu1 %v16261_v25  ;;  %v23043_v12 = vmax.f32 %v23041_v7, %v23042_v8  ;;  %v23044_v13 = vld [vmem:[#allocation10_spill] sm:$0xff]  ;;  %v23045_v1 = vld [vmem:[#allocation11_spill] sm:$0xff] }
 0x1ed   : > { %v2524_v57 = vmax.f32 %v2468_v38, 0.0  ;;  %v2470_v61 = vadd.f32 %v18564_v33, %v2402_v19  ;;  %v2065_v31 = vpop.f32.mrb[76].mxu0  ;;  %4948 = vmatpush1.bf16.msra.mxu0 %v16256_v42  ;;  %7302 = vmatpush1.bf16.msra.mxu1 %v16259_v40  ;;  %v23046_v38 = vmax.f32 %v23044_v13, %v23045_v1  ;;  %v16211_v40 = vld [vmem:[%s17662_s23 + $0x314] ss:$8 sps:$4 sm:$0xff]  }
 0x1ee   : > { %v2294_v32 = vpop.f32.mrb[76].mxu1  ;;  %v2525_v6 = vmax.f32 %v2469_v15, 0.0  ;;  %v2174_v43 = vmax.f32 %v23033_v11, %v2065_v31  ;;  %v2067_v44 = vpop.f32.mrb[77].mxu0  ;;  %v23047_v31 = vld [vmem:[#allocation12_spill] sm:$0xff]  ;;  %v23056_v25 = vld [vmem:[#allocation18_spill] sm:$0xff]  ;;  %v23063_v13 = vld [vmem:[#allocation23_spill] sm:$0xff] }
 0x1ef   : > { %v2296_v60 = vpop.f32.mrb[77].mxu1  ;;  %v14957_v26 = vpack.c.bf16 %v2524_v57, %v2523_v2  ;;  %v2526_v35 = vmax.f32 %v2470_v61, 0.0  ;;  %v2175_v56 = vmax.f32 %v23034_v0, %v2067_v44  ;;  %v2069_v46 = vpop.f32.mrb[78].mxu0  ;;  %v16208_v57 = vld [vmem:[%s17662_s23 + $0x304] ss:$8 sps:$4 sm:$0xff]  }
 0x1f0   : > { %v2298_v45 = vpop.f32.mrb[78].mxu1  ;;  %v2403_v47 = vmax.f32 %v2174_v43, %v2294_v32  ;;  %v2176_v52 = vmax.f32 %v23037_v5, %v2069_v46  ;;  %v2071_v17 = vpop.f32.mrb[79].mxu0  ;;  %v23048_v32 = vld [vmem:[#allocation13_spill] sm:$0xff] }
 0x1f1   : > { %v2300_v18 = vpop.f32.mrb[79].mxu1  ;;  %2739 = vst.msk [vmem:[%s18605_s26 + $0x60] sm:$0xff] %vm18583_vm3, %v14957_v26  ;;  %v14958_v50 = vpack.c.bf16 %v2526_v35, %v2525_v6  ;;  %v2404_v36 = vmax.f32 %v2175_v56, %v2296_v60  ;;  %v2177_v59 = vmax.f32 %v23040_v20, %v2071_v17  ;;  %v23049_v6 = vmax.f32 %v23047_v31, %v23048_v32  ;;  %v23050_v26 = vld [vmem:[#allocation14_spill] sm:$0xff]  ;;  %v23051_v35 = vld [vmem:[#allocation15_spill] sm:$0xff] }
 0x1f2   : > { %v2471_v41 = vadd.f32 %v18557_v28, %v2403_v47  ;;  %v2405_v9 = vmax.f32 %v2176_v52, %v2298_v45  ;;  %3877 = vmatmul.mubr.bf16.gmra.mrb[184].mxu0 %v16204_v62  ;;  %v23052_v0 = vmax.f32 %v23050_v26, %v23051_v35  ;;  %v23055_v20 = vmax.f32 %v23053_v55, %v23054_v51  ;;  %v23066_v26 = vld [vmem:[#allocation25_spill] sm:$0xff]  ;;  %v23071_v55 = vld [vmem:[#allocation28_spill] sm:$0xff] }
 0x1f3   : > { %4106 = vmatmul.mubr.bf16.gmra.mrb[184].mxu1 %v16204_v62  ;;  %2740 = vst.msk [vmem:[%s18605_s26 + $0x68] sm:$0xff] %vm18583_vm3, %v14958_v50  ;;  %v2472_v27 = vadd.f32 %v18564_v33, %v2404_v36  ;;  %v2406_v39 = vmax.f32 %v2177_v59, %v2300_v18  ;;  %13721 = vmatprep.mubr.msk.bf16.mxu0 %vm1218_vm0, %v16205_v3  ;;  %v16210_v50 = vld [vmem:[%s17662_s23 + $0x300] ss:$8 sps:$4 sm:$0xff]  }
 0x1f4   : > { %13735 = vmatprep.mubr.msk.bf16.mxu1 %vm1218_vm0, %v16205_v3  ;;  %v2527_v48 = vmax.f32 %v2471_v41, 0.0  ;;  %v2473_v53 = vadd.f32 %v18557_v28, %v2405_v9  ;;  %v23072_v51 = vld [vmem:[#allocation29_spill] sm:$0xff] }
 0x1f5   : > { %v2528_v54 = vmax.f32 %v2472_v27, 0.0  ;;  %v2474_v29 = vadd.f32 %v18564_v33, %v2406_v39  ;;  %v2075_v37 = vpop.f32.mrb[80].mxu0  ;;  %v23057_v27 = vld [vmem:[#allocation19_spill] sm:$0xff] }
 0x1f6   : > { %v2304_v23 = vpop.f32.mrb[80].mxu1  ;;  %v2529_v30 = vmax.f32 %v2473_v53, 0.0  ;;  %v2178_v24 = vmax.f32 %v23043_v12, %v2075_v37  ;;  %v2077_v10 = vpop.f32.mrb[81].mxu0  ;;  %v23058_v39 = vmax.f32 %v23056_v25, %v23057_v27  ;;  %v23075_v25 = vld [vmem:[#allocation31_spill] sm:$0xff] }
 0x1f7   : > { %v2306_v58 = vpop.f32.mrb[81].mxu1  ;;  %v14959_v14 = vpack.c.bf16 %v2528_v54, %v2527_v48  ;;  %v2530_v63 = vmax.f32 %v2474_v29, 0.0  ;;  %v2179_v19 = vmax.f32 %v23046_v38, %v2077_v10  ;;  %v2079_v2 = vpop.f32.mrb[82].mxu0  ;;  %v16264_v29 = vld [vmem:[%s22718_s3 + $0xe4] ss:$8 sps:$4 sm:$0xff]  }
 0x1f8   : > { %v2308_v15 = vpop.f32.mrb[82].mxu1  ;;  %v2407_v61 = vmax.f32 %v2178_v24, %v2304_v23  ;;  %v2180_v11 = vmax.f32 %v23049_v6, %v2079_v2  ;;  %v2081_v43 = vpop.f32.mrb[83].mxu0  ;;  %v23059_v23 = vld [vmem:[#allocation20_spill] sm:$0xff]  ;;  %4949 = vmatprep.subr.bf16.mxu0 %v16264_v29 }
 0x1f9   : > { %v2310_v44 = vpop.f32.mrb[83].mxu1  ;;  %2741 = vst.msk [vmem:[%s18605_s26 + $0x70] sm:$0xff] %vm18583_vm3, %v14959_v14  ;;  %v14960_v60 = vpack.c.bf16 %v2530_v63, %v2529_v30  ;;  %v2408_v62 = vmax.f32 %v2179_v19, %v2306_v58  ;;  %v2181_v56 = vmax.f32 %v23052_v0, %v2081_v43  ;;  %v23060_v30 = vld [vmem:[#allocation21_spill] sm:$0xff]  ;;  %v16267_v58 = vld [vmem:[%s22718_s3 + $0x3b4] ss:$8 sps:$4 sm:$0xff]  }
 0x1fa   : > { %v2475_v46 = vadd.f32 %v18557_v28, %v2407_v61  ;;  %v2409_v45 = vmax.f32 %v2180_v11, %v2308_v15  ;;  %3887 = vmatmul.mubr.bf16.gmra.mrb[188].mxu0 %v16207_v22  ;;  %v23061_v7 = vmax.f32 %v23059_v23, %v23060_v30  ;;  %v16262_v10 = vld [vmem:[%s22718_s3 + $0xe0] ss:$8 sps:$4 sm:$0xff]   ;;  %v23062_v63 = vld [vmem:[#allocation22_spill] sm:$0xff]  ;;  %7303 = vmatprep.subr.bf16.mxu1 %v16267_v58  ;;  %v16273_v23 = vld [vmem:[%s22718_s3 + $0x3c4] ss:$8 sps:$4 sm:$0xff]  }
 0x1fb   : > { %4116 = vmatmul.mubr.bf16.gmra.mrb[188].mxu1 %v16207_v22  ;;  %2742 = vst.msk [vmem:[%s18605_s26 + $0x78] sm:$0xff] %vm18583_vm3, %v14960_v60  ;;  %v2476_v3 = vadd.f32 %v18564_v33, %v2408_v62  ;;  %v2410_v47 = vmax.f32 %v2181_v56, %v2310_v44  ;;  %13722 = vmatprep.mubr.msk.bf16.mxu0 %vm1218_vm0, %v16208_v57  ;;  %v16265_v19 = vld [vmem:[%s22718_s3 + $0x3b0] ss:$8 sps:$4 sm:$0xff]   ;;  %v23065_v62 = vld [vmem:[#allocation24_spill] sm:$0xff] }
 0x1fc   : > { %13736 = vmatprep.mubr.msk.bf16.mxu1 %vm1218_vm0, %v16208_v57  ;;  %v2531_v49 = vmax.f32 %v2475_v46, 0.0  ;;  %v2477_v21 = vadd.f32 %v18557_v28, %v2409_v45  ;;  %v23064_v1 = vmax.f32 %v23062_v63, %v23063_v13  ;;  %4950 = vmatpush1.bf16.msra.mxu0 %v16262_v10  ;;  %v23067_v35 = vmax.f32 %v23065_v62, %v23066_v26  ;;  %v16213_v45 = vld [vmem:[%s17662_s23 + $0x310] ss:$8 sps:$4 sm:$0xff]   ;;  %v23077_v63 = vld [vmem:[#allocation32_spill] sm:$0xff]  ;;  %v23078_v13 = vld [vmem:[#allocation33_spill] sm:$0xff] }
 0x1fd   : > { %v2532_v5 = vmax.f32 %v2476_v3, 0.0  ;;  %v2478_v52 = vadd.f32 %v18564_v33, %v2410_v47  ;;  %v2085_v17 = vpop.f32.mrb[84].mxu0  ;;  %7304 = vmatpush1.bf16.msra.mxu1 %v16265_v19  ;;  %v23083_v26 = vld [vmem:[#allocation36_spill] sm:$0xff] }
 0x1fe   : > { %v2314_v18 = vpop.f32.mrb[84].mxu1  ;;  %v2533_v36 = vmax.f32 %v2477_v21, 0.0  ;;  %v2182_v59 = vmax.f32 %v23055_v20, %v2085_v17  ;;  %v2087_v42 = vpop.f32.mrb[85].mxu0  ;;  %v23069_v21 = vld [vmem:[#allocation27_spill] sm:$0xff]  ;;  %v23073_v20 = vmax.f32 %v23071_v55, %v23072_v51  ;;  %7305 = vmatprep.subr.bf16.mxu1 %v16273_v23 }
 0x1ff   : > { %v2316_v16 = vpop.f32.mrb[85].mxu1  ;;  %v14961_v41 = vpack.c.bf16 %v2532_v5, %v2531_v49  ;;  %v2534_v9 = vmax.f32 %v2478_v52, 0.0  ;;  %v2183_v48 = vmax.f32 %v23058_v39, %v2087_v42  ;;  %v2089_v53 = vpop.f32.mrb[86].mxu0  ;;  %v23068_v49 = vld [vmem:[#allocation26_spill] sm:$0xff]  ;;  %v23093_v23 = vld [vmem:[#allocation43_spill] sm:$0xff] }
 0x200   : > { %v2318_v54 = vpop.f32.mrb[86].mxu1  ;;  %v2411_v37 = vmax.f32 %v2182_v59, %v2314_v18  ;;  %v2184_v8 = vmax.f32 %v23061_v7, %v2089_v53  ;;  %v2091_v12 = vpop.f32.mrb[87].mxu0  ;;  %v23070_v5 = vmax.f32 %v23068_v49, %v23069_v21  ;;  %v16270_v53 = vld [vmem:[%s22718_s3 + $0xf4] ss:$8 sps:$4 sm:$0xff]  }
 0x201   : > { %v2320_v24 = vpop.f32.mrb[87].mxu1  ;;  %2743 = vst.msk [vmem:[%s18605_s26 + $0x80] sm:$0xff] %vm18583_vm3, %v14961_v41  ;;  %v14962_v22 = vpack.c.bf16 %v2534_v9, %v2533_v36  ;;  %v2412_v14 = vmax.f32 %v2183_v48, %v2316_v16  ;;  %v2185_v38 = vmax.f32 %v23064_v1, %v2091_v12  ;;  %v23074_v9 = vld [vmem:[#allocation30_spill] sm:$0xff]  ;;  %4951 = vmatprep.subr.bf16.mxu0 %v16270_v53  ;;  %v23087_v21 = vld [vmem:[#allocation39_spill] sm:$0xff] }
 0x202   : > { %v2479_v2 = vadd.f32 %v18557_v28, %v2411_v37  ;;  %v2413_v15 = vmax.f32 %v2184_v8, %v2318_v54  ;;  %3897 = vmatmul.mubr.bf16.gmra.mrb[192].mxu0 %v16210_v50  ;;  %v23076_v27 = vmax.f32 %v23074_v9, %v23075_v25  ;;  %v16268_v48 = vld [vmem:[%s22718_s3 + $0xf0] ss:$8 sps:$4 sm:$0xff]   ;;  %v16271_v54 = vld [vmem:[%s22718_s3 + $0x3c0] ss:$8 sps:$4 sm:$0xff]   ;;  %v23079_v1 = vmax.f32 %v23077_v63, %v23078_v13 }
 0x203   : > { %4126 = vmatmul.mubr.bf16.gmra.mrb[192].mxu1 %v16210_v50  ;;  %2744 = vst.msk [vmem:[%s18605_s26 + $0x88] sm:$0xff] %vm18583_vm3, %v14962_v22  ;;  %v2480_v57 = vadd.f32 %v18564_v33, %v2412_v14  ;;  %v2414_v61 = vmax.f32 %v2185_v38, %v2320_v24  ;;  %13723 = vmatprep.mubr.msk.bf16.mxu0 %vm1218_vm0, %v16211_v40  ;;  %v16214_v50 = vld [vmem:[%s17662_s23 + $0x324] ss:$8 sps:$4 sm:$0xff]   ;;  %v23086_v49 = vld [vmem:[#allocation38_spill] sm:$0xff] }
 0x204   : > { %13737 = vmatprep.mubr.msk.bf16.mxu1 %vm1218_vm0, %v16211_v40  ;;  %v2535_v31 = vmax.f32 %v2479_v2, 0.0  ;;  %v2481_v32 = vadd.f32 %v18557_v28, %v2413_v15  ;;  %4952 = vmatpush1.bf16.msra.mxu0 %v16268_v48  ;;  %v16216_v15 = vld [vmem:[%s17662_s23 + $0x320] ss:$8 sps:$4 sm:$0xff]   ;;  %v16219_v53 = vld [vmem:[%s17662_s23 + $0x330] ss:$8 sps:$4 sm:$0xff]  }
 0x205   : > { %v2536_v6 = vmax.f32 %v2480_v57, 0.0  ;;  %v2482_v11 = vadd.f32 %v18564_v33, %v2414_v61  ;;  %v2095_v43 = vpop.f32.mrb[88].mxu0  ;;  %7306 = vmatpush1.bf16.msra.mxu1 %v16271_v54  ;;  %v23090_v9 = vld [vmem:[#allocation41_spill] sm:$0xff] }
 0x206   : > { %v2324_v44 = vpop.f32.mrb[88].mxu1  ;;  %v2537_v60 = vmax.f32 %v2481_v32, 0.0  ;;  %v2186_v0 = vmax.f32 %v23067_v35, %v2095_v43  ;;  %v2097_v56 = vpop.f32.mrb[89].mxu0  ;;  %v23081_v32 = vld [vmem:[#allocation35_spill] sm:$0xff]  ;;  %v23084_v35 = vld [vmem:[#allocation37_spill] sm:$0xff] }
 0x207   : > { %v2326_v46 = vpop.f32.mrb[89].mxu1  ;;  %v14963_v3 = vpack.c.bf16 %v2536_v6, %v2535_v31  ;;  %v2538_v47 = vmax.f32 %v2482_v11, 0.0  ;;  %v2187_v52 = vmax.f32 %v23070_v5, %v2097_v56  ;;  %v2099_v17 = vpop.f32.mrb[90].mxu0  ;;  %v23080_v31 = vld [vmem:[#allocation34_spill] sm:$0xff]  ;;  %v23088_v5 = vmax.f32 %v23086_v49, %v23087_v21  ;;  %v23102_v49 = vld [vmem:[#allocation49_spill] sm:$0xff] }
 0x208   : > { %v2328_v18 = vpop.f32.mrb[90].mxu1  ;;  %v2415_v36 = vmax.f32 %v2186_v0, %v2324_v44  ;;  %v2188_v59 = vmax.f32 %v23073_v20, %v2099_v17  ;;  %v2101_v42 = vpop.f32.mrb[91].mxu0  ;;  %v23082_v6 = vmax.f32 %v23080_v31, %v23081_v32  ;;  %v23085_v0 = vmax.f32 %v23083_v26, %v23084_v35  ;;  %v16274_v32 = vld [vmem:[%s22718_s3 + $0x100] ss:$8 sps:$4 sm:$0xff]  }
 0x209   : > { %v2330_v16 = vpop.f32.mrb[91].mxu1  ;;  %2745 = vst.msk [vmem:[%s18605_s26 + $0x90] sm:$0xff] %vm18583_vm3, %v14963_v3  ;;  %v14964_v40 = vpack.c.bf16 %v2538_v47, %v2537_v60  ;;  %v2416_v41 = vmax.f32 %v2187_v52, %v2326_v46  ;;  %v2189_v39 = vmax.f32 %v23076_v27, %v2101_v42  ;;  %v16217_v60 = vld [vmem:[%s17662_s23 + $0x334] ss:$8 sps:$4 sm:$0xff]  }
 0x20a   : > { %v2483_v29 = vadd.f32 %v18557_v28, %v2415_v36  ;;  %v2417_v37 = vmax.f32 %v2188_v59, %v2328_v18  ;;  %3907 = vmatmul.mubr.bf16.gmra.mrb[196].mxu0 %v16213_v45 }
 0x20b   : > { %4136 = vmatmul.mubr.bf16.gmra.mrb[196].mxu1 %v16213_v45  ;;  %2746 = vst.msk [vmem:[%s18605_s26 + $0x98] sm:$0xff] %vm18583_vm3, %v14964_v40  ;;  %v2484_v30 = vadd.f32 %v18564_v33, %v2416_v41  ;;  %v2418_v7 = vmax.f32 %v2189_v39, %v2330_v16  ;;  %13724 = vmatprep.mubr.msk.bf16.mxu0 %vm1218_vm0, %v16214_v50  ;;  %v23089_v41 = vld [vmem:[#allocation40_spill] sm:$0xff] }
 0x20c   : > { %13738 = vmatprep.mubr.msk.bf16.mxu1 %vm1218_vm0, %v16214_v50  ;;  %v2539_v8 = vmax.f32 %v2483_v29, 0.0  ;;  %v2485_v12 = vadd.f32 %v18557_v28, %v2417_v37  ;;  %v23091_v25 = vmax.f32 %v23089_v41, %v23090_v9  ;;  %v23092_v37 = vld [vmem:[#allocation42_spill] sm:$0xff]  ;;  %v23107_v9 = vld [vmem:[#allocation52_spill] sm:$0xff] }
 0x20d   : > { %v2540_v24 = vmax.f32 %v2484_v30, 0.0  ;;  %v2486_v10 = vadd.f32 %v18564_v33, %v2418_v7  ;;  %v2105_v58 = vpop.f32.mrb[92].mxu0  ;;  %v23094_v30 = vmax.f32 %v23092_v37, %v23093_v23  ;;  %v23110_v37 = vld [vmem:[#allocation54_spill] sm:$0xff]  ;;  %v23111_v23 = vld [vmem:[#allocation55_spill] sm:$0xff] }
 0x20e   : > { %v2334_v22 = vpop.f32.mrb[92].mxu1  ;;  %v2541_v14 = vmax.f32 %v2485_v12, 0.0  ;;  %v2190_v38 = vmax.f32 %v23079_v1, %v2105_v58  ;;  %v2107_v19 = vpop.f32.mrb[93].mxu0  ;;  %v23095_v58 = vld [vmem:[#allocation44_spill] sm:$0xff] }
 0x20f   : > { %v2336_v2 = vpop.f32.mrb[93].mxu1  ;;  %v14965_v57 = vpack.c.bf16 %v2540_v24, %v2539_v8  ;;  %v2542_v61 = vmax.f32 %v2486_v10, 0.0  ;;  %v2191_v11 = vmax.f32 %v23082_v6, %v2107_v19  ;;  %v2109_v43 = vpop.f32.mrb[94].mxu0  ;;  %v16220_v24 = vld [vmem:[%s17662_s23 + $0x344] ss:$8 sps:$4 sm:$0xff]  }
 0x210   : > { %v2338_v44 = vpop.f32.mrb[94].mxu1  ;;  %v2419_v62 = vmax.f32 %v2190_v38, %v2334_v22  ;;  %v2192_v56 = vmax.f32 %v23085_v0, %v2109_v43  ;;  %v2111_v46 = vpop.f32.mrb[95].mxu0  ;;  %v23096_v22 = vld [vmem:[#allocation45_spill] sm:$0xff]  ;;  %v16277_v6 = vld [vmem:[%s22718_s3 + $0x3d0] ss:$8 sps:$4 sm:$0xff]  }
 0x211   : > { %v2340_v45 = vpop.f32.mrb[95].mxu1  ;;  %2747 = vst.msk [vmem:[%s18605_s26 + $0xa0] sm:$0xff] %vm18583_vm3, %v14965_v57  ;;  %v14966_v3 = vpack.c.bf16 %v2542_v61, %v2541_v14  ;;  %v2420_v47 = vmax.f32 %v2191_v11, %v2336_v2  ;;  %v2193_v52 = vmax.f32 %v23088_v5, %v2111_v46  ;;  %v23097_v14 = vmax.f32 %v23095_v58, %v23096_v22  ;;  %v16276_v38 = vld [vmem:[%s22718_s3 + $0x104] ss:$8 sps:$4 sm:$0xff]   ;;  %v23099_v57 = vld [vmem:[#allocation47_spill] sm:$0xff] }
 0x212   : > { %v2487_v17 = vadd.f32 %v18557_v28, %v2419_v62  ;;  %v2421_v18 = vmax.f32 %v2192_v56, %v2338_v44  ;;  %3917 = vmatmul.mubr.bf16.gmra.mrb[200].mxu0 %v16216_v15  ;;  %v16279_v11 = vld [vmem:[%s22718_s3 + $0x3d4] ss:$8 sps:$4 sm:$0xff]   ;;  %4953 = vmatprep.subr.bf16.mxu0 %v16276_v38  ;;  %v16283_v58 = vld [vmem:[%s22718_s3 + $0x3e4] ss:$8 sps:$4 sm:$0x3f]   ;;  %v22798_v38 = vmov 0  }
 0x213   : > { %4146 = vmatmul.mubr.bf16.gmra.mrb[200].mxu1 %v16216_v15  ;;  %2748 = vst.msk [vmem:[%s18605_s26 + $0xa8] sm:$0xff] %vm18583_vm3, %v14966_v3  ;;  %v2488_v50 = vadd.f32 %v18564_v33, %v2420_v47  ;;  %v2422_v36 = vmax.f32 %v2193_v52, %v2340_v45  ;;  %13725 = vmatprep.mubr.msk.bf16.mxu0 %vm1218_vm0, %v16217_v60  ;;  %v23098_v15 = vld [vmem:[#allocation46_spill] sm:$0xff]  ;;  %v23101_v47 = vld [vmem:[#allocation48_spill] sm:$0xff]  ;;  %13508 = vst.msk [vmem:[%s18605_s26 + $0x120] sm:$0xff] %vm18583_vm3, %v22798_v38 }
 0x214   : > { %13739 = vmatprep.mubr.msk.bf16.mxu1 %vm1218_vm0, %v16217_v60  ;;  %v2543_v55 = vmax.f32 %v2487_v17, 0.0  ;;  %v2489_v51 = vadd.f32 %v18557_v28, %v2421_v18  ;;  %v23100_v61 = vmax.f32 %v23098_v15, %v23099_v57  ;;  %7307 = vmatprep.subr.bf16.mxu1 %v16279_v11  ;;  %v23103_v21 = vmax.f32 %v23101_v47, %v23102_v49  ;;  %v16222_v18 = vld [vmem:[%s17662_s23 + $0x340] ss:$8 sps:$4 sm:$0xff]   ;;  %v16226_v47 = vld [vmem:[%s17662_s23 + $0x364] ss:$8 sps:$4 sm:$0xff]  }
 0x215   : > { %v2544_v20 = vmax.f32 %v2488_v50, 0.0  ;;  %v2490_v59 = vadd.f32 %v18564_v33, %v2422_v36  ;;  %v2115_v42 = vpop.f32.mrb[96].mxu0  ;;  %4954 = vmatpush1.bf16.msra.mxu0 %v16274_v32  ;;  %7308 = vmatpush1.bf16.msra.mxu1 %v16277_v6  ;;  %13509 = vst.msk [vmem:[%s18605_s26 + $0x128] sm:$0xff] %vm18583_vm3, %v22798_v38  ;;  %936 = vst.msk [vmem:[%s18605_s26] sm:$0xff] %vm18583_vm3, %v22798_v38  ;;  %v23115_v32 = vld [vmem:[#allocation57_spill] sm:$0xff] }
 0x216   : > { %v2344_v16 = vpop.f32.mrb[96].mxu1  ;;  %v2545_v40 = vmax.f32 %v2489_v51, 0.0  ;;  %v2194_v27 = vmax.f32 %v23091_v25, %v2115_v42  ;;  %v2117_v39 = vpop.f32.mrb[97].mxu0  ;;  %v23105_v51 = vld [vmem:[#allocation51_spill] sm:$0xff]  ;;  %v23108_v25 = vld [vmem:[#allocation53_spill] sm:$0xff]  ;;  %14287 = vmatprep.subr.msk.bf16.mxu1 %vm4932_vm4, %v16283_v58  ;;  %937 = vst.msk [vmem:[%s18605_s26 + $0x8] sm:$0xff] %vm18583_vm3, %v22798_v38 }
 0x217   : > { %v2346_v48 = vpop.f32.mrb[97].mxu1  ;;  %v14967_v54 = vpack.c.bf16 %v2544_v20, %v2543_v55  ;;  %v2546_v29 = vmax.f32 %v2490_v59, 0.0  ;;  %v2195_v7 = vmax.f32 %v23094_v30, %v2117_v39  ;;  %v2119_v8 = vpop.f32.mrb[98].mxu0  ;;  %v23104_v55 = vld [vmem:[#allocation50_spill] sm:$0xff]  ;;  %v23112_v30 = vmax.f32 %v23110_v37, %v23111_v23  ;;  %938 = vst.msk [vmem:[%s18605_s26 + $0x10] sm:$0xff] %vm18583_vm3, %v22798_v38  ;;  %939 = vst.msk [vmem:[%s18605_s26 + $0x18] sm:$0xff] %vm18583_vm3, %v22798_v38 }
 0x218   : > { %v2348_v12 = vpop.f32.mrb[98].mxu1  ;;  %v2423_v10 = vmax.f32 %v2194_v27, %v2344_v16  ;;  %v2196_v63 = vmax.f32 %v23097_v14, %v2119_v8  ;;  %v2121_v13 = vpop.f32.mrb[99].mxu0  ;;  %v23106_v20 = vmax.f32 %v23104_v55, %v23105_v51  ;;  %v23109_v27 = vmax.f32 %v23107_v9, %v23108_v25  ;;  %v16280_v8 = vld [vmem:[%s22718_s3 + $0x114] ss:$8 sps:$4 sm:$0x3f]   ;;  %940 = vst.msk [vmem:[%s18605_s26 + $0x100] sm:$0xff] %vm18583_vm3, %v22798_v38 }
 0x219   : > { %v2350_v1 = vpop.f32.mrb[99].mxu1  ;;  %2749 = vst.msk [vmem:[%s18605_s26 + $0xb0] sm:$0xff] %vm18583_vm3, %v14967_v54  ;;  %v14968_v19 = vpack.c.bf16 %v2546_v29, %v2545_v40  ;;  %v2424_v2 = vmax.f32 %v2195_v7, %v2346_v48  ;;  %v2197_v31 = vmax.f32 %v23100_v61, %v2121_v13  ;;  %v16223_v40 = vld [vmem:[%s17662_s23 + $0x354] ss:$8 sps:$4 sm:$0xff]   ;;  %13892 = vmatprep.subr.msk.bf16.mxu0 %vm4932_vm4, %v16280_v8  ;;  %941 = vst.msk [vmem:[%s18605_s26 + $0x108] sm:$0xff] %vm18583_vm3, %v22798_v38 }
 0x21a   : > { %v2491_v43 = vadd.f32 %v18557_v28, %v2423_v10  ;;  %v2425_v44 = vmax.f32 %v2196_v63, %v2348_v12  ;;  %3927 = vmatmul.mubr.bf16.gmra.mrb[204].mxu0 %v16219_v53  ;;  %v16282_v10 = vld [vmem:[%s22718_s3 + $0x110] ss:$8 sps:$4 sm:$0x3f]   ;;  %942 = vst.msk [vmem:[%s18605_s26 + $0x110] sm:$0xff] %vm18583_vm3, %v22798_v38  ;;  %943 = vst.msk [vmem:[%s18605_s26 + $0x118] sm:$0xff] %vm18583_vm3, %v22798_v38 }
 0x21b   : > { %4156 = vmatmul.mubr.bf16.gmra.mrb[204].mxu1 %v16219_v53  ;;  %2750 = vst.msk [vmem:[%s18605_s26 + $0xb8] sm:$0xff] %vm18583_vm3, %v14968_v19  ;;  %v2492_v60 = vadd.f32 %v18564_v33, %v2424_v2  ;;  %v2426_v62 = vmax.f32 %v2197_v31, %v2350_v1  ;;  %13726 = vmatprep.mubr.msk.bf16.mxu0 %vm1218_vm0, %v16220_v24  ;;  %v18976_v1 = vsel %vm4932_vm4, %v16282_v10, 0  ;;  %13510 = vst.msk [vmem:[%s18605_s26 + $0x130] sm:$0xff] %vm18583_vm3, %v22798_v38  ;;  %v23114_v31 = vld [vmem:[#allocation56_spill] sm:$0xff] }
 0x21c   : > { %13740 = vmatprep.mubr.msk.bf16.mxu1 %vm1218_vm0, %v16220_v24  ;;  %v2547_v26 = vmax.f32 %v2491_v43, 0.0  ;;  %v2493_v35 = vadd.f32 %v18557_v28, %v2425_v44  ;;  %23113 = vst [vmem:[#allocation4_spill] sm:$0xff] %v18976_v1  ;;  %13511 = vst.msk [vmem:[%s18605_s26 + $0x138] sm:$0xff] %vm18583_vm3, %v22798_v38  ;;  %4956 = vmatpush1.bf16.msra.mxu0 %v18976_v1  ;;  %v23116_v6 = vmax.f32 %v23114_v31, %v23115_v32  ;;  %v16228_v58 = vld [vmem:[%s17662_s23 + $0x360] ss:$8 sps:$4 sm:$0xff]  }
 0x21d   : > { %v2548_v0 = vmax.f32 %v2492_v60, 0.0  ;;  %v2494_v56 = vadd.f32 %v18564_v33, %v2426_v62  ;;  %v2125_v46 = vpop.f32.mrb[100].mxu0  ;;  %13512 = vst.msk [vmem:[%s18605_s26 + $0x220] sm:$0xff] %vm18583_vm3, %v22798_v38  ;;  %13513 = vst.msk [vmem:[%s18605_s26 + $0x228] sm:$0xff] %vm18583_vm3, %v22798_v38  ;;  %v16225_v60 = vld [vmem:[%s17662_s23 + $0x350] ss:$8 sps:$4 sm:$0xff]  }
 0x21e   : > { %v2354_v45 = vpop.f32.mrb[100].mxu1  ;;  %v2549_v3 = vmax.f32 %v2493_v35, 0.0  ;;  %v2198_v5 = vmax.f32 %v23103_v21, %v2125_v46  ;;  %v2127_v52 = vpop.f32.mrb[101].mxu0  ;;  %13514 = vst.msk [vmem:[%s18605_s26 + $0x230] sm:$0xff] %vm18583_vm3, %v22798_v38  ;;  %13515 = vst.msk [vmem:[%s18605_s26 + $0x238] sm:$0xff] %vm18583_vm3, %v22798_v38  ;;  %v23117_v35 = vld [vmem:[#allocation58_spill] sm:$0xff] }
 0x21f   : > { %v2356_v17 = vpop.f32.mrb[101].mxu1  ;;  %v14969_v50 = vpack.c.bf16 %v2548_v0, %v2547_v26  ;;  %v2550_v36 = vmax.f32 %v2494_v56, 0.0  ;;  %v2199_v59 = vmax.f32 %v23106_v20, %v2127_v52  ;;  %v2129_v42 = vpop.f32.mrb[102].mxu0  ;;  %v23118_v0 = vld [vmem:[#allocation59_spill] sm:$0xff]  ;;  %v23120_v21 = vld [vmem:[#allocation60_spill] sm:$0xff]  ;;  %v23123_v20 = vld [vmem:[#allocation62_spill] sm:$0xff] }
 0x220   : > { %v2358_v16 = vpop.f32.mrb[102].mxu1  ;;  %v2427_v41 = vmax.f32 %v2198_v5, %v2354_v45  ;;  %v2200_v39 = vmax.f32 %v23109_v27, %v2129_v42  ;;  %v2131_v48 = vpop.f32.mrb[103].mxu0  ;;  %v23119_v56 = vmax.f32 %v23117_v35, %v23118_v0  ;;  %v23121_v5 = vld [vmem:[#allocation61_spill] sm:$0xff]  ;;  %v23133_v32 = vld [vmem:[#allocation68_spill] sm:$0xff]  ;;  %v23136_v35 = vld [vmem:[#allocation70_spill] sm:$0xff] }
 0x221   : > { %v2360_v53 = vpop.f32.mrb[103].mxu1  ;;  %2751 = vst.msk [vmem:[%s18605_s26 + $0xc0] sm:$0xff] %vm18583_vm3, %v14969_v50  ;;  %v14970_v54 = vpack.c.bf16 %v2550_v36, %v2549_v3  ;;  %v2428_v29 = vmax.f32 %v2199_v59, %v2356_v17  ;;  %v2201_v7 = vmax.f32 %v23112_v30, %v2131_v48  ;;  %v23122_v52 = vmax.f32 %v23120_v21, %v23121_v5  ;;  %v16285_v36 = vld [vmem:[%s22718_s3 + $0x3e0] ss:$8 sps:$4 sm:$0x3f]   ;;  %v23124_v59 = vld [vmem:[#allocation63_spill] sm:$0xff] }
 0x222   : > { %v2495_v12 = vadd.f32 %v18557_v28, %v2427_v41  ;;  %v2429_v24 = vmax.f32 %v2200_v39, %v2358_v16  ;;  %3937 = vmatmul.mubr.bf16.gmra.mrb[208].mxu0 %v16222_v18  ;;  %v23125_v42 = vmax.f32 %v23123_v20, %v23124_v59  ;;  %v19067_v9 = vsel %vm4932_vm4, %v16285_v36, 0  ;;  %v23127_v30 = vld [vmem:[#allocation64_spill] sm:$0xff]  ;;  %v23137_v0 = vld [vmem:[#allocation71_spill] sm:$0xff] }
 0x223   : > { %4166 = vmatmul.mubr.bf16.gmra.mrb[208].mxu1 %v16222_v18  ;;  %2752 = vst.msk [vmem:[%s18605_s26 + $0xc8] sm:$0xff] %vm18583_vm3, %v14970_v54  ;;  %v2496_v22 = vadd.f32 %v18564_v33, %v2428_v29  ;;  %v2430_v14 = vmax.f32 %v2201_v7, %v2360_v53  ;;  %13727 = vmatprep.mubr.msk.bf16.mxu0 %vm1218_vm0, %v16223_v40  ;;  %23126 = vst [vmem:[#allocation5_spill] sm:$0xff] %v19067_v9  ;;  %v23128_v7 = vld [vmem:[#allocation65_spill] sm:$0xff]  ;;  %v16231_v59 = vld [vmem:[%s17662_s23 + $0x370] ss:$8 sps:$4 sm:$0xff]  }
 0x224   : > { %13741 = vmatprep.mubr.msk.bf16.mxu1 %vm1218_vm0, %v16223_v40  ;;  %v2551_v63 = vmax.f32 %v2495_v12, 0.0  ;;  %v2497_v13 = vadd.f32 %v18557_v28, %v2429_v24  ;;  %7310 = vmatpush1.bf16.msra.mxu1 %v19067_v9  ;;  %v23129_v8 = vmax.f32 %v23127_v30, %v23128_v7  ;;  %v16328_v9 = vld [vmem:[%s22718_s3 + $0x310] ss:$8 sps:$4 sm:$0xff]  }
 0x225   : > { %v2552_v19 = vmax.f32 %v2496_v22, 0.0  ;;  %v2498_v2 = vadd.f32 %v18564_v33, %v2430_v14  ;;  %v2135_v15 = vpop.f32.mrb[104].mxu0 }
 0x226   : > { %v2364_v57 = vpop.f32.mrb[104].mxu1  ;;  %v2553_v61 = vmax.f32 %v2497_v13, 0.0  ;;  %v2202_v11 = vmax.f32 %v23116_v6, %v2135_v15  ;;  %v2137_v43 = vpop.f32.mrb[105].mxu0  ;;  %v23131_v13 = vld [vmem:[#allocation67_spill] sm:$0xff]  ;;  %v23134_v6 = vld [vmem:[#allocation69_spill] sm:$0xff] }
 0x227   : > { %v2366_v44 = vpop.f32.mrb[105].mxu1  ;;  %v14971_v62 = vpack.c.bf16 %v2552_v19, %v2551_v63  ;;  %v2554_v26 = vmax.f32 %v2498_v2, 0.0  ;;  %v2203_v46 = vmax.f32 %v23119_v56, %v2137_v43  ;;  %v2139_v45 = vpop.f32.mrb[106].mxu0  ;;  %v23130_v63 = vld [vmem:[#allocation66_spill] sm:$0xff]  ;;  %v23138_v56 = vmax.f32 %v23136_v35, %v23137_v0 }
 0x228   : > { %v2368_v3 = vpop.f32.mrb[106].mxu1  ;;  %v2431_v49 = vmax.f32 %v2202_v11, %v2364_v57  ;;  %v2204_v17 = vmax.f32 %v23122_v52, %v2139_v45  ;;  %v2141_v18 = vpop.f32.mrb[107].mxu0  ;;  %v23132_v19 = vmax.f32 %v23130_v63, %v23131_v13  ;;  %v23135_v11 = vmax.f32 %v23133_v32, %v23134_v6  ;;  %v16299_v32 = vld [vmem:[%s22718_s3 + $0x14] ss:$8 sps:$4 sm:$0xff]   ;;  %v16302_v6 = vld [vmem:[%s22718_s3 + $0x2e0] ss:$8 sps:$4 sm:$0xff]  }
 0x229   : > { %v2370_v50 = vpop.f32.mrb[107].mxu1  ;;  %2753 = vst.msk [vmem:[%s18605_s26 + $0xd0] sm:$0xff] %vm18583_vm3, %v14971_v62  ;;  %v14972_v55 = vpack.c.bf16 %v2554_v26, %v2553_v61  ;;  %v2432_v51 = vmax.f32 %v2203_v46, %v2366_v44  ;;  %v2205_v16 = vmax.f32 %v23125_v42, %v2141_v18  ;;  %v16229_v61 = vld [vmem:[%s17662_s23 + $0x374] ss:$8 sps:$4 sm:$0xff]   ;;  %s21973_s23 = scalar_lea.vmem %s22726_s11, %s14948_s27 }
 0x22a   : > { %v2499_v40 = vadd.f32 %v18557_v28, %v2431_v49  ;;  %v2433_v41 = vmax.f32 %v2204_v17, %v2368_v3  ;;  %3947 = vmatmul.mubr.bf16.gmra.mrb[212].mxu0 %v16225_v60 }
 0x22b   : > { %4176 = vmatmul.mubr.bf16.gmra.mrb[212].mxu1 %v16225_v60  ;;  %2754 = vst.msk [vmem:[%s18605_s26 + $0xd8] sm:$0xff] %vm18583_vm3, %v14972_v55  ;;  %v2500_v25 = vadd.f32 %v18564_v33, %v2432_v51  ;;  %v2434_v27 = vmax.f32 %v2205_v16, %v2370_v50  ;;  %13728 = vmatprep.mubr.msk.bf16.mxu0 %vm1218_vm0, %v16226_v47 }
 0x22c   : > { %13742 = vmatprep.mubr.msk.bf16.mxu1 %vm1218_vm0, %v16226_v47  ;;  %v2555_v39 = vmax.f32 %v2499_v40, 0.0  ;;  %v2501_v48 = vadd.f32 %v18557_v28, %v2433_v41  ;;  %v16288_v41 = vld [vmem:[%s18605_s26 + $0x124] ss:$8 sps:$4 sm:$0xff]  }
 0x22d   : > { %v2556_v53 = vmax.f32 %v2500_v25, 0.0  ;;  %v2502_v54 = vadd.f32 %v18564_v33, %v2434_v27  ;;  %v2145_v29 = vpop.f32.mrb[108].mxu0 }
 0x22e   : > { %v2374_v37 = vpop.f32.mrb[108].mxu1  ;;  %v2557_v23 = vmax.f32 %v2501_v48, 0.0  ;;  %v2206_v12 = vmax.f32 %v23129_v8, %v2145_v29  ;;  %v2147_v24 = vpop.f32.mrb[109].mxu0  ;;  %v16294_v29 = vld [vmem:[%s22718_s3 + $0x2d4] ss:$8 sps:$4 sm:$0xff]  }
 0x22f   : > { %v2376_v10 = vpop.f32.mrb[109].mxu1  ;;  %v14973_v22 = vpack.c.bf16 %v2556_v53, %v2555_v39  ;;  %v2558_v14 = vmax.f32 %v2502_v54, 0.0  ;;  %v2207_v2 = vmax.f32 %v23132_v19, %v2147_v24  ;;  %v2149_v15 = vpop.f32.mrb[110].mxu0  ;;  %v16291_v54 = vld [vmem:[%s22718_s3 + $0x4] ss:$8 sps:$4 sm:$0xff]   ;;  %7560 = vmatprep.subr.bf16.mxu1 %v16294_v29 }
 0x230   : > { %v2378_v57 = vpop.f32.mrb[110].mxu1  ;;  %v2435_v31 = vmax.f32 %v2206_v12, %v2374_v37  ;;  %v2208_v43 = vmax.f32 %v23135_v11, %v2149_v15  ;;  %v2151_v44 = vpop.f32.mrb[111].mxu0  ;;  %5374 = vmatprep.subr.bf16.mxu0 %v16291_v54  ;;  %v16286_v12 = vld [vmem:[%s18605_s26 + $0x120] ss:$8 sps:$4 sm:$0xff]   ;;  %v16304_v11 = vld [vmem:[%s22718_s3 + $0x2e4] ss:$8 sps:$4 sm:$0xff]  }
 0x231   : > { %v2380_v60 = vpop.f32.mrb[111].mxu1  ;;  %2755 = vst.msk [vmem:[%s18605_s26 + $0xe0] sm:$0xff] %vm18583_vm3, %v14973_v22  ;;  %v14974_v62 = vpack.c.bf16 %v2558_v14, %v2557_v23  ;;  %v2436_v26 = vmax.f32 %v2207_v2, %v2376_v10  ;;  %v2209_v46 = vmax.f32 %v23138_v56, %v2151_v44  ;;  %v16289_v22 = vld [vmem:[%s22718_s3] ss:$8 sps:$4 sm:$0xff]   ;;  %v16292_v14 = vld [vmem:[%s22718_s3 + $0x2d0] ss:$8 sps:$4 sm:$0xff]  }
 0x232   : > { %v2503_v45 = vadd.f32 %v18557_v28, %v2435_v31  ;;  %v2437_v3 = vmax.f32 %v2208_v43, %v2378_v57  ;;  %3957 = vmatmul.mubr.bf16.gmra.mrb[216].mxu0 %v16228_v58  ;;  %v16295_v2 = vld [vmem:[%s18605_s26 + $0x134] ss:$8 sps:$4 sm:$0xff]   ;;  %v16297_v31 = vld [vmem:[%s22718_s3 + $0x10] ss:$8 sps:$4 sm:$0xff]   ;;  %v16327_v53 = vld [vmem:[%s22718_s3 + $0x44] ss:$8 sps:$4 sm:$0xff]  }
 0x233   : > { %4186 = vmatmul.mubr.bf16.gmra.mrb[216].mxu1 %v16228_v58  ;;  %2756 = vst.msk [vmem:[%s18605_s26 + $0xe8] sm:$0xff] %vm18583_vm3, %v14974_v62  ;;  %v2504_v47 = vadd.f32 %v18564_v33, %v2436_v26  ;;  %v2438_v49 = vmax.f32 %v2209_v46, %v2380_v60  ;;  %13729 = vmatprep.mubr.msk.bf16.mxu0 %vm1218_vm0, %v16229_v61  ;;  %v13802_v57 = vld [vmem:[%s18605_s26 + $0x130] sm:$0xff] }
 0x234   : > { %13743 = vmatprep.mubr.msk.bf16.mxu1 %vm1218_vm0, %v16229_v61  ;;  %v2559_v21 = vmax.f32 %v2503_v45, 0.0  ;;  %v2505_v5 = vadd.f32 %v18557_v28, %v2437_v3  ;;  %v13803_v61 = vld [vmem:[%s18605_s26 + $0x138] sm:$0xff] }
 0x235   : > { %v2560_v52 = vmax.f32 %v2504_v47, 0.0  ;;  %v2506_v17 = vadd.f32 %v18564_v33, %v2438_v49  ;;  %v19104_v18 = vpop.f32.mrb[112].mxu0  ;;  %v19202_v35 = vcombine.low %v13802_v57, %v13803_v61 }
 0x236   : > { %v19106_v50 = vpop.f32.mrb[112].mxu1  ;;  %v2561_v36 = vmax.f32 %v2505_v5, 0.0  ;;  %v19110_v51 = vpop.f32.mrb[113].mxu0 }
 0x237   : > { %v19112_v20 = vpop.f32.mrb[113].mxu1  ;;  %v14975_v42 = vpack.c.bf16 %v2560_v52, %v2559_v21  ;;  %v2562_v28 = vmax.f32 %v2506_v17, 0.0  ;;  %v19117_v16 = vpop.f32.mrb[114].mxu0  ;;  %23139 = vst [vmem:[#allocation6_spill] sm:$0xff] %v19202_v35 }
 0x238   : > { %v19119_v40 = vpop.f32.mrb[114].mxu1  ;;  %v19124_v27 = vpop.f32.mrb[115].mxu0 }
 0x239   : > { %v19126_v39 = vpop.f32.mrb[115].mxu1  ;;  %2757 = vst.msk [vmem:[%s18605_s26 + $0xf0] sm:$0xff] %vm18583_vm3, %v14975_v42  ;;  %v14976_v48 = vpack.c.bf16 %v2562_v28, %v2561_v36 }
 0x23a   : > { %3967 = vmatmul.mubr.bf16.gmra.mrb[220].mxu0 %v16231_v59 }
 0x23b   : > { %4196 = vmatmul.mubr.bf16.gmra.mrb[220].mxu1 %v16231_v59  ;;  %2758 = vst.msk [vmem:[%s18605_s26 + $0xf8] sm:$0xff] %vm18583_vm3, %v14976_v48  ;;  %13893 = vmatprep.mubr.msk.bf16.mxu0 %vm4889_vm5, %v16288_v41 }
 0x23c   : > { %14288 = vmatprep.mubr.msk.bf16.mxu1 %vm4889_vm5, %v16288_v41 }
 0x23d   : > { %v19144_v37 = vpop.f32.mrb[116].mxu0 }
 0x23e   : > { %v19146_v23 = vpop.f32.mrb[116].mxu1  ;;  %v19150_v7 = vpop.f32.mrb[117].mxu0 }
 0x23f   : > { %v19152_v8 = vpop.f32.mrb[117].mxu1  ;;  %v19157_v10 = vpop.f32.mrb[118].mxu0 }
 0x240   : > { %v19159_v58 = vpop.f32.mrb[118].mxu1  ;;  %v19169_v13 = vpop.f32.mrb[119].mxu0 }
 0x241   : > { %v19171_v19 = vpop.f32.mrb[119].mxu1 }
 0x242   : > { %4972 = vmatmul.mubr.bf16.vlgmr.msra.gmra.mrb[224].mxu0 %v16286_v12 }
 0x243   : > { %7326 = vmatmul.mubr.bf16.vlgmr.msra.gmra.mrb[224].mxu1 %v16286_v12  ;;  %5375 = vmatpush1.bf16.msra.mxu0 %v16289_v22  ;;  %v16307_v12 = vld [vmem:[%s22718_s3 + $0x20] ss:$8 sps:$4 sm:$0xff]   ;;  %v16309_v22 = vld [vmem:[%s22718_s3 + $0x24] ss:$8 sps:$4 sm:$0xff]  }
 0x244   : > { %7561 = vmatpush1.bf16.msra.mxu1 %v16292_v14  ;;  %13894 = vmatprep.mubr.msk.bf16.mxu0 %vm4889_vm5, %v16295_v2  ;;  %v16310_v14 = vld [vmem:[%s22718_s3 + $0x2f0] ss:$8 sps:$4 sm:$0xff]  }
 0x245   : > { %14289 = vmatprep.mubr.msk.bf16.mxu1 %vm4889_vm5, %v16295_v2  ;;  %v19192_v43 = vpop.f32.mrb[120].mxu0  ;;  %5376 = vmatprep.subr.bf16.mxu0 %v16299_v32  ;;  %v16312_v2 = vld [vmem:[%s22718_s3 + $0x2f4] ss:$8 sps:$4 sm:$0xff]  }
 0x246   : > { %v19194_v44 = vpop.f32.mrb[120].mxu1  ;;  %v19198_v62 = vpop.f32.mrb[121].mxu0  ;;  %7562 = vmatprep.subr.bf16.mxu1 %v16304_v11  ;;  %v16317_v11 = vld [vmem:[%s22718_s3 + $0x34] ss:$8 sps:$4 sm:$0xff]  }
 0x247   : > { %v19200_v26 = vpop.f32.mrb[121].mxu1  ;;  %v19206_v56 = vpop.f32.mrb[122].mxu0  ;;  %5377 = vmatpush1.bf16.msra.mxu0 %v16297_v31  ;;  %v16322_v31 = vld [vmem:[%s22718_s3 + $0x304] ss:$8 sps:$4 sm:$0xff]  }
 0x248   : > { %v19208_v46 = vpop.f32.mrb[122].mxu1  ;;  %7563 = vmatpush1.bf16.msra.mxu1 %v16302_v6  ;;  %v19212_v3 = vpop.f32.mrb[123].mxu0  ;;  %5378 = vmatprep.subr.bf16.mxu0 %v16309_v22 }
 0x249   : > { %v19214_v47 = vpop.f32.mrb[123].mxu1  ;;  %7564 = vmatprep.subr.bf16.mxu1 %v16312_v2 }
 0x24a   : > { %4982 = vmatmul.mubr.bf16.gmra.mrb[228].mxu0 %v19202_v35 }
 0x24b   : > { %7336 = vmatmul.mubr.bf16.gmra.mrb[228].mxu1 %v19202_v35  ;;  %5379 = vmatpush1.bf16.msra.mxu0 %v16307_v12  ;;  %v16325_v35 = vld [vmem:[%s22718_s3 + $0x40] ss:$8 sps:$4 sm:$0xff]  }
 0x24c   : > { %7565 = vmatpush1.bf16.msra.mxu1 %v16310_v14  ;;  %v16315_v14 = vld [vmem:[%s22718_s3 + $0x30] ss:$8 sps:$4 sm:$0xff]   ;;  %5380 = vmatprep.subr.bf16.mxu0 %v16317_v11 }
 0x24d   : > { %v19220_v21 = vpop.f32.mrb[124].mxu0  ;;  %7566 = vmatprep.subr.bf16.mxu1 %v16322_v31  ;;  %v16330_v31 = vld [vmem:[%s22718_s3 + $0x314] ss:$8 sps:$4 sm:$0xff]  }
 0x24e   : > { %v19222_v5 = vpop.f32.mrb[124].mxu1  ;;  %v19226_v17 = vpop.f32.mrb[125].mxu0 }
 0x24f   : > { %v19228_v36 = vpop.f32.mrb[125].mxu1  ;;  %v19232_v42 = vpop.f32.mrb[126].mxu0  ;;  %5381 = vmatpush1.bf16.msra.mxu0 %v16315_v14  ;;  %v16320_v14 = vld [vmem:[%s22718_s3 + $0x300] ss:$8 sps:$4 sm:$0xff]  }
 0x250   : > { %v19234_v28 = vpop.f32.mrb[126].mxu1  ;;  %v19238_v48 = vpop.f32.mrb[127].mxu0  ;;  %7567 = vmatpush1.bf16.msra.mxu1 %v16320_v14  ;;  %5382 = vmatprep.subr.bf16.mxu0 %v16327_v53 }
 0x251   : > { %v19240_v54 = vpop.f32.mrb[127].mxu1  ;;  %7568 = vmatprep.subr.bf16.mxu1 %v16330_v31  ;;  %v16338_v31 = vld [vmem:[%s22718_s3 + $0x54] ss:$8 sps:$4 sm:$0xff]  }
 0x253   : > { %5383 = vmatpush1.bf16.msra.mxu0 %v16325_v35  ;;  %v16336_v35 = vld [vmem:[%s22718_s3 + $0x50] ss:$8 sps:$4 sm:$0xff]  }
 0x254   : > { %7569 = vmatpush1.bf16.msra.mxu1 %v16328_v9  ;;  %5384 = vmatprep.subr.bf16.mxu0 %v16338_v31  ;;  %v16339_v31 = vld [vmem:[%s22718_s3 + $0x320] ss:$8 sps:$4 sm:$0xff]  }
 0x255   : > { %v19256_v57 = vpop.f32.mrb[128].mxu0 }
 0x256   : > { %v19258_v61 = vpop.f32.mrb[128].mxu1  ;;  %v19262_v32 = vpop.f32.mrb[129].mxu0 }
 0x257   : > { %v19264_v6 = vpop.f32.mrb[129].mxu1  ;;  %v19268_v22 = vpop.f32.mrb[130].mxu0  ;;  %5385 = vmatpush1.bf16.msra.mxu0 %v16336_v35 }
 0x258   : > { %v19270_v38 = vpop.f32.mrb[130].mxu1  ;;  %v19274_v29 = vpop.f32.mrb[131].mxu0 }
 0x259   : > { %v19276_v2 = vpop.f32.mrb[131].mxu1 }
 0x25d   : > { %v19286_v41 = vpop.f32.mrb[132].mxu0 }
 0x25e   : > { %v19288_v59 = vpop.f32.mrb[132].mxu1  ;;  %v19292_v52 = vpop.f32.mrb[133].mxu0 }
 0x25f   : > { %v19294_v49 = vpop.f32.mrb[133].mxu1  ;;  %v19298_v45 = vpop.f32.mrb[134].mxu0 }
 0x260   : > { %v19300_v0 = vpop.f32.mrb[134].mxu1  ;;  %v19304_v15 = vpop.f32.mrb[135].mxu0 }
 0x261   : > { %23140 = vst [vmem:[#allocation7_spill] sm:$0xff] %v19300_v0  ;;  %23141 = vst [vmem:[#allocation8_spill] sm:$0xff] %v19304_v15  ;;  %v19306_v11 = vpop.f32.mrb[135].mxu1  ;;  %v23212_v15 = vmax.f32 %v19117_v16, %v19119_v40 }
 0x262   : > { %23142 = vst [vmem:[#allocation9_spill] sm:$0xff] %v19306_v11 }
 0x265   : > { %v19316_v63 = vpop.f32.mrb[136].mxu0 }
 0x266   : > { %23143 = vst [vmem:[#allocation10_spill] sm:$0xff] %v19316_v63  ;;  %v19318_v60 = vpop.f32.mrb[136].mxu1  ;;  %v19322_v30 = vpop.f32.mrb[137].mxu0 }
 0x267   : > { %23144 = vst [vmem:[#allocation11_spill] sm:$0xff] %v19318_v60  ;;  %23145 = vst [vmem:[#allocation12_spill] sm:$0xff] %v19322_v30  ;;  %v19324_v12 = vpop.f32.mrb[137].mxu1  ;;  %v19328_v25 = vpop.f32.mrb[138].mxu0 }
 0x268   : > { %23146 = vst [vmem:[#allocation13_spill] sm:$0xff] %v19324_v12  ;;  %23147 = vst [vmem:[#allocation14_spill] sm:$0xff] %v19328_v25  ;;  %v19330_v33 = vpop.f32.mrb[138].mxu1  ;;  %v19334_v14 = vpop.f32.mrb[139].mxu0 }
 0x269   : > { %23148 = vst [vmem:[#allocation15_spill] sm:$0xff] %v19330_v33  ;;  %23149 = vst [vmem:[#allocation16_spill] sm:$0xff] %v19334_v14  ;;  %v19336_v55 = vpop.f32.mrb[139].mxu1 }
 0x26a   : > { %23150 = vst [vmem:[#allocation17_spill] sm:$0xff] %v19336_v55 }
 0x26d   : > { %v19352_v1 = vpop.f32.mrb[140].mxu0 }
 0x26e   : > { %23151 = vst [vmem:[#allocation18_spill] sm:$0xff] %v19352_v1  ;;  %v19354_v33 = vpop.f32.mrb[140].mxu1  ;;  %v19358_v55 = vpop.f32.mrb[141].mxu0 }
 0x26f   : > { %23152 = vst [vmem:[#allocation19_spill] sm:$0xff] %v19354_v33  ;;  %23153 = vst [vmem:[#allocation20_spill] sm:$0xff] %v19358_v55  ;;  %v19360_v14 = vpop.f32.mrb[141].mxu1  ;;  %v19364_v12 = vpop.f32.mrb[142].mxu0  ;;  %v16341_v33 = vld [vmem:[%s22718_s3 + $0x324] ss:$8 sps:$4 sm:$0xff]  }
 0x270   : > { %23154 = vst [vmem:[#allocation21_spill] sm:$0xff] %v19360_v14  ;;  %23155 = vst [vmem:[#allocation22_spill] sm:$0xff] %v19364_v12  ;;  %v19366_v30 = vpop.f32.mrb[142].mxu1  ;;  %v19370_v60 = vpop.f32.mrb[143].mxu0  ;;  %7570 = vmatprep.subr.bf16.mxu1 %v16341_v33  ;;  %v16350_v33 = vld [vmem:[%s22718_s3 + $0x334] ss:$8 sps:$4 sm:$0xff]  }
 0x271   : > { %23156 = vst [vmem:[#allocation23_spill] sm:$0xff] %v19366_v30  ;;  %23157 = vst [vmem:[#allocation24_spill] sm:$0xff] %v19370_v60  ;;  %v19372_v24 = vpop.f32.mrb[143].mxu1  ;;  %7571 = vmatpush1.bf16.msra.mxu1 %v16339_v31 }
 0x272   : > { %23158 = vst [vmem:[#allocation25_spill] sm:$0xff] %v19372_v24  ;;  %7572 = vmatprep.subr.bf16.mxu1 %v16350_v33  ;;  %v16359_v33 = vld [vmem:[%s22718_s3 + $0x74] ss:$8 sps:$4 sm:$0xff]  }
 0x275   : > { %v19382_v25 = vpop.f32.mrb[144].mxu0 }
 0x276   : > { %23159 = vst [vmem:[#allocation26_spill] sm:$0xff] %v19382_v25  ;;  %v19384_v9 = vpop.f32.mrb[144].mxu1  ;;  %v19388_v30 = vpop.f32.mrb[145].mxu0 }
 0x277   : > { %23160 = vst [vmem:[#allocation27_spill] sm:$0xff] %v19384_v9  ;;  %23161 = vst [vmem:[#allocation28_spill] sm:$0xff] %v19388_v30  ;;  %v19390_v12 = vpop.f32.mrb[145].mxu1  ;;  %v19394_v24 = vpop.f32.mrb[146].mxu0 }
 0x278   : > { %23162 = vst [vmem:[#allocation29_spill] sm:$0xff] %v19390_v12  ;;  %23163 = vst [vmem:[#allocation30_spill] sm:$0xff] %v19394_v24  ;;  %v19396_v60 = vpop.f32.mrb[146].mxu1  ;;  %v19400_v55 = vpop.f32.mrb[147].mxu0 }
 0x279   : > { %23164 = vst [vmem:[#allocation31_spill] sm:$0xff] %v19396_v60  ;;  %23165 = vst [vmem:[#allocation32_spill] sm:$0xff] %v19400_v55  ;;  %v19402_v1 = vpop.f32.mrb[147].mxu1 }
 0x27a   : > { %23166 = vst [vmem:[#allocation33_spill] sm:$0xff] %v19402_v1  ;;  %v16347_v1 = vld [vmem:[%s22718_s3 + $0x64] ss:$8 sps:$4 sm:$0xff]  }
 0x27b   : > { %5386 = vmatprep.subr.bf16.mxu0 %v16347_v1 }
 0x27d   : > { %v19412_v35 = vpop.f32.mrb[148].mxu0 }
 0x27e   : > { %23167 = vst [vmem:[#allocation34_spill] sm:$0xff] %v19412_v35  ;;  %v19414_v14 = vpop.f32.mrb[148].mxu1  ;;  %v19418_v24 = vpop.f32.mrb[149].mxu0 }
 0x27f   : > { %23168 = vst [vmem:[#allocation35_spill] sm:$0xff] %v19414_v14  ;;  %23169 = vst [vmem:[#allocation36_spill] sm:$0xff] %v19418_v24  ;;  %v19420_v53 = vpop.f32.mrb[149].mxu1  ;;  %v19424_v55 = vpop.f32.mrb[150].mxu0  ;;  %v16345_v14 = vld [vmem:[%s22718_s3 + $0x60] ss:$8 sps:$4 sm:$0xff]  }
 0x280   : > { %23170 = vst [vmem:[#allocation37_spill] sm:$0xff] %v19420_v53  ;;  %23171 = vst [vmem:[#allocation38_spill] sm:$0xff] %v19424_v55  ;;  %v19426_v12 = vpop.f32.mrb[150].mxu1  ;;  %v19430_v31 = vpop.f32.mrb[151].mxu0  ;;  %v16348_v53 = vld [vmem:[%s22718_s3 + $0x330] ss:$8 sps:$4 sm:$0xff]   ;;  %5387 = vmatpush1.bf16.msra.mxu0 %v16345_v14 }
 0x281   : > { %23172 = vst [vmem:[#allocation39_spill] sm:$0xff] %v19426_v12  ;;  %23173 = vst [vmem:[#allocation40_spill] sm:$0xff] %v19430_v31  ;;  %v19432_v30 = vpop.f32.mrb[151].mxu1  ;;  %7573 = vmatpush1.bf16.msra.mxu1 %v16348_v53  ;;  %v16357_v14 = vld [vmem:[%s22718_s3 + $0x70] ss:$8 sps:$4 sm:$0xff]   ;;  %5388 = vmatprep.subr.bf16.mxu0 %v16359_v33 }
 0x282   : > { %23174 = vst [vmem:[#allocation41_spill] sm:$0xff] %v19432_v30 }
 0x284   : > { %5389 = vmatpush1.bf16.msra.mxu0 %v16357_v14  ;;  %v16360_v14 = vld [vmem:[%s22718_s3 + $0x340] ss:$8 sps:$4 sm:$0xff]  }
 0x285   : > { %v19448_v12 = vpop.f32.mrb[152].mxu0 }
 0x286   : > { %23175 = vst [vmem:[#allocation42_spill] sm:$0xff] %v19448_v12  ;;  %v19450_v55 = vpop.f32.mrb[152].mxu1  ;;  %v19454_v30 = vpop.f32.mrb[153].mxu0  ;;  %v23210_v12 = vld [vmem:[#allocation72_spill] sm:$0xff] }
 0x287   : > { %23176 = vst [vmem:[#allocation43_spill] sm:$0xff] %v19450_v55  ;;  %23177 = vst [vmem:[#allocation44_spill] sm:$0xff] %v19454_v30  ;;  %v19456_v31 = vpop.f32.mrb[153].mxu1  ;;  %v19460_v35 = vpop.f32.mrb[154].mxu0  ;;  %v16362_v55 = vld [vmem:[%s22718_s3 + $0x344] ss:$8 sps:$4 sm:$0xff]  }
 0x288   : > { %23178 = vst [vmem:[#allocation45_spill] sm:$0xff] %v19456_v31  ;;  %23179 = vst [vmem:[#allocation46_spill] sm:$0xff] %v19460_v35  ;;  %v19462_v9 = vpop.f32.mrb[154].mxu1  ;;  %v19466_v25 = vpop.f32.mrb[155].mxu0  ;;  %7574 = vmatprep.subr.bf16.mxu1 %v16362_v55 }
 0x289   : > { %23180 = vst [vmem:[#allocation47_spill] sm:$0xff] %v19462_v9  ;;  %23181 = vst [vmem:[#allocation48_spill] sm:$0xff] %v19466_v25  ;;  %v19468_v60 = vpop.f32.mrb[155].mxu1  ;;  %7575 = vmatpush1.bf16.msra.mxu1 %v16360_v14  ;;  %v16366_v55 = vld [vmem:[%s22718_s3 + $0x84] ss:$8 sps:$4 sm:$0x3f]  }
 0x28a   : > { %23182 = vst [vmem:[#allocation49_spill] sm:$0xff] %v19468_v60  ;;  %13953 = vmatprep.subr.msk.bf16.mxu0 %vm4932_vm4, %v16366_v55  ;;  %v16374_v14 = vld [vmem:[%s22718_s3 + $0x350] ss:$8 sps:$4 sm:$0x3f]  }
 0x28d   : > { %v19478_v24 = vpop.f32.mrb[156].mxu0 }
 0x28e   : > { %23183 = vst [vmem:[#allocation50_spill] sm:$0xff] %v19478_v24  ;;  %v19480_v53 = vpop.f32.mrb[156].mxu1  ;;  %v19484_v9 = vpop.f32.mrb[157].mxu0 }
 0x28f   : > { %23184 = vst [vmem:[#allocation51_spill] sm:$0xff] %v19480_v53  ;;  %23185 = vst [vmem:[#allocation52_spill] sm:$0xff] %v19484_v9  ;;  %v19486_v35 = vpop.f32.mrb[157].mxu1  ;;  %v19490_v60 = vpop.f32.mrb[158].mxu0 }
 0x290   : > { %23186 = vst [vmem:[#allocation53_spill] sm:$0xff] %v19486_v35  ;;  %23187 = vst [vmem:[#allocation54_spill] sm:$0xff] %v19490_v60  ;;  %v19492_v25 = vpop.f32.mrb[158].mxu1  ;;  %v19496_v30 = vpop.f32.mrb[159].mxu0 }
 0x291   : > { %23188 = vst [vmem:[#allocation55_spill] sm:$0xff] %v19492_v25  ;;  %23189 = vst [vmem:[#allocation56_spill] sm:$0xff] %v19496_v30  ;;  %v19498_v33 = vpop.f32.mrb[159].mxu1 }
 0x292   : > { %23190 = vst [vmem:[#allocation57_spill] sm:$0xff] %v19498_v33 }
 0x295   : > { %v19508_v35 = vpop.f32.mrb[160].mxu0 }
 0x296   : > { %23191 = vst [vmem:[#allocation58_spill] sm:$0xff] %v19508_v35  ;;  %v19510_v31 = vpop.f32.mrb[160].mxu1  ;;  %v19514_v60 = vpop.f32.mrb[161].mxu0 }
 0x297   : > { %23192 = vst [vmem:[#allocation59_spill] sm:$0xff] %v19510_v31  ;;  %23193 = vst [vmem:[#allocation60_spill] sm:$0xff] %v19514_v60  ;;  %v19516_v1 = vpop.f32.mrb[161].mxu1  ;;  %v19520_v30 = vpop.f32.mrb[162].mxu0 }
 0x298   : > { %23194 = vst [vmem:[#allocation61_spill] sm:$0xff] %v19516_v1  ;;  %23195 = vst [vmem:[#allocation62_spill] sm:$0xff] %v19520_v30  ;;  %v19522_v9 = vpop.f32.mrb[162].mxu1  ;;  %v19529_v53 = vpop.f32.mrb[163].mxu0  ;;  %v19551_v30 = vsel %vm4932_vm4, %v16374_v14, 0 }
 0x299   : > { %23196 = vst [vmem:[#allocation63_spill] sm:$0xff] %v19522_v9  ;;  %23197 = vst [vmem:[#allocation64_spill] sm:$0xff] %v19529_v53  ;;  %v19531_v25 = vpop.f32.mrb[163].mxu1  ;;  %v16368_v31 = vld [vmem:[%s22718_s3 + $0x80] ss:$8 sps:$4 sm:$0x3f]  }
 0x29a   : > { %23198 = vst [vmem:[#allocation65_spill] sm:$0xff] %v19531_v25  ;;  %v16369_v1 = vld [vmem:[%s22718_s3 + $0x354] ss:$8 sps:$4 sm:$0x3f]   ;;  %v19546_v9 = vsel %vm4932_vm4, %v16368_v31, 0  ;;  %23200 = vst [vmem:[#allocation67_spill] sm:$0xff] %v19551_v30 }
 0x29b   : > { %23199 = vst [vmem:[#allocation66_spill] sm:$0xff] %v19546_v9  ;;  %5391 = vmatpush1.bf16.msra.mxu0 %v19546_v9  ;;  %14320 = vmatprep.subr.msk.bf16.mxu1 %vm4932_vm4, %v16369_v1  ;;  %v16380_v25 = vld [vmem:[%s22718_s3 + $0x124] ss:$8 sps:$4 sm:$0xff]   ;;  %v16383_v1 = vld [vmem:[%s22718_s3 + $0x3f4] ss:$8 sps:$4 sm:$0xff]  }
 0x29c   : > { %7577 = vmatpush1.bf16.msra.mxu1 %v19551_v30  ;;  %5856 = vmatprep.subr.bf16.mxu0 %v16380_v25  ;;  %v4262_v14 = vld [vmem:[%s22717_s2] sm:$0x3]  ;;  %v23209_v25 = vmax.f32 %v19104_v18, %v19106_v50 }
 0x29d   : > { %v19554_v55 = vpop.f32.mrb[164].mxu0  ;;  %7846 = vmatprep.subr.bf16.mxu1 %v16383_v1  ;;  %v19591_v35 = vrot.slane %v4262_v14, %v23210_v12  ;;  %v23211_v1 = vmax.f32 %v19110_v51, %v19112_v20  ;;  %v23213_v12 = vmax.f32 %v19124_v27, %v19126_v39  ;;  %v23214_v27 = vmax.f32 %v19144_v37, %v19146_v23 }
 0x29e   : > { %23201 = vst [vmem:[#allocation68_spill] sm:$0xff] %v19554_v55  ;;  %v19556_v33 = vpop.f32.mrb[164].mxu1  ;;  %v19563_v53 = vpop.f32.mrb[165].mxu0  ;;  %v19597_v55 = vrot.slane %v4262_v14, %v18549_v4 }
 0x29f   : > { %23202 = vst [vmem:[#allocation69_spill] sm:$0xff] %v19556_v33  ;;  %23203 = vst [vmem:[#allocation70_spill] sm:$0xff] %v19563_v53  ;;  %v19565_v9 = vpop.f32.mrb[165].mxu1  ;;  %v19572_v30 = vpop.f32.mrb[166].mxu0 }
 0x2a0   : > { %23204 = vst [vmem:[#allocation71_spill] sm:$0xff] %v19565_v9  ;;  %23205 = vst [vmem:[#allocation73_spill] sm:$0xff] %v19572_v30  ;;  %v19574_v60 = vpop.f32.mrb[166].mxu1  ;;  %v19578_v31 = vpop.f32.mrb[167].mxu0 }
 0x2a1   : > { %23206 = vst [vmem:[#allocation74_spill] sm:$0xff] %v19574_v60  ;;  %23207 = vst [vmem:[#allocation75_spill] sm:$0xff] %v19578_v31  ;;  %v19580_v33 = vpop.f32.mrb[167].mxu1 }
 0x2a2   : > { %23208 = vst [vmem:[#allocation76_spill] sm:$0xff] %v19580_v33 }
 0x2a5   : > { %v3838_v9 = vpop.f32.mrb[168].mxu0 }
 0x2a6   : > { %v4067_v53 = vpop.f32.mrb[168].mxu1  ;;  %v3977_v24 = vmax.f32 %v23209_v25, %v3838_v9  ;;  %v3840_v60 = vpop.f32.mrb[169].mxu0 }
 0x2a7   : > { %v4069_v30 = vpop.f32.mrb[169].mxu1  ;;  %v3978_v63 = vmax.f32 %v23211_v1, %v3840_v60  ;;  %v3842_v33 = vpop.f32.mrb[170].mxu0 }
 0x2a8   : > { %v4071_v31 = vpop.f32.mrb[170].mxu1  ;;  %v4206_v11 = vmax.f32 %v3977_v24, %v4067_v53  ;;  %v3979_v18 = vmax.f32 %v23212_v15, %v3842_v33  ;;  %v3844_v50 = vpop.f32.mrb[171].mxu0 }
 0x2a9   : > { %v4073_v9 = vpop.f32.mrb[171].mxu1  ;;  %v4207_v25 = vmax.f32 %v3978_v63, %v4069_v30  ;;  %v3980_v0 = vmax.f32 %v23213_v12, %v3844_v50 }
 0x2aa   : > { %v4274_v51 = vadd.f32 %v19591_v35, %v4206_v11  ;;  %v4208_v20 = vmax.f32 %v3979_v18, %v4071_v31 }
 0x2ab   : > { %v4275_v60 = vadd.f32 %v19597_v55, %v4207_v25  ;;  %v4209_v14 = vmax.f32 %v3980_v0, %v4073_v9  ;;  %v23215_v0 = vmax.f32 %v19150_v7, %v19152_v8  ;;  %v23216_v25 = vmax.f32 %v19157_v10, %v19159_v58 }
 0x2ac   : > { %v4330_v1 = vmax.f32 %v4274_v51, 0.0  ;;  %v4276_v24 = vadd.f32 %v19591_v35, %v4208_v20 }
 0x2ad   : > { %v4331_v53 = vmax.f32 %v4275_v60, 0.0  ;;  %v4277_v16 = vadd.f32 %v19597_v55, %v4209_v14  ;;  %v3848_v40 = vpop.f32.mrb[172].mxu0  ;;  %v23217_v14 = vmax.f32 %v19169_v13, %v19171_v19  ;;  %v23218_v19 = vmax.f32 %v19192_v43, %v19194_v44 }
 0x2ae   : > { %v4077_v15 = vpop.f32.mrb[172].mxu1  ;;  %v4332_v30 = vmax.f32 %v4276_v24, 0.0  ;;  %v3981_v39 = vmax.f32 %v23214_v27, %v3848_v40  ;;  %v3850_v63 = vpop.f32.mrb[173].mxu0 }
 0x2af   : > { %v4079_v12 = vpop.f32.mrb[173].mxu1  ;;  %v14977_v11 = vpack.c.bf16 %v4331_v53, %v4330_v1  ;;  %v4333_v33 = vmax.f32 %v4277_v16, 0.0  ;;  %v3982_v31 = vmax.f32 %v23215_v0, %v3850_v63  ;;  %v3852_v18 = vpop.f32.mrb[174].mxu0 }
 0x2b0   : > { %v4081_v50 = vpop.f32.mrb[174].mxu1  ;;  %v4210_v9 = vmax.f32 %v3981_v39, %v4077_v15  ;;  %v3983_v51 = vmax.f32 %v23216_v25, %v3852_v18  ;;  %v3854_v20 = vpop.f32.mrb[175].mxu0 }
 0x2b1   : > { %v4083_v60 = vpop.f32.mrb[175].mxu1  ;;  %13772 = vst.msk [vmem:[%s18605_s26 + $0x140] sm:$0xff] %vm18583_vm3, %v14977_v11  ;;  %v14978_v37 = vpack.c.bf16 %v4333_v33, %v4332_v30  ;;  %v4211_v23 = vmax.f32 %v3982_v31, %v4079_v12  ;;  %v3984_v1 = vmax.f32 %v23217_v14, %v3854_v20  ;;  %v23219_v33 = vmax.f32 %v19198_v62, %v19200_v26 }
 0x2b2   : > { %v4278_v7 = vadd.f32 %v19591_v35, %v4210_v9  ;;  %v4212_v8 = vmax.f32 %v3983_v51, %v4081_v50  ;;  %v23220_v9 = vmax.f32 %v19206_v56, %v19208_v46  ;;  %v23221_v62 = vmax.f32 %v19212_v3, %v19214_v47 }
 0x2b3   : > { %13773 = vst.msk [vmem:[%s18605_s26 + $0x148] sm:$0xff] %vm18583_vm3, %v14978_v37  ;;  %v4279_v10 = vadd.f32 %v19597_v55, %v4211_v23  ;;  %v4213_v58 = vmax.f32 %v3984_v1, %v4083_v60 }
 0x2b4   : > { %v4334_v24 = vmax.f32 %v4278_v7, 0.0  ;;  %v4280_v53 = vadd.f32 %v19591_v35, %v4212_v8 }
 0x2b5   : > { %v4335_v16 = vmax.f32 %v4279_v10, 0.0  ;;  %v4281_v40 = vadd.f32 %v19597_v55, %v4213_v58  ;;  %v3858_v15 = vpop.f32.mrb[176].mxu0 }
 0x2b6   : > { %v4087_v30 = vpop.f32.mrb[176].mxu1  ;;  %v4336_v13 = vmax.f32 %v4280_v53, 0.0  ;;  %v3985_v27 = vmax.f32 %v23218_v19, %v3858_v15  ;;  %v3860_v39 = vpop.f32.mrb[177].mxu0 }
 0x2b7   : > { %v4089_v63 = vpop.f32.mrb[177].mxu1  ;;  %v14979_v12 = vpack.c.bf16 %v4335_v16, %v4334_v24  ;;  %v4337_v11 = vmax.f32 %v4281_v40, 0.0  ;;  %v3986_v0 = vmax.f32 %v23219_v33, %v3860_v39  ;;  %v3862_v31 = vpop.f32.mrb[178].mxu0  ;;  %v23222_v16 = vmax.f32 %v19220_v21, %v19222_v5 }
 0x2b8   : > { %v4091_v18 = vpop.f32.mrb[178].mxu1  ;;  %v4214_v50 = vmax.f32 %v3985_v27, %v4087_v30  ;;  %v3987_v43 = vmax.f32 %v23220_v9, %v3862_v31  ;;  %v3864_v44 = vpop.f32.mrb[179].mxu0  ;;  %v13804_v60 = vld [vmem:[%s18605_s26 + $0x140] sm:$0xff]  ;;  %v23223_v27 = vmax.f32 %v19226_v17, %v19228_v36  ;;  %v23224_v33 = vmax.f32 %v19232_v42, %v19234_v28 }
 0x2b9   : > { %v4093_v25 = vpop.f32.mrb[179].mxu1  ;;  %13774 = vst.msk [vmem:[%s18605_s26 + $0x150] sm:$0xff] %vm18583_vm3, %v14979_v12  ;;  %v14980_v51 = vpack.c.bf16 %v4337_v11, %v4336_v13  ;;  %v4215_v20 = vmax.f32 %v3986_v0, %v4089_v63  ;;  %v3988_v26 = vmax.f32 %v23221_v62, %v3864_v44  ;;  %v23225_v17 = vmax.f32 %v19238_v48, %v19240_v54 }
 0x2ba   : > { %v4282_v37 = vadd.f32 %v19591_v35, %v4214_v50  ;;  %v4216_v23 = vmax.f32 %v3987_v43, %v4091_v18  ;;  %v13805_v14 = vld [vmem:[%s18605_s26 + $0x148] sm:$0xff] }
 0x2bb   : > { %v16300_v1 = vld [vmem:[%s18605_s26 + $0x144] ss:$8 sps:$4 sm:$0xff]   ;;  %13775 = vst.msk [vmem:[%s18605_s26 + $0x158] sm:$0xff] %vm18583_vm3, %v14980_v51  ;;  %v4283_v56 = vadd.f32 %v19597_v55, %v4215_v20  ;;  %v4217_v46 = vmax.f32 %v3988_v26, %v4093_v25  ;;  %v19654_v7 = vcombine.low %v13804_v60, %v13805_v14 }
 0x2bc   : > { %v4338_v8 = vmax.f32 %v4282_v37, 0.0  ;;  %v4284_v10 = vadd.f32 %v19591_v35, %v4216_v23  ;;  %13895 = vmatprep.mubr.msk.bf16.mxu0 %vm4889_vm5, %v16300_v1  ;;  %14290 = vmatprep.mubr.msk.bf16.mxu1 %vm4889_vm5, %v16300_v1  ;;  %v23226_v23 = vmax.f32 %v19256_v57, %v19258_v61 }
 0x2bd   : > { %v4339_v3 = vmax.f32 %v4283_v56, 0.0  ;;  %v4285_v47 = vadd.f32 %v19597_v55, %v4217_v46  ;;  %v3868_v58 = vpop.f32.mrb[180].mxu0  ;;  %4992 = vmatmul.mubr.bf16.gmra.mrb[232].mxu0 %v19654_v7  ;;  %7346 = vmatmul.mubr.bf16.gmra.mrb[232].mxu1 %v19654_v7 }
 0x2be   : > { %v4097_v24 = vpop.f32.mrb[180].mxu1  ;;  %v4340_v53 = vmax.f32 %v4284_v10, 0.0  ;;  %v3989_v40 = vmax.f32 %v23222_v16, %v3868_v58  ;;  %v3870_v15 = vpop.f32.mrb[181].mxu0  ;;  %v23227_v10 = vmax.f32 %v19262_v32, %v19264_v6  ;;  %v23229_v32 = vmax.f32 %v19274_v29, %v19276_v2 }
 0x2bf   : > { %v4099_v30 = vpop.f32.mrb[181].mxu1  ;;  %v14981_v13 = vpack.c.bf16 %v4339_v3, %v4338_v8  ;;  %v4341_v19 = vmax.f32 %v4285_v47, 0.0  ;;  %v3990_v39 = vmax.f32 %v23223_v27, %v3870_v15  ;;  %v3872_v63 = vpop.f32.mrb[182].mxu0 }
 0x2c0   : > { %v4101_v12 = vpop.f32.mrb[182].mxu1  ;;  %v4218_v11 = vmax.f32 %v3989_v40, %v4097_v24  ;;  %v3991_v21 = vmax.f32 %v23224_v33, %v3872_v63  ;;  %v3874_v5 = vpop.f32.mrb[183].mxu0  ;;  %v13806_v50 = vld [vmem:[%s18605_s26 + $0x150] sm:$0xff] }
 0x2c1   : > { %v4103_v0 = vpop.f32.mrb[183].mxu1  ;;  %13776 = vst.msk [vmem:[%s18605_s26 + $0x160] sm:$0xff] %vm18583_vm3, %v14981_v13  ;;  %v14982_v31 = vpack.c.bf16 %v4341_v19, %v4340_v53  ;;  %v4219_v18 = vmax.f32 %v3990_v39, %v4099_v30  ;;  %v3992_v36 = vmax.f32 %v23225_v17, %v3874_v5  ;;  %v23228_v53 = vmax.f32 %v19268_v22, %v19270_v38 }
 0x2c2   : > { %v4286_v9 = vadd.f32 %v19591_v35, %v4218_v11  ;;  %v4220_v43 = vmax.f32 %v3991_v21, %v4101_v12  ;;  %v13807_v44 = vld [vmem:[%s18605_s26 + $0x158] sm:$0xff] }
 0x2c3   : > { %v16305_v25 = vld [vmem:[%s18605_s26 + $0x154] ss:$8 sps:$4 sm:$0xff]   ;;  %13777 = vst.msk [vmem:[%s18605_s26 + $0x168] sm:$0xff] %vm18583_vm3, %v14982_v31  ;;  %v4287_v42 = vadd.f32 %v19597_v55, %v4219_v18  ;;  %v4221_v28 = vmax.f32 %v3992_v36, %v4103_v0  ;;  %v19685_v51 = vcombine.low %v13806_v50, %v13807_v44  ;;  %v23230_v0 = vmax.f32 %v19286_v41, %v19288_v59 }
 0x2c4   : > { %v4342_v20 = vmax.f32 %v4286_v9, 0.0  ;;  %v4288_v62 = vadd.f32 %v19591_v35, %v4220_v43  ;;  %13896 = vmatprep.mubr.msk.bf16.mxu0 %vm4889_vm5, %v16305_v25  ;;  %14291 = vmatprep.mubr.msk.bf16.mxu1 %vm4889_vm5, %v16305_v25  ;;  %v23231_v9 = vmax.f32 %v19292_v52, %v19294_v49 }
 0x2c5   : > { %v4343_v48 = vmax.f32 %v4287_v42, 0.0  ;;  %v4289_v54 = vadd.f32 %v19597_v55, %v4221_v28  ;;  %v3878_v26 = vpop.f32.mrb[184].mxu0  ;;  %5002 = vmatmul.mubr.bf16.gmra.mrb[236].mxu0 %v19685_v51  ;;  %7356 = vmatmul.mubr.bf16.gmra.mrb[236].mxu1 %v19685_v51  ;;  %v23232_v28 = vld [vmem:[#allocation7_spill] sm:$0xff] }
 0x2c6   : > { %v4107_v60 = vpop.f32.mrb[184].mxu1  ;;  %v4344_v37 = vmax.f32 %v4288_v62, 0.0  ;;  %v3993_v14 = vmax.f32 %v23226_v23, %v3878_v26  ;;  %v3880_v1 = vpop.f32.mrb[185].mxu0  ;;  %v23234_v26 = vld [vmem:[#allocation8_spill] sm:$0xff] }
 0x2c7   : > { %v4109_v56 = vpop.f32.mrb[185].mxu1  ;;  %v14983_v46 = vpack.c.bf16 %v4343_v48, %v4342_v20  ;;  %v4345_v8 = vmax.f32 %v4289_v54, 0.0  ;;  %v3994_v3 = vmax.f32 %v23227_v10, %v3880_v1  ;;  %v3882_v47 = vpop.f32.mrb[186].mxu0  ;;  %v23233_v20 = vmax.f32 %v19298_v45, %v23232_v28 }
 0x2c8   : > { %v4111_v58 = vpop.f32.mrb[186].mxu1  ;;  %v4222_v24 = vmax.f32 %v3993_v14, %v4107_v60  ;;  %v3995_v57 = vmax.f32 %v23228_v53, %v3882_v47  ;;  %v3884_v61 = vpop.f32.mrb[187].mxu0  ;;  %v13808_v30 = vld [vmem:[%s18605_s26 + $0x160] sm:$0xff]  ;;  %v23235_v60 = vld [vmem:[#allocation9_spill] sm:$0xff] }
 0x2c9   : > { %v4113_v16 = vpop.f32.mrb[187].mxu1  ;;  %13778 = vst.msk [vmem:[%s18605_s26 + $0x170] sm:$0xff] %vm18583_vm3, %v14983_v46  ;;  %v14984_v40 = vpack.c.bf16 %v4345_v8, %v4344_v37  ;;  %v4223_v15 = vmax.f32 %v3994_v3, %v4109_v56  ;;  %v3996_v6 = vmax.f32 %v23229_v32, %v3884_v61  ;;  %v23236_v49 = vmax.f32 %v23234_v26, %v23235_v60  ;;  %v23237_v61 = vld [vmem:[#allocation10_spill] sm:$0xff] }
 0x2ca   : > { %v4290_v13 = vadd.f32 %v19591_v35, %v4222_v24  ;;  %v4224_v19 = vmax.f32 %v3995_v57, %v4111_v58  ;;  %v13809_v27 = vld [vmem:[%s18605_s26 + $0x168] sm:$0xff] }
 0x2cb   : > { %v16313_v39 = vld [vmem:[%s18605_s26 + $0x164] ss:$8 sps:$4 sm:$0xff]   ;;  %13779 = vst.msk [vmem:[%s18605_s26 + $0x178] sm:$0xff] %vm18583_vm3, %v14984_v40  ;;  %v4291_v38 = vadd.f32 %v19597_v55, %v4223_v15  ;;  %v4225_v22 = vmax.f32 %v3996_v6, %v4113_v16  ;;  %v19716_v63 = vcombine.low %v13808_v30, %v13809_v27  ;;  %v23238_v16 = vld [vmem:[#allocation11_spill] sm:$0xff] }
 0x2cc   : > { %v4346_v12 = vmax.f32 %v4290_v13, 0.0  ;;  %v4292_v11 = vadd.f32 %v19591_v35, %v4224_v19  ;;  %13897 = vmatprep.mubr.msk.bf16.mxu0 %vm4889_vm5, %v16313_v39  ;;  %14292 = vmatprep.mubr.msk.bf16.mxu1 %vm4889_vm5, %v16313_v39  ;;  %v23239_v40 = vmax.f32 %v23237_v61, %v23238_v16  ;;  %v23240_v19 = vld [vmem:[#allocation12_spill] sm:$0xff]  ;;  %v23241_v27 = vld [vmem:[#allocation13_spill] sm:$0xff]  ;;  %v23255_v16 = vld [vmem:[#allocation22_spill] sm:$0xff] }
 0x2cd   : > { %v4347_v29 = vmax.f32 %v4291_v38, 0.0  ;;  %v4293_v2 = vadd.f32 %v19597_v55, %v4225_v22  ;;  %v3888_v33 = vpop.f32.mrb[188].mxu0  ;;  %5012 = vmatmul.mubr.bf16.gmra.mrb[240].mxu0 %v19716_v63  ;;  %7366 = vmatmul.mubr.bf16.gmra.mrb[240].mxu1 %v19716_v63  ;;  %v23242_v39 = vmax.f32 %v23240_v19, %v23241_v27  ;;  %v23258_v27 = vld [vmem:[#allocation24_spill] sm:$0xff] }
 0x2ce   : > { %v4117_v21 = vpop.f32.mrb[188].mxu1  ;;  %v4348_v5 = vmax.f32 %v4292_v11, 0.0  ;;  %v3997_v31 = vmax.f32 %v23230_v0, %v3888_v33  ;;  %v3890_v18 = vpop.f32.mrb[189].mxu0 }
 0x2cf   : > { %v4119_v17 = vpop.f32.mrb[189].mxu1  ;;  %v14985_v36 = vpack.c.bf16 %v4347_v29, %v4346_v12  ;;  %v4349_v50 = vmax.f32 %v4293_v2, 0.0  ;;  %v3998_v43 = vmax.f32 %v23231_v9, %v3890_v18  ;;  %v3892_v44 = vpop.f32.mrb[190].mxu0  ;;  %v23243_v29 = vld [vmem:[#allocation14_spill] sm:$0xff]  ;;  %v23244_v2 = vld [vmem:[#allocation15_spill] sm:$0xff] }
 0x2d0   : > { %v4121_v25 = vpop.f32.mrb[190].mxu1  ;;  %v4226_v42 = vmax.f32 %v3997_v31, %v4117_v21  ;;  %v3999_v59 = vmax.f32 %v23233_v20, %v3892_v44  ;;  %v3894_v41 = vpop.f32.mrb[191].mxu0  ;;  %v13810_v37 = vld [vmem:[%s18605_s26 + $0x170] sm:$0xff]  ;;  %v23245_v33 = vmax.f32 %v23243_v29, %v23244_v2 }
 0x2d1   : > { %v4123_v62 = vpop.f32.mrb[191].mxu1  ;;  %13780 = vst.msk [vmem:[%s18605_s26 + $0x180] sm:$0xff] %vm18583_vm3, %v14985_v36  ;;  %v14986_v48 = vpack.c.bf16 %v4349_v50, %v4348_v5  ;;  %v4227_v54 = vmax.f32 %v3998_v43, %v4119_v17  ;;  %v4000_v52 = vmax.f32 %v23236_v49, %v3894_v41  ;;  %v23246_v17 = vld [vmem:[#allocation16_spill] sm:$0xff]  ;;  %v23247_v36 = vld [vmem:[#allocation17_spill] sm:$0xff] }
 0x2d2   : > { %v4294_v23 = vadd.f32 %v19591_v35, %v4226_v42  ;;  %v4228_v14 = vmax.f32 %v3999_v59, %v4121_v25  ;;  %v13811_v1 = vld [vmem:[%s18605_s26 + $0x178] sm:$0xff]  ;;  %v23248_v50 = vmax.f32 %v23246_v17, %v23247_v36 }
 0x2d3   : > { %v16318_v56 = vld [vmem:[%s18605_s26 + $0x174] ss:$8 sps:$4 sm:$0xff]   ;;  %13781 = vst.msk [vmem:[%s18605_s26 + $0x188] sm:$0xff] %vm18583_vm3, %v14986_v48  ;;  %v4295_v45 = vadd.f32 %v19597_v55, %v4227_v54  ;;  %v4229_v46 = vmax.f32 %v4000_v52, %v4123_v62  ;;  %v19747_v8 = vcombine.low %v13810_v37, %v13811_v1 }
 0x2d4   : > { %v4350_v10 = vmax.f32 %v4294_v23, 0.0  ;;  %v4296_v3 = vadd.f32 %v19591_v35, %v4228_v14  ;;  %13898 = vmatprep.mubr.msk.bf16.mxu0 %vm4889_vm5, %v16318_v56  ;;  %14293 = vmatprep.mubr.msk.bf16.mxu1 %vm4889_vm5, %v16318_v56  ;;  %v23249_v37 = vld [vmem:[#allocation18_spill] sm:$0xff]  ;;  %v23250_v23 = vld [vmem:[#allocation19_spill] sm:$0xff] }
 0x2d5   : > { %v4351_v47 = vmax.f32 %v4295_v45, 0.0  ;;  %v4297_v58 = vadd.f32 %v19597_v55, %v4229_v46  ;;  %v3898_v24 = vpop.f32.mrb[192].mxu0  ;;  %5022 = vmatmul.mubr.bf16.gmra.mrb[244].mxu0 %v19747_v8  ;;  %7376 = vmatmul.mubr.bf16.gmra.mrb[244].mxu1 %v19747_v8  ;;  %v23251_v14 = vmax.f32 %v23249_v37, %v23250_v23 }
 0x2d6   : > { %v4127_v53 = vpop.f32.mrb[192].mxu1  ;;  %v4352_v57 = vmax.f32 %v4296_v3, 0.0  ;;  %v4001_v15 = vmax.f32 %v23239_v40, %v3898_v24  ;;  %v3900_v32 = vpop.f32.mrb[193].mxu0  ;;  %v23252_v3 = vld [vmem:[#allocation20_spill] sm:$0xff]  ;;  %v23256_v40 = vld [vmem:[#allocation23_spill] sm:$0xff] }
 0x2d7   : > { %v4129_v6 = vpop.f32.mrb[193].mxu1  ;;  %v14987_v30 = vpack.c.bf16 %v4351_v47, %v4350_v10  ;;  %v4353_v13 = vmax.f32 %v4297_v58, 0.0  ;;  %v4002_v38 = vmax.f32 %v23242_v39, %v3900_v32  ;;  %v3902_v22 = vpop.f32.mrb[194].mxu0  ;;  %v23253_v47 = vld [vmem:[#allocation21_spill] sm:$0xff] }
 0x2d8   : > { %v4131_v12 = vpop.f32.mrb[194].mxu1  ;;  %v4230_v11 = vmax.f32 %v4001_v15, %v4127_v53  ;;  %v4003_v21 = vmax.f32 %v23245_v33, %v3902_v22  ;;  %v3904_v5 = vpop.f32.mrb[195].mxu0  ;;  %v13812_v43 = vld [vmem:[%s18605_s26 + $0x180] sm:$0xff]  ;;  %v23254_v58 = vmax.f32 %v23252_v3, %v23253_v47  ;;  %v23257_v15 = vmax.f32 %v23255_v16, %v23256_v40  ;;  %v23259_v39 = vld [vmem:[#allocation25_spill] sm:$0xff] }
 0x2d9   : > { %v4133_v0 = vpop.f32.mrb[195].mxu1  ;;  %13782 = vst.msk [vmem:[%s18605_s26 + $0x190] sm:$0xff] %vm18583_vm3, %v14987_v30  ;;  %v14988_v31 = vpack.c.bf16 %v4353_v13, %v4352_v57  ;;  %v4231_v18 = vmax.f32 %v4002_v38, %v4129_v6  ;;  %v4004_v9 = vmax.f32 %v23248_v50, %v3904_v5  ;;  %v23260_v38 = vmax.f32 %v23258_v27, %v23259_v39 }
 0x2da   : > { %v4298_v44 = vadd.f32 %v19591_v35, %v4230_v11  ;;  %v4232_v25 = vmax.f32 %v4003_v21, %v4131_v12  ;;  %v13813_v42 = vld [vmem:[%s18605_s26 + $0x188] sm:$0xff] }
 0x2db   : > { %v16323_v28 = vld [vmem:[%s18605_s26 + $0x184] ss:$8 sps:$4 sm:$0xff]   ;;  %13783 = vst.msk [vmem:[%s18605_s26 + $0x198] sm:$0xff] %vm18583_vm3, %v14988_v31  ;;  %v4299_v20 = vadd.f32 %v19597_v55, %v4231_v18  ;;  %v4233_v59 = vmax.f32 %v4004_v9, %v4133_v0  ;;  %v19778_v41 = vcombine.low %v13812_v43, %v13813_v42 }
 0x2dc   : > { %v4354_v62 = vmax.f32 %v4298_v44, 0.0  ;;  %v4300_v48 = vadd.f32 %v19591_v35, %v4232_v25  ;;  %13899 = vmatprep.mubr.msk.bf16.mxu0 %vm4889_vm5, %v16323_v28  ;;  %14294 = vmatprep.mubr.msk.bf16.mxu1 %vm4889_vm5, %v16323_v28  ;;  %v23261_v44 = vld [vmem:[#allocation26_spill] sm:$0xff]  ;;  %v23262_v25 = vld [vmem:[#allocation27_spill] sm:$0xff] }
 0x2dd   : > { %v4355_v54 = vmax.f32 %v4299_v20, 0.0  ;;  %v4301_v26 = vadd.f32 %v19597_v55, %v4233_v59  ;;  %v3908_v60 = vpop.f32.mrb[196].mxu0  ;;  %5032 = vmatmul.mubr.bf16.gmra.mrb[248].mxu0 %v19778_v41  ;;  %7386 = vmatmul.mubr.bf16.gmra.mrb[248].mxu1 %v19778_v41  ;;  %v23263_v42 = vmax.f32 %v23261_v44, %v23262_v25  ;;  %v23279_v25 = vld [vmem:[#allocation38_spill] sm:$0xff] }
 0x2de   : > { %v4137_v49 = vpop.f32.mrb[196].mxu1  ;;  %v4356_v52 = vmax.f32 %v4300_v48, 0.0  ;;  %v4005_v1 = vmax.f32 %v23251_v14, %v3908_v60  ;;  %v3910_v56 = vpop.f32.mrb[197].mxu0  ;;  %v23267_v14 = vld [vmem:[#allocation30_spill] sm:$0xff] }
 0x2df   : > { %v4139_v45 = vpop.f32.mrb[197].mxu1  ;;  %v14989_v46 = vpack.c.bf16 %v4355_v54, %v4354_v62  ;;  %v4357_v10 = vmax.f32 %v4301_v26, 0.0  ;;  %v4006_v24 = vmax.f32 %v23254_v58, %v3910_v56  ;;  %v3912_v53 = vpop.f32.mrb[198].mxu0  ;;  %v23264_v54 = vld [vmem:[#allocation28_spill] sm:$0xff]  ;;  %v23265_v26 = vld [vmem:[#allocation29_spill] sm:$0xff] }
 0x2e0   : > { %v4141_v57 = vpop.f32.mrb[198].mxu1  ;;  %v4234_v61 = vmax.f32 %v4005_v1, %v4137_v49  ;;  %v4007_v32 = vmax.f32 %v23257_v15, %v3912_v53  ;;  %v3914_v6 = vpop.f32.mrb[199].mxu0  ;;  %v13814_v12 = vld [vmem:[%s18605_s26 + $0x190] sm:$0xff]  ;;  %v23266_v60 = vmax.f32 %v23264_v54, %v23265_v26  ;;  %v23268_v1 = vld [vmem:[#allocation31_spill] sm:$0xff]  ;;  %v23270_v58 = vld [vmem:[#allocation32_spill] sm:$0xff] }
 0x2e1   : > { %v4143_v30 = vpop.f32.mrb[199].mxu1  ;;  %13784 = vst.msk [vmem:[%s18605_s26 + $0x1a0] sm:$0xff] %vm18583_vm3, %v14989_v46  ;;  %v14990_v13 = vpack.c.bf16 %v4357_v10, %v4356_v52  ;;  %v4235_v19 = vmax.f32 %v4006_v24, %v4139_v45  ;;  %v4008_v22 = vmax.f32 %v23260_v38, %v3914_v6  ;;  %v23269_v56 = vmax.f32 %v23267_v14, %v23268_v1  ;;  %v23271_v24 = vld [vmem:[#allocation33_spill] sm:$0xff]  ;;  %v23282_v26 = vld [vmem:[#allocation40_spill] sm:$0xff] }
 0x2e2   : > { %v4302_v11 = vadd.f32 %v19591_v35, %v4234_v61  ;;  %v4236_v29 = vmax.f32 %v4007_v32, %v4141_v57  ;;  %v13815_v2 = vld [vmem:[%s18605_s26 + $0x198] sm:$0xff]  ;;  %v23272_v53 = vmax.f32 %v23270_v58, %v23271_v24 }
 0x2e3   : > { %v16331_v33 = vld [vmem:[%s18605_s26 + $0x194] ss:$8 sps:$4 sm:$0xff]   ;;  %13785 = vst.msk [vmem:[%s18605_s26 + $0x1a8] sm:$0xff] %vm18583_vm3, %v14990_v13  ;;  %v4303_v21 = vadd.f32 %v19597_v55, %v4235_v19  ;;  %v4237_v5 = vmax.f32 %v4008_v22, %v4143_v30  ;;  %v19809_v0 = vcombine.low %v13814_v12, %v13815_v2 }
 0x2e4   : > { %v4358_v31 = vmax.f32 %v4302_v11, 0.0  ;;  %v4304_v18 = vadd.f32 %v19591_v35, %v4236_v29  ;;  %13900 = vmatprep.mubr.msk.bf16.mxu0 %vm4889_vm5, %v16331_v33  ;;  %14295 = vmatprep.mubr.msk.bf16.mxu1 %vm4889_vm5, %v16331_v33  ;;  %v23273_v12 = vld [vmem:[#allocation34_spill] sm:$0xff]  ;;  %v23274_v11 = vld [vmem:[#allocation35_spill] sm:$0xff] }
 0x2e5   : > { %v4359_v17 = vmax.f32 %v4303_v21, 0.0  ;;  %v4305_v36 = vadd.f32 %v19597_v55, %v4237_v5  ;;  %v3918_v50 = vpop.f32.mrb[200].mxu0  ;;  %5042 = vmatmul.mubr.bf16.gmra.mrb[252].mxu0 %v19809_v0  ;;  %7396 = vmatmul.mubr.bf16.gmra.mrb[252].mxu1 %v19809_v0  ;;  %v23275_v29 = vmax.f32 %v23273_v12, %v23274_v11  ;;  %v23291_v11 = vld [vmem:[#allocation46_spill] sm:$0xff] }
 0x2e6   : > { %v4147_v9 = vpop.f32.mrb[200].mxu1  ;;  %v4360_v43 = vmax.f32 %v4304_v18, 0.0  ;;  %v4009_v28 = vmax.f32 %v23263_v42, %v3918_v50  ;;  %v3920_v20 = vpop.f32.mrb[201].mxu0  ;;  %v23276_v18 = vld [vmem:[#allocation36_spill] sm:$0xff]  ;;  %v23280_v42 = vld [vmem:[#allocation39_spill] sm:$0xff] }
 0x2e7   : > { %v4149_v59 = vpop.f32.mrb[201].mxu1  ;;  %v14991_v62 = vpack.c.bf16 %v4359_v17, %v4358_v31  ;;  %v4361_v48 = vmax.f32 %v4305_v36, 0.0  ;;  %v4010_v49 = vmax.f32 %v23266_v60, %v3920_v20  ;;  %v3922_v52 = vpop.f32.mrb[202].mxu0  ;;  %v23277_v17 = vld [vmem:[#allocation37_spill] sm:$0xff] }
 0x2e8   : > { %v4151_v37 = vpop.f32.mrb[202].mxu1  ;;  %v4238_v23 = vmax.f32 %v4009_v28, %v4147_v9  ;;  %v4011_v45 = vmax.f32 %v23269_v56, %v3922_v52  ;;  %v3924_v46 = vpop.f32.mrb[203].mxu0  ;;  %v23278_v36 = vmax.f32 %v23276_v18, %v23277_v17  ;;  %v23281_v28 = vmax.f32 %v23279_v25, %v23280_v42  ;;  %v23283_v60 = vld [vmem:[#allocation41_spill] sm:$0xff]  ;;  %v23294_v17 = vld [vmem:[#allocation48_spill] sm:$0xff] }
 0x2e9   : > { %v4153_v10 = vpop.f32.mrb[203].mxu1  ;;  %13786 = vst.msk [vmem:[%s18605_s26 + $0x1b0] sm:$0xff] %vm18583_vm3, %v14991_v62  ;;  %v14992_v3 = vpack.c.bf16 %v4361_v48, %v4360_v43  ;;  %v4239_v47 = vmax.f32 %v4010_v49, %v4149_v59  ;;  %v4012_v57 = vmax.f32 %v23272_v53, %v3924_v46  ;;  %v23284_v49 = vmax.f32 %v23282_v26, %v23283_v60 }
 0x2ea   : > { %v4306_v61 = vadd.f32 %v19591_v35, %v4238_v23  ;;  %v4240_v16 = vmax.f32 %v4011_v45, %v4151_v37  ;;  %v16333_v40 = vld [vmem:[%s18605_s26 + $0x1a0] ss:$8 sps:$4 sm:$0xff]   ;;  %v16335_v15 = vld [vmem:[%s18605_s26 + $0x1a4] ss:$8 sps:$4 sm:$0xff]  }
 0x2eb   : > { %13787 = vst.msk [vmem:[%s18605_s26 + $0x1b8] sm:$0xff] %vm18583_vm3, %v14992_v3  ;;  %v4307_v32 = vadd.f32 %v19597_v55, %v4239_v47  ;;  %v4241_v6 = vmax.f32 %v4012_v57, %v4153_v10  ;;  %13901 = vmatprep.mubr.msk.bf16.mxu0 %vm4889_vm5, %v16335_v15  ;;  %14296 = vmatprep.mubr.msk.bf16.mxu1 %vm4889_vm5, %v16335_v15  ;;  %v23285_v57 = vld [vmem:[#allocation42_spill] sm:$0xff] }
 0x2ec   : > { %v4362_v30 = vmax.f32 %v4306_v61, 0.0  ;;  %v4308_v13 = vadd.f32 %v19591_v35, %v4240_v16  ;;  %v23286_v61 = vld [vmem:[#allocation43_spill] sm:$0xff] }
 0x2ed   : > { %v4363_v19 = vmax.f32 %v4307_v32, 0.0  ;;  %v4309_v27 = vadd.f32 %v19597_v55, %v4241_v6  ;;  %v3928_v39 = vpop.f32.mrb[204].mxu0  ;;  %5052 = vmatmul.mubr.bf16.gmra.mrb[0].mxu0 %v16333_v40  ;;  %7406 = vmatmul.mubr.bf16.gmra.mrb[0].mxu1 %v16333_v40  ;;  %v23287_v16 = vmax.f32 %v23285_v57, %v23286_v61  ;;  %v23303_v61 = vld [vmem:[#allocation54_spill] sm:$0xff] }
 0x2ee   : > { %v4157_v38 = vpop.f32.mrb[204].mxu1  ;;  %v4364_v22 = vmax.f32 %v4308_v13, 0.0  ;;  %v4013_v2 = vmax.f32 %v23275_v29, %v3928_v39  ;;  %v3930_v33 = vpop.f32.mrb[205].mxu0  ;;  %v23288_v13 = vld [vmem:[#allocation44_spill] sm:$0xff]  ;;  %v23292_v29 = vld [vmem:[#allocation47_spill] sm:$0xff] }
 0x2ef   : > { %v4159_v21 = vpop.f32.mrb[205].mxu1  ;;  %v14993_v5 = vpack.c.bf16 %v4363_v19, %v4362_v30  ;;  %v4365_v31 = vmax.f32 %v4309_v27, 0.0  ;;  %v4014_v50 = vmax.f32 %v23278_v36, %v3930_v33  ;;  %v3932_v9 = vpop.f32.mrb[206].mxu0  ;;  %v23289_v19 = vld [vmem:[#allocation45_spill] sm:$0xff] }
 0x2f0   : > { %v4161_v43 = vpop.f32.mrb[206].mxu1  ;;  %v4242_v44 = vmax.f32 %v4013_v2, %v4157_v38  ;;  %v4015_v20 = vmax.f32 %v23281_v28, %v3932_v9  ;;  %v3934_v59 = vpop.f32.mrb[207].mxu0  ;;  %v23290_v27 = vmax.f32 %v23288_v13, %v23289_v19  ;;  %v23293_v2 = vmax.f32 %v23291_v11, %v23292_v29  ;;  %v23295_v36 = vld [vmem:[#allocation49_spill] sm:$0xff]  ;;  %v23306_v19 = vld [vmem:[#allocation56_spill] sm:$0xff] }
 0x2f1   : > { %v4163_v62 = vpop.f32.mrb[207].mxu1  ;;  %13788 = vst.msk [vmem:[%s18605_s26 + $0x1c0] sm:$0xff] %vm18583_vm3, %v14993_v5  ;;  %v14994_v48 = vpack.c.bf16 %v4365_v31, %v4364_v22  ;;  %v4243_v54 = vmax.f32 %v4014_v50, %v4159_v21  ;;  %v4016_v52 = vmax.f32 %v23284_v49, %v3934_v59  ;;  %v23296_v50 = vmax.f32 %v23294_v17, %v23295_v36 }
 0x2f2   : > { %v4310_v37 = vadd.f32 %v19591_v35, %v4242_v44  ;;  %v4244_v23 = vmax.f32 %v4015_v20, %v4161_v43  ;;  %v16342_v14 = vld [vmem:[%s18605_s26 + $0x1b0] ss:$8 sps:$4 sm:$0xff]   ;;  %v16344_v1 = vld [vmem:[%s18605_s26 + $0x1b4] ss:$8 sps:$4 sm:$0xff]  }
 0x2f3   : > { %13789 = vst.msk [vmem:[%s18605_s26 + $0x1c8] sm:$0xff] %vm18583_vm3, %v14994_v48  ;;  %v4311_v56 = vadd.f32 %v19597_v55, %v4243_v54  ;;  %v4245_v45 = vmax.f32 %v4016_v52, %v4163_v62  ;;  %13902 = vmatprep.mubr.msk.bf16.mxu0 %vm4889_vm5, %v16344_v1  ;;  %14297 = vmatprep.mubr.msk.bf16.mxu1 %vm4889_vm5, %v16344_v1  ;;  %v23297_v52 = vld [vmem:[#allocation50_spill] sm:$0xff] }
 0x2f4   : > { %v4366_v46 = vmax.f32 %v4310_v37, 0.0  ;;  %v4312_v10 = vadd.f32 %v19591_v35, %v4244_v23  ;;  %v23298_v37 = vld [vmem:[#allocation51_spill] sm:$0xff] }
 0x2f5   : > { %v4367_v3 = vmax.f32 %v4311_v56, 0.0  ;;  %v4313_v47 = vadd.f32 %v19597_v55, %v4245_v45  ;;  %v3938_v58 = vpop.f32.mrb[208].mxu0  ;;  %5062 = vmatmul.mubr.bf16.gmra.mrb[4].mxu0 %v16342_v14  ;;  %7416 = vmatmul.mubr.bf16.gmra.mrb[4].mxu1 %v16342_v14  ;;  %v23299_v23 = vmax.f32 %v23297_v52, %v23298_v37  ;;  %v23315_v52 = vld [vmem:[#allocation62_spill] sm:$0xff]  ;;  %v23316_v37 = vld [vmem:[#allocation63_spill] sm:$0xff] }
 0x2f6   : > { %v4167_v24 = vpop.f32.mrb[208].mxu1  ;;  %v4368_v53 = vmax.f32 %v4312_v10, 0.0  ;;  %v4017_v40 = vmax.f32 %v23287_v16, %v3938_v58  ;;  %v3940_v15 = vpop.f32.mrb[209].mxu0  ;;  %v23300_v10 = vld [vmem:[#allocation52_spill] sm:$0xff]  ;;  %v23304_v16 = vld [vmem:[#allocation55_spill] sm:$0xff] }
 0x2f7   : > { %v4169_v32 = vpop.f32.mrb[209].mxu1  ;;  %v14995_v6 = vpack.c.bf16 %v4367_v3, %v4366_v46  ;;  %v4369_v30 = vmax.f32 %v4313_v47, 0.0  ;;  %v4018_v39 = vmax.f32 %v23290_v27, %v3940_v15  ;;  %v3942_v38 = vpop.f32.mrb[210].mxu0  ;;  %v23301_v3 = vld [vmem:[#allocation53_spill] sm:$0xff] }
 0x2f8   : > { %v4171_v22 = vpop.f32.mrb[210].mxu1  ;;  %v4246_v12 = vmax.f32 %v4017_v40, %v4167_v24  ;;  %v4019_v33 = vmax.f32 %v23293_v2, %v3942_v38  ;;  %v3944_v21 = vpop.f32.mrb[211].mxu0  ;;  %v23302_v47 = vmax.f32 %v23300_v10, %v23301_v3  ;;  %v23305_v40 = vmax.f32 %v23303_v61, %v23304_v16  ;;  %v23307_v27 = vld [vmem:[#allocation57_spill] sm:$0xff]  ;;  %v23318_v10 = vld [vmem:[#allocation64_spill] sm:$0xff] }
 0x2f9   : > { %v4173_v5 = vpop.f32.mrb[211].mxu1  ;;  %13790 = vst.msk [vmem:[%s18605_s26 + $0x1d0] sm:$0xff] %vm18583_vm3, %v14995_v6  ;;  %v14996_v31 = vpack.c.bf16 %v4369_v30, %v4368_v53  ;;  %v4247_v18 = vmax.f32 %v4018_v39, %v4169_v32  ;;  %v4020_v9 = vmax.f32 %v23296_v50, %v3944_v21  ;;  %v23308_v39 = vmax.f32 %v23306_v19, %v23307_v27  ;;  %v23319_v3 = vld [vmem:[#allocation65_spill] sm:$0xff] }
 0x2fa   : > { %v4314_v43 = vadd.f32 %v19591_v35, %v4246_v12  ;;  %v4248_v44 = vmax.f32 %v4019_v33, %v4171_v22  ;;  %v16351_v25 = vld [vmem:[%s18605_s26 + $0x1c0] ss:$8 sps:$4 sm:$0xff]   ;;  %v16353_v42 = vld [vmem:[%s18605_s26 + $0x1c4] ss:$8 sps:$4 sm:$0xff]  }
 0x2fb   : > { %13791 = vst.msk [vmem:[%s18605_s26 + $0x1d8] sm:$0xff] %vm18583_vm3, %v14996_v31  ;;  %v4315_v28 = vadd.f32 %v19597_v55, %v4247_v18  ;;  %v4249_v20 = vmax.f32 %v4020_v9, %v4173_v5  ;;  %13903 = vmatprep.mubr.msk.bf16.mxu0 %vm4889_vm5, %v16353_v42  ;;  %14298 = vmatprep.mubr.msk.bf16.mxu1 %vm4889_vm5, %v16353_v42  ;;  %v23309_v9 = vld [vmem:[#allocation58_spill] sm:$0xff] }
 0x2fc   : > { %v4370_v59 = vmax.f32 %v4314_v43, 0.0  ;;  %v4316_v62 = vadd.f32 %v19591_v35, %v4248_v44  ;;  %v23310_v43 = vld [vmem:[#allocation59_spill] sm:$0xff] }
 0x2fd   : > { %v4371_v48 = vmax.f32 %v4315_v28, 0.0  ;;  %v4317_v54 = vadd.f32 %v19597_v55, %v4249_v20  ;;  %v3948_v26 = vpop.f32.mrb[212].mxu0  ;;  %5072 = vmatmul.mubr.bf16.gmra.mrb[8].mxu0 %v16351_v25  ;;  %7426 = vmatmul.mubr.bf16.gmra.mrb[8].mxu1 %v16351_v25  ;;  %v23311_v44 = vmax.f32 %v23309_v9, %v23310_v43  ;;  %v23327_v9 = vld [vmem:[#allocation73_spill] sm:$0xff]  ;;  %v23328_v43 = vld [vmem:[#allocation74_spill] sm:$0xff] }
 0x2fe   : > { %v4177_v60 = vpop.f32.mrb[212].mxu1  ;;  %v4372_v49 = vmax.f32 %v4316_v62, 0.0  ;;  %v4021_v14 = vmax.f32 %v23299_v23, %v3948_v26  ;;  %v3950_v1 = vpop.f32.mrb[213].mxu0  ;;  %v23312_v62 = vld [vmem:[#allocation60_spill] sm:$0xff]  ;;  %v23317_v23 = vmax.f32 %v23315_v52, %v23316_v37 }
 0x2ff   : > { %v4179_v56 = vpop.f32.mrb[213].mxu1  ;;  %v14997_v45 = vpack.c.bf16 %v4371_v48, %v4370_v59  ;;  %v4373_v46 = vmax.f32 %v4317_v54, 0.0  ;;  %v4022_v58 = vmax.f32 %v23302_v47, %v3950_v1  ;;  %v3952_v24 = vpop.f32.mrb[214].mxu0  ;;  %v23313_v48 = vld [vmem:[#allocation61_spill] sm:$0xff]  ;;  %v23320_v47 = vmax.f32 %v23318_v10, %v23319_v3 }
 0x300   : > { %v4181_v53 = vpop.f32.mrb[214].mxu1  ;;  %v4250_v57 = vmax.f32 %v4021_v14, %v4177_v60  ;;  %v4023_v15 = vmax.f32 %v23305_v40, %v3952_v24  ;;  %v3954_v32 = vpop.f32.mrb[215].mxu0  ;;  %v23314_v54 = vmax.f32 %v23312_v62, %v23313_v48  ;;  %v23330_v62 = vld [vmem:[#allocation75_spill] sm:$0xff]  ;;  %v23331_v48 = vld [vmem:[#allocation76_spill] sm:$0xff] }
 0x301   : > { %v4183_v6 = vpop.f32.mrb[215].mxu1  ;;  %13792 = vst.msk [vmem:[%s18605_s26 + $0x1e0] sm:$0xff] %vm18583_vm3, %v14997_v45  ;;  %v14998_v30 = vpack.c.bf16 %v4373_v46, %v4372_v49  ;;  %v4251_v13 = vmax.f32 %v4022_v58, %v4179_v56  ;;  %v4024_v38 = vmax.f32 %v23308_v39, %v3954_v32 }
 0x302   : > { %v4318_v22 = vadd.f32 %v19591_v35, %v4250_v57  ;;  %v4252_v12 = vmax.f32 %v4023_v15, %v4181_v53  ;;  %v16354_v11 = vld [vmem:[%s18605_s26 + $0x1d0] ss:$8 sps:$4 sm:$0xff]   ;;  %v16356_v29 = vld [vmem:[%s18605_s26 + $0x1d4] ss:$8 sps:$4 sm:$0xff]  }
 0x303   : > { %13793 = vst.msk [vmem:[%s18605_s26 + $0x1e8] sm:$0xff] %vm18583_vm3, %v14998_v30  ;;  %v4319_v2 = vadd.f32 %v19597_v55, %v4251_v13  ;;  %v4253_v33 = vmax.f32 %v4024_v38, %v4183_v6  ;;  %13904 = vmatprep.mubr.msk.bf16.mxu0 %vm4889_vm5, %v16356_v29  ;;  %14299 = vmatprep.mubr.msk.bf16.mxu1 %vm4889_vm5, %v16356_v29  ;;  %v23321_v38 = vld [vmem:[#allocation68_spill] sm:$0xff] }
 0x304   : > { %v4374_v21 = vmax.f32 %v4318_v22, 0.0  ;;  %v4320_v5 = vadd.f32 %v19591_v35, %v4252_v12  ;;  %v23322_v22 = vld [vmem:[#allocation69_spill] sm:$0xff] }
 0x305   : > { %v4375_v31 = vmax.f32 %v4319_v2, 0.0  ;;  %v4321_v18 = vadd.f32 %v19597_v55, %v4253_v33  ;;  %v3958_v17 = vpop.f32.mrb[216].mxu0  ;;  %5082 = vmatmul.mubr.bf16.gmra.mrb[12].mxu0 %v16354_v11  ;;  %7436 = vmatmul.mubr.bf16.gmra.mrb[12].mxu1 %v16354_v11  ;;  %v23323_v12 = vmax.f32 %v23321_v38, %v23322_v22  ;;  %v16412_v38 = vld [vmem:[%s22718_s3 + $0x154] ss:$8 sps:$4 sm:$0xff]   ;;  %v16416_v22 = vld [vmem:[%s22718_s3 + $0x424] ss:$8 sps:$4 sm:$0xff]  }
 0x306   : > { %v4187_v36 = vpop.f32.mrb[216].mxu1  ;;  %v4376_v50 = vmax.f32 %v4320_v5, 0.0  ;;  %v4025_v25 = vmax.f32 %v23311_v44, %v3958_v17  ;;  %v3960_v42 = vpop.f32.mrb[217].mxu0  ;;  %v23324_v5 = vld [vmem:[#allocation70_spill] sm:$0xff]  ;;  %v23329_v44 = vmax.f32 %v23327_v9, %v23328_v43  ;;  %v16446_v9 = vld [vmem:[%s22718_s3 + $0x184] ss:$8 sps:$4 sm:$0xff]  }
 0x307   : > { %v4189_v28 = vpop.f32.mrb[217].mxu1  ;;  %v14999_v20 = vpack.c.bf16 %v4375_v31, %v4374_v21  ;;  %v4377_v59 = vmax.f32 %v4321_v18, 0.0  ;;  %v4026_v26 = vmax.f32 %v23314_v54, %v3960_v42  ;;  %v3962_v60 = vpop.f32.mrb[218].mxu0  ;;  %v23325_v31 = vld [vmem:[#allocation71_spill] sm:$0xff]  ;;  %v23332_v54 = vmax.f32 %v23330_v62, %v23331_v48  ;;  %v16459_v48 = vld [vmem:[%s22718_s3 + $0x460] ss:$8 sps:$4 sm:$0xff]  }
 0x308   : > { %v4191_v49 = vpop.f32.mrb[218].mxu1  ;;  %v4027_v14 = vmax.f32 %v23317_v23, %v3962_v60  ;;  %v4254_v1 = vmax.f32 %v4025_v25, %v4187_v36  ;;  %v3964_v56 = vpop.f32.mrb[219].mxu0  ;;  %v23326_v18 = vmax.f32 %v23324_v5, %v23325_v31  ;;  %v16425_v5 = vld [vmem:[%s22718_s3 + $0x430] ss:$8 sps:$4 sm:$0xff]   ;;  %v20052_v31 = vld [vmem:[%s18605_s26 + $0x34] ss:$8 sps:$4 sm:$0xff]  }
 0x309   : > { %v4193_v45 = vpop.f32.mrb[219].mxu1  ;;  %13794 = vst.msk [vmem:[%s18605_s26 + $0x1f0] sm:$0xff] %vm18583_vm3, %v14999_v20  ;;  %v15000_v46 = vpack.c.bf16 %v4377_v59, %v4376_v50  ;;  %v4028_v58 = vmax.f32 %v23320_v47, %v3964_v56  ;;  %v4255_v24 = vmax.f32 %v4026_v26, %v4189_v28  ;;  %v16449_v43 = vld [vmem:[%s22718_s3 + $0x454] ss:$8 sps:$4 sm:$0xff]   ;;  %v16453_v62 = vld [vmem:[%s22718_s3 + $0x190] ss:$8 sps:$4 sm:$0xff]  }
 0x30a   : > { %v4322_v53 = vadd.f32 %v19591_v35, %v4254_v1  ;;  %v4256_v57 = vmax.f32 %v4027_v14, %v4191_v49  ;;  %v16363_v61 = vld [vmem:[%s18605_s26 + $0x1e0] ss:$8 sps:$4 sm:$0xff]   ;;  %v16365_v16 = vld [vmem:[%s18605_s26 + $0x1e4] ss:$8 sps:$4 sm:$0xff]  }
 0x30b   : > { %13795 = vst.msk [vmem:[%s18605_s26 + $0x1f8] sm:$0xff] %vm18583_vm3, %v15000_v46  ;;  %v4323_v40 = vadd.f32 %v19597_v55, %v4255_v24  ;;  %v4257_v15 = vmax.f32 %v4028_v58, %v4193_v45  ;;  %13905 = vmatprep.mubr.msk.bf16.mxu0 %vm4889_vm5, %v16365_v16  ;;  %14300 = vmatprep.mubr.msk.bf16.mxu1 %vm4889_vm5, %v16365_v16  ;;  %v16377_v49 = vld [vmem:[%s18605_s26 + $0x4] ss:$8 sps:$4 sm:$0xff]   ;;  %v16391_v16 = vld [vmem:[%s22718_s3 + $0x134] ss:$8 sps:$4 sm:$0xff]  }
 0x30c   : > { %v4378_v32 = vmax.f32 %v4322_v53, 0.0  ;;  %v4324_v6 = vadd.f32 %v19591_v35, %v4256_v57  ;;  %v16375_v53 = vld [vmem:[%s18605_s26] ss:$8 sps:$4 sm:$0xff]  }
 0x30d   : > { %v4379_v30 = vmax.f32 %v4323_v40, 0.0  ;;  %v4325_v13 = vadd.f32 %v19597_v55, %v4257_v15  ;;  %v3968_v19 = vpop.f32.mrb[220].mxu0  ;;  %5092 = vmatmul.mubr.bf16.gmra.mrb[16].mxu0 %v16363_v61  ;;  %7446 = vmatmul.mubr.bf16.gmra.mrb[16].mxu1 %v16363_v61  ;;  %v16378_v57 = vld [vmem:[%s22718_s3 + $0x120] ss:$8 sps:$4 sm:$0xff]   ;;  %v16384_v61 = vld [vmem:[%s18605_s26 + $0x14] ss:$8 sps:$4 sm:$0xff]  }
 0x30e   : > { %v4197_v27 = vpop.f32.mrb[220].mxu1  ;;  %v4380_v39 = vmax.f32 %v4324_v6, 0.0  ;;  %v4029_v11 = vmax.f32 %v23323_v12, %v3968_v19  ;;  %v3970_v29 = vpop.f32.mrb[221].mxu0  ;;  %v16394_v40 = vld [vmem:[%s22718_s3 + $0x404] ss:$8 sps:$4 sm:$0xff]  }
 0x30f   : > { %v4199_v2 = vpop.f32.mrb[221].mxu1  ;;  %v15001_v33 = vpack.c.bf16 %v4379_v30, %v4378_v32  ;;  %v4381_v21 = vmax.f32 %v4325_v13, 0.0  ;;  %v4030_v17 = vmax.f32 %v23326_v18, %v3970_v29  ;;  %v3972_v36 = vpop.f32.mrb[222].mxu0  ;;  %v16389_v15 = vld [vmem:[%s22718_s3 + $0x130] ss:$8 sps:$4 sm:$0xff]  }
 0x310   : > { %v4201_v50 = vpop.f32.mrb[222].mxu1  ;;  %v4031_v25 = vmax.f32 %v23329_v44, %v3972_v36  ;;  %v4258_v42 = vmax.f32 %v4029_v11, %v4197_v27  ;;  %v3974_v28 = vpop.f32.mrb[223].mxu0  ;;  %v16392_v32 = vld [vmem:[%s22718_s3 + $0x400] ss:$8 sps:$4 sm:$0xff]   ;;  %v16403_v6 = vld [vmem:[%s22718_s3 + $0x144] ss:$8 sps:$4 sm:$0xff]  }
 0x311   : > { %v4203_v20 = vpop.f32.mrb[223].mxu1  ;;  %13796 = vst.msk [vmem:[%s18605_s26 + $0x200] sm:$0xff] %vm18583_vm3, %v15001_v33  ;;  %v15002_v59 = vpack.c.bf16 %v4381_v21, %v4380_v39  ;;  %v4032_v26 = vmax.f32 %v23332_v54, %v3974_v28  ;;  %v4259_v60 = vmax.f32 %v4030_v17, %v4199_v2  ;;  %v16406_v30 = vld [vmem:[%s22718_s3 + $0x414] ss:$8 sps:$4 sm:$0xff]   ;;  %v16386_v13 = vld [vmem:[%s18605_s26 + $0x10] ss:$8 sps:$4 sm:$0xff]  }
 0x312   : > { %v4326_v52 = vadd.f32 %v19591_v35, %v4258_v42  ;;  %v4260_v37 = vmax.f32 %v4031_v25, %v4201_v50  ;;  %v16371_v23 = vld [vmem:[%s18605_s26 + $0x1f0] ss:$8 sps:$4 sm:$0xff]   ;;  %v16373_v14 = vld [vmem:[%s18605_s26 + $0x1f4] ss:$8 sps:$4 sm:$0xff]   ;;  %v16401_v19 = vld [vmem:[%s22718_s3 + $0x140] ss:$8 sps:$4 sm:$0xff]  }
 0x313   : > { %13797 = vst.msk [vmem:[%s18605_s26 + $0x208] sm:$0xff] %vm18583_vm3, %v15002_v59  ;;  %v4327_v1 = vadd.f32 %v19597_v55, %v4259_v60  ;;  %v4261_v56 = vmax.f32 %v4032_v26, %v4203_v20  ;;  %13906 = vmatprep.mubr.msk.bf16.mxu0 %vm4889_vm5, %v16373_v14  ;;  %14301 = vmatprep.mubr.msk.bf16.mxu1 %vm4889_vm5, %v16373_v14  ;;  %v16404_v27 = vld [vmem:[%s22718_s3 + $0x410] ss:$8 sps:$4 sm:$0xff]   ;;  %v20018_v39 = vld [vmem:[%s18605_s26 + $0x24] ss:$8 sps:$4 sm:$0xff]  }
 0x314   : > { %v4382_v45 = vmax.f32 %v4326_v52, 0.0  ;;  %v4328_v46 = vadd.f32 %v19591_v35, %v4260_v37  ;;  %v16410_v12 = vld [vmem:[%s22718_s3 + $0x150] ss:$8 sps:$4 sm:$0xff]   ;;  %v16414_v11 = vld [vmem:[%s22718_s3 + $0x420] ss:$8 sps:$4 sm:$0xff]  }
 0x315   : > { %v4383_v10 = vmax.f32 %v4327_v1, 0.0  ;;  %v4329_v3 = vadd.f32 %v19597_v55, %v4261_v56  ;;  %5102 = vmatmul.mubr.bf16.gmra.mrb[20].mxu0 %v16371_v23  ;;  %7456 = vmatmul.mubr.bf16.gmra.mrb[20].mxu1 %v16371_v23  ;;  %v16381_v55 = vld [vmem:[%s22718_s3 + $0x3f0] ss:$8 sps:$4 sm:$0xff]   ;;  %v16424_v29 = vld [vmem:[%s22718_s3 + $0x164] ss:$8 sps:$4 sm:$0xff]  }
 0x316   : > { %v4384_v47 = vmax.f32 %v4328_v46, 0.0  ;;  %13954 = vmatprep.mubr.msk.bf16.mxu0 %vm4889_vm5, %v16377_v49  ;;  %14321 = vmatprep.mubr.msk.bf16.mxu1 %vm4889_vm5, %v16377_v49  ;;  %v16427_v2 = vld [vmem:[%s22718_s3 + $0x434] ss:$8 sps:$4 sm:$0xff]   ;;  %v20043_v33 = vld [vmem:[%s18605_s26 + $0x20] ss:$8 sps:$4 sm:$0xff]  }
 0x317   : > { %v15003_v58 = vpack.c.bf16 %v4383_v10, %v4382_v45  ;;  %v4385_v24 = vmax.f32 %v4329_v3, 0.0  ;;  %v16422_v21 = vld [vmem:[%s22718_s3 + $0x160] ss:$8 sps:$4 sm:$0xff]   ;;  %v16434_v18 = vld [vmem:[%s22718_s3 + $0x174] ss:$8 sps:$4 sm:$0xff]  }
 0x318   : > { %v16440_v17 = vld [vmem:[%s22718_s3 + $0x444] ss:$8 sps:$4 sm:$0xff]   ;;  %v16432_v36 = vld [vmem:[%s22718_s3 + $0x170] ss:$8 sps:$4 sm:$0xff]   ;;  %v16438_v50 = vld [vmem:[%s22718_s3 + $0x440] ss:$8 sps:$4 sm:$0xff]  }
 0x319   : > { %13798 = vst.msk [vmem:[%s18605_s26 + $0x210] sm:$0xff] %vm18583_vm3, %v15003_v58  ;;  %v15004_v35 = vpack.c.bf16 %v4385_v24, %v4384_v47  ;;  %v20079_v44 = vld [vmem:[%s18605_s26 + $0x30] ss:$8 sps:$4 sm:$0xff]   ;;  %v16444_v25 = vld [vmem:[%s22718_s3 + $0x180] ss:$8 sps:$4 sm:$0xff]  }
 0x31a   : > { %v16447_v42 = vld [vmem:[%s22718_s3 + $0x450] ss:$8 sps:$4 sm:$0xff]   ;;  %v20088_v28 = vld [vmem:[%s18605_s26 + $0x44] ss:$8 sps:$4 sm:$0xff]   ;;  %v16455_v20 = vld [vmem:[%s22718_s3 + $0x194] ss:$8 sps:$4 sm:$0xff]  }
 0x31b   : > { %13799 = vst.msk [vmem:[%s18605_s26 + $0x218] sm:$0xff] %vm18583_vm3, %v15004_v35  ;;  %v16461_v59 = vld [vmem:[%s22718_s3 + $0x464] ss:$8 sps:$4 sm:$0xff]   ;;  %v16467_v26 = vld [vmem:[%s22718_s3 + $0x1a0] ss:$8 sps:$4 sm:$0x3f]  }
 0x31c   : > { %v16465_v54 = vld [vmem:[%s22718_s3 + $0x1a4] ss:$8 sps:$4 sm:$0x3f]   ;;  %v16468_v60 = vld [vmem:[%s22718_s3 + $0x474] ss:$8 sps:$4 sm:$0x3f]  }
 0x31d   : > { %5407 = vmatmul.mubr.bf16.vlgmr.msra.gmra.mrb[224].mxu0 %v16375_v53  ;;  %7593 = vmatmul.mubr.bf16.vlgmr.msra.gmra.mrb[224].mxu1 %v16375_v53  ;;  %v16470_v49 = vld [vmem:[%s22718_s3 + $0x470] ss:$8 sps:$4 sm:$0x3f]   ;;  %v20121_v52 = vld [vmem:[%s18605_s26 + $0x40] ss:$8 sps:$4 sm:$0xff]   ;;  %v20128_v23 = vsel %vm4932_vm4, %v16467_v26, 0 }
 0x31e   : > { %5857 = vmatpush1.bf16.msra.mxu0 %v16378_v57  ;;  %7847 = vmatpush1.bf16.msra.mxu1 %v16381_v55  ;;  %v20124_v37 = vld [vmem:[%s18605_s26 + $0x54] ss:$8 sps:$4 sm:$0xff]   ;;  %v20132_v14 = vsel %vm4932_vm4, %v16470_v49, 0  ;;  %v16476_v56 = vld [vmem:[%s22718_s3 + $0x484] ss:$8 sps:$4 sm:$0xff]  }
 0x31f   : > { %13955 = vmatprep.mubr.msk.bf16.mxu0 %vm4889_vm5, %v16384_v61  ;;  %14322 = vmatprep.mubr.msk.bf16.mxu1 %vm4889_vm5, %v16384_v61  ;;  %v16473_v1 = vld [vmem:[%s22718_s3 + $0x1b4] ss:$8 sps:$4 sm:$0xff]   ;;  %v20149_v45 = vld [vmem:[%s18605_s26 + $0x50] ss:$8 sps:$4 sm:$0xff]   ;;  %v20152_v46 = vld [vmem:[%s18605_s26 + $0x64] ss:$8 sps:$4 sm:$0xff]  }
 0x320   : > { %5858 = vmatprep.subr.bf16.mxu0 %v16391_v16  ;;  %7848 = vmatprep.subr.bf16.mxu1 %v16394_v40  ;;  %v20161_v10 = vld [vmem:[%s18605_s26 + $0x60] ss:$8 sps:$4 sm:$0xff]   ;;  %v20164_v3 = vld [vmem:[%s18605_s26 + $0x74] ss:$8 sps:$4 sm:$0xff]   ;;  %v20173_v47 = vld [vmem:[%s18605_s26 + $0x70] ss:$8 sps:$4 sm:$0xff]  }
 0x321   : > { %v20176_v58 = vld [vmem:[%s18605_s26 + $0x84] ss:$8 sps:$4 sm:$0xff]   ;;  %v20185_v24 = vld [vmem:[%s18605_s26 + $0x80] ss:$8 sps:$4 sm:$0xff]   ;;  %v20188_v35 = vld [vmem:[%s18605_s26 + $0x94] ss:$8 sps:$4 sm:$0xff]  }
 0x322   : > { %5859 = vmatpush1.bf16.msra.mxu0 %v16389_v15  ;;  %7849 = vmatpush1.bf16.msra.mxu1 %v16392_v32  ;;  %v20197_v53 = vld [vmem:[%s18605_s26 + $0x90] ss:$8 sps:$4 sm:$0xff]   ;;  %v20200_v57 = vld [vmem:[%s18605_s26 + $0xa4] ss:$8 sps:$4 sm:$0xff]   ;;  %v20209_v55 = vld [vmem:[%s18605_s26 + $0xa0] ss:$8 sps:$4 sm:$0xff]  }
 0x323   : > { %5860 = vmatprep.subr.bf16.mxu0 %v16403_v6  ;;  %7850 = vmatprep.subr.bf16.mxu1 %v16406_v30  ;;  %v20212_v61 = vld [vmem:[%s18605_s26 + $0xb4] ss:$8 sps:$4 sm:$0xff]   ;;  %v20221_v16 = vld [vmem:[%s18605_s26 + $0xb0] ss:$8 sps:$4 sm:$0xff]   ;;  %v20224_v40 = vld [vmem:[%s18605_s26 + $0xc4] ss:$8 sps:$4 sm:$0xff]  }
 0x324   : > { %v20233_v15 = vld [vmem:[%s18605_s26 + $0xc0] ss:$8 sps:$4 sm:$0xff]   ;;  %v20236_v32 = vld [vmem:[%s18605_s26 + $0xd4] ss:$8 sps:$4 sm:$0xff]   ;;  %v20245_v6 = vld [vmem:[%s18605_s26 + $0xd0] ss:$8 sps:$4 sm:$0xff]  }
 0x325   : > { %5417 = vmatmul.mubr.bf16.gmra.mrb[228].mxu0 %v16386_v13  ;;  %7603 = vmatmul.mubr.bf16.gmra.mrb[228].mxu1 %v16386_v13  ;;  %v16471_v30 = vld [vmem:[%s22718_s3 + $0x1b0] ss:$8 sps:$4 sm:$0xff]   ;;  %v16474_v13 = vld [vmem:[%s22718_s3 + $0x480] ss:$8 sps:$4 sm:$0xff]  }
 0x326   : > { %13956 = vmatprep.mubr.msk.bf16.mxu0 %vm4889_vm5, %v20018_v39  ;;  %14323 = vmatprep.mubr.msk.bf16.mxu1 %vm4889_vm5, %v20018_v39  ;;  %v16519_v26 = vld [vmem:[%s22718_s3 + $0x4f0] ss:$8 sps:$4 sm:$0xff]  }
 0x327   : > { %5861 = vmatpush1.bf16.msra.mxu0 %v16401_v19  ;;  %7851 = vmatpush1.bf16.msra.mxu1 %v16404_v27  ;;  %v16479_v19 = vld [vmem:[%s22718_s3 + $0x1c4] ss:$8 sps:$4 sm:$0xff]   ;;  %v16482_v27 = vld [vmem:[%s22718_s3 + $0x494] ss:$8 sps:$4 sm:$0xff]  }
 0x328   : > { %5862 = vmatprep.subr.bf16.mxu0 %v16412_v38  ;;  %7852 = vmatprep.subr.bf16.mxu1 %v16416_v22  ;;  %v16480_v38 = vld [vmem:[%s22718_s3 + $0x490] ss:$8 sps:$4 sm:$0xff]   ;;  %v16485_v22 = vld [vmem:[%s22718_s3 + $0x1d4] ss:$8 sps:$4 sm:$0xff]  }
 0x329   : > { %v16527_v49 = vld [vmem:[%s22718_s3 + $0x230] ss:$8 sps:$4 sm:$0x3f]  }
 0x32b   : > { %5863 = vmatpush1.bf16.msra.mxu0 %v16410_v12  ;;  %7853 = vmatpush1.bf16.msra.mxu1 %v16414_v11  ;;  %v16488_v12 = vld [vmem:[%s22718_s3 + $0x4a4] ss:$8 sps:$4 sm:$0xff]   ;;  %v16483_v11 = vld [vmem:[%s22718_s3 + $0x1d0] ss:$8 sps:$4 sm:$0xff]  }
 0x32c   : > { %5864 = vmatprep.subr.bf16.mxu0 %v16424_v29  ;;  %7854 = vmatprep.subr.bf16.mxu1 %v16427_v2  ;;  %v16486_v29 = vld [vmem:[%s22718_s3 + $0x4a0] ss:$8 sps:$4 sm:$0xff]   ;;  %v16491_v2 = vld [vmem:[%s22718_s3 + $0x1e4] ss:$8 sps:$4 sm:$0xff]  }
 0x32d   : > { %5427 = vmatmul.mubr.bf16.gmra.mrb[232].mxu0 %v20043_v33  ;;  %7613 = vmatmul.mubr.bf16.gmra.mrb[232].mxu1 %v20043_v33 }
 0x32e   : > { %13957 = vmatprep.mubr.msk.bf16.mxu0 %vm4889_vm5, %v20052_v31  ;;  %14324 = vmatprep.mubr.msk.bf16.mxu1 %vm4889_vm5, %v20052_v31 }
 0x32f   : > { %5865 = vmatpush1.bf16.msra.mxu0 %v16422_v21  ;;  %7855 = vmatpush1.bf16.msra.mxu1 %v16425_v5  ;;  %v16489_v21 = vld [vmem:[%s22718_s3 + $0x1e0] ss:$8 sps:$4 sm:$0xff]   ;;  %v16492_v5 = vld [vmem:[%s22718_s3 + $0x4b0] ss:$8 sps:$4 sm:$0xff]  }
 0x330   : > { %5866 = vmatprep.subr.bf16.mxu0 %v16434_v18  ;;  %7856 = vmatprep.subr.bf16.mxu1 %v16440_v17  ;;  %v16500_v18 = vld [vmem:[%s22718_s3 + $0x4c4] ss:$8 sps:$4 sm:$0xff]   ;;  %v16495_v17 = vld [vmem:[%s22718_s3 + $0x1f0] ss:$8 sps:$4 sm:$0xff]  }
 0x333   : > { %5867 = vmatpush1.bf16.msra.mxu0 %v16432_v36  ;;  %7857 = vmatpush1.bf16.msra.mxu1 %v16438_v50  ;;  %v16498_v36 = vld [vmem:[%s22718_s3 + $0x4c0] ss:$8 sps:$4 sm:$0xff]   ;;  %v16503_v50 = vld [vmem:[%s22718_s3 + $0x204] ss:$8 sps:$4 sm:$0xff]  }
 0x334   : > { %5868 = vmatprep.subr.bf16.mxu0 %v16446_v9  ;;  %7858 = vmatprep.subr.bf16.mxu1 %v16449_v43  ;;  %v16506_v9 = vld [vmem:[%s22718_s3 + $0x4d4] ss:$8 sps:$4 sm:$0xff]   ;;  %v16501_v43 = vld [vmem:[%s22718_s3 + $0x200] ss:$8 sps:$4 sm:$0xff]  }
 0x335   : > { %5437 = vmatmul.mubr.bf16.gmra.mrb[236].mxu0 %v20079_v44  ;;  %7623 = vmatmul.mubr.bf16.gmra.mrb[236].mxu1 %v20079_v44 }
 0x336   : > { %13958 = vmatprep.mubr.msk.bf16.mxu0 %vm4889_vm5, %v20088_v28  ;;  %14325 = vmatprep.mubr.msk.bf16.mxu1 %vm4889_vm5, %v20088_v28 }
 0x337   : > { %5869 = vmatpush1.bf16.msra.mxu0 %v16444_v25  ;;  %7859 = vmatpush1.bf16.msra.mxu1 %v16447_v42  ;;  %v16509_v25 = vld [vmem:[%s22718_s3 + $0x214] ss:$8 sps:$4 sm:$0xff]   ;;  %v16512_v42 = vld [vmem:[%s22718_s3 + $0x4e4] ss:$8 sps:$4 sm:$0xff]  }
 0x338   : > { %5870 = vmatprep.subr.bf16.mxu0 %v16455_v20  ;;  %7860 = vmatprep.subr.bf16.mxu1 %v16461_v59  ;;  %v16507_v20 = vld [vmem:[%s22718_s3 + $0x210] ss:$8 sps:$4 sm:$0xff]   ;;  %v16510_v59 = vld [vmem:[%s22718_s3 + $0x4e0] ss:$8 sps:$4 sm:$0xff]  }
 0x33b   : > { %5871 = vmatpush1.bf16.msra.mxu0 %v16453_v62  ;;  %7861 = vmatpush1.bf16.msra.mxu1 %v16459_v48  ;;  %v16515_v62 = vld [vmem:[%s22718_s3 + $0x224] ss:$8 sps:$4 sm:$0xff]   ;;  %v16521_v48 = vld [vmem:[%s22718_s3 + $0x4f4] ss:$8 sps:$4 sm:$0xff]  }
 0x33c   : > { %14032 = vmatprep.subr.msk.bf16.mxu0 %vm4932_vm4, %v16465_v54  ;;  %14371 = vmatprep.subr.msk.bf16.mxu1 %vm4932_vm4, %v16468_v60  ;;  %v16513_v54 = vld [vmem:[%s22718_s3 + $0x220] ss:$8 sps:$4 sm:$0xff]   ;;  %v16525_v60 = vld [vmem:[%s22718_s3 + $0x234] ss:$8 sps:$4 sm:$0x3f]  }
 0x33d   : > { %5447 = vmatmul.mubr.bf16.gmra.mrb[240].mxu0 %v20121_v52  ;;  %7633 = vmatmul.mubr.bf16.gmra.mrb[240].mxu1 %v20121_v52 }
 0x33e   : > { %13959 = vmatprep.mubr.msk.bf16.mxu0 %vm4889_vm5, %v20124_v37  ;;  %14326 = vmatprep.mubr.msk.bf16.mxu1 %vm4889_vm5, %v20124_v37 }
 0x33f   : > { %5873 = vmatpush1.bf16.msra.mxu0 %v20128_v23  ;;  %7863 = vmatpush1.bf16.msra.mxu1 %v20132_v14 }
 0x340   : > { %6394 = vmatprep.subr.bf16.mxu0 %v16473_v1  ;;  %8188 = vmatprep.subr.bf16.mxu1 %v16476_v56  ;;  %v16528_v1 = vld [vmem:[%s22718_s3 + $0x504] ss:$8 sps:$4 sm:$0x3f]   ;;  %v16530_v56 = vld [vmem:[%s22718_s3 + $0x500] ss:$8 sps:$4 sm:$0x3f]  }
 0x345   : > { %5457 = vmatmul.mubr.bf16.gmra.mrb[244].mxu0 %v20149_v45  ;;  %7643 = vmatmul.mubr.bf16.gmra.mrb[244].mxu1 %v20149_v45 }
 0x346   : > { %13960 = vmatprep.mubr.msk.bf16.mxu0 %vm4889_vm5, %v20152_v46  ;;  %14327 = vmatprep.mubr.msk.bf16.mxu1 %vm4889_vm5, %v20152_v46 }
 0x34d   : > { %5467 = vmatmul.mubr.bf16.gmra.mrb[248].mxu0 %v20161_v10  ;;  %7653 = vmatmul.mubr.bf16.gmra.mrb[248].mxu1 %v20161_v10 }
 0x34e   : > { %13961 = vmatprep.mubr.msk.bf16.mxu0 %vm4889_vm5, %v20164_v3  ;;  %14328 = vmatprep.mubr.msk.bf16.mxu1 %vm4889_vm5, %v20164_v3 }
 0x355   : > { %5477 = vmatmul.mubr.bf16.gmra.mrb[252].mxu0 %v20173_v47  ;;  %7663 = vmatmul.mubr.bf16.gmra.mrb[252].mxu1 %v20173_v47 }
 0x356   : > { %13962 = vmatprep.mubr.msk.bf16.mxu0 %vm4889_vm5, %v20176_v58  ;;  %14329 = vmatprep.mubr.msk.bf16.mxu1 %vm4889_vm5, %v20176_v58 }
 0x35d   : > { %5487 = vmatmul.mubr.bf16.gmra.mrb[0].mxu0 %v20185_v24  ;;  %7673 = vmatmul.mubr.bf16.gmra.mrb[0].mxu1 %v20185_v24 }
 0x35e   : > { %13963 = vmatprep.mubr.msk.bf16.mxu0 %vm4889_vm5, %v20188_v35  ;;  %14330 = vmatprep.mubr.msk.bf16.mxu1 %vm4889_vm5, %v20188_v35 }
 0x365   : > { %5497 = vmatmul.mubr.bf16.gmra.mrb[4].mxu0 %v20197_v53  ;;  %7683 = vmatmul.mubr.bf16.gmra.mrb[4].mxu1 %v20197_v53 }
 0x366   : > { %13964 = vmatprep.mubr.msk.bf16.mxu0 %vm4889_vm5, %v20200_v57  ;;  %14331 = vmatprep.mubr.msk.bf16.mxu1 %vm4889_vm5, %v20200_v57 }
 0x36d   : > { %5507 = vmatmul.mubr.bf16.gmra.mrb[8].mxu0 %v20209_v55  ;;  %7693 = vmatmul.mubr.bf16.gmra.mrb[8].mxu1 %v20209_v55 }
 0x36e   : > { %13965 = vmatprep.mubr.msk.bf16.mxu0 %vm4889_vm5, %v20212_v61  ;;  %14332 = vmatprep.mubr.msk.bf16.mxu1 %vm4889_vm5, %v20212_v61 }
 0x375   : > { %5517 = vmatmul.mubr.bf16.gmra.mrb[12].mxu0 %v20221_v16  ;;  %7703 = vmatmul.mubr.bf16.gmra.mrb[12].mxu1 %v20221_v16 }
 0x376   : > { %13966 = vmatprep.mubr.msk.bf16.mxu0 %vm4889_vm5, %v20224_v40  ;;  %14333 = vmatprep.mubr.msk.bf16.mxu1 %vm4889_vm5, %v20224_v40 }
 0x37d   : > { %5527 = vmatmul.mubr.bf16.gmra.mrb[16].mxu0 %v20233_v15  ;;  %7713 = vmatmul.mubr.bf16.gmra.mrb[16].mxu1 %v20233_v15 }
 0x37e   : > { %13967 = vmatprep.mubr.msk.bf16.mxu0 %vm4889_vm5, %v20236_v32  ;;  %14334 = vmatprep.mubr.msk.bf16.mxu1 %vm4889_vm5, %v20236_v32 }
 0x385   : > { %5537 = vmatmul.mubr.bf16.gmra.mrb[20].mxu0 %v20245_v6  ;;  %7723 = vmatmul.mubr.bf16.gmra.mrb[20].mxu1 %v20245_v6 }
 0x386   : > { %14033 = vmatprep.mubr.msk.bf16.mxu0 %vm4889_vm5, %v20018_v39  ;;  %14372 = vmatprep.mubr.msk.bf16.mxu1 %vm4889_vm5, %v20018_v39  ;;  %v16477_v39 = vld [vmem:[%s22718_s3 + $0x1c0] ss:$8 sps:$4 sm:$0xff]  }
 0x38d   : > { %5889 = vmatmul.mubr.bf16.vlgmr.msra.gmra.mrb[224].mxu0 %v20043_v33  ;;  %7879 = vmatmul.mubr.bf16.vlgmr.msra.gmra.mrb[224].mxu1 %v20043_v33  ;;  %v16494_v33 = vld [vmem:[%s22718_s3 + $0x4b4] ss:$8 sps:$4 sm:$0xff]  }
 0x38e   : > { %14034 = vmatprep.mubr.msk.bf16.mxu0 %vm4889_vm5, %v20052_v31  ;;  %6395 = vmatpush1.bf16.msra.mxu0 %v16471_v30  ;;  %v20381_v30 = vsel %vm4932_vm4, %v16527_v49, 0  ;;  %v16581_v49 = vld [vmem:[%s22718_s3 + $0x550] ss:$8 sps:$4 sm:$0xff]  }
 0x38f   : > { %14373 = vmatprep.mubr.msk.bf16.mxu1 %vm4889_vm5, %v20052_v31  ;;  %8189 = vmatpush1.bf16.msra.mxu1 %v16474_v13  ;;  %v16497_v31 = vld [vmem:[%s22718_s3 + $0x1f4] ss:$8 sps:$4 sm:$0xff]   ;;  %v20385_v13 = vsel %vm4932_vm4, %v16530_v56, 0 }
 0x390   : > { %6396 = vmatprep.subr.bf16.mxu0 %v16479_v19  ;;  %8190 = vmatprep.subr.bf16.mxu1 %v16482_v27  ;;  %v16536_v19 = vld [vmem:[%s22718_s3 + $0x244] ss:$8 sps:$4 sm:$0xff]   ;;  %v16541_v27 = vld [vmem:[%s22718_s3 + $0x514] ss:$8 sps:$4 sm:$0xff]  }
 0x391   : > { %v16590_v56 = vld [vmem:[%s22718_s3 + $0x294] ss:$8 sps:$4 sm:$0xff]  }
 0x392   : > { %6397 = vmatpush1.bf16.msra.mxu0 %v16477_v39  ;;  %v20438_v39 = vld [vmem:[%s18605_s26 + $0xe4] ss:$8 sps:$4 sm:$0xff]  }
 0x393   : > { %8191 = vmatpush1.bf16.msra.mxu1 %v16480_v38  ;;  %6398 = vmatprep.subr.bf16.mxu0 %v16485_v22  ;;  %v20447_v38 = vld [vmem:[%s18605_s26 + $0xe0] ss:$8 sps:$4 sm:$0xff]   ;;  %v20450_v22 = vld [vmem:[%s18605_s26 + $0xf4] ss:$8 sps:$4 sm:$0xff]  }
 0x394   : > { %8192 = vmatprep.subr.bf16.mxu1 %v16488_v12  ;;  %v20459_v12 = vld [vmem:[%s18605_s26 + $0xf0] ss:$8 sps:$4 sm:$0xff]  }
 0x395   : > { %5899 = vmatmul.mubr.bf16.gmra.mrb[228].mxu0 %v20079_v44  ;;  %7889 = vmatmul.mubr.bf16.gmra.mrb[228].mxu1 %v20079_v44  ;;  %v16504_v44 = vld [vmem:[%s22718_s3 + $0x4d0] ss:$8 sps:$4 sm:$0xff]  }
 0x396   : > { %14035 = vmatprep.mubr.msk.bf16.mxu0 %vm4889_vm5, %v20088_v28  ;;  %14374 = vmatprep.mubr.msk.bf16.mxu1 %vm4889_vm5, %v20088_v28 }
 0x397   : > { %6399 = vmatpush1.bf16.msra.mxu0 %v16483_v11  ;;  %8193 = vmatpush1.bf16.msra.mxu1 %v16486_v29  ;;  %v16533_v11 = vld [vmem:[%s18605_s26 + $0x144] ss:$8 sps:$4 sm:$0xff]   ;;  %v16534_v29 = vld [vmem:[%s22718_s3 + $0x240] ss:$8 sps:$4 sm:$0xff]  }
 0x398   : > { %6400 = vmatprep.subr.bf16.mxu0 %v16491_v2  ;;  %8194 = vmatprep.subr.bf16.mxu1 %v16494_v33  ;;  %v16531_v2 = vld [vmem:[%s18605_s26 + $0x140] ss:$8 sps:$4 sm:$0xff]   ;;  %v16539_v33 = vld [vmem:[%s22718_s3 + $0x510] ss:$8 sps:$4 sm:$0xff]  }
 0x39b   : > { %6401 = vmatpush1.bf16.msra.mxu0 %v16489_v21  ;;  %8195 = vmatpush1.bf16.msra.mxu1 %v16492_v5  ;;  %v16537_v21 = vld [vmem:[%s18605_s26 + $0x154] ss:$8 sps:$4 sm:$0xff]  }
 0x39c   : > { %6402 = vmatprep.subr.bf16.mxu0 %v16497_v31  ;;  %8196 = vmatprep.subr.bf16.mxu1 %v16500_v18  ;;  %v16547_v5 = vld [vmem:[%s22718_s3 + $0x254] ss:$8 sps:$4 sm:$0xff]   ;;  %v16550_v31 = vld [vmem:[%s22718_s3 + $0x524] ss:$8 sps:$4 sm:$0xff]   ;;  %v16545_v18 = vld [vmem:[%s22718_s3 + $0x250] ss:$8 sps:$4 sm:$0xff]  }
 0x39d   : > { %5909 = vmatmul.mubr.bf16.gmra.mrb[232].mxu0 %v20121_v52  ;;  %7899 = vmatmul.mubr.bf16.gmra.mrb[232].mxu1 %v20121_v52 }
 0x39e   : > { %14036 = vmatprep.mubr.msk.bf16.mxu0 %vm4889_vm5, %v20124_v37  ;;  %14375 = vmatprep.mubr.msk.bf16.mxu1 %vm4889_vm5, %v20124_v37 }
 0x39f   : > { %6403 = vmatpush1.bf16.msra.mxu0 %v16495_v17  ;;  %8197 = vmatpush1.bf16.msra.mxu1 %v16498_v36  ;;  %v16548_v17 = vld [vmem:[%s22718_s3 + $0x520] ss:$8 sps:$4 sm:$0xff]   ;;  %v16559_v36 = vld [vmem:[%s22718_s3 + $0x264] ss:$8 sps:$4 sm:$0xff]  }
 0x3a0   : > { %6404 = vmatprep.subr.bf16.mxu0 %v16503_v50  ;;  %8198 = vmatprep.subr.bf16.mxu1 %v16506_v9  ;;  %v16562_v50 = vld [vmem:[%s22718_s3 + $0x534] ss:$8 sps:$4 sm:$0xff]   ;;  %v16542_v9 = vld [vmem:[%s18605_s26 + $0x150] ss:$8 sps:$4 sm:$0xff]  }
 0x3a3   : > { %6405 = vmatpush1.bf16.msra.mxu0 %v16501_v43  ;;  %8199 = vmatpush1.bf16.msra.mxu1 %v16504_v44  ;;  %v16557_v43 = vld [vmem:[%s22718_s3 + $0x260] ss:$8 sps:$4 sm:$0xff]   ;;  %v16560_v44 = vld [vmem:[%s22718_s3 + $0x530] ss:$8 sps:$4 sm:$0xff]  }
 0x3a4   : > { %6406 = vmatprep.subr.bf16.mxu0 %v16509_v25  ;;  %8200 = vmatprep.subr.bf16.mxu1 %v16512_v42  ;;  %v16543_v25 = vld [vmem:[%s18605_s26 + $0x164] ss:$8 sps:$4 sm:$0xff]   ;;  %v16568_v42 = vld [vmem:[%s22718_s3 + $0x274] ss:$8 sps:$4 sm:$0xff]  }
 0x3a5   : > { %5919 = vmatmul.mubr.bf16.gmra.mrb[236].mxu0 %v20149_v45  ;;  %7909 = vmatmul.mubr.bf16.gmra.mrb[236].mxu1 %v20149_v45 }
 0x3a6   : > { %14037 = vmatprep.mubr.msk.bf16.mxu0 %vm4889_vm5, %v20152_v46  ;;  %14376 = vmatprep.mubr.msk.bf16.mxu1 %vm4889_vm5, %v20152_v46 }
 0x3a7   : > { %6407 = vmatpush1.bf16.msra.mxu0 %v16507_v20  ;;  %8201 = vmatpush1.bf16.msra.mxu1 %v16510_v59  ;;  %v16572_v20 = vld [vmem:[%s22718_s3 + $0x544] ss:$8 sps:$4 sm:$0xff]   ;;  %v16566_v59 = vld [vmem:[%s22718_s3 + $0x270] ss:$8 sps:$4 sm:$0xff]  }
 0x3a8   : > { %6408 = vmatprep.subr.bf16.mxu0 %v16515_v62  ;;  %8202 = vmatprep.subr.bf16.mxu1 %v16521_v48  ;;  %v16570_v62 = vld [vmem:[%s22718_s3 + $0x540] ss:$8 sps:$4 sm:$0xff]   ;;  %v16580_v48 = vld [vmem:[%s22718_s3 + $0x284] ss:$8 sps:$4 sm:$0xff]  }
 0x3ab   : > { %6409 = vmatpush1.bf16.msra.mxu0 %v16513_v54  ;;  %8203 = vmatpush1.bf16.msra.mxu1 %v16519_v26  ;;  %v16583_v54 = vld [vmem:[%s22718_s3 + $0x554] ss:$8 sps:$4 sm:$0xff]   ;;  %v16551_v26 = vld [vmem:[%s18605_s26 + $0x160] ss:$8 sps:$4 sm:$0xff]  }
 0x3ac   : > { %14139 = vmatprep.subr.msk.bf16.mxu0 %vm4932_vm4, %v16525_v60  ;;  %14422 = vmatprep.subr.msk.bf16.mxu1 %vm4932_vm4, %v16528_v1  ;;  %v16578_v60 = vld [vmem:[%s22718_s3 + $0x280] ss:$8 sps:$4 sm:$0xff]   ;;  %v16552_v1 = vld [vmem:[%s18605_s26 + $0x174] ss:$8 sps:$4 sm:$0xff]  }
 0x3ad   : > { %5929 = vmatmul.mubr.bf16.gmra.mrb[240].mxu0 %v20161_v10  ;;  %7919 = vmatmul.mubr.bf16.gmra.mrb[240].mxu1 %v20161_v10 }
 0x3ae   : > { %14038 = vmatprep.mubr.msk.bf16.mxu0 %vm4889_vm5, %v20164_v3  ;;  %14377 = vmatprep.mubr.msk.bf16.mxu1 %vm4889_vm5, %v20164_v3 }
 0x3af   : > { %6411 = vmatpush1.bf16.msra.mxu0 %v20381_v30  ;;  %8205 = vmatpush1.bf16.msra.mxu1 %v20385_v13 }
 0x3b0   : > { %6932 = vmatprep.subr.bf16.mxu0 %v16536_v19  ;;  %8530 = vmatprep.subr.bf16.mxu1 %v16541_v27  ;;  %v16596_v19 = vld [vmem:[%s22718_s3 + $0x564] ss:$8 sps:$4 sm:$0xff]   ;;  %v16588_v27 = vld [vmem:[%s22718_s3 + $0x290] ss:$8 sps:$4 sm:$0xff]  }
 0x3b5   : > { %5939 = vmatmul.mubr.bf16.gmra.mrb[244].mxu0 %v20173_v47  ;;  %7929 = vmatmul.mubr.bf16.gmra.mrb[244].mxu1 %v20173_v47 }
 0x3b6   : > { %14039 = vmatprep.mubr.msk.bf16.mxu0 %vm4889_vm5, %v20176_v58  ;;  %14378 = vmatprep.mubr.msk.bf16.mxu1 %vm4889_vm5, %v20176_v58 }
 0x3bd   : > { %5949 = vmatmul.mubr.bf16.gmra.mrb[248].mxu0 %v20185_v24  ;;  %7939 = vmatmul.mubr.bf16.gmra.mrb[248].mxu1 %v20185_v24 }
 0x3be   : > { %14040 = vmatprep.mubr.msk.bf16.mxu0 %vm4889_vm5, %v20188_v35  ;;  %14379 = vmatprep.mubr.msk.bf16.mxu1 %vm4889_vm5, %v20188_v35 }
 0x3c5   : > { %5959 = vmatmul.mubr.bf16.gmra.mrb[252].mxu0 %v20197_v53  ;;  %7949 = vmatmul.mubr.bf16.gmra.mrb[252].mxu1 %v20197_v53 }
 0x3c6   : > { %14041 = vmatprep.mubr.msk.bf16.mxu0 %vm4889_vm5, %v20200_v57  ;;  %14380 = vmatprep.mubr.msk.bf16.mxu1 %vm4889_vm5, %v20200_v57 }
 0x3cd   : > { %5969 = vmatmul.mubr.bf16.gmra.mrb[0].mxu0 %v20209_v55  ;;  %7959 = vmatmul.mubr.bf16.gmra.mrb[0].mxu1 %v20209_v55 }
 0x3ce   : > { %14042 = vmatprep.mubr.msk.bf16.mxu0 %vm4889_vm5, %v20212_v61  ;;  %14381 = vmatprep.mubr.msk.bf16.mxu1 %vm4889_vm5, %v20212_v61 }
 0x3d5   : > { %5979 = vmatmul.mubr.bf16.gmra.mrb[4].mxu0 %v20221_v16  ;;  %7969 = vmatmul.mubr.bf16.gmra.mrb[4].mxu1 %v20221_v16 }
 0x3d6   : > { %14043 = vmatprep.mubr.msk.bf16.mxu0 %vm4889_vm5, %v20224_v40  ;;  %14382 = vmatprep.mubr.msk.bf16.mxu1 %vm4889_vm5, %v20224_v40 }
 0x3dd   : > { %5989 = vmatmul.mubr.bf16.gmra.mrb[8].mxu0 %v20233_v15  ;;  %7979 = vmatmul.mubr.bf16.gmra.mrb[8].mxu1 %v20233_v15 }
 0x3de   : > { %14044 = vmatprep.mubr.msk.bf16.mxu0 %vm4889_vm5, %v20236_v32  ;;  %14383 = vmatprep.mubr.msk.bf16.mxu1 %vm4889_vm5, %v20236_v32 }
 0x3e5   : > { %5999 = vmatmul.mubr.bf16.gmra.mrb[12].mxu0 %v20245_v6  ;;  %7989 = vmatmul.mubr.bf16.gmra.mrb[12].mxu1 %v20245_v6 }
 0x3e6   : > { %14045 = vmatprep.mubr.msk.bf16.mxu0 %vm4889_vm5, %v20438_v39  ;;  %14384 = vmatprep.mubr.msk.bf16.mxu1 %vm4889_vm5, %v20438_v39 }
 0x3ed   : > { %6009 = vmatmul.mubr.bf16.gmra.mrb[16].mxu0 %v20447_v38  ;;  %7999 = vmatmul.mubr.bf16.gmra.mrb[16].mxu1 %v20447_v38 }
 0x3ee   : > { %14046 = vmatprep.mubr.msk.bf16.mxu0 %vm4889_vm5, %v20450_v22  ;;  %14385 = vmatprep.mubr.msk.bf16.mxu1 %vm4889_vm5, %v20450_v22 }
 0x3f5   : > { %6019 = vmatmul.mubr.bf16.gmra.mrb[20].mxu0 %v20459_v12  ;;  %8009 = vmatmul.mubr.bf16.gmra.mrb[20].mxu1 %v20459_v12 }
 0x3f6   : > { %14140 = vmatprep.mubr.msk.bf16.mxu0 %vm4889_vm5, %v16533_v11  ;;  %14423 = vmatprep.mubr.msk.bf16.mxu1 %vm4889_vm5, %v16533_v11  ;;  %v16594_v11 = vld [vmem:[%s22718_s3 + $0x560] ss:$8 sps:$4 sm:$0xff]  }
 0x3fd   : > { %6427 = vmatmul.mubr.bf16.vlgmr.msra.gmra.mrb[224].mxu0 %v16531_v2  ;;  %8221 = vmatmul.mubr.bf16.vlgmr.msra.gmra.mrb[224].mxu1 %v16531_v2  ;;  %v16605_v2 = vld [vmem:[%s22718_s3 + $0x574] ss:$8 sps:$4 sm:$0xff]  }
 0x3fe   : > { %14141 = vmatprep.mubr.msk.bf16.mxu0 %vm4889_vm5, %v16537_v21  ;;  %6933 = vmatpush1.bf16.msra.mxu0 %v16534_v29  ;;  %v16602_v29 = vld [vmem:[%s22718_s3 + $0x2a4] ss:$8 sps:$4 sm:$0xff]  }
 0x3ff   : > { %14424 = vmatprep.mubr.msk.bf16.mxu1 %vm4889_vm5, %v16537_v21  ;;  %8531 = vmatpush1.bf16.msra.mxu1 %v16539_v33  ;;  %v16554_v33 = vld [vmem:[%s18605_s26 + $0x170] ss:$8 sps:$4 sm:$0xff]   ;;  %v16600_v21 = vld [vmem:[%s22718_s3 + $0x2a0] ss:$8 sps:$4 sm:$0xff]  }
 0x400   : > { %6934 = vmatprep.subr.bf16.mxu0 %v16547_v5  ;;  %8532 = vmatprep.subr.bf16.mxu1 %v16550_v31  ;;  %v16603_v5 = vld [vmem:[%s22718_s3 + $0x570] ss:$8 sps:$4 sm:$0xff]   ;;  %v16555_v31 = vld [vmem:[%s18605_s26 + $0x184] ss:$8 sps:$4 sm:$0xff]  }
 0x402   : > { %6935 = vmatpush1.bf16.msra.mxu0 %v16545_v18  ;;  %v16611_v18 = vld [vmem:[%s22718_s3 + $0x2b4] ss:$8 sps:$4 sm:$0xff]  }
 0x403   : > { %8533 = vmatpush1.bf16.msra.mxu1 %v16548_v17  ;;  %6936 = vmatprep.subr.bf16.mxu0 %v16559_v36  ;;  %v16617_v17 = vld [vmem:[%s22718_s3 + $0x584] ss:$8 sps:$4 sm:$0xff]   ;;  %v16609_v36 = vld [vmem:[%s22718_s3 + $0x2b0] ss:$8 sps:$4 sm:$0xff]  }
 0x404   : > { %8534 = vmatprep.subr.bf16.mxu1 %v16562_v50  ;;  %v16615_v50 = vld [vmem:[%s22718_s3 + $0x580] ss:$8 sps:$4 sm:$0xff]  }
 0x405   : > { %6437 = vmatmul.mubr.bf16.gmra.mrb[228].mxu0 %v16542_v9  ;;  %8231 = vmatmul.mubr.bf16.gmra.mrb[228].mxu1 %v16542_v9  ;;  %v16621_v9 = vld [vmem:[%s22718_s3 + $0x2c4] ss:$8 sps:$4 sm:$0x3f]  }
 0x406   : > { %14142 = vmatprep.mubr.msk.bf16.mxu0 %vm4889_vm5, %v16543_v25  ;;  %14425 = vmatprep.mubr.msk.bf16.mxu1 %vm4889_vm5, %v16543_v25  ;;  %v16626_v25 = vld [vmem:[%s22718_s3 + $0x590] ss:$8 sps:$4 sm:$0x3f]  }
 0x407   : > { %6937 = vmatpush1.bf16.msra.mxu0 %v16557_v43  ;;  %8535 = vmatpush1.bf16.msra.mxu1 %v16560_v44  ;;  %v16623_v43 = vld [vmem:[%s22718_s3 + $0x2c0] ss:$8 sps:$4 sm:$0x3f]   ;;  %v16624_v44 = vld [vmem:[%s22718_s3 + $0x594] ss:$8 sps:$4 sm:$0x3f]  }
 0x408   : > { %6938 = vmatprep.subr.bf16.mxu0 %v16568_v42  ;;  %8536 = vmatprep.subr.bf16.mxu1 %v16572_v20  ;;  %v16563_v42 = vld [vmem:[%s18605_s26 + $0x180] ss:$8 sps:$4 sm:$0xff]   ;;  %v16564_v20 = vld [vmem:[%s18605_s26 + $0x194] ss:$8 sps:$4 sm:$0xff]  }
 0x40b   : > { %6939 = vmatpush1.bf16.msra.mxu0 %v16566_v59  ;;  %8537 = vmatpush1.bf16.msra.mxu1 %v16570_v62  ;;  %v20588_v59 = vsel %vm4932_vm4, %v16623_v43, 0  ;;  %v20592_v62 = vsel %vm4932_vm4, %v16626_v25, 0  ;;  %v16630_v43 = vld [vmem:[%s18605_s26 + $0x54] ss:$8 sps:$4 sm:$0xff]   ;;  %v16869_v25 = vld [vmem:[%s22718_s3 + $0x360] ss:$8 sps:$4 sm:$0xff]  }
 0x40c   : > { %6940 = vmatprep.subr.bf16.mxu0 %v16580_v48  ;;  %8538 = vmatprep.subr.bf16.mxu1 %v16583_v54  ;;  %v16866_v48 = vld [vmem:[%s22718_s3 + $0x94] ss:$8 sps:$4 sm:$0xff]   ;;  %v16867_v54 = vld [vmem:[%s22718_s3 + $0x364] ss:$8 sps:$4 sm:$0xff]  }
 0x40d   : > { %6447 = vmatmul.mubr.bf16.gmra.mrb[232].mxu0 %v16551_v26  ;;  %8241 = vmatmul.mubr.bf16.gmra.mrb[232].mxu1 %v16551_v26  ;;  %v16569_v26 = vld [vmem:[%s18605_s26 + $0x190] ss:$8 sps:$4 sm:$0xff]  }
 0x40e   : > { %14143 = vmatprep.mubr.msk.bf16.mxu0 %vm4889_vm5, %v16552_v1  ;;  %14426 = vmatprep.mubr.msk.bf16.mxu1 %vm4889_vm5, %v16552_v1  ;;  %v16576_v1 = vld [vmem:[%s18605_s26 + $0x1b4] ss:$8 sps:$4 sm:$0xff]  }
 0x40f   : > { %6941 = vmatpush1.bf16.msra.mxu0 %v16578_v60  ;;  %8539 = vmatpush1.bf16.msra.mxu1 %v16581_v49  ;;  %v16573_v60 = vld [vmem:[%s18605_s26 + $0x1a4] ss:$8 sps:$4 sm:$0xff]   ;;  %v16575_v49 = vld [vmem:[%s18605_s26 + $0x1a0] ss:$8 sps:$4 sm:$0xff]  }
 0x410   : > { %6942 = vmatprep.subr.bf16.mxu0 %v16590_v56  ;;  %8540 = vmatprep.subr.bf16.mxu1 %v16596_v19  ;;  %v16584_v56 = vld [vmem:[%s18605_s26 + $0x1b0] ss:$8 sps:$4 sm:$0xff]   ;;  %v16587_v19 = vld [vmem:[%s18605_s26 + $0x1c4] ss:$8 sps:$4 sm:$0xff]  }
 0x413   : > { %6943 = vmatpush1.bf16.msra.mxu0 %v16588_v27  ;;  %8541 = vmatpush1.bf16.msra.mxu1 %v16594_v11  ;;  %v16585_v27 = vld [vmem:[%s18605_s26 + $0x1c0] ss:$8 sps:$4 sm:$0xff]   ;;  %v16593_v11 = vld [vmem:[%s18605_s26 + $0x1d4] ss:$8 sps:$4 sm:$0xff]  }
 0x414   : > { %6944 = vmatprep.subr.bf16.mxu0 %v16602_v29  ;;  %8542 = vmatprep.subr.bf16.mxu1 %v16605_v2  ;;  %v16591_v29 = vld [vmem:[%s18605_s26 + $0x1d0] ss:$8 sps:$4 sm:$0xff]   ;;  %v16599_v2 = vld [vmem:[%s18605_s26 + $0x1e4] ss:$8 sps:$4 sm:$0xff]  }
 0x415   : > { %6457 = vmatmul.mubr.bf16.gmra.mrb[236].mxu0 %v16554_v33  ;;  %8251 = vmatmul.mubr.bf16.gmra.mrb[236].mxu1 %v16554_v33  ;;  %v16597_v33 = vld [vmem:[%s18605_s26 + $0x1e0] ss:$8 sps:$4 sm:$0xff]  }
 0x416   : > { %14144 = vmatprep.mubr.msk.bf16.mxu0 %vm4889_vm5, %v16555_v31  ;;  %14427 = vmatprep.mubr.msk.bf16.mxu1 %vm4889_vm5, %v16555_v31  ;;  %v16614_v31 = vld [vmem:[%s18605_s26 + $0x204] ss:$8 sps:$4 sm:$0xff]  }
 0x417   : > { %6945 = vmatpush1.bf16.msra.mxu0 %v16600_v21  ;;  %8543 = vmatpush1.bf16.msra.mxu1 %v16603_v5  ;;  %v16608_v21 = vld [vmem:[%s18605_s26 + $0x1f4] ss:$8 sps:$4 sm:$0xff]   ;;  %v16606_v5 = vld [vmem:[%s18605_s26 + $0x1f0] ss:$8 sps:$4 sm:$0xff]  }
 0x418   : > { %6946 = vmatprep.subr.bf16.mxu0 %v16611_v18  ;;  %8544 = vmatprep.subr.bf16.mxu1 %v16617_v17  ;;  %v16612_v18 = vld [vmem:[%s18605_s26 + $0x200] ss:$8 sps:$4 sm:$0xff]   ;;  %v16620_v17 = vld [vmem:[%s18605_s26 + $0x214] ss:$8 sps:$4 sm:$0xff]  }
 0x41b   : > { %6947 = vmatpush1.bf16.msra.mxu0 %v16609_v36  ;;  %8545 = vmatpush1.bf16.msra.mxu1 %v16615_v50  ;;  %v16618_v36 = vld [vmem:[%s18605_s26 + $0x210] ss:$8 sps:$4 sm:$0xff]   ;;  %v16629_v50 = vld [vmem:[%s18605_s26 + $0x44] ss:$8 sps:$4 sm:$0xff]  }
 0x41c   : > { %14218 = vmatprep.subr.msk.bf16.mxu0 %vm4932_vm4, %v16621_v9  ;;  %14473 = vmatprep.subr.msk.bf16.mxu1 %vm4932_vm4, %v16624_v44  ;;  %v16627_v9 = vld [vmem:[%s18605_s26 + $0x40] ss:$8 sps:$4 sm:$0xff]   ;;  %v16868_v44 = vld [vmem:[%s22718_s3 + $0x90] ss:$8 sps:$4 sm:$0xff]  }
 0x41d   : > { %6467 = vmatmul.mubr.bf16.gmra.mrb[240].mxu0 %v16563_v42  ;;  %8261 = vmatmul.mubr.bf16.gmra.mrb[240].mxu1 %v16563_v42  ;;  %v16870_v42 = vld [vmem:[%s22718_s3 + $0xa4] ss:$8 sps:$4 sm:$0xff]  }
 0x41e   : > { %14145 = vmatprep.mubr.msk.bf16.mxu0 %vm4889_vm5, %v16564_v20  ;;  %14428 = vmatprep.mubr.msk.bf16.mxu1 %vm4889_vm5, %v16564_v20  ;;  %v16871_v20 = vld [vmem:[%s22718_s3 + $0x374] ss:$8 sps:$4 sm:$0xff]  }
 0x41f   : > { %6949 = vmatpush1.bf16.msra.mxu0 %v20588_v59  ;;  %8547 = vmatpush1.bf16.msra.mxu1 %v20592_v62 }
 0x420   : > { %8815 = vmatprep.subr.bf16.mxu0 %v16866_v48  ;;  %10100 = vmatprep.subr.bf16.mxu1 %v16867_v54  ;;  %v16632_v48 = vld [vmem:[%s18605_s26 + $0x50] ss:$8 sps:$4 sm:$0xff]   ;;  %v16872_v54 = vld [vmem:[%s22718_s3 + $0xa0] ss:$8 sps:$4 sm:$0xff]  }
 0x425   : > { %6477 = vmatmul.mubr.bf16.gmra.mrb[244].mxu0 %v16569_v26  ;;  %8271 = vmatmul.mubr.bf16.gmra.mrb[244].mxu1 %v16569_v26  ;;  %v16873_v26 = vld [vmem:[%s22718_s3 + $0x370] ss:$8 sps:$4 sm:$0xff]  }
 0x426   : > { %14146 = vmatprep.mubr.msk.bf16.mxu0 %vm4889_vm5, %v16573_v60  ;;  %14429 = vmatprep.mubr.msk.bf16.mxu1 %vm4889_vm5, %v16573_v60  ;;  %v16633_v60 = vld [vmem:[%s18605_s26 + $0x64] ss:$8 sps:$4 sm:$0xff]  }
 0x42d   : > { %6487 = vmatmul.mubr.bf16.gmra.mrb[248].mxu0 %v16575_v49  ;;  %8281 = vmatmul.mubr.bf16.gmra.mrb[248].mxu1 %v16575_v49  ;;  %v16874_v49 = vld [vmem:[%s22718_s3 + $0xb4] ss:$8 sps:$4 sm:$0xff]  }
 0x42e   : > { %14147 = vmatprep.mubr.msk.bf16.mxu0 %vm4889_vm5, %v16576_v1  ;;  %14430 = vmatprep.mubr.msk.bf16.mxu1 %vm4889_vm5, %v16576_v1  ;;  %v16875_v1 = vld [vmem:[%s22718_s3 + $0x384] ss:$8 sps:$4 sm:$0xff]  }
 0x435   : > { %6497 = vmatmul.mubr.bf16.gmra.mrb[252].mxu0 %v16584_v56  ;;  %8291 = vmatmul.mubr.bf16.gmra.mrb[252].mxu1 %v16584_v56  ;;  %v16876_v56 = vld [vmem:[%s22718_s3 + $0xb0] ss:$8 sps:$4 sm:$0xff]  }
 0x436   : > { %14148 = vmatprep.mubr.msk.bf16.mxu0 %vm4889_vm5, %v16587_v19  ;;  %14431 = vmatprep.mubr.msk.bf16.mxu1 %vm4889_vm5, %v16587_v19  ;;  %v16877_v19 = vld [vmem:[%s22718_s3 + $0x380] ss:$8 sps:$4 sm:$0xff]  }
 0x43d   : > { %6507 = vmatmul.mubr.bf16.gmra.mrb[0].mxu0 %v16585_v27  ;;  %8301 = vmatmul.mubr.bf16.gmra.mrb[0].mxu1 %v16585_v27  ;;  %v16878_v27 = vld [vmem:[%s22718_s3 + $0xc4] ss:$8 sps:$4 sm:$0xff]  }
 0x43e   : > { %14149 = vmatprep.mubr.msk.bf16.mxu0 %vm4889_vm5, %v16593_v11  ;;  %14432 = vmatprep.mubr.msk.bf16.mxu1 %vm4889_vm5, %v16593_v11  ;;  %v16879_v11 = vld [vmem:[%s22718_s3 + $0x394] ss:$8 sps:$4 sm:$0xff]  }
 0x445   : > { %6517 = vmatmul.mubr.bf16.gmra.mrb[4].mxu0 %v16591_v29  ;;  %8311 = vmatmul.mubr.bf16.gmra.mrb[4].mxu1 %v16591_v29  ;;  %v16635_v29 = vld [vmem:[%s18605_s26 + $0x60] ss:$8 sps:$4 sm:$0xff]  }
 0x446   : > { %14150 = vmatprep.mubr.msk.bf16.mxu0 %vm4889_vm5, %v16599_v2  ;;  %14433 = vmatprep.mubr.msk.bf16.mxu1 %vm4889_vm5, %v16599_v2  ;;  %v16880_v2 = vld [vmem:[%s22718_s3 + $0xc0] ss:$8 sps:$4 sm:$0xff]  }
 0x44d   : > { %6527 = vmatmul.mubr.bf16.gmra.mrb[8].mxu0 %v16597_v33  ;;  %8321 = vmatmul.mubr.bf16.gmra.mrb[8].mxu1 %v16597_v33  ;;  %v16881_v33 = vld [vmem:[%s22718_s3 + $0x390] ss:$8 sps:$4 sm:$0xff]  }
 0x44e   : > { %14151 = vmatprep.mubr.msk.bf16.mxu0 %vm4889_vm5, %v16608_v21  ;;  %14434 = vmatprep.mubr.msk.bf16.mxu1 %vm4889_vm5, %v16608_v21  ;;  %v16636_v21 = vld [vmem:[%s18605_s26 + $0x74] ss:$8 sps:$4 sm:$0xff]  }
 0x455   : > { %6537 = vmatmul.mubr.bf16.gmra.mrb[12].mxu0 %v16606_v5  ;;  %8331 = vmatmul.mubr.bf16.gmra.mrb[12].mxu1 %v16606_v5  ;;  %v16882_v5 = vld [vmem:[%s22718_s3 + $0xd4] ss:$8 sps:$4 sm:$0xff]  }
 0x456   : > { %14152 = vmatprep.mubr.msk.bf16.mxu0 %vm4889_vm5, %v16614_v31  ;;  %14435 = vmatprep.mubr.msk.bf16.mxu1 %vm4889_vm5, %v16614_v31  ;;  %v16883_v31 = vld [vmem:[%s22718_s3 + $0x3a4] ss:$8 sps:$4 sm:$0xff]  }
 0x45d   : > { %6547 = vmatmul.mubr.bf16.gmra.mrb[16].mxu0 %v16612_v18  ;;  %8341 = vmatmul.mubr.bf16.gmra.mrb[16].mxu1 %v16612_v18  ;;  %v16884_v18 = vld [vmem:[%s22718_s3 + $0xd0] ss:$8 sps:$4 sm:$0xff]  }
 0x45e   : > { %14153 = vmatprep.mubr.msk.bf16.mxu0 %vm4889_vm5, %v16620_v17  ;;  %14436 = vmatprep.mubr.msk.bf16.mxu1 %vm4889_vm5, %v16620_v17  ;;  %v16885_v17 = vld [vmem:[%s22718_s3 + $0x3a0] ss:$8 sps:$4 sm:$0xff]  }
 0x465   : > { %6557 = vmatmul.mubr.bf16.gmra.mrb[20].mxu0 %v16618_v36  ;;  %8351 = vmatmul.mubr.bf16.gmra.mrb[20].mxu1 %v16618_v36  ;;  %v16886_v36 = vld [vmem:[%s22718_s3 + $0xe4] ss:$8 sps:$4 sm:$0xff]  }
 0x466   : > { %14219 = vmatprep.mubr.msk.bf16.mxu0 %vm4889_vm5, %v16629_v50  ;;  %14474 = vmatprep.mubr.msk.bf16.mxu1 %vm4889_vm5, %v16629_v50  ;;  %v16887_v50 = vld [vmem:[%s22718_s3 + $0x3b4] ss:$8 sps:$4 sm:$0xff]  }
 0x46d   : > { %6965 = vmatmul.mubr.bf16.vlgmr.msra.gmra.mrb[224].mxu0 %v16627_v9  ;;  %8563 = vmatmul.mubr.bf16.vlgmr.msra.gmra.mrb[224].mxu1 %v16627_v9  ;;  %v16638_v9 = vld [vmem:[%s18605_s26 + $0x70] ss:$8 sps:$4 sm:$0xff]  }
 0x46e   : > { %14220 = vmatprep.mubr.msk.bf16.mxu0 %vm4889_vm5, %v16630_v43  ;;  %14475 = vmatprep.mubr.msk.bf16.mxu1 %vm4889_vm5, %v16630_v43  ;;  %v16888_v43 = vld [vmem:[%s22718_s3 + $0xe0] ss:$8 sps:$4 sm:$0xff]  }
 0x46f   : > { %8816 = vmatpush1.bf16.msra.mxu0 %v16868_v44  ;;  %10101 = vmatpush1.bf16.msra.mxu1 %v16869_v25  ;;  %v16889_v44 = vld [vmem:[%s22718_s3 + $0x3b0] ss:$8 sps:$4 sm:$0xff]   ;;  %v16639_v25 = vld [vmem:[%s18605_s26 + $0x84] ss:$8 sps:$4 sm:$0xff]  }
 0x470   : > { %8817 = vmatprep.subr.bf16.mxu0 %v16870_v42  ;;  %10102 = vmatprep.subr.bf16.mxu1 %v16871_v20  ;;  %v16890_v42 = vld [vmem:[%s22718_s3 + $0xf4] ss:$8 sps:$4 sm:$0xff]   ;;  %v16891_v20 = vld [vmem:[%s22718_s3 + $0x3c4] ss:$8 sps:$4 sm:$0xff]  }
 0x473   : > { %8818 = vmatpush1.bf16.msra.mxu0 %v16872_v54  ;;  %10103 = vmatpush1.bf16.msra.mxu1 %v16873_v26  ;;  %v16893_v54 = vld [vmem:[%s22718_s3 + $0x3c0] ss:$8 sps:$4 sm:$0xff]   ;;  %v16894_v26 = vld [vmem:[%s22718_s3 + $0x104] ss:$8 sps:$4 sm:$0xff]  }
 0x474   : > { %8819 = vmatprep.subr.bf16.mxu0 %v16874_v49  ;;  %10104 = vmatprep.subr.bf16.mxu1 %v16875_v1  ;;  %v16641_v49 = vld [vmem:[%s18605_s26 + $0x80] ss:$8 sps:$4 sm:$0xff]  }
 0x475   : > { %6975 = vmatmul.mubr.bf16.gmra.mrb[228].mxu0 %v16632_v48  ;;  %8573 = vmatmul.mubr.bf16.gmra.mrb[228].mxu1 %v16632_v48  ;;  %v16892_v48 = vld [vmem:[%s22718_s3 + $0xf0] ss:$8 sps:$4 sm:$0xff]   ;;  %v16896_v1 = vld [vmem:[%s22718_s3 + $0x100] ss:$8 sps:$4 sm:$0xff]  }
 0x476   : > { %14221 = vmatprep.mubr.msk.bf16.mxu0 %vm4889_vm5, %v16633_v60  ;;  %14476 = vmatprep.mubr.msk.bf16.mxu1 %vm4889_vm5, %v16633_v60  ;;  %v16895_v60 = vld [vmem:[%s22718_s3 + $0x3d4] ss:$8 sps:$4 sm:$0xff]  }
 0x477   : > { %8820 = vmatpush1.bf16.msra.mxu0 %v16876_v56  ;;  %10105 = vmatpush1.bf16.msra.mxu1 %v16877_v19  ;;  %v16897_v56 = vld [vmem:[%s22718_s3 + $0x3d0] ss:$8 sps:$4 sm:$0xff]   ;;  %v16642_v19 = vld [vmem:[%s18605_s26 + $0x94] ss:$8 sps:$4 sm:$0xff]  }
 0x478   : > { %8821 = vmatprep.subr.bf16.mxu0 %v16878_v27  ;;  %10106 = vmatprep.subr.bf16.mxu1 %v16879_v11  ;;  %v16898_v27 = vld [vmem:[%s22718_s3 + $0x114] ss:$8 sps:$4 sm:$0x3f]   ;;  %v16899_v11 = vld [vmem:[%s22718_s3 + $0x3e4] ss:$8 sps:$4 sm:$0x3f]  }
 0x47b   : > { %8822 = vmatpush1.bf16.msra.mxu0 %v16880_v2  ;;  %10107 = vmatpush1.bf16.msra.mxu1 %v16881_v33  ;;  %v23334_v2 = vld [vmem:[#allocation5_spill] sm:$0xff] }
 0x47c   : > { %8823 = vmatprep.subr.bf16.mxu0 %v16882_v5  ;;  %10108 = vmatprep.subr.bf16.mxu1 %v16883_v31  ;;  %v16900_v33 = vld [vmem:[%s22718_s3 + $0x4] ss:$8 sps:$4 sm:$0xff]   ;;  %v16644_v5 = vld [vmem:[%s18605_s26 + $0x90] ss:$8 sps:$4 sm:$0xff]  }
 0x47d   : > { %6985 = vmatmul.mubr.bf16.gmra.mrb[232].mxu0 %v16635_v29  ;;  %8583 = vmatmul.mubr.bf16.gmra.mrb[232].mxu1 %v16635_v29  ;;  %v23333_v29 = vld [vmem:[#allocation4_spill] sm:$0xff] }
 0x47e   : > { %14222 = vmatprep.mubr.msk.bf16.mxu0 %vm4889_vm5, %v16636_v21  ;;  %14477 = vmatprep.mubr.msk.bf16.mxu1 %vm4889_vm5, %v16636_v21  ;;  %v16901_v21 = vld [vmem:[%s22718_s3 + $0x2d4] ss:$8 sps:$4 sm:$0xff]   ;;  %v16645_v31 = vld [vmem:[%s18605_s26 + $0xa4] ss:$8 sps:$4 sm:$0xff]  }
 0x47f   : > { %8824 = vmatpush1.bf16.msra.mxu0 %v16884_v18  ;;  %10109 = vmatpush1.bf16.msra.mxu1 %v16885_v17  ;;  %v16647_v18 = vld [vmem:[%s18605_s26 + $0xa0] ss:$8 sps:$4 sm:$0xff]   ;;  %v16648_v17 = vld [vmem:[%s18605_s26 + $0xb4] ss:$8 sps:$4 sm:$0xff]  }
 0x480   : > { %8825 = vmatprep.subr.bf16.mxu0 %v16886_v36  ;;  %10110 = vmatprep.subr.bf16.mxu1 %v16887_v50  ;;  %v16650_v36 = vld [vmem:[%s18605_s26 + $0xb0] ss:$8 sps:$4 sm:$0xff]   ;;  %v16653_v50 = vld [vmem:[%s18605_s26 + $0xc4] ss:$8 sps:$4 sm:$0xff]  }
 0x483   : > { %8826 = vmatpush1.bf16.msra.mxu0 %v16888_v43  ;;  %10111 = vmatpush1.bf16.msra.mxu1 %v16889_v44  ;;  %v16656_v43 = vld [vmem:[%s18605_s26 + $0xd4] ss:$8 sps:$4 sm:$0xff]   ;;  %v16654_v44 = vld [vmem:[%s18605_s26 + $0xd0] ss:$8 sps:$4 sm:$0xff]  }
 0x484   : > { %8827 = vmatprep.subr.bf16.mxu0 %v16890_v42  ;;  %10112 = vmatprep.subr.bf16.mxu1 %v16891_v20  ;;  %v16657_v42 = vld [vmem:[%s18605_s26 + $0x100] ss:$8 sps:$4 sm:$0xff]   ;;  %v16662_v20 = vld [vmem:[%s18605_s26 + $0x114] ss:$8 sps:$4 sm:$0xff]  }
 0x485   : > { %6995 = vmatmul.mubr.bf16.gmra.mrb[236].mxu0 %v16638_v9  ;;  %8593 = vmatmul.mubr.bf16.gmra.mrb[236].mxu1 %v16638_v9  ;;  %v16651_v9 = vld [vmem:[%s18605_s26 + $0xc0] ss:$8 sps:$4 sm:$0xff]  }
 0x486   : > { %14223 = vmatprep.mubr.msk.bf16.mxu0 %vm4889_vm5, %v16639_v25  ;;  %14478 = vmatprep.mubr.msk.bf16.mxu1 %vm4889_vm5, %v16639_v25  ;;  %v16659_v25 = vld [vmem:[%s18605_s26 + $0x104] ss:$8 sps:$4 sm:$0xff]  }
 0x487   : > { %8828 = vmatpush1.bf16.msra.mxu0 %v16892_v48  ;;  %10113 = vmatpush1.bf16.msra.mxu1 %v16893_v54  ;;  %v16660_v48 = vld [vmem:[%s18605_s26 + $0x110] ss:$8 sps:$4 sm:$0xff]   ;;  %v16902_v54 = vld [vmem:[%s18605_s26 + $0x24] ss:$8 sps:$4 sm:$0xff]  }
 0x488   : > { %8829 = vmatprep.subr.bf16.mxu0 %v16894_v26  ;;  %10114 = vmatprep.subr.bf16.mxu1 %v16895_v60  ;;  %v16903_v26 = vld [vmem:[%s18605_s26 + $0x20] ss:$8 sps:$4 sm:$0xff]   ;;  %v16904_v60 = vld [vmem:[%s18605_s26 + $0x34] ss:$8 sps:$4 sm:$0xff]  }
 0x48b   : > { %8830 = vmatpush1.bf16.msra.mxu0 %v16896_v1  ;;  %10115 = vmatpush1.bf16.msra.mxu1 %v16897_v56  ;;  %v16906_v1 = vld [vmem:[%s22718_s3 + $0x2d0] ss:$8 sps:$4 sm:$0xff]   ;;  %v16907_v56 = vld [vmem:[%s22718_s3 + $0x14] ss:$8 sps:$4 sm:$0xff]  }
 0x48c   : > { %14488 = vmatprep.subr.msk.bf16.mxu0 %vm4932_vm4, %v16898_v27  ;;  %14619 = vmatprep.subr.msk.bf16.mxu1 %vm4932_vm4, %v16899_v11  ;;  %v16909_v27 = vld [vmem:[%s22718_s3 + $0x10] ss:$8 sps:$4 sm:$0xff]   ;;  %v16910_v11 = vld [vmem:[%s22718_s3 + $0x2e0] ss:$8 sps:$4 sm:$0xff]  }
 0x48d   : > { %7005 = vmatmul.mubr.bf16.gmra.mrb[240].mxu0 %v16641_v49  ;;  %8603 = vmatmul.mubr.bf16.gmra.mrb[240].mxu1 %v16641_v49  ;;  %v16905_v49 = vld [vmem:[%s22718_s3] ss:$8 sps:$4 sm:$0xff]  }
 0x48e   : > { %14224 = vmatprep.mubr.msk.bf16.mxu0 %vm4889_vm5, %v16642_v19  ;;  %14479 = vmatprep.mubr.msk.bf16.mxu1 %vm4889_vm5, %v16642_v19  ;;  %v16908_v19 = vld [vmem:[%s22718_s3 + $0x2e4] ss:$8 sps:$4 sm:$0xff]  }
 0x48f   : > { %8832 = vmatpush1.bf16.msra.mxu0 %v23333_v29  ;;  %10117 = vmatpush1.bf16.msra.mxu1 %v23334_v2  ;;  %v16911_v29 = vld [vmem:[%s22718_s3 + $0x24] ss:$8 sps:$4 sm:$0xff]   ;;  %v16912_v2 = vld [vmem:[%s22718_s3 + $0x2f4] ss:$8 sps:$4 sm:$0xff]  }
 0x490   : > { %8988 = vmatprep.subr.bf16.mxu0 %v16900_v33  ;;  %10273 = vmatprep.subr.bf16.mxu1 %v16901_v21  ;;  %v16913_v33 = vld [vmem:[%s18605_s26 + $0x30] ss:$8 sps:$4 sm:$0xff]   ;;  %v16914_v21 = vld [vmem:[%s22718_s3 + $0x20] ss:$8 sps:$4 sm:$0xff]  }
 0x495   : > { %7015 = vmatmul.mubr.bf16.gmra.mrb[244].mxu0 %v16644_v5  ;;  %8613 = vmatmul.mubr.bf16.gmra.mrb[244].mxu1 %v16644_v5  ;;  %v16915_v5 = vld [vmem:[%s22718_s3 + $0x2f0] ss:$8 sps:$4 sm:$0xff]  }
 0x496   : > { %14225 = vmatprep.mubr.msk.bf16.mxu0 %vm4889_vm5, %v16645_v31  ;;  %14480 = vmatprep.mubr.msk.bf16.mxu1 %vm4889_vm5, %v16645_v31  ;;  %v16916_v31 = vld [vmem:[%s22718_s3 + $0x34] ss:$8 sps:$4 sm:$0xff]  }
 0x49d   : > { %7025 = vmatmul.mubr.bf16.gmra.mrb[248].mxu0 %v16647_v18  ;;  %8623 = vmatmul.mubr.bf16.gmra.mrb[248].mxu1 %v16647_v18  ;;  %v16917_v18 = vld [vmem:[%s22718_s3 + $0x304] ss:$8 sps:$4 sm:$0xff]  }
 0x49e   : > { %14226 = vmatprep.mubr.msk.bf16.mxu0 %vm4889_vm5, %v16648_v17  ;;  %14481 = vmatprep.mubr.msk.bf16.mxu1 %vm4889_vm5, %v16648_v17  ;;  %v16919_v17 = vld [vmem:[%s22718_s3 + $0x300] ss:$8 sps:$4 sm:$0xff]  }
 0x4a5   : > { %7035 = vmatmul.mubr.bf16.gmra.mrb[252].mxu0 %v16650_v36  ;;  %8633 = vmatmul.mubr.bf16.gmra.mrb[252].mxu1 %v16650_v36  ;;  %v16920_v36 = vld [vmem:[%s22718_s3 + $0x44] ss:$8 sps:$4 sm:$0xff]  }
 0x4a6   : > { %14227 = vmatprep.mubr.msk.bf16.mxu0 %vm4889_vm5, %v16653_v50  ;;  %14482 = vmatprep.mubr.msk.bf16.mxu1 %vm4889_vm5, %v16653_v50  ;;  %v16921_v50 = vld [vmem:[%s22718_s3 + $0x314] ss:$8 sps:$4 sm:$0xff]  }
 0x4ad   : > { %7045 = vmatmul.mubr.bf16.gmra.mrb[0].mxu0 %v16651_v9  ;;  %8643 = vmatmul.mubr.bf16.gmra.mrb[0].mxu1 %v16651_v9  ;;  %v16922_v9 = vld [vmem:[%s22718_s3 + $0x40] ss:$8 sps:$4 sm:$0xff]  }
 0x4ae   : > { %14228 = vmatprep.mubr.msk.bf16.mxu0 %vm4889_vm5, %v16656_v43  ;;  %14483 = vmatprep.mubr.msk.bf16.mxu1 %vm4889_vm5, %v16656_v43  ;;  %v16923_v43 = vld [vmem:[%s22718_s3 + $0x310] ss:$8 sps:$4 sm:$0xff]  }
 0x4b5   : > { %7055 = vmatmul.mubr.bf16.gmra.mrb[4].mxu0 %v16654_v44  ;;  %8653 = vmatmul.mubr.bf16.gmra.mrb[4].mxu1 %v16654_v44  ;;  %v16925_v44 = vld [vmem:[%s22718_s3 + $0x324] ss:$8 sps:$4 sm:$0xff]  }
 0x4b6   : > { %14229 = vmatprep.mubr.msk.bf16.mxu0 %vm4889_vm5, %v20438_v39  ;;  %14484 = vmatprep.mubr.msk.bf16.mxu1 %vm4889_vm5, %v20438_v39 }
 0x4bd   : > { %7065 = vmatmul.mubr.bf16.gmra.mrb[8].mxu0 %v20447_v38  ;;  %8663 = vmatmul.mubr.bf16.gmra.mrb[8].mxu1 %v20447_v38 }
 0x4be   : > { %14230 = vmatprep.mubr.msk.bf16.mxu0 %vm4889_vm5, %v20450_v22  ;;  %14485 = vmatprep.mubr.msk.bf16.mxu1 %vm4889_vm5, %v20450_v22 }
 0x4c5   : > { %7075 = vmatmul.mubr.bf16.gmra.mrb[12].mxu0 %v20459_v12  ;;  %8673 = vmatmul.mubr.bf16.gmra.mrb[12].mxu1 %v20459_v12 }
 0x4c6   : > { %14231 = vmatprep.mubr.msk.bf16.mxu0 %vm4889_vm5, %v16659_v25  ;;  %14486 = vmatprep.mubr.msk.bf16.mxu1 %vm4889_vm5, %v16659_v25  ;;  %v16927_v25 = vld [vmem:[%s22718_s3 + $0x320] ss:$8 sps:$4 sm:$0xff]  }
 0x4cd   : > { %7085 = vmatmul.mubr.bf16.gmra.mrb[16].mxu0 %v16657_v42  ;;  %8683 = vmatmul.mubr.bf16.gmra.mrb[16].mxu1 %v16657_v42  ;;  %v16928_v42 = vld [vmem:[%s22718_s3 + $0x64] ss:$8 sps:$4 sm:$0xff]  }
 0x4ce   : > { %14232 = vmatprep.mubr.msk.bf16.mxu0 %vm4889_vm5, %v16662_v20  ;;  %14487 = vmatprep.mubr.msk.bf16.mxu1 %vm4889_vm5, %v16662_v20  ;;  %v16929_v20 = vld [vmem:[%s22718_s3 + $0x334] ss:$8 sps:$4 sm:$0xff]  }
 0x4d5   : > { %7095 = vmatmul.mubr.bf16.gmra.mrb[20].mxu0 %v16660_v48  ;;  %8693 = vmatmul.mubr.bf16.gmra.mrb[20].mxu1 %v16660_v48  ;;  %v16930_v48 = vld [vmem:[%s22718_s3 + $0x60] ss:$8 sps:$4 sm:$0xff]  }
 0x4d6   : > { %14489 = vmatprep.mubr.msk.bf16.mxu0 %vm4889_vm5, %v16902_v54  ;;  %14620 = vmatprep.mubr.msk.bf16.mxu1 %vm4889_vm5, %v16902_v54  ;;  %v16931_v54 = vld [vmem:[%s22718_s3 + $0x330] ss:$8 sps:$4 sm:$0xff]  }
 0x4dd   : > { %8848 = vmatmul.mubr.bf16.vlgmr.msra.gmra.mrb[24].mxu0 %v16903_v26  ;;  %10133 = vmatmul.mubr.bf16.vlgmr.msra.gmra.mrb[24].mxu1 %v16903_v26  ;;  %v16933_v26 = vld [vmem:[%s22718_s3 + $0x344] ss:$8 sps:$4 sm:$0xff]  }
 0x4de   : > { %14490 = vmatprep.mubr.msk.bf16.mxu0 %vm4889_vm5, %v16904_v60  ;;  %8989 = vmatpush1.bf16.msra.mxu0 %v16905_v49  ;;  %v16936_v49 = vld [vmem:[%s22718_s3 + $0x84] ss:$8 sps:$4 sm:$0x3f]  }
 0x4df   : > { %14621 = vmatprep.mubr.msk.bf16.mxu1 %vm4889_vm5, %v16904_v60  ;;  %10274 = vmatpush1.bf16.msra.mxu1 %v16906_v1  ;;  %v16935_v60 = vld [vmem:[%s22718_s3 + $0x340] ss:$8 sps:$4 sm:$0xff]   ;;  %v16937_v1 = vld [vmem:[%s22718_s3 + $0x354] ss:$8 sps:$4 sm:$0x3f]  }
 0x4e0   : > { %8990 = vmatprep.subr.bf16.mxu0 %v16907_v56  ;;  %10275 = vmatprep.subr.bf16.mxu1 %v16908_v19  ;;  %v23335_v56 = vld [vmem:[#allocation66_spill] sm:$0xff]  ;;  %v23336_v19 = vld [vmem:[#allocation67_spill] sm:$0xff] }
 0x4e2   : > { %8991 = vmatpush1.bf16.msra.mxu0 %v16909_v27  ;;  %v16938_v27 = vld [vmem:[%s22718_s3 + $0x124] ss:$8 sps:$4 sm:$0xff]  }
 0x4e3   : > { %10276 = vmatpush1.bf16.msra.mxu1 %v16910_v11  ;;  %8992 = vmatprep.subr.bf16.mxu0 %v16911_v29  ;;  %v16939_v11 = vld [vmem:[%s22718_s3 + $0x3f4] ss:$8 sps:$4 sm:$0xff]  }
 0x4e4   : > { %10277 = vmatprep.subr.bf16.mxu1 %v16912_v2 }
 0x4e5   : > { %8858 = vmatmul.mubr.bf16.gmra.mrb[28].mxu0 %v16913_v33  ;;  %10143 = vmatmul.mubr.bf16.gmra.mrb[28].mxu1 %v16913_v33  ;;  %v16968_v33 = vld [vmem:[%s22718_s3 + $0x454] ss:$8 sps:$4 sm:$0xff]  }
 0x4e6   : > { %14491 = vmatprep.mubr.msk.bf16.mxu0 %vm4889_vm5, %v20088_v28  ;;  %14622 = vmatprep.mubr.msk.bf16.mxu1 %vm4889_vm5, %v20088_v28  ;;  %v16918_v28 = vld [vmem:[%s22718_s3 + $0x30] ss:$8 sps:$4 sm:$0xff]  }
 0x4e7   : > { %8993 = vmatpush1.bf16.msra.mxu0 %v16914_v21  ;;  %10278 = vmatpush1.bf16.msra.mxu1 %v16915_v5 }
 0x4e8   : > { %8994 = vmatprep.subr.bf16.mxu0 %v16916_v31  ;;  %10279 = vmatprep.subr.bf16.mxu1 %v16917_v18  ;;  %v16941_v18 = vld [vmem:[%s18605_s26 + $0x120] ss:$8 sps:$4 sm:$0xff]  }
 0x4eb   : > { %8995 = vmatpush1.bf16.msra.mxu0 %v16918_v28  ;;  %10280 = vmatpush1.bf16.msra.mxu1 %v16919_v17  ;;  %v16942_v28 = vld [vmem:[%s22718_s3 + $0x120] ss:$8 sps:$4 sm:$0xff]   ;;  %v16943_v17 = vld [vmem:[%s22718_s3 + $0x3f0] ss:$8 sps:$4 sm:$0xff]  }
 0x4ec   : > { %8996 = vmatprep.subr.bf16.mxu0 %v16920_v36  ;;  %10281 = vmatprep.subr.bf16.mxu1 %v16921_v50  ;;  %v16944_v36 = vld [vmem:[%s18605_s26 + $0x134] ss:$8 sps:$4 sm:$0xff]  }
 0x4ed   : > { %8868 = vmatmul.mubr.bf16.gmra.mrb[32].mxu0 %v20121_v52  ;;  %10153 = vmatmul.mubr.bf16.gmra.mrb[32].mxu1 %v20121_v52  ;;  %v16924_v52 = vld [vmem:[%s22718_s3 + $0x54] ss:$8 sps:$4 sm:$0xff]  }
 0x4ee   : > { %14492 = vmatprep.mubr.msk.bf16.mxu0 %vm4889_vm5, %v20124_v37  ;;  %14623 = vmatprep.mubr.msk.bf16.mxu1 %vm4889_vm5, %v20124_v37  ;;  %v16926_v37 = vld [vmem:[%s22718_s3 + $0x50] ss:$8 sps:$4 sm:$0xff]  }
 0x4ef   : > { %8997 = vmatpush1.bf16.msra.mxu0 %v16922_v9  ;;  %10282 = vmatpush1.bf16.msra.mxu1 %v16923_v43  ;;  %v16945_v43 = vld [vmem:[%s22718_s3 + $0x134] ss:$8 sps:$4 sm:$0xff]  }
 0x4f0   : > { %8998 = vmatprep.subr.bf16.mxu0 %v16924_v52  ;;  %10283 = vmatprep.subr.bf16.mxu1 %v16925_v44  ;;  %v16946_v52 = vld [vmem:[%s22718_s3 + $0x404] ss:$8 sps:$4 sm:$0xff]  }
 0x4f3   : > { %8999 = vmatpush1.bf16.msra.mxu0 %v16926_v37  ;;  %10284 = vmatpush1.bf16.msra.mxu1 %v16927_v25 }
 0x4f4   : > { %9000 = vmatprep.subr.bf16.mxu0 %v16928_v42  ;;  %10285 = vmatprep.subr.bf16.mxu1 %v16929_v20 }
 0x4f5   : > { %8878 = vmatmul.mubr.bf16.gmra.mrb[36].mxu0 %v20149_v45  ;;  %10163 = vmatmul.mubr.bf16.gmra.mrb[36].mxu1 %v20149_v45  ;;  %v16932_v45 = vld [vmem:[%s22718_s3 + $0x74] ss:$8 sps:$4 sm:$0xff]  }
 0x4f6   : > { %14493 = vmatprep.mubr.msk.bf16.mxu0 %vm4889_vm5, %v20152_v46  ;;  %14624 = vmatprep.mubr.msk.bf16.mxu1 %vm4889_vm5, %v20152_v46  ;;  %v16934_v46 = vld [vmem:[%s22718_s3 + $0x70] ss:$8 sps:$4 sm:$0xff]  }
 0x4f7   : > { %9001 = vmatpush1.bf16.msra.mxu0 %v16930_v48  ;;  %10286 = vmatpush1.bf16.msra.mxu1 %v16931_v54  ;;  %v16947_v54 = vld [vmem:[%s22718_s3 + $0x130] ss:$8 sps:$4 sm:$0xff]  }
 0x4f8   : > { %9002 = vmatprep.subr.bf16.mxu0 %v16932_v45  ;;  %10287 = vmatprep.subr.bf16.mxu1 %v16933_v26  ;;  %v16948_v45 = vld [vmem:[%s22718_s3 + $0x400] ss:$8 sps:$4 sm:$0xff]  }
 0x4fb   : > { %9003 = vmatpush1.bf16.msra.mxu0 %v16934_v46  ;;  %10288 = vmatpush1.bf16.msra.mxu1 %v16935_v60 }
 0x4fc   : > { %14503 = vmatprep.subr.msk.bf16.mxu0 %vm4932_vm4, %v16936_v49  ;;  %14634 = vmatprep.subr.msk.bf16.mxu1 %vm4932_vm4, %v16937_v1  ;;  %v16949_v49 = vld [vmem:[%s22718_s3 + $0x144] ss:$8 sps:$4 sm:$0xff]   ;;  %v16950_v1 = vld [vmem:[%s22718_s3 + $0x414] ss:$8 sps:$4 sm:$0xff]  }
 0x4fd   : > { %8888 = vmatmul.mubr.bf16.gmra.mrb[40].mxu0 %v20161_v10  ;;  %10173 = vmatmul.mubr.bf16.gmra.mrb[40].mxu1 %v20161_v10 }
 0x4fe   : > { %14494 = vmatprep.mubr.msk.bf16.mxu0 %vm4889_vm5, %v20164_v3  ;;  %14625 = vmatprep.mubr.msk.bf16.mxu1 %vm4889_vm5, %v20164_v3 }
 0x4ff   : > { %9005 = vmatpush1.bf16.msra.mxu0 %v23335_v56  ;;  %10290 = vmatpush1.bf16.msra.mxu1 %v23336_v19  ;;  %v23337_v19 = vld [vmem:[#allocation6_spill] sm:$0xff]  ;;  %v16966_v56 = vld [vmem:[%s22718_s3 + $0x440] ss:$8 sps:$4 sm:$0xff]  }
 0x500   : > { %9161 = vmatprep.subr.bf16.mxu0 %v16938_v27  ;;  %10446 = vmatprep.subr.bf16.mxu1 %v16939_v11  ;;  %v16951_v27 = vld [vmem:[%s18605_s26 + $0x144] ss:$8 sps:$4 sm:$0xff]   ;;  %v16952_v11 = vld [vmem:[%s22718_s3 + $0x140] ss:$8 sps:$4 sm:$0xff]  }
 0x505   : > { %8898 = vmatmul.mubr.bf16.gmra.mrb[44].mxu0 %v20173_v47  ;;  %10183 = vmatmul.mubr.bf16.gmra.mrb[44].mxu1 %v20173_v47 }
 0x506   : > { %14495 = vmatprep.mubr.msk.bf16.mxu0 %vm4889_vm5, %v20176_v58  ;;  %14626 = vmatprep.mubr.msk.bf16.mxu1 %vm4889_vm5, %v20176_v58 }
 0x50d   : > { %8908 = vmatmul.mubr.bf16.gmra.mrb[48].mxu0 %v20185_v24  ;;  %10193 = vmatmul.mubr.bf16.gmra.mrb[48].mxu1 %v20185_v24 }
 0x50e   : > { %14496 = vmatprep.mubr.msk.bf16.mxu0 %vm4889_vm5, %v20188_v35  ;;  %14627 = vmatprep.mubr.msk.bf16.mxu1 %vm4889_vm5, %v20188_v35 }
 0x515   : > { %8918 = vmatmul.mubr.bf16.gmra.mrb[52].mxu0 %v20197_v53  ;;  %10203 = vmatmul.mubr.bf16.gmra.mrb[52].mxu1 %v20197_v53 }
 0x516   : > { %14497 = vmatprep.mubr.msk.bf16.mxu0 %vm4889_vm5, %v20200_v57  ;;  %14628 = vmatprep.mubr.msk.bf16.mxu1 %vm4889_vm5, %v20200_v57 }
 0x51d   : > { %8928 = vmatmul.mubr.bf16.gmra.mrb[56].mxu0 %v20209_v55  ;;  %10213 = vmatmul.mubr.bf16.gmra.mrb[56].mxu1 %v20209_v55 }
 0x51e   : > { %14498 = vmatprep.mubr.msk.bf16.mxu0 %vm4889_vm5, %v20212_v61  ;;  %14629 = vmatprep.mubr.msk.bf16.mxu1 %vm4889_vm5, %v20212_v61 }
 0x525   : > { %8938 = vmatmul.mubr.bf16.gmra.mrb[60].mxu0 %v20221_v16  ;;  %10223 = vmatmul.mubr.bf16.gmra.mrb[60].mxu1 %v20221_v16 }
 0x526   : > { %14499 = vmatprep.mubr.msk.bf16.mxu0 %vm4889_vm5, %v20224_v40  ;;  %14630 = vmatprep.mubr.msk.bf16.mxu1 %vm4889_vm5, %v20224_v40 }
 0x52d   : > { %8948 = vmatmul.mubr.bf16.gmra.mrb[64].mxu0 %v20233_v15  ;;  %10233 = vmatmul.mubr.bf16.gmra.mrb[64].mxu1 %v20233_v15  ;;  %v16940_v15 = vld [vmem:[%s18605_s26 + $0x124] ss:$8 sps:$4 sm:$0xff]  }
 0x52e   : > { %14500 = vmatprep.mubr.msk.bf16.mxu0 %vm4889_vm5, %v20236_v32  ;;  %14631 = vmatprep.mubr.msk.bf16.mxu1 %vm4889_vm5, %v20236_v32 }
 0x535   : > { %8958 = vmatmul.mubr.bf16.gmra.mrb[68].mxu0 %v20245_v6  ;;  %10243 = vmatmul.mubr.bf16.gmra.mrb[68].mxu1 %v20245_v6 }
 0x536   : > { %14501 = vmatprep.mubr.msk.bf16.mxu0 %vm4889_vm5, %v20438_v39  ;;  %14632 = vmatprep.mubr.msk.bf16.mxu1 %vm4889_vm5, %v20438_v39  ;;  %v16975_v39 = vld [vmem:[%s22718_s3 + $0x460] ss:$8 sps:$4 sm:$0xff]  }
 0x53d   : > { %8968 = vmatmul.mubr.bf16.gmra.mrb[72].mxu0 %v20447_v38  ;;  %10253 = vmatmul.mubr.bf16.gmra.mrb[72].mxu1 %v20447_v38 }
 0x53e   : > { %14502 = vmatprep.mubr.msk.bf16.mxu0 %vm4889_vm5, %v20450_v22  ;;  %14633 = vmatprep.mubr.msk.bf16.mxu1 %vm4889_vm5, %v20450_v22 }
 0x540   : > { %v20987_v10 = vpop.f32.mrb[224].mxu0  ;;  %v20989_v3 = vpop.f32.mrb[224].mxu1 }
 0x541   : > { %v20993_v58 = vpop.f32.mrb[225].mxu0  ;;  %v20995_v24 = vpop.f32.mrb[225].mxu1 }
 0x542   : > { %v20999_v53 = vpop.f32.mrb[226].mxu0  ;;  %v21001_v57 = vpop.f32.mrb[226].mxu1 }
 0x543   : > { %v21005_v61 = vpop.f32.mrb[227].mxu0  ;;  %v21007_v16 = vpop.f32.mrb[227].mxu1 }
 0x545   : > { %8978 = vmatmul.mubr.bf16.gmra.mrb[76].mxu0 %v20459_v12  ;;  %10263 = vmatmul.mubr.bf16.gmra.mrb[76].mxu1 %v20459_v12 }
 0x546   : > { %14504 = vmatprep.mubr.msk.bf16.mxu0 %vm4889_vm5, %v16940_v15  ;;  %14635 = vmatprep.mubr.msk.bf16.mxu1 %vm4889_vm5, %v16940_v15  ;;  %v16953_v15 = vld [vmem:[%s22718_s3 + $0x410] ss:$8 sps:$4 sm:$0xff]  }
 0x548   : > { %v21016_v32 = vpop.f32.mrb[228].mxu0  ;;  %v21018_v6 = vpop.f32.mrb[228].mxu1 }
 0x549   : > { %v21022_v38 = vpop.f32.mrb[229].mxu0  ;;  %v21024_v22 = vpop.f32.mrb[229].mxu1 }
 0x54a   : > { %v21028_v29 = vpop.f32.mrb[230].mxu0  ;;  %v21030_v2 = vpop.f32.mrb[230].mxu1 }
 0x54b   : > { %v21034_v21 = vpop.f32.mrb[231].mxu0  ;;  %v21036_v5 = vpop.f32.mrb[231].mxu1 }
 0x54d   : > { %9021 = vmatmul.mubr.bf16.vlgmr.msra.gmra.mrb[24].mxu0 %v16941_v18  ;;  %10306 = vmatmul.mubr.bf16.vlgmr.msra.gmra.mrb[24].mxu1 %v16941_v18 }
 0x54e   : > { %9162 = vmatpush1.bf16.msra.mxu0 %v16942_v28  ;;  %10447 = vmatpush1.bf16.msra.mxu1 %v16943_v17  ;;  %v16954_v17 = vld [vmem:[%s22718_s3 + $0x154] ss:$8 sps:$4 sm:$0xff]  }
 0x54f   : > { %14505 = vmatprep.mubr.msk.bf16.mxu0 %vm4889_vm5, %v16944_v36  ;;  %14636 = vmatprep.mubr.msk.bf16.mxu1 %vm4889_vm5, %v16944_v36  ;;  %v16955_v36 = vld [vmem:[%s22718_s3 + $0x424] ss:$8 sps:$4 sm:$0xff]  }
 0x550   : > { %v21050_v50 = vpop.f32.mrb[232].mxu0  ;;  %v21052_v9 = vpop.f32.mrb[232].mxu1  ;;  %9163 = vmatprep.subr.bf16.mxu0 %v16945_v43  ;;  %10448 = vmatprep.subr.bf16.mxu1 %v16946_v52 }
 0x551   : > { %v21062_v37 = vpop.f32.mrb[233].mxu0  ;;  %v21064_v25 = vpop.f32.mrb[233].mxu1 }
 0x552   : > { %v21068_v20 = vpop.f32.mrb[234].mxu0  ;;  %v21070_v48 = vpop.f32.mrb[234].mxu1  ;;  %9164 = vmatpush1.bf16.msra.mxu0 %v16947_v54  ;;  %10449 = vmatpush1.bf16.msra.mxu1 %v16948_v45  ;;  %v16959_v45 = vld [vmem:[%s22718_s3 + $0x434] ss:$8 sps:$4 sm:$0xff]  }
 0x553   : > { %v21080_v46 = vpop.f32.mrb[235].mxu0  ;;  %v21082_v60 = vpop.f32.mrb[235].mxu1  ;;  %9165 = vmatprep.subr.bf16.mxu0 %v16949_v49  ;;  %10450 = vmatprep.subr.bf16.mxu1 %v16950_v1 }
 0x555   : > { %9031 = vmatmul.mubr.bf16.gmra.mrb[28].mxu0 %v23337_v19  ;;  %10316 = vmatmul.mubr.bf16.gmra.mrb[28].mxu1 %v23337_v19  ;;  %v16958_v19 = vld [vmem:[%s22718_s3 + $0x164] ss:$8 sps:$4 sm:$0xff]  }
 0x556   : > { %14506 = vmatprep.mubr.msk.bf16.mxu0 %vm4889_vm5, %v16951_v27  ;;  %14637 = vmatprep.mubr.msk.bf16.mxu1 %vm4889_vm5, %v16951_v27 }
 0x557   : > { %9166 = vmatpush1.bf16.msra.mxu0 %v16952_v11  ;;  %10451 = vmatpush1.bf16.msra.mxu1 %v16953_v15  ;;  %v16956_v15 = vld [vmem:[%s22718_s3 + $0x150] ss:$8 sps:$4 sm:$0xff]  }
 0x558   : > { %v21103_v18 = vpop.f32.mrb[236].mxu0  ;;  %v21105_v28 = vpop.f32.mrb[236].mxu1  ;;  %9167 = vmatprep.subr.bf16.mxu0 %v16954_v17  ;;  %10452 = vmatprep.subr.bf16.mxu1 %v16955_v36  ;;  %v16957_v17 = vld [vmem:[%s22718_s3 + $0x420] ss:$8 sps:$4 sm:$0xff]  }
 0x559   : > { %v21115_v52 = vpop.f32.mrb[237].mxu0  ;;  %v21117_v54 = vpop.f32.mrb[237].mxu1 }
 0x55a   : > { %v21121_v49 = vpop.f32.mrb[238].mxu0  ;;  %v21123_v1 = vpop.f32.mrb[238].mxu1 }
 0x55b   : > { %v21127_v27 = vpop.f32.mrb[239].mxu0  ;;  %v21129_v11 = vpop.f32.mrb[239].mxu1  ;;  %9168 = vmatpush1.bf16.msra.mxu0 %v16956_v15  ;;  %10453 = vmatpush1.bf16.msra.mxu1 %v16957_v17  ;;  %v16960_v15 = vld [vmem:[%s18605_s26 + $0x154] ss:$8 sps:$4 sm:$0xff]   ;;  %v16961_v17 = vld [vmem:[%s22718_s3 + $0x160] ss:$8 sps:$4 sm:$0xff]  }
 0x55c   : > { %9169 = vmatprep.subr.bf16.mxu0 %v16958_v19  ;;  %10454 = vmatprep.subr.bf16.mxu1 %v16959_v45  ;;  %v16962_v19 = vld [vmem:[%s22718_s3 + $0x430] ss:$8 sps:$4 sm:$0xff]  }
 0x55d   : > { %9041 = vmatmul.mubr.bf16.gmra.mrb[32].mxu0 %v19654_v7  ;;  %10326 = vmatmul.mubr.bf16.gmra.mrb[32].mxu1 %v19654_v7  ;;  %v16963_v7 = vld [vmem:[%s22718_s3 + $0x174] ss:$8 sps:$4 sm:$0xff]  }
 0x55e   : > { %14507 = vmatprep.mubr.msk.bf16.mxu0 %vm4889_vm5, %v16960_v15  ;;  %14638 = vmatprep.mubr.msk.bf16.mxu1 %vm4889_vm5, %v16960_v15  ;;  %v16964_v15 = vld [vmem:[%s22718_s3 + $0x444] ss:$8 sps:$4 sm:$0xff]  }
 0x55f   : > { %9170 = vmatpush1.bf16.msra.mxu0 %v16961_v17  ;;  %10455 = vmatpush1.bf16.msra.mxu1 %v16962_v19  ;;  %v16965_v17 = vld [vmem:[%s22718_s3 + $0x170] ss:$8 sps:$4 sm:$0xff]  }
 0x560   : > { %v21156_v45 = vpop.f32.mrb[240].mxu0  ;;  %v21158_v36 = vpop.f32.mrb[240].mxu1  ;;  %9171 = vmatprep.subr.bf16.mxu0 %v16963_v7  ;;  %10456 = vmatprep.subr.bf16.mxu1 %v16964_v15  ;;  %v16967_v7 = vld [vmem:[%s22718_s3 + $0x184] ss:$8 sps:$4 sm:$0xff]  }
 0x561   : > { %v21168_v43 = vpop.f32.mrb[241].mxu0  ;;  %v21170_v19 = vpop.f32.mrb[241].mxu1 }
 0x562   : > { %v21174_v26 = vpop.f32.mrb[242].mxu0  ;;  %v21176_v42 = vpop.f32.mrb[242].mxu1 }
 0x563   : > { %v21180_v44 = vpop.f32.mrb[243].mxu0  ;;  %v21182_v15 = vpop.f32.mrb[243].mxu1  ;;  %9172 = vmatpush1.bf16.msra.mxu0 %v16965_v17  ;;  %10457 = vmatpush1.bf16.msra.mxu1 %v16966_v56  ;;  %v16969_v17 = vld [vmem:[%s18605_s26 + $0x164] ss:$8 sps:$4 sm:$0xff]   ;;  %v16970_v56 = vld [vmem:[%s22718_s3 + $0x180] ss:$8 sps:$4 sm:$0xff]  }
 0x564   : > { %9173 = vmatprep.subr.bf16.mxu0 %v16967_v7  ;;  %10458 = vmatprep.subr.bf16.mxu1 %v16968_v33  ;;  %v16971_v7 = vld [vmem:[%s22718_s3 + $0x450] ss:$8 sps:$4 sm:$0xff]  }
 0x565   : > { %9051 = vmatmul.mubr.bf16.gmra.mrb[36].mxu0 %v19685_v51  ;;  %10336 = vmatmul.mubr.bf16.gmra.mrb[36].mxu1 %v19685_v51  ;;  %v16972_v51 = vld [vmem:[%s22718_s3 + $0x194] ss:$8 sps:$4 sm:$0xff]  }
 0x566   : > { %14508 = vmatprep.mubr.msk.bf16.mxu0 %vm4889_vm5, %v16969_v17  ;;  %14639 = vmatprep.mubr.msk.bf16.mxu1 %vm4889_vm5, %v16969_v17  ;;  %v16973_v17 = vld [vmem:[%s22718_s3 + $0x464] ss:$8 sps:$4 sm:$0xff]  }
 0x567   : > { %9174 = vmatpush1.bf16.msra.mxu0 %v16970_v56  ;;  %10459 = vmatpush1.bf16.msra.mxu1 %v16971_v7  ;;  %v16974_v56 = vld [vmem:[%s22718_s3 + $0x190] ss:$8 sps:$4 sm:$0xff]  }
 0x568   : > { %v21209_v33 = vpop.f32.mrb[244].mxu0  ;;  %v21211_v31 = vpop.f32.mrb[244].mxu1  ;;  %9175 = vmatprep.subr.bf16.mxu0 %v16972_v51  ;;  %10460 = vmatprep.subr.bf16.mxu1 %v16973_v17  ;;  %v16976_v51 = vld [vmem:[%s22718_s3 + $0x1a4] ss:$8 sps:$4 sm:$0x3f]  }
 0x569   : > { %v21221_v12 = vpop.f32.mrb[245].mxu0  ;;  %v21223_v7 = vpop.f32.mrb[245].mxu1 }
 0x56a   : > { %v21227_v40 = vpop.f32.mrb[246].mxu0  ;;  %v21229_v55 = vpop.f32.mrb[246].mxu1 }
 0x56b   : > { %23338 = vst [vmem:[#allocation7_spill] sm:$0xff] %v21227_v40  ;;  %23339 = vst [vmem:[#allocation8_spill] sm:$0xff] %v21229_v55  ;;  %v21233_v35 = vpop.f32.mrb[247].mxu0  ;;  %v21235_v17 = vpop.f32.mrb[247].mxu1  ;;  %9176 = vmatpush1.bf16.msra.mxu0 %v16974_v56  ;;  %10461 = vmatpush1.bf16.msra.mxu1 %v16975_v39  ;;  %v16978_v39 = vld [vmem:[%s18605_s26 + $0x174] ss:$8 sps:$4 sm:$0xff]  }
 0x56c   : > { %23340 = vst [vmem:[#allocation9_spill] sm:$0xff] %v21233_v35  ;;  %23341 = vst [vmem:[#allocation10_spill] sm:$0xff] %v21235_v17  ;;  %14518 = vmatprep.subr.msk.bf16.mxu0 %vm4932_vm4, %v16976_v51  ;;  %v16977_v55 = vld [vmem:[%s22718_s3 + $0x474] ss:$8 sps:$4 sm:$0x3f]  }
 0x56d   : > { %14649 = vmatprep.subr.msk.bf16.mxu1 %vm4932_vm4, %v16977_v55  ;;  %9061 = vmatmul.mubr.bf16.gmra.mrb[40].mxu0 %v19716_v63  ;;  %v16979_v55 = vld [vmem:[%s22718_s3 + $0x1b4] ss:$8 sps:$4 sm:$0xff]  }
 0x56e   : > { %10346 = vmatmul.mubr.bf16.gmra.mrb[40].mxu1 %v19716_v63  ;;  %14509 = vmatprep.mubr.msk.bf16.mxu0 %vm4889_vm5, %v16978_v39  ;;  %v16980_v63 = vld [vmem:[%s22718_s3 + $0x484] ss:$8 sps:$4 sm:$0xff]  }
 0x56f   : > { %14640 = vmatprep.mubr.msk.bf16.mxu1 %vm4889_vm5, %v16978_v39  ;;  %9178 = vmatpush1.bf16.msra.mxu0 %v20128_v23 }
 0x570   : > { %10463 = vmatpush1.bf16.msra.mxu1 %v20132_v14  ;;  %v21260_v56 = vpop.f32.mrb[248].mxu0  ;;  %v21262_v51 = vpop.f32.mrb[248].mxu1  ;;  %9390 = vmatprep.subr.bf16.mxu0 %v16979_v55 }
 0x571   : > { %23342 = vst [vmem:[#allocation11_spill] sm:$0xff] %v21260_v56  ;;  %23343 = vst [vmem:[#allocation12_spill] sm:$0xff] %v21262_v51  ;;  %10675 = vmatprep.subr.bf16.mxu1 %v16980_v63  ;;  %v21272_v39 = vpop.f32.mrb[249].mxu0  ;;  %v21274_v14 = vpop.f32.mrb[249].mxu1  ;;  %v16981_v51 = vld [vmem:[%s18605_s26 + $0x184] ss:$8 sps:$4 sm:$0xff]  }
 0x572   : > { %23344 = vst [vmem:[#allocation13_spill] sm:$0xff] %v21272_v39  ;;  %23345 = vst [vmem:[#allocation14_spill] sm:$0xff] %v21274_v14  ;;  %v21278_v17 = vpop.f32.mrb[250].mxu0  ;;  %v21280_v35 = vpop.f32.mrb[250].mxu1 }
 0x573   : > { %23346 = vst [vmem:[#allocation15_spill] sm:$0xff] %v21278_v17  ;;  %23347 = vst [vmem:[#allocation16_spill] sm:$0xff] %v21280_v35  ;;  %v21284_v40 = vpop.f32.mrb[251].mxu0  ;;  %v21286_v63 = vpop.f32.mrb[251].mxu1 }
 0x574   : > { %23348 = vst [vmem:[#allocation17_spill] sm:$0xff] %v21284_v40  ;;  %23349 = vst [vmem:[#allocation18_spill] sm:$0xff] %v21286_v63 }
 0x575   : > { %9071 = vmatmul.mubr.bf16.gmra.mrb[44].mxu0 %v19747_v8 }
 0x576   : > { %10356 = vmatmul.mubr.bf16.gmra.mrb[44].mxu1 %v19747_v8  ;;  %14510 = vmatprep.mubr.msk.bf16.mxu0 %vm4889_vm5, %v16981_v51 }
 0x577   : > { %14641 = vmatprep.mubr.msk.bf16.mxu1 %vm4889_vm5, %v16981_v51 }
 0x578   : > { %v21295_v47 = vpop.f32.mrb[252].mxu0  ;;  %v21297_v55 = vpop.f32.mrb[252].mxu1 }
 0x579   : > { %23350 = vst [vmem:[#allocation19_spill] sm:$0xff] %v21295_v47  ;;  %23351 = vst [vmem:[#allocation20_spill] sm:$0xff] %v21297_v55  ;;  %v21301_v17 = vpop.f32.mrb[253].mxu0  ;;  %v21303_v23 = vpop.f32.mrb[253].mxu1  ;;  %v16982_v55 = vld [vmem:[%s18605_s26 + $0x194] ss:$8 sps:$4 sm:$0xff]   ;;  %v23411_v47 = vmax.f32 %v21005_v61, %v21007_v16  ;;  %v23412_v61 = vmax.f32 %v21016_v32, %v21018_v6 }
 0x57a   : > { %23352 = vst [vmem:[#allocation21_spill] sm:$0xff] %v21301_v17  ;;  %23353 = vst [vmem:[#allocation22_spill] sm:$0xff] %v21303_v23  ;;  %v21307_v63 = vpop.f32.mrb[254].mxu0  ;;  %v21309_v40 = vpop.f32.mrb[254].mxu1 }
 0x57b   : > { %23354 = vst [vmem:[#allocation23_spill] sm:$0xff] %v21307_v63  ;;  %23355 = vst [vmem:[#allocation24_spill] sm:$0xff] %v21309_v40  ;;  %v21313_v14 = vpop.f32.mrb[255].mxu0  ;;  %v21315_v39 = vpop.f32.mrb[255].mxu1 }
 0x57c   : > { %23356 = vst [vmem:[#allocation25_spill] sm:$0xff] %v21313_v14  ;;  %23357 = vst [vmem:[#allocation26_spill] sm:$0xff] %v21315_v39 }
 0x57d   : > { %9081 = vmatmul.mubr.bf16.gmra.mrb[48].mxu0 %v19778_v41 }
 0x57e   : > { %10366 = vmatmul.mubr.bf16.gmra.mrb[48].mxu1 %v19778_v41  ;;  %14511 = vmatprep.mubr.msk.bf16.mxu0 %vm4889_vm5, %v16982_v55  ;;  %v16983_v41 = vld [vmem:[%s18605_s26 + $0x1a4] ss:$8 sps:$4 sm:$0xff]  }
 0x57f   : > { %14642 = vmatprep.mubr.msk.bf16.mxu1 %vm4889_vm5, %v16982_v55 }
 0x580   : > { %v21324_v8 = vpop.f32.mrb[0].mxu0  ;;  %v21326_v51 = vpop.f32.mrb[0].mxu1 }
 0x581   : > { %23358 = vst [vmem:[#allocation27_spill] sm:$0xff] %v21324_v8  ;;  %23359 = vst [vmem:[#allocation28_spill] sm:$0xff] %v21326_v51  ;;  %v21330_v63 = vpop.f32.mrb[1].mxu0  ;;  %v21332_v35 = vpop.f32.mrb[1].mxu1 }
 0x582   : > { %23360 = vst [vmem:[#allocation29_spill] sm:$0xff] %v21330_v63  ;;  %23361 = vst [vmem:[#allocation30_spill] sm:$0xff] %v21332_v35  ;;  %v21336_v39 = vpop.f32.mrb[2].mxu0  ;;  %v21338_v14 = vpop.f32.mrb[2].mxu1 }
 0x583   : > { %23362 = vst [vmem:[#allocation31_spill] sm:$0xff] %v21336_v39  ;;  %23363 = vst [vmem:[#allocation32_spill] sm:$0xff] %v21338_v14  ;;  %v21342_v23 = vpop.f32.mrb[3].mxu0  ;;  %v21344_v17 = vpop.f32.mrb[3].mxu1 }
 0x584   : > { %23364 = vst [vmem:[#allocation33_spill] sm:$0xff] %v21342_v23  ;;  %23365 = vst [vmem:[#allocation34_spill] sm:$0xff] %v21344_v17 }
 0x585   : > { %9091 = vmatmul.mubr.bf16.gmra.mrb[52].mxu0 %v19809_v0 }
 0x586   : > { %10376 = vmatmul.mubr.bf16.gmra.mrb[52].mxu1 %v19809_v0  ;;  %14512 = vmatprep.mubr.msk.bf16.mxu0 %vm4889_vm5, %v16983_v41 }
 0x587   : > { %14643 = vmatprep.mubr.msk.bf16.mxu1 %vm4889_vm5, %v16983_v41 }
 0x588   : > { %v21353_v35 = vpop.f32.mrb[4].mxu0  ;;  %v21355_v55 = vpop.f32.mrb[4].mxu1 }
 0x589   : > { %23366 = vst [vmem:[#allocation35_spill] sm:$0xff] %v21353_v35  ;;  %23367 = vst [vmem:[#allocation36_spill] sm:$0xff] %v21355_v55  ;;  %v21359_v39 = vpop.f32.mrb[5].mxu0  ;;  %v21361_v40 = vpop.f32.mrb[5].mxu1  ;;  %v16984_v55 = vld [vmem:[%s18605_s26 + $0x1a0] ss:$8 sps:$4 sm:$0xff]  }
 0x58a   : > { %23368 = vst [vmem:[#allocation37_spill] sm:$0xff] %v21359_v39  ;;  %23369 = vst [vmem:[#allocation38_spill] sm:$0xff] %v21361_v40  ;;  %v21365_v17 = vpop.f32.mrb[6].mxu0  ;;  %v21367_v23 = vpop.f32.mrb[6].mxu1  ;;  %v16985_v35 = vld [vmem:[%s18605_s26 + $0x1b4] ss:$8 sps:$4 sm:$0xff]  }
 0x58b   : > { %23370 = vst [vmem:[#allocation39_spill] sm:$0xff] %v21365_v17  ;;  %23371 = vst [vmem:[#allocation40_spill] sm:$0xff] %v21367_v23  ;;  %v21371_v63 = vpop.f32.mrb[7].mxu0  ;;  %v21373_v51 = vpop.f32.mrb[7].mxu1 }
 0x58c   : > { %23372 = vst [vmem:[#allocation41_spill] sm:$0xff] %v21371_v63  ;;  %23373 = vst [vmem:[#allocation42_spill] sm:$0xff] %v21373_v51 }
 0x58d   : > { %9101 = vmatmul.mubr.bf16.gmra.mrb[56].mxu0 %v16984_v55 }
 0x58e   : > { %10386 = vmatmul.mubr.bf16.gmra.mrb[56].mxu1 %v16984_v55  ;;  %14513 = vmatprep.mubr.msk.bf16.mxu0 %vm4889_vm5, %v16985_v35 }
 0x58f   : > { %14644 = vmatprep.mubr.msk.bf16.mxu1 %vm4889_vm5, %v16985_v35 }
 0x590   : > { %v21381_v0 = vpop.f32.mrb[8].mxu0  ;;  %v21383_v41 = vpop.f32.mrb[8].mxu1 }
 0x591   : > { %23374 = vst [vmem:[#allocation43_spill] sm:$0xff] %v21381_v0  ;;  %23375 = vst [vmem:[#allocation44_spill] sm:$0xff] %v21383_v41  ;;  %v21387_v17 = vpop.f32.mrb[9].mxu0  ;;  %v21389_v14 = vpop.f32.mrb[9].mxu1  ;;  %v16986_v41 = vld [vmem:[%s18605_s26 + $0x1b0] ss:$8 sps:$4 sm:$0xff]  }
 0x592   : > { %23376 = vst [vmem:[#allocation45_spill] sm:$0xff] %v21387_v17  ;;  %23377 = vst [vmem:[#allocation46_spill] sm:$0xff] %v21389_v14  ;;  %v21393_v51 = vpop.f32.mrb[10].mxu0  ;;  %v21395_v63 = vpop.f32.mrb[10].mxu1  ;;  %v16987_v0 = vld [vmem:[%s18605_s26 + $0x1c4] ss:$8 sps:$4 sm:$0xff]  }
 0x593   : > { %23378 = vst [vmem:[#allocation47_spill] sm:$0xff] %v21393_v51  ;;  %23379 = vst [vmem:[#allocation48_spill] sm:$0xff] %v21395_v63  ;;  %v21399_v40 = vpop.f32.mrb[11].mxu0  ;;  %v21401_v39 = vpop.f32.mrb[11].mxu1 }
 0x594   : > { %23380 = vst [vmem:[#allocation49_spill] sm:$0xff] %v21399_v40  ;;  %23381 = vst [vmem:[#allocation50_spill] sm:$0xff] %v21401_v39 }
 0x595   : > { %9111 = vmatmul.mubr.bf16.gmra.mrb[60].mxu0 %v16986_v41 }
 0x596   : > { %10396 = vmatmul.mubr.bf16.gmra.mrb[60].mxu1 %v16986_v41  ;;  %14514 = vmatprep.mubr.msk.bf16.mxu0 %vm4889_vm5, %v16987_v0 }
 0x597   : > { %14645 = vmatprep.mubr.msk.bf16.mxu1 %vm4889_vm5, %v16987_v0 }
 0x598   : > { %v21409_v55 = vpop.f32.mrb[12].mxu0  ;;  %v21411_v35 = vpop.f32.mrb[12].mxu1 }
 0x599   : > { %23382 = vst [vmem:[#allocation51_spill] sm:$0xff] %v21409_v55  ;;  %23383 = vst [vmem:[#allocation52_spill] sm:$0xff] %v21411_v35  ;;  %v21415_v51 = vpop.f32.mrb[13].mxu0  ;;  %v21417_v23 = vpop.f32.mrb[13].mxu1  ;;  %v16988_v35 = vld [vmem:[%s18605_s26 + $0x1c0] ss:$8 sps:$4 sm:$0xff]  }
 0x59a   : > { %23384 = vst [vmem:[#allocation53_spill] sm:$0xff] %v21415_v51  ;;  %23385 = vst [vmem:[#allocation54_spill] sm:$0xff] %v21417_v23  ;;  %v21421_v39 = vpop.f32.mrb[14].mxu0  ;;  %v21423_v40 = vpop.f32.mrb[14].mxu1  ;;  %v16989_v55 = vld [vmem:[%s18605_s26 + $0x1d4] ss:$8 sps:$4 sm:$0xff]  }
 0x59b   : > { %23386 = vst [vmem:[#allocation55_spill] sm:$0xff] %v21421_v39  ;;  %23387 = vst [vmem:[#allocation56_spill] sm:$0xff] %v21423_v40  ;;  %v21427_v14 = vpop.f32.mrb[15].mxu0  ;;  %v21429_v17 = vpop.f32.mrb[15].mxu1 }
 0x59c   : > { %23388 = vst [vmem:[#allocation57_spill] sm:$0xff] %v21427_v14  ;;  %23389 = vst [vmem:[#allocation58_spill] sm:$0xff] %v21429_v17 }
 0x59d   : > { %9121 = vmatmul.mubr.bf16.gmra.mrb[64].mxu0 %v16988_v35 }
 0x59e   : > { %10406 = vmatmul.mubr.bf16.gmra.mrb[64].mxu1 %v16988_v35  ;;  %14515 = vmatprep.mubr.msk.bf16.mxu0 %vm4889_vm5, %v16989_v55 }
 0x59f   : > { %14646 = vmatprep.mubr.msk.bf16.mxu1 %vm4889_vm5, %v16989_v55 }
 0x5a0   : > { %v21437_v41 = vpop.f32.mrb[16].mxu0  ;;  %v21439_v0 = vpop.f32.mrb[16].mxu1 }
 0x5a1   : > { %23390 = vst [vmem:[#allocation59_spill] sm:$0xff] %v21437_v41  ;;  %23391 = vst [vmem:[#allocation60_spill] sm:$0xff] %v21439_v0  ;;  %v21443_v39 = vpop.f32.mrb[17].mxu0  ;;  %v21445_v63 = vpop.f32.mrb[17].mxu1  ;;  %v16990_v0 = vld [vmem:[%s18605_s26 + $0x1d0] ss:$8 sps:$4 sm:$0xff]  }
 0x5a2   : > { %23392 = vst [vmem:[#allocation61_spill] sm:$0xff] %v21443_v39  ;;  %23393 = vst [vmem:[#allocation62_spill] sm:$0xff] %v21445_v63  ;;  %v21449_v17 = vpop.f32.mrb[18].mxu0  ;;  %v21451_v14 = vpop.f32.mrb[18].mxu1  ;;  %v16991_v41 = vld [vmem:[%s18605_s26 + $0x1e4] ss:$8 sps:$4 sm:$0xff]  }
 0x5a3   : > { %23394 = vst [vmem:[#allocation63_spill] sm:$0xff] %v21449_v17  ;;  %23395 = vst [vmem:[#allocation64_spill] sm:$0xff] %v21451_v14  ;;  %v21455_v23 = vpop.f32.mrb[19].mxu0  ;;  %v21457_v51 = vpop.f32.mrb[19].mxu1 }
 0x5a4   : > { %23396 = vst [vmem:[#allocation65_spill] sm:$0xff] %v21455_v23  ;;  %23397 = vst [vmem:[#allocation68_spill] sm:$0xff] %v21457_v51  ;;  %v16995_v23 = vld [vmem:[%s18605_s26 + $0x144] ss:$8 sps:$4 sm:$0xff]  }
 0x5a5   : > { %9131 = vmatmul.mubr.bf16.gmra.mrb[68].mxu0 %v16990_v0 }
 0x5a6   : > { %10416 = vmatmul.mubr.bf16.gmra.mrb[68].mxu1 %v16990_v0  ;;  %14516 = vmatprep.mubr.msk.bf16.mxu0 %vm4889_vm5, %v16991_v41  ;;  %v16993_v0 = vld [vmem:[%s18605_s26 + $0x1f4] ss:$8 sps:$4 sm:$0xff]  }
 0x5a7   : > { %14647 = vmatprep.mubr.msk.bf16.mxu1 %vm4889_vm5, %v16991_v41 }
 0x5a8   : > { %v21465_v35 = vpop.f32.mrb[20].mxu0  ;;  %v21467_v55 = vpop.f32.mrb[20].mxu1 }
 0x5a9   : > { %23398 = vst [vmem:[#allocation69_spill] sm:$0xff] %v21465_v35  ;;  %23399 = vst [vmem:[#allocation70_spill] sm:$0xff] %v21467_v55  ;;  %v21471_v17 = vpop.f32.mrb[21].mxu0  ;;  %v21473_v40 = vpop.f32.mrb[21].mxu1  ;;  %v16992_v35 = vld [vmem:[%s18605_s26 + $0x1e0] ss:$8 sps:$4 sm:$0xff]  }
 0x5aa   : > { %23400 = vst [vmem:[#allocation71_spill] sm:$0xff] %v21471_v17  ;;  %23401 = vst [vmem:[#allocation73_spill] sm:$0xff] %v21473_v40  ;;  %v21477_v51 = vpop.f32.mrb[22].mxu0  ;;  %v21479_v41 = vpop.f32.mrb[22].mxu1  ;;  %v16994_v40 = vld [vmem:[%s18605_s26 + $0x1f0] ss:$8 sps:$4 sm:$0xff]  }
 0x5ab   : > { %23402 = vst [vmem:[#allocation74_spill] sm:$0xff] %v21477_v51  ;;  %23403 = vst [vmem:[#allocation75_spill] sm:$0xff] %v21479_v41  ;;  %v21483_v63 = vpop.f32.mrb[23].mxu0  ;;  %v21485_v14 = vpop.f32.mrb[23].mxu1  ;;  %v16996_v41 = vld [vmem:[%s18605_s26 + $0x140] ss:$8 sps:$4 sm:$0xff]  }
 0x5ac   : > { %23404 = vst [vmem:[#allocation76_spill] sm:$0xff] %v21483_v63  ;;  %23405 = vst [vmem:[#allocation4_spill] sm:$0xff] %v21485_v14  ;;  %v16997_v55 = vld [vmem:[%s18605_s26 + $0x154] ss:$8 sps:$4 sm:$0xff]  }
 0x5ad   : > { %9141 = vmatmul.mubr.bf16.gmra.mrb[72].mxu0 %v16992_v35 }
 0x5ae   : > { %10426 = vmatmul.mubr.bf16.gmra.mrb[72].mxu1 %v16992_v35  ;;  %14517 = vmatprep.mubr.msk.bf16.mxu0 %vm4889_vm5, %v16993_v0  ;;  %v16998_v35 = vld [vmem:[%s22718_s3 + $0x1b0] ss:$8 sps:$4 sm:$0xff]  }
 0x5af   : > { %14648 = vmatprep.mubr.msk.bf16.mxu1 %vm4889_vm5, %v16993_v0  ;;  %v17001_v0 = vld [vmem:[%s22718_s3 + $0x494] ss:$8 sps:$4 sm:$0xff]  }
 0x5b5   : > { %9151 = vmatmul.mubr.bf16.gmra.mrb[76].mxu0 %v16994_v40 }
 0x5b6   : > { %10436 = vmatmul.mubr.bf16.gmra.mrb[76].mxu1 %v16994_v40  ;;  %14519 = vmatprep.mubr.msk.bf16.mxu0 %vm4889_vm5, %v16995_v23  ;;  %v16999_v40 = vld [vmem:[%s22718_s3 + $0x480] ss:$8 sps:$4 sm:$0xff]  }
 0x5b7   : > { %14650 = vmatprep.mubr.msk.bf16.mxu1 %vm4889_vm5, %v16995_v23  ;;  %v17000_v23 = vld [vmem:[%s22718_s3 + $0x1c4] ss:$8 sps:$4 sm:$0xff]  }
 0x5bd   : > { %9194 = vmatmul.mubr.bf16.vlgmr.msra.gmra.mrb[24].mxu0 %v16996_v41 }
 0x5be   : > { %10479 = vmatmul.mubr.bf16.vlgmr.msra.gmra.mrb[24].mxu1 %v16996_v41  ;;  %14520 = vmatprep.mubr.msk.bf16.mxu0 %vm4889_vm5, %v16997_v55  ;;  %v17003_v41 = vld [vmem:[%s22718_s3 + $0x490] ss:$8 sps:$4 sm:$0xff]  }
 0x5bf   : > { %9391 = vmatpush1.bf16.msra.mxu0 %v16998_v35  ;;  %14651 = vmatprep.mubr.msk.bf16.mxu1 %vm4889_vm5, %v16997_v55  ;;  %v17002_v55 = vld [vmem:[%s22718_s3 + $0x1c0] ss:$8 sps:$4 sm:$0xff]   ;;  %v17004_v35 = vld [vmem:[%s22718_s3 + $0x1d4] ss:$8 sps:$4 sm:$0xff]  }
 0x5c0   : > { %10676 = vmatpush1.bf16.msra.mxu1 %v16999_v40  ;;  %9392 = vmatprep.subr.bf16.mxu0 %v17000_v23  ;;  %v17005_v40 = vld [vmem:[%s22718_s3 + $0x4a4] ss:$8 sps:$4 sm:$0xff]   ;;  %v17006_v23 = vld [vmem:[%s18605_s26 + $0x150] ss:$8 sps:$4 sm:$0xff]  }
 0x5c1   : > { %10677 = vmatprep.subr.bf16.mxu1 %v17001_v0  ;;  %v17007_v0 = vld [vmem:[%s18605_s26 + $0x164] ss:$8 sps:$4 sm:$0xff]  }
 0x5c3   : > { %9393 = vmatpush1.bf16.msra.mxu0 %v17002_v55  ;;  %v17008_v55 = vld [vmem:[%s22718_s3 + $0x1d0] ss:$8 sps:$4 sm:$0xff]  }
 0x5c4   : > { %10678 = vmatpush1.bf16.msra.mxu1 %v17003_v41  ;;  %9394 = vmatprep.subr.bf16.mxu0 %v17004_v35  ;;  %v17009_v41 = vld [vmem:[%s22718_s3 + $0x4a0] ss:$8 sps:$4 sm:$0xff]   ;;  %v17010_v35 = vld [vmem:[%s22718_s3 + $0x1e4] ss:$8 sps:$4 sm:$0xff]  }
 0x5c5   : > { %10679 = vmatprep.subr.bf16.mxu1 %v17005_v40  ;;  %9204 = vmatmul.mubr.bf16.gmra.mrb[28].mxu0 %v17006_v23  ;;  %v17011_v40 = vld [vmem:[%s22718_s3 + $0x4b4] ss:$8 sps:$4 sm:$0xff]  }
 0x5c6   : > { %10489 = vmatmul.mubr.bf16.gmra.mrb[28].mxu1 %v17006_v23  ;;  %14521 = vmatprep.mubr.msk.bf16.mxu0 %vm4889_vm5, %v17007_v0  ;;  %v17012_v23 = vld [vmem:[%s22718_s3 + $0x1e0] ss:$8 sps:$4 sm:$0xff]  }
 0x5c7   : > { %14652 = vmatprep.mubr.msk.bf16.mxu1 %vm4889_vm5, %v17007_v0  ;;  %9395 = vmatpush1.bf16.msra.mxu0 %v17008_v55  ;;  %v17013_v0 = vld [vmem:[%s22718_s3 + $0x4b0] ss:$8 sps:$4 sm:$0xff]   ;;  %v17014_v55 = vld [vmem:[%s22718_s3 + $0x1f4] ss:$8 sps:$4 sm:$0xff]  }
 0x5c8   : > { %10680 = vmatpush1.bf16.msra.mxu1 %v17009_v41  ;;  %9396 = vmatprep.subr.bf16.mxu0 %v17010_v35  ;;  %v17015_v41 = vld [vmem:[%s22718_s3 + $0x4c4] ss:$8 sps:$4 sm:$0xff]   ;;  %v17016_v35 = vld [vmem:[%s18605_s26 + $0x160] ss:$8 sps:$4 sm:$0xff]  }
 0x5c9   : > { %10681 = vmatprep.subr.bf16.mxu1 %v17011_v40  ;;  %v17017_v40 = vld [vmem:[%s18605_s26 + $0x174] ss:$8 sps:$4 sm:$0xff]  }
 0x5cb   : > { %9397 = vmatpush1.bf16.msra.mxu0 %v17012_v23  ;;  %v17018_v23 = vld [vmem:[%s22718_s3 + $0x1f0] ss:$8 sps:$4 sm:$0xff]  }
 0x5cc   : > { %10682 = vmatpush1.bf16.msra.mxu1 %v17013_v0  ;;  %9398 = vmatprep.subr.bf16.mxu0 %v17014_v55  ;;  %v17019_v0 = vld [vmem:[%s22718_s3 + $0x4c0] ss:$8 sps:$4 sm:$0xff]   ;;  %v17020_v55 = vld [vmem:[%s22718_s3 + $0x204] ss:$8 sps:$4 sm:$0xff]  }
 0x5cd   : > { %10683 = vmatprep.subr.bf16.mxu1 %v17015_v41  ;;  %9214 = vmatmul.mubr.bf16.gmra.mrb[32].mxu0 %v17016_v35  ;;  %v17021_v41 = vld [vmem:[%s22718_s3 + $0x4d4] ss:$8 sps:$4 sm:$0xff]  }
 0x5ce   : > { %10499 = vmatmul.mubr.bf16.gmra.mrb[32].mxu1 %v17016_v35  ;;  %14522 = vmatprep.mubr.msk.bf16.mxu0 %vm4889_vm5, %v17017_v40  ;;  %v17022_v35 = vld [vmem:[%s22718_s3 + $0x200] ss:$8 sps:$4 sm:$0xff]  }
 0x5cf   : > { %14653 = vmatprep.mubr.msk.bf16.mxu1 %vm4889_vm5, %v17017_v40  ;;  %9399 = vmatpush1.bf16.msra.mxu0 %v17018_v23  ;;  %v17023_v40 = vld [vmem:[%s22718_s3 + $0x4d0] ss:$8 sps:$4 sm:$0xff]   ;;  %v17024_v23 = vld [vmem:[%s22718_s3 + $0x214] ss:$8 sps:$4 sm:$0xff]  }
 0x5d0   : > { %10684 = vmatpush1.bf16.msra.mxu1 %v17019_v0  ;;  %9400 = vmatprep.subr.bf16.mxu0 %v17020_v55  ;;  %v17025_v0 = vld [vmem:[%s22718_s3 + $0x4e4] ss:$8 sps:$4 sm:$0xff]   ;;  %v17026_v55 = vld [vmem:[%s18605_s26 + $0x170] ss:$8 sps:$4 sm:$0xff]  }
 0x5d1   : > { %10685 = vmatprep.subr.bf16.mxu1 %v17021_v41  ;;  %v17027_v41 = vld [vmem:[%s18605_s26 + $0x184] ss:$8 sps:$4 sm:$0xff]  }
 0x5d3   : > { %9401 = vmatpush1.bf16.msra.mxu0 %v17022_v35  ;;  %v17028_v35 = vld [vmem:[%s22718_s3 + $0x210] ss:$8 sps:$4 sm:$0xff]  }
 0x5d4   : > { %10686 = vmatpush1.bf16.msra.mxu1 %v17023_v40  ;;  %9402 = vmatprep.subr.bf16.mxu0 %v17024_v23  ;;  %v17029_v40 = vld [vmem:[%s22718_s3 + $0x4e0] ss:$8 sps:$4 sm:$0xff]   ;;  %v17030_v23 = vld [vmem:[%s22718_s3 + $0x224] ss:$8 sps:$4 sm:$0xff]  }
 0x5d5   : > { %10687 = vmatprep.subr.bf16.mxu1 %v17025_v0  ;;  %9224 = vmatmul.mubr.bf16.gmra.mrb[36].mxu0 %v17026_v55  ;;  %v17031_v0 = vld [vmem:[%s22718_s3 + $0x4f4] ss:$8 sps:$4 sm:$0xff]  }
 0x5d6   : > { %10509 = vmatmul.mubr.bf16.gmra.mrb[36].mxu1 %v17026_v55  ;;  %14523 = vmatprep.mubr.msk.bf16.mxu0 %vm4889_vm5, %v17027_v41  ;;  %v17032_v55 = vld [vmem:[%s22718_s3 + $0x220] ss:$8 sps:$4 sm:$0xff]  }
 0x5d7   : > { %14654 = vmatprep.mubr.msk.bf16.mxu1 %vm4889_vm5, %v17027_v41  ;;  %9403 = vmatpush1.bf16.msra.mxu0 %v17028_v35  ;;  %v17033_v41 = vld [vmem:[%s22718_s3 + $0x4f0] ss:$8 sps:$4 sm:$0xff]   ;;  %v17034_v35 = vld [vmem:[%s22718_s3 + $0x234] ss:$8 sps:$4 sm:$0x3f]  }
 0x5d8   : > { %10688 = vmatpush1.bf16.msra.mxu1 %v17029_v40  ;;  %9404 = vmatprep.subr.bf16.mxu0 %v17030_v23  ;;  %v17035_v40 = vld [vmem:[%s22718_s3 + $0x504] ss:$8 sps:$4 sm:$0x3f]   ;;  %v17036_v23 = vld [vmem:[%s18605_s26 + $0x180] ss:$8 sps:$4 sm:$0xff]  }
 0x5d9   : > { %10689 = vmatprep.subr.bf16.mxu1 %v17031_v0  ;;  %v17037_v0 = vld [vmem:[%s18605_s26 + $0x194] ss:$8 sps:$4 sm:$0xff]  }
 0x5db   : > { %9405 = vmatpush1.bf16.msra.mxu0 %v17032_v55  ;;  %v17038_v55 = vld [vmem:[%s22718_s3 + $0x244] ss:$8 sps:$4 sm:$0xff]  }
 0x5dc   : > { %10690 = vmatpush1.bf16.msra.mxu1 %v17033_v41  ;;  %14533 = vmatprep.subr.msk.bf16.mxu0 %vm4932_vm4, %v17034_v35  ;;  %v17039_v41 = vld [vmem:[%s22718_s3 + $0x514] ss:$8 sps:$4 sm:$0xff]   ;;  %v17040_v35 = vld [vmem:[%s18605_s26 + $0x190] ss:$8 sps:$4 sm:$0xff]  }
 0x5dd   : > { %14664 = vmatprep.subr.msk.bf16.mxu1 %vm4932_vm4, %v17035_v40  ;;  %9234 = vmatmul.mubr.bf16.gmra.mrb[40].mxu0 %v17036_v23  ;;  %v17041_v40 = vld [vmem:[%s18605_s26 + $0x1a4] ss:$8 sps:$4 sm:$0xff]  }
 0x5de   : > { %10519 = vmatmul.mubr.bf16.gmra.mrb[40].mxu1 %v17036_v23  ;;  %14524 = vmatprep.mubr.msk.bf16.mxu0 %vm4889_vm5, %v17037_v0  ;;  %v17044_v23 = vld [vmem:[%s18605_s26 + $0x1b0] ss:$8 sps:$4 sm:$0xff]  }
 0x5df   : > { %14655 = vmatprep.mubr.msk.bf16.mxu1 %vm4889_vm5, %v17037_v0  ;;  %9407 = vmatpush1.bf16.msra.mxu0 %v20381_v30  ;;  %v17042_v30 = vld [vmem:[%s18605_s26 + $0x1a0] ss:$8 sps:$4 sm:$0xff]   ;;  %v17045_v0 = vld [vmem:[%s18605_s26 + $0x1c4] ss:$8 sps:$4 sm:$0xff]  }
 0x5e0   : > { %10692 = vmatpush1.bf16.msra.mxu1 %v20385_v13  ;;  %9815 = vmatprep.subr.bf16.mxu0 %v17038_v55  ;;  %v17043_v13 = vld [vmem:[%s18605_s26 + $0x1b4] ss:$8 sps:$4 sm:$0xff]   ;;  %v17046_v55 = vld [vmem:[%s18605_s26 + $0x1c0] ss:$8 sps:$4 sm:$0xff]  }
 0x5e1   : > { %10904 = vmatprep.subr.bf16.mxu1 %v17039_v41  ;;  %v17047_v41 = vld [vmem:[%s18605_s26 + $0x1d4] ss:$8 sps:$4 sm:$0xff]  }
 0x5e5   : > { %9244 = vmatmul.mubr.bf16.gmra.mrb[44].mxu0 %v17040_v35 }
 0x5e6   : > { %10529 = vmatmul.mubr.bf16.gmra.mrb[44].mxu1 %v17040_v35  ;;  %14525 = vmatprep.mubr.msk.bf16.mxu0 %vm4889_vm5, %v17041_v40  ;;  %v17048_v35 = vld [vmem:[%s18605_s26 + $0x1d0] ss:$8 sps:$4 sm:$0xff]  }
 0x5e7   : > { %14656 = vmatprep.mubr.msk.bf16.mxu1 %vm4889_vm5, %v17041_v40  ;;  %v17049_v40 = vld [vmem:[%s18605_s26 + $0x1e4] ss:$8 sps:$4 sm:$0xff]  }
 0x5ed   : > { %9254 = vmatmul.mubr.bf16.gmra.mrb[48].mxu0 %v17042_v30 }
 0x5ee   : > { %10539 = vmatmul.mubr.bf16.gmra.mrb[48].mxu1 %v17042_v30  ;;  %14526 = vmatprep.mubr.msk.bf16.mxu0 %vm4889_vm5, %v17043_v13  ;;  %v17050_v30 = vld [vmem:[%s18605_s26 + $0x1e0] ss:$8 sps:$4 sm:$0xff]  }
 0x5ef   : > { %14657 = vmatprep.mubr.msk.bf16.mxu1 %vm4889_vm5, %v17043_v13  ;;  %v17051_v13 = vld [vmem:[%s18605_s26 + $0x1f4] ss:$8 sps:$4 sm:$0xff]  }
 0x5f5   : > { %9264 = vmatmul.mubr.bf16.gmra.mrb[52].mxu0 %v17044_v23 }
 0x5f6   : > { %10549 = vmatmul.mubr.bf16.gmra.mrb[52].mxu1 %v17044_v23  ;;  %14527 = vmatprep.mubr.msk.bf16.mxu0 %vm4889_vm5, %v17045_v0  ;;  %v17052_v23 = vld [vmem:[%s18605_s26 + $0x1f0] ss:$8 sps:$4 sm:$0xff]  }
 0x5f7   : > { %14658 = vmatprep.mubr.msk.bf16.mxu1 %vm4889_vm5, %v17045_v0  ;;  %v17053_v0 = vld [vmem:[%s18605_s26 + $0x204] ss:$8 sps:$4 sm:$0xff]  }
 0x5fd   : > { %9274 = vmatmul.mubr.bf16.gmra.mrb[56].mxu0 %v17046_v55 }
 0x5fe   : > { %10559 = vmatmul.mubr.bf16.gmra.mrb[56].mxu1 %v17046_v55  ;;  %14528 = vmatprep.mubr.msk.bf16.mxu0 %vm4889_vm5, %v17047_v41  ;;  %v17054_v55 = vld [vmem:[%s18605_s26 + $0x200] ss:$8 sps:$4 sm:$0xff]  }
 0x5ff   : > { %14659 = vmatprep.mubr.msk.bf16.mxu1 %vm4889_vm5, %v17047_v41  ;;  %v17055_v41 = vld [vmem:[%s18605_s26 + $0x214] ss:$8 sps:$4 sm:$0xff]  }
 0x605   : > { %9284 = vmatmul.mubr.bf16.gmra.mrb[60].mxu0 %v17048_v35 }
 0x606   : > { %10569 = vmatmul.mubr.bf16.gmra.mrb[60].mxu1 %v17048_v35  ;;  %14529 = vmatprep.mubr.msk.bf16.mxu0 %vm4889_vm5, %v17049_v40  ;;  %v17056_v35 = vld [vmem:[%s18605_s26 + $0x210] ss:$8 sps:$4 sm:$0xff]  }
 0x607   : > { %14660 = vmatprep.mubr.msk.bf16.mxu1 %vm4889_vm5, %v17049_v40  ;;  %v17057_v40 = vld [vmem:[%s18605_s26 + $0x44] ss:$8 sps:$4 sm:$0xff]  }
 0x60d   : > { %9294 = vmatmul.mubr.bf16.gmra.mrb[64].mxu0 %v17050_v30 }
 0x60e   : > { %10579 = vmatmul.mubr.bf16.gmra.mrb[64].mxu1 %v17050_v30  ;;  %14530 = vmatprep.mubr.msk.bf16.mxu0 %vm4889_vm5, %v17051_v13  ;;  %v17058_v30 = vld [vmem:[%s18605_s26 + $0x40] ss:$8 sps:$4 sm:$0xff]  }
 0x60f   : > { %14661 = vmatprep.mubr.msk.bf16.mxu1 %vm4889_vm5, %v17051_v13  ;;  %v17059_v13 = vld [vmem:[%s18605_s26 + $0x54] ss:$8 sps:$4 sm:$0xff]  }
 0x615   : > { %9304 = vmatmul.mubr.bf16.gmra.mrb[68].mxu0 %v17052_v23 }
 0x616   : > { %10589 = vmatmul.mubr.bf16.gmra.mrb[68].mxu1 %v17052_v23  ;;  %14531 = vmatprep.mubr.msk.bf16.mxu0 %vm4889_vm5, %v17053_v0  ;;  %v17060_v23 = vld [vmem:[%s22718_s3 + $0x240] ss:$8 sps:$4 sm:$0xff]  }
 0x617   : > { %14662 = vmatprep.mubr.msk.bf16.mxu1 %vm4889_vm5, %v17053_v0  ;;  %v17061_v0 = vld [vmem:[%s22718_s3 + $0x510] ss:$8 sps:$4 sm:$0xff]  }
 0x61d   : > { %9314 = vmatmul.mubr.bf16.gmra.mrb[72].mxu0 %v17054_v55 }
 0x61e   : > { %10599 = vmatmul.mubr.bf16.gmra.mrb[72].mxu1 %v17054_v55  ;;  %14532 = vmatprep.mubr.msk.bf16.mxu0 %vm4889_vm5, %v17055_v41  ;;  %v17062_v55 = vld [vmem:[%s22718_s3 + $0x254] ss:$8 sps:$4 sm:$0xff]  }
 0x61f   : > { %14663 = vmatprep.mubr.msk.bf16.mxu1 %vm4889_vm5, %v17055_v41  ;;  %v17063_v41 = vld [vmem:[%s22718_s3 + $0x524] ss:$8 sps:$4 sm:$0xff]  }
 0x625   : > { %9324 = vmatmul.mubr.bf16.gmra.mrb[76].mxu0 %v17056_v35 }
 0x626   : > { %10609 = vmatmul.mubr.bf16.gmra.mrb[76].mxu1 %v17056_v35  ;;  %14534 = vmatprep.mubr.msk.bf16.mxu0 %vm4889_vm5, %v17057_v40  ;;  %v17064_v35 = vld [vmem:[%s22718_s3 + $0x250] ss:$8 sps:$4 sm:$0xff]  }
 0x627   : > { %14665 = vmatprep.mubr.msk.bf16.mxu1 %vm4889_vm5, %v17057_v40  ;;  %v17065_v40 = vld [vmem:[%s22718_s3 + $0x520] ss:$8 sps:$4 sm:$0xff]  }
 0x62d   : > { %9423 = vmatmul.mubr.bf16.vlgmr.msra.gmra.mrb[24].mxu0 %v17058_v30 }
 0x62e   : > { %10708 = vmatmul.mubr.bf16.vlgmr.msra.gmra.mrb[24].mxu1 %v17058_v30  ;;  %14535 = vmatprep.mubr.msk.bf16.mxu0 %vm4889_vm5, %v17059_v13  ;;  %v17066_v30 = vld [vmem:[%s22718_s3 + $0x264] ss:$8 sps:$4 sm:$0xff]  }
 0x62f   : > { %9816 = vmatpush1.bf16.msra.mxu0 %v17060_v23  ;;  %14666 = vmatprep.mubr.msk.bf16.mxu1 %vm4889_vm5, %v17059_v13  ;;  %v17067_v13 = vld [vmem:[%s22718_s3 + $0x534] ss:$8 sps:$4 sm:$0xff]   ;;  %v17068_v23 = vld [vmem:[%s18605_s26 + $0x50] ss:$8 sps:$4 sm:$0xff]  }
 0x630   : > { %10905 = vmatpush1.bf16.msra.mxu1 %v17061_v0  ;;  %9817 = vmatprep.subr.bf16.mxu0 %v17062_v55  ;;  %v17069_v0 = vld [vmem:[%s18605_s26 + $0x64] ss:$8 sps:$4 sm:$0xff]   ;;  %v17070_v55 = vld [vmem:[%s22718_s3 + $0x260] ss:$8 sps:$4 sm:$0xff]  }
 0x631   : > { %10906 = vmatprep.subr.bf16.mxu1 %v17063_v41  ;;  %v17071_v41 = vld [vmem:[%s22718_s3 + $0x530] ss:$8 sps:$4 sm:$0xff]  }
 0x633   : > { %9818 = vmatpush1.bf16.msra.mxu0 %v17064_v35  ;;  %v17072_v35 = vld [vmem:[%s22718_s3 + $0x274] ss:$8 sps:$4 sm:$0xff]  }
 0x634   : > { %10907 = vmatpush1.bf16.msra.mxu1 %v17065_v40  ;;  %9819 = vmatprep.subr.bf16.mxu0 %v17066_v30  ;;  %v17073_v40 = vld [vmem:[%s22718_s3 + $0x544] ss:$8 sps:$4 sm:$0xff]   ;;  %v17074_v30 = vld [vmem:[%s22718_s3 + $0x270] ss:$8 sps:$4 sm:$0xff]  }
 0x635   : > { %10908 = vmatprep.subr.bf16.mxu1 %v17067_v13  ;;  %9433 = vmatmul.mubr.bf16.gmra.mrb[28].mxu0 %v17068_v23  ;;  %v17075_v13 = vld [vmem:[%s22718_s3 + $0x540] ss:$8 sps:$4 sm:$0xff]  }
 0x636   : > { %10718 = vmatmul.mubr.bf16.gmra.mrb[28].mxu1 %v17068_v23  ;;  %14536 = vmatprep.mubr.msk.bf16.mxu0 %vm4889_vm5, %v17069_v0  ;;  %v17076_v23 = vld [vmem:[%s22718_s3 + $0x284] ss:$8 sps:$4 sm:$0xff]  }
 0x637   : > { %14667 = vmatprep.mubr.msk.bf16.mxu1 %vm4889_vm5, %v17069_v0  ;;  %9820 = vmatpush1.bf16.msra.mxu0 %v17070_v55  ;;  %v17077_v0 = vld [vmem:[%s22718_s3 + $0x554] ss:$8 sps:$4 sm:$0xff]   ;;  %v17078_v55 = vld [vmem:[%s18605_s26 + $0x60] ss:$8 sps:$4 sm:$0xff]  }
 0x638   : > { %10909 = vmatpush1.bf16.msra.mxu1 %v17071_v41  ;;  %9821 = vmatprep.subr.bf16.mxu0 %v17072_v35  ;;  %v17079_v41 = vld [vmem:[%s18605_s26 + $0x74] ss:$8 sps:$4 sm:$0xff]   ;;  %v17080_v35 = vld [vmem:[%s22718_s3 + $0x280] ss:$8 sps:$4 sm:$0xff]  }
 0x639   : > { %10910 = vmatprep.subr.bf16.mxu1 %v17073_v40  ;;  %v17081_v40 = vld [vmem:[%s22718_s3 + $0x550] ss:$8 sps:$4 sm:$0xff]  }
 0x63b   : > { %9822 = vmatpush1.bf16.msra.mxu0 %v17074_v30  ;;  %v17082_v30 = vld [vmem:[%s22718_s3 + $0x294] ss:$8 sps:$4 sm:$0xff]  }
 0x63c   : > { %10911 = vmatpush1.bf16.msra.mxu1 %v17075_v13  ;;  %9823 = vmatprep.subr.bf16.mxu0 %v17076_v23  ;;  %v17083_v13 = vld [vmem:[%s22718_s3 + $0x564] ss:$8 sps:$4 sm:$0xff]   ;;  %v17084_v23 = vld [vmem:[%s22718_s3 + $0x290] ss:$8 sps:$4 sm:$0xff]  }
 0x63d   : > { %10912 = vmatprep.subr.bf16.mxu1 %v17077_v0  ;;  %9443 = vmatmul.mubr.bf16.gmra.mrb[32].mxu0 %v17078_v55  ;;  %v17085_v0 = vld [vmem:[%s22718_s3 + $0x560] ss:$8 sps:$4 sm:$0xff]  }
 0x63e   : > { %10728 = vmatmul.mubr.bf16.gmra.mrb[32].mxu1 %v17078_v55  ;;  %14537 = vmatprep.mubr.msk.bf16.mxu0 %vm4889_vm5, %v17079_v41  ;;  %v17086_v55 = vld [vmem:[%s22718_s3 + $0x2a4] ss:$8 sps:$4 sm:$0xff]  }
 0x63f   : > { %14668 = vmatprep.mubr.msk.bf16.mxu1 %vm4889_vm5, %v17079_v41  ;;  %9824 = vmatpush1.bf16.msra.mxu0 %v17080_v35  ;;  %v17087_v41 = vld [vmem:[%s22718_s3 + $0x574] ss:$8 sps:$4 sm:$0xff]   ;;  %v17088_v35 = vld [vmem:[%s18605_s26 + $0x70] ss:$8 sps:$4 sm:$0xff]  }
 0x640   : > { %10913 = vmatpush1.bf16.msra.mxu1 %v17081_v40  ;;  %9825 = vmatprep.subr.bf16.mxu0 %v17082_v30  ;;  %v17089_v40 = vld [vmem:[%s18605_s26 + $0x84] ss:$8 sps:$4 sm:$0xff]   ;;  %v17090_v30 = vld [vmem:[%s22718_s3 + $0x2a0] ss:$8 sps:$4 sm:$0xff]  }
 0x641   : > { %10914 = vmatprep.subr.bf16.mxu1 %v17083_v13  ;;  %v17091_v13 = vld [vmem:[%s22718_s3 + $0x570] ss:$8 sps:$4 sm:$0xff]  }
 0x643   : > { %9826 = vmatpush1.bf16.msra.mxu0 %v17084_v23  ;;  %v17092_v23 = vld [vmem:[%s22718_s3 + $0x2b4] ss:$8 sps:$4 sm:$0xff]  }
 0x644   : > { %10915 = vmatpush1.bf16.msra.mxu1 %v17085_v0  ;;  %9827 = vmatprep.subr.bf16.mxu0 %v17086_v55  ;;  %v17093_v0 = vld [vmem:[%s22718_s3 + $0x584] ss:$8 sps:$4 sm:$0xff]   ;;  %v17094_v55 = vld [vmem:[%s22718_s3 + $0x2b0] ss:$8 sps:$4 sm:$0xff]  }
 0x645   : > { %10916 = vmatprep.subr.bf16.mxu1 %v17087_v41  ;;  %9453 = vmatmul.mubr.bf16.gmra.mrb[36].mxu0 %v17088_v35  ;;  %v17095_v41 = vld [vmem:[%s22718_s3 + $0x580] ss:$8 sps:$4 sm:$0xff]  }
 0x646   : > { %10738 = vmatmul.mubr.bf16.gmra.mrb[36].mxu1 %v17088_v35  ;;  %14538 = vmatprep.mubr.msk.bf16.mxu0 %vm4889_vm5, %v17089_v40  ;;  %v17096_v35 = vld [vmem:[%s22718_s3 + $0x2c4] ss:$8 sps:$4 sm:$0x3f]  }
 0x647   : > { %14669 = vmatprep.mubr.msk.bf16.mxu1 %vm4889_vm5, %v17089_v40  ;;  %9828 = vmatpush1.bf16.msra.mxu0 %v17090_v30  ;;  %v17097_v40 = vld [vmem:[%s22718_s3 + $0x594] ss:$8 sps:$4 sm:$0x3f]   ;;  %v17098_v30 = vld [vmem:[%s18605_s26 + $0x80] ss:$8 sps:$4 sm:$0xff]  }
 0x648   : > { %10917 = vmatpush1.bf16.msra.mxu1 %v17091_v13  ;;  %9829 = vmatprep.subr.bf16.mxu0 %v17092_v23  ;;  %v17099_v13 = vld [vmem:[%s18605_s26 + $0x94] ss:$8 sps:$4 sm:$0xff]   ;;  %v23406_v23 = vmov 0  }
 0x649   : > { %10918 = vmatprep.subr.bf16.mxu1 %v17093_v0  ;;  %v17100_v0 = vld [vmem:[%s18605_s26 + $0x90] ss:$8 sps:$4 sm:$0xff]  }
 0x64b   : > { %9830 = vmatpush1.bf16.msra.mxu0 %v17094_v55  ;;  %v17101_v55 = vld [vmem:[%s18605_s26 + $0xa4] ss:$8 sps:$4 sm:$0xff]  }
 0x64c   : > { %10919 = vmatpush1.bf16.msra.mxu1 %v17095_v41  ;;  %14604 = vmatprep.subr.msk.bf16.mxu0 %vm4932_vm4, %v17096_v35  ;;  %v17102_v41 = vld [vmem:[%s18605_s26 + $0xa0] ss:$8 sps:$4 sm:$0xff]   ;;  %v17105_v35 = vld [vmem:[%s18605_s26 + $0xc4] ss:$8 sps:$4 sm:$0xff]  }
 0x64d   : > { %14679 = vmatprep.subr.msk.bf16.mxu1 %vm4932_vm4, %v17097_v40  ;;  %9463 = vmatmul.mubr.bf16.gmra.mrb[40].mxu0 %v17098_v30  ;;  %v17106_v40 = vld [vmem:[%s18605_s26 + $0xc0] ss:$8 sps:$4 sm:$0xff]  }
 0x64e   : > { %10748 = vmatmul.mubr.bf16.gmra.mrb[40].mxu1 %v17098_v30  ;;  %14539 = vmatprep.mubr.msk.bf16.mxu0 %vm4889_vm5, %v17099_v13  ;;  %v17107_v30 = vld [vmem:[%s18605_s26 + $0xd4] ss:$8 sps:$4 sm:$0xff]  }
 0x64f   : > { %14670 = vmatprep.mubr.msk.bf16.mxu1 %vm4889_vm5, %v17099_v13  ;;  %9832 = vmatpush1.bf16.msra.mxu0 %v20588_v59  ;;  %v17103_v59 = vld [vmem:[%s18605_s26 + $0xb4] ss:$8 sps:$4 sm:$0xff]   ;;  %v17108_v13 = vld [vmem:[%s18605_s26 + $0xd0] ss:$8 sps:$4 sm:$0xff]  }
 0x650   : > { %10921 = vmatpush1.bf16.msra.mxu1 %v20592_v62  ;;  %11634 = vmatprep.subr.bf16.mxu0 %v23406_v23  ;;  %v17104_v62 = vld [vmem:[%s18605_s26 + $0xb0] ss:$8 sps:$4 sm:$0xff]  }
 0x651   : > { %11763 = vmatprep.subr.bf16.mxu1 %v23406_v23 }
 0x655   : > { %9473 = vmatmul.mubr.bf16.gmra.mrb[44].mxu0 %v17100_v0 }
 0x656   : > { %10758 = vmatmul.mubr.bf16.gmra.mrb[44].mxu1 %v17100_v0  ;;  %14540 = vmatprep.mubr.msk.bf16.mxu0 %vm4889_vm5, %v17101_v55  ;;  %v17109_v0 = vld [vmem:[%s18605_s26 + $0xe4] ss:$8 sps:$4 sm:$0xff]  }
 0x657   : > { %14671 = vmatprep.mubr.msk.bf16.mxu1 %vm4889_vm5, %v17101_v55  ;;  %v17110_v55 = vld [vmem:[%s18605_s26 + $0xe0] ss:$8 sps:$4 sm:$0xff]  }
 0x65d   : > { %9483 = vmatmul.mubr.bf16.gmra.mrb[48].mxu0 %v17102_v41 }
 0x65e   : > { %10768 = vmatmul.mubr.bf16.gmra.mrb[48].mxu1 %v17102_v41  ;;  %14541 = vmatprep.mubr.msk.bf16.mxu0 %vm4889_vm5, %v17103_v59  ;;  %v17111_v41 = vld [vmem:[%s18605_s26 + $0xf4] ss:$8 sps:$4 sm:$0xff]  }
 0x65f   : > { %14672 = vmatprep.mubr.msk.bf16.mxu1 %vm4889_vm5, %v17103_v59  ;;  %v17112_v59 = vld [vmem:[%s18605_s26 + $0xf0] ss:$8 sps:$4 sm:$0xff]  }
 0x665   : > { %9493 = vmatmul.mubr.bf16.gmra.mrb[52].mxu0 %v17104_v62 }
 0x666   : > { %10778 = vmatmul.mubr.bf16.gmra.mrb[52].mxu1 %v17104_v62  ;;  %14542 = vmatprep.mubr.msk.bf16.mxu0 %vm4889_vm5, %v17105_v35  ;;  %v17113_v62 = vld [vmem:[%s18605_s26 + $0x104] ss:$8 sps:$4 sm:$0xff]  }
 0x667   : > { %14673 = vmatprep.mubr.msk.bf16.mxu1 %vm4889_vm5, %v17105_v35  ;;  %v17114_v35 = vld [vmem:[%s18605_s26 + $0x100] ss:$8 sps:$4 sm:$0xff]  }
 0x66d   : > { %9503 = vmatmul.mubr.bf16.gmra.mrb[56].mxu0 %v17106_v40 }
 0x66e   : > { %10788 = vmatmul.mubr.bf16.gmra.mrb[56].mxu1 %v17106_v40  ;;  %14543 = vmatprep.mubr.msk.bf16.mxu0 %vm4889_vm5, %v17107_v30  ;;  %v17115_v40 = vld [vmem:[%s18605_s26 + $0x114] ss:$8 sps:$4 sm:$0xff]  }
 0x66f   : > { %14674 = vmatprep.mubr.msk.bf16.mxu1 %vm4889_vm5, %v17107_v30  ;;  %v16665_v30 = vld [vmem:[%s18605_s26 + $0x164] ss:$8 sps:$4 sm:$0xff]  }
 0x675   : > { %9513 = vmatmul.mubr.bf16.gmra.mrb[60].mxu0 %v17108_v13 }
 0x676   : > { %10798 = vmatmul.mubr.bf16.gmra.mrb[60].mxu1 %v17108_v13  ;;  %14544 = vmatprep.mubr.msk.bf16.mxu0 %vm4889_vm5, %v17109_v0  ;;  %v17116_v13 = vld [vmem:[%s18605_s26 + $0x110] ss:$8 sps:$4 sm:$0xff]  }
 0x677   : > { %14675 = vmatprep.mubr.msk.bf16.mxu1 %vm4889_vm5, %v17109_v0  ;;  %v16663_v0 = vld [vmem:[%s18605_s26 + $0x160] ss:$8 sps:$4 sm:$0xff]  }
 0x67d   : > { %9523 = vmatmul.mubr.bf16.gmra.mrb[64].mxu0 %v17110_v55 }
 0x67e   : > { %10808 = vmatmul.mubr.bf16.gmra.mrb[64].mxu1 %v17110_v55  ;;  %14545 = vmatprep.mubr.msk.bf16.mxu0 %vm4889_vm5, %v17111_v41  ;;  %v16705_v55 = vld [vmem:[%s22720_s5 + $0x48] sm:$0xff]  }
 0x67f   : > { %14676 = vmatprep.mubr.msk.bf16.mxu1 %vm4889_vm5, %v17111_v41  ;;  %v16708_v41 = vld [vmem:[%s22720_s5] sm:$0xff]  }
 0x685   : > { %9533 = vmatmul.mubr.bf16.gmra.mrb[68].mxu0 %v17112_v59 }
 0x686   : > { %10818 = vmatmul.mubr.bf16.gmra.mrb[68].mxu1 %v17112_v59  ;;  %14546 = vmatprep.mubr.msk.bf16.mxu0 %vm4889_vm5, %v17113_v62  ;;  %v16668_v59 = vld [vmem:[%s18605_s26 + $0x174] ss:$8 sps:$4 sm:$0xff]  }
 0x687   : > { %14677 = vmatprep.mubr.msk.bf16.mxu1 %vm4889_vm5, %v17113_v62  ;;  %v16706_v62 = vld [vmem:[%s22720_s5 + $0x50] sm:$0xff]  }
 0x68d   : > { %9543 = vmatmul.mubr.bf16.gmra.mrb[72].mxu0 %v17114_v35 }
 0x68e   : > { %10828 = vmatmul.mubr.bf16.gmra.mrb[72].mxu1 %v17114_v35  ;;  %14547 = vmatprep.mubr.msk.bf16.mxu0 %vm4889_vm5, %v17115_v40  ;;  %v16710_v35 = vld [vmem:[%s22720_s5 + $0x8] sm:$0xff]  }
 0x68f   : > { %14678 = vmatprep.mubr.msk.bf16.mxu1 %vm4889_vm5, %v17115_v40  ;;  %v16666_v40 = vld [vmem:[%s18605_s26 + $0x170] ss:$8 sps:$4 sm:$0xff]  }
 0x695   : > { %9553 = vmatmul.mubr.bf16.gmra.mrb[76].mxu0 %v17116_v13 }
 0x696   : > { %10838 = vmatmul.mubr.bf16.gmra.mrb[76].mxu1 %v17116_v13  ;;  %14605 = vmatprep.mubr.msk.bf16.mxu0 %vm4889_vm5, %v16665_v30  ;;  %v16712_v13 = vld [vmem:[%s22720_s5 + $0x10] sm:$0xff]  }
 0x697   : > { %14680 = vmatprep.mubr.msk.bf16.mxu1 %vm4889_vm5, %v16665_v30  ;;  %v16707_v30 = vld [vmem:[%s22720_s5 + $0x58] sm:$0xff]  }
 0x69d   : > { %9848 = vmatmul.mubr.bf16.vlgmr.msra.gmra.mrb[24].mxu0 %v16663_v0 }
 0x69e   : > { %10937 = vmatmul.mubr.bf16.vlgmr.msra.gmra.mrb[24].mxu1 %v16663_v0  ;;  %14606 = vmatprep.mubr.msk.bf16.mxu0 %vm4889_vm5, %v16668_v59  ;;  %v16671_v0 = vld [vmem:[%s18605_s26 + $0x184] ss:$8 sps:$4 sm:$0xff]  }
 0x69f   : > { %14681 = vmatprep.mubr.msk.bf16.mxu1 %vm4889_vm5, %v16668_v59  ;;  %11635 = vmatpush1.bf16.msra.mxu0 %v16705_v55  ;;  %v16709_v55 = vld [vmem:[%s22720_s5 + $0x60] sm:$0xff]   ;;  %v16711_v59 = vld [vmem:[%s22720_s5 + $0x68] sm:$0xff]  }
 0x6a0   : > { %11764 = vmatpush1.bf16.msra.mxu1 %v16708_v41  ;;  %11636 = vmatprep.subr.bf16.mxu0 %v23406_v23  ;;  %v16669_v41 = vld [vmem:[%s18605_s26 + $0x180] ss:$8 sps:$4 sm:$0xff]  }
 0x6a1   : > { %11765 = vmatprep.subr.bf16.mxu1 %v23406_v23 }
 0x6a3   : > { %11637 = vmatpush1.bf16.msra.mxu0 %v16706_v62  ;;  %v16674_v62 = vld [vmem:[%s18605_s26 + $0x194] ss:$8 sps:$4 sm:$0xff]  }
 0x6a4   : > { %11766 = vmatpush1.bf16.msra.mxu1 %v16710_v35  ;;  %11638 = vmatprep.subr.bf16.mxu0 %v23406_v23  ;;  %v16713_v35 = vld [vmem:[%s22720_s5 + $0x70] sm:$0xff]  }
 0x6a5   : > { %11767 = vmatprep.subr.bf16.mxu1 %v23406_v23  ;;  %9858 = vmatmul.mubr.bf16.gmra.mrb[28].mxu0 %v16666_v40 }
 0x6a6   : > { %10947 = vmatmul.mubr.bf16.gmra.mrb[28].mxu1 %v16666_v40  ;;  %14607 = vmatprep.mubr.msk.bf16.mxu0 %vm4889_vm5, %v16671_v0  ;;  %v16672_v40 = vld [vmem:[%s18605_s26 + $0x190] ss:$8 sps:$4 sm:$0xff]  }
 0x6a7   : > { %14682 = vmatprep.mubr.msk.bf16.mxu1 %vm4889_vm5, %v16671_v0  ;;  %11639 = vmatpush1.bf16.msra.mxu0 %v16707_v30  ;;  %v16677_v30 = vld [vmem:[%s18605_s26 + $0x1a4] ss:$8 sps:$4 sm:$0xff]   ;;  %v16680_v0 = vld [vmem:[%s18605_s26 + $0x1b4] ss:$8 sps:$4 sm:$0xff]  }
 0x6a8   : > { %11768 = vmatpush1.bf16.msra.mxu1 %v16712_v13  ;;  %11640 = vmatprep.subr.bf16.mxu0 %v23406_v23  ;;  %v16675_v13 = vld [vmem:[%s18605_s26 + $0x1a0] ss:$8 sps:$4 sm:$0xff]  }
 0x6a9   : > { %11769 = vmatprep.subr.bf16.mxu1 %v23406_v23 }
 0x6ab   : > { %11641 = vmatpush1.bf16.msra.mxu0 %v16709_v55  ;;  %v16678_v55 = vld [vmem:[%s18605_s26 + $0x1b0] ss:$8 sps:$4 sm:$0xff]  }
 0x6ac   : > { %11642 = vmatprep.subr.bf16.mxu0 %v23406_v23 }
 0x6ad   : > { %9868 = vmatmul.mubr.bf16.gmra.mrb[32].mxu0 %v16669_v41 }
 0x6ae   : > { %10957 = vmatmul.mubr.bf16.gmra.mrb[32].mxu1 %v16669_v41  ;;  %14608 = vmatprep.mubr.msk.bf16.mxu0 %vm4889_vm5, %v16674_v62  ;;  %v16683_v41 = vld [vmem:[%s18605_s26 + $0x1c4] ss:$8 sps:$4 sm:$0xff]  }
 0x6af   : > { %14683 = vmatprep.mubr.msk.bf16.mxu1 %vm4889_vm5, %v16674_v62  ;;  %11643 = vmatpush1.bf16.msra.mxu0 %v16711_v59  ;;  %v16681_v59 = vld [vmem:[%s18605_s26 + $0x1c0] ss:$8 sps:$4 sm:$0xff]   ;;  %v16686_v62 = vld [vmem:[%s18605_s26 + $0x1d4] ss:$8 sps:$4 sm:$0xff]  }
 0x6b0   : > { %11644 = vmatprep.subr.bf16.mxu0 %v23406_v23 }
 0x6b3   : > { %11645 = vmatpush1.bf16.msra.mxu0 %v16713_v35  ;;  %v16684_v35 = vld [vmem:[%s18605_s26 + $0x1d0] ss:$8 sps:$4 sm:$0xff]  }
 0x6b4   : > { %11646 = vmatprep.subr.bf16.mxu0 %v23406_v23 }
 0x6b5   : > { %9878 = vmatmul.mubr.bf16.gmra.mrb[36].mxu0 %v16672_v40 }
 0x6b6   : > { %10967 = vmatmul.mubr.bf16.gmra.mrb[36].mxu1 %v16672_v40  ;;  %14609 = vmatprep.mubr.msk.bf16.mxu0 %vm4889_vm5, %v16677_v30  ;;  %v16689_v40 = vld [vmem:[%s18605_s26 + $0x1e4] ss:$8 sps:$4 sm:$0xff]  }
 0x6b7   : > { %14684 = vmatprep.mubr.msk.bf16.mxu1 %vm4889_vm5, %v16677_v30  ;;  %v16687_v30 = vld [vmem:[%s18605_s26 + $0x1e0] ss:$8 sps:$4 sm:$0xff]  }
 0x6bd   : > { %9888 = vmatmul.mubr.bf16.gmra.mrb[40].mxu0 %v16675_v13 }
 0x6be   : > { %10977 = vmatmul.mubr.bf16.gmra.mrb[40].mxu1 %v16675_v13  ;;  %14610 = vmatprep.mubr.msk.bf16.mxu0 %vm4889_vm5, %v16680_v0  ;;  %v16692_v13 = vld [vmem:[%s18605_s26 + $0x1f4] ss:$8 sps:$4 sm:$0xff]  }
 0x6bf   : > { %14685 = vmatprep.mubr.msk.bf16.mxu1 %vm4889_vm5, %v16680_v0  ;;  %v16690_v0 = vld [vmem:[%s18605_s26 + $0x1f0] ss:$8 sps:$4 sm:$0xff]  }
 0x6c5   : > { %9898 = vmatmul.mubr.bf16.gmra.mrb[44].mxu0 %v16678_v55 }
 0x6c6   : > { %10987 = vmatmul.mubr.bf16.gmra.mrb[44].mxu1 %v16678_v55  ;;  %14611 = vmatprep.mubr.msk.bf16.mxu0 %vm4889_vm5, %v16683_v41  ;;  %v16695_v55 = vld [vmem:[%s18605_s26 + $0x204] ss:$8 sps:$4 sm:$0xff]  }
 0x6c7   : > { %14686 = vmatprep.mubr.msk.bf16.mxu1 %vm4889_vm5, %v16683_v41  ;;  %v16693_v41 = vld [vmem:[%s18605_s26 + $0x200] ss:$8 sps:$4 sm:$0xff]  }
 0x6cd   : > { %9908 = vmatmul.mubr.bf16.gmra.mrb[48].mxu0 %v16681_v59 }
 0x6ce   : > { %10997 = vmatmul.mubr.bf16.gmra.mrb[48].mxu1 %v16681_v59  ;;  %14612 = vmatprep.mubr.msk.bf16.mxu0 %vm4889_vm5, %v16686_v62  ;;  %v16698_v59 = vld [vmem:[%s18605_s26 + $0x214] ss:$8 sps:$4 sm:$0xff]  }
 0x6cf   : > { %14687 = vmatprep.mubr.msk.bf16.mxu1 %vm4889_vm5, %v16686_v62  ;;  %v16701_v62 = vld [vmem:[%s18605_s26 + $0x224] ss:$8 sps:$4 sm:$0xff]  }
 0x6d5   : > { %9918 = vmatmul.mubr.bf16.gmra.mrb[52].mxu0 %v16684_v35 }
 0x6d6   : > { %11007 = vmatmul.mubr.bf16.gmra.mrb[52].mxu1 %v16684_v35  ;;  %14613 = vmatprep.mubr.msk.bf16.mxu0 %vm4889_vm5, %v16689_v40  ;;  %v16696_v35 = vld [vmem:[%s18605_s26 + $0x210] ss:$8 sps:$4 sm:$0xff]  }
 0x6d7   : > { %14688 = vmatprep.mubr.msk.bf16.mxu1 %vm4889_vm5, %v16689_v40  ;;  %v16714_v40 = vld [vmem:[%s22720_s5 + $0x18] sm:$0xff]  }
 0x6d8   : > { %11770 = vmatpush1.bf16.msra.mxu1 %v16714_v40  ;;  %v16721_v40 = vld [vmem:[%s22720_s5 + $0x40] sm:$0x3f]  }
 0x6d9   : > { %11771 = vmatprep.subr.bf16.mxu1 %v23406_v23 }
 0x6dd   : > { %9928 = vmatmul.mubr.bf16.gmra.mrb[56].mxu0 %v16687_v30 }
 0x6de   : > { %11017 = vmatmul.mubr.bf16.gmra.mrb[56].mxu1 %v16687_v30  ;;  %14614 = vmatprep.mubr.msk.bf16.mxu0 %vm4889_vm5, %v16692_v13  ;;  %v16716_v30 = vld [vmem:[%s22720_s5 + $0x20] sm:$0xff]  }
 0x6df   : > { %14689 = vmatprep.mubr.msk.bf16.mxu1 %vm4889_vm5, %v16692_v13  ;;  %v16699_v13 = vld [vmem:[%s18605_s26 + $0x220] ss:$8 sps:$4 sm:$0xff]   ;;  %11772 = vmatpush1.bf16.msra.mxu1 %v16716_v30  ;;  %v11761_v30 = vsel %vm4932_vm4, %v16721_v40, 0 }
 0x6e0   : > { %11773 = vmatprep.subr.bf16.mxu1 %v23406_v23 }
 0x6e5   : > { %9938 = vmatmul.mubr.bf16.gmra.mrb[60].mxu0 %v16690_v0 }
 0x6e6   : > { %11027 = vmatmul.mubr.bf16.gmra.mrb[60].mxu1 %v16690_v0  ;;  %14615 = vmatprep.mubr.msk.bf16.mxu0 %vm4889_vm5, %v16695_v55  ;;  %v16704_v0 = vld [vmem:[%s18605_s26 + $0x234] ss:$8 sps:$4 sm:$0xff]  }
 0x6e7   : > { %14690 = vmatprep.mubr.msk.bf16.mxu1 %vm4889_vm5, %v16695_v55  ;;  %v16717_v55 = vld [vmem:[%s22720_s5 + $0x28] sm:$0xff]  }
 0x6e8   : > { %11774 = vmatpush1.bf16.msra.mxu1 %v16717_v55 }
 0x6e9   : > { %11775 = vmatprep.subr.bf16.mxu1 %v23406_v23 }
 0x6ed   : > { %9948 = vmatmul.mubr.bf16.gmra.mrb[64].mxu0 %v16693_v41 }
 0x6ee   : > { %11037 = vmatmul.mubr.bf16.gmra.mrb[64].mxu1 %v16693_v41  ;;  %14616 = vmatprep.mubr.msk.bf16.mxu0 %vm4889_vm5, %v16698_v59  ;;  %v16715_v41 = vld [vmem:[%s22720_s5 + $0x78] sm:$0xff]  }
 0x6ef   : > { %14691 = vmatprep.mubr.msk.bf16.mxu1 %vm4889_vm5, %v16698_v59  ;;  %11647 = vmatpush1.bf16.msra.mxu0 %v16715_v41  ;;  %v16718_v59 = vld [vmem:[%s22720_s5 + $0x30] sm:$0xff]   ;;  %v11189_v41 = vld [vmem:[%s22719_s4] sm:$0x3] }
 0x6f0   : > { %11648 = vmatprep.subr.bf16.mxu0 %v23406_v23  ;;  %11776 = vmatpush1.bf16.msra.mxu1 %v16718_v59  ;;  %v21958_v51 = vrot.slane %v11189_v41, %v18549_v4 }
 0x6f1   : > { %11777 = vmatprep.subr.bf16.mxu1 %v23406_v23 }
 0x6f5   : > { %9958 = vmatmul.mubr.bf16.gmra.mrb[68].mxu0 %v16696_v35 }
 0x6f6   : > { %11047 = vmatmul.mubr.bf16.gmra.mrb[68].mxu1 %v16696_v35  ;;  %14617 = vmatprep.mubr.msk.bf16.mxu0 %vm4889_vm5, %v16701_v62  ;;  %v16720_v35 = vld [vmem:[%s22720_s5 + $0x38] sm:$0xff]  }
 0x6f7   : > { %14692 = vmatprep.mubr.msk.bf16.mxu1 %vm4889_vm5, %v16701_v62  ;;  %v16702_v62 = vld [vmem:[%s18605_s26 + $0x230] ss:$8 sps:$4 sm:$0xff]   ;;  %11778 = vmatpush1.bf16.msra.mxu1 %v16720_v35  ;;  %v23407_v35 = vmax.f32 %v20987_v10, %v20989_v3  ;;  %v23410_v10 = vmax.f32 %v20999_v53, %v21001_v57 }
 0x6f8   : > { %11779 = vmatprep.subr.bf16.mxu1 %v23406_v23 }
 0x6fb   : > { %11780 = vmatpush1.bf16.msra.mxu1 %v11761_v30  ;;  %v23408_v30 = vld [vmem:[#allocation72_spill] sm:$0xff] }
 0x6fc   : > { %12071 = vmatprep.subr.bf16.mxu1 %v23406_v23 }
 0x6fd   : > { %9968 = vmatmul.mubr.bf16.gmra.mrb[72].mxu0 %v16699_v13 }
 0x6fe   : > { %11057 = vmatmul.mubr.bf16.gmra.mrb[72].mxu1 %v16699_v13  ;;  %14618 = vmatprep.mubr.msk.bf16.mxu0 %vm4889_vm5, %v16704_v0  ;;  %v16719_v13 = vld [vmem:[%s22720_s5 + $0x80] sm:$0xff]  }
 0x6ff   : > { %14693 = vmatprep.mubr.msk.bf16.mxu1 %vm4889_vm5, %v16704_v0  ;;  %11649 = vmatpush1.bf16.msra.mxu0 %v16719_v13  ;;  %v16725_v0 = vld [vmem:[%s22720_s5 + $0x88] sm:$0x3f]   ;;  %v21952_v13 = vrot.slane %v11189_v41, %v23408_v30 }
 0x700   : > { %11650 = vmatprep.subr.bf16.mxu0 %v23406_v23  ;;  %v11632_v55 = vsel %vm4932_vm4, %v16725_v0, 0 }
 0x703   : > { %11651 = vmatpush1.bf16.msra.mxu0 %v11632_v55  ;;  %v23409_v55 = vmax.f32 %v20993_v58, %v20995_v24 }
 0x704   : > { %11915 = vmatprep.subr.bf16.mxu0 %v23406_v23 }
 0x705   : > { %9978 = vmatmul.mubr.bf16.gmra.mrb[76].mxu0 %v16702_v62 }
 0x706   : > { %11067 = vmatmul.mubr.bf16.gmra.mrb[76].mxu1 %v16702_v62 }
 0x770   : > { %v9849_v59 = vpop.f32.mrb[24].mxu0 }
 0x771   : > { %v10938_v62 = vpop.f32.mrb[24].mxu1  ;;  %v10044_v40 = vmax.f32 %v23407_v35, %v9849_v59  ;;  %v9851_v14 = vpop.f32.mrb[25].mxu0 }
 0x772   : > { %v10940_v0 = vpop.f32.mrb[25].mxu1  ;;  %v10045_v63 = vmax.f32 %v23409_v55, %v9851_v14  ;;  %v9853_v17 = vpop.f32.mrb[26].mxu0 }
 0x773   : > { %v10942_v39 = vpop.f32.mrb[26].mxu1  ;;  %v11133_v8 = vmax.f32 %v10044_v40, %v10938_v62  ;;  %v10046_v3 = vmax.f32 %v23410_v10, %v9853_v17  ;;  %v9855_v59 = vpop.f32.mrb[27].mxu0 }
 0x774   : > { %v10944_v35 = vpop.f32.mrb[27].mxu1  ;;  %v11134_v30 = vmax.f32 %v10045_v63, %v10940_v0  ;;  %v10047_v56 = vmax.f32 %v23411_v47, %v9855_v59  ;;  %v23413_v0 = vmax.f32 %v21022_v38, %v21024_v22 }
 0x775   : > { %v11201_v58 = vadd.f32 %v21952_v13, %v11133_v8  ;;  %v11135_v24 = vmax.f32 %v10046_v3, %v10942_v39 }
 0x776   : > { %v11202_v4 = vadd.f32 %v21958_v51, %v11134_v30  ;;  %v11136_v14 = vmax.f32 %v10047_v56, %v10944_v35  ;;  %v23414_v35 = vmax.f32 %v21028_v29, %v21030_v2 }
 0x777   : > { %v11257_v41 = vmax.f32 %v11201_v58, 0.0  ;;  %v11203_v62 = vadd.f32 %v21952_v13, %v11135_v24 }
 0x778   : > { %v11258_v40 = vmax.f32 %v11202_v4, 0.0  ;;  %v11204_v53 = vadd.f32 %v21958_v51, %v11136_v14  ;;  %v9859_v57 = vpop.f32.mrb[28].mxu0  ;;  %v23415_v4 = vmax.f32 %v21034_v21, %v21036_v5  ;;  %v23416_v5 = vmax.f32 %v21050_v50, %v21052_v9 }
 0x779   : > { %v10948_v17 = vpop.f32.mrb[28].mxu1  ;;  %v11259_v47 = vmax.f32 %v11203_v62, 0.0  ;;  %v10048_v16 = vmax.f32 %v23412_v61, %v9859_v57  ;;  %v9861_v56 = vpop.f32.mrb[29].mxu0 }
 0x77a   : > { %v10950_v39 = vpop.f32.mrb[29].mxu1  ;;  %v15005_v63 = vpack.c.bf16 %v11258_v40, %v11257_v41  ;;  %v11260_v8 = vmax.f32 %v11204_v53, 0.0  ;;  %v10049_v55 = vmax.f32 %v23413_v0, %v9861_v56  ;;  %v9863_v10 = vpop.f32.mrb[30].mxu0 }
 0x77b   : > { %v10952_v3 = vpop.f32.mrb[30].mxu1  ;;  %v11137_v59 = vmax.f32 %v10048_v16, %v10948_v17  ;;  %v10050_v30 = vmax.f32 %v23414_v35, %v9863_v10  ;;  %v9865_v58 = vpop.f32.mrb[31].mxu0 }
 0x77c   : > { %v10954_v24 = vpop.f32.mrb[31].mxu1  ;;  %11481 = vst.msk [vmem:[%s21973_s23] sm:$0xff] %vm18583_vm3, %v15005_v63  ;;  %v15006_v32 = vpack.c.bf16 %v11260_v8, %v11259_v47  ;;  %v11138_v6 = vmax.f32 %v10049_v55, %v10950_v39  ;;  %v10051_v14 = vmax.f32 %v23415_v4, %v9865_v58  ;;  %v23417_v63 = vmax.f32 %v21062_v37, %v21064_v25  ;;  %v16729_v58 = vld [vmem:[%s22720_s5 + $0xd8] sm:$0xff]  }
 0x77d   : > { %v11205_v38 = vadd.f32 %v21952_v13, %v11137_v59  ;;  %v11139_v22 = vmax.f32 %v10050_v30, %v10952_v3  ;;  %v23418_v3 = vmax.f32 %v21068_v20, %v21070_v48  ;;  %v23419_v37 = vmax.f32 %v21080_v46, %v21082_v60 }
 0x77e   : > { %11482 = vst.msk [vmem:[%s21973_s23 + $0x8] sm:$0xff] %vm18583_vm3, %v15006_v32  ;;  %v11206_v29 = vadd.f32 %v21958_v51, %v11138_v6  ;;  %v11140_v2 = vmax.f32 %v10051_v14, %v10954_v24 }
 0x77f   : > { %v11261_v41 = vmax.f32 %v11205_v38, 0.0  ;;  %v11207_v62 = vadd.f32 %v21952_v13, %v11139_v22 }
 0x780   : > { %v11262_v40 = vmax.f32 %v11206_v29, 0.0  ;;  %v11208_v53 = vadd.f32 %v21958_v51, %v11140_v2  ;;  %v9869_v57 = vpop.f32.mrb[32].mxu0 }
 0x781   : > { %v10958_v17 = vpop.f32.mrb[32].mxu1  ;;  %v11263_v21 = vmax.f32 %v11207_v62, 0.0  ;;  %v10052_v47 = vmax.f32 %v23416_v5, %v9869_v57  ;;  %v9871_v61 = vpop.f32.mrb[33].mxu0  ;;  %v16734_v57 = vld [vmem:[%s22720_s5 + $0xe0] sm:$0xff]   ;;  %v23421_v5 = vmax.f32 %v21115_v52, %v21117_v54  ;;  %v23423_v54 = vmax.f32 %v21127_v27, %v21129_v11 }
 0x782   : > { %v10960_v16 = vpop.f32.mrb[33].mxu1  ;;  %v15007_v56 = vpack.c.bf16 %v11262_v40, %v11261_v41  ;;  %v11264_v39 = vmax.f32 %v11208_v53, 0.0  ;;  %v10053_v8 = vmax.f32 %v23417_v63, %v9871_v61  ;;  %v9873_v0 = vpop.f32.mrb[34].mxu0  ;;  %v23420_v41 = vmax.f32 %v21103_v18, %v21105_v28 }
 0x783   : > { %v10962_v55 = vpop.f32.mrb[34].mxu1  ;;  %v11141_v10 = vmax.f32 %v10052_v47, %v10958_v17  ;;  %v10054_v59 = vmax.f32 %v23418_v3, %v9873_v0  ;;  %v9875_v50 = vpop.f32.mrb[35].mxu0  ;;  %v23422_v28 = vmax.f32 %v21121_v49, %v21123_v1 }
 0x784   : > { %v10964_v9 = vpop.f32.mrb[35].mxu1  ;;  %11483 = vst.msk [vmem:[%s21973_s23 + $0x10] sm:$0xff] %vm18583_vm3, %v15007_v56  ;;  %v15008_v35 = vpack.c.bf16 %v11264_v39, %v11263_v21  ;;  %v11142_v30 = vmax.f32 %v10053_v8, %v10960_v16  ;;  %v10055_v25 = vmax.f32 %v23419_v37, %v9875_v50 }
 0x785   : > { %v11209_v24 = vadd.f32 %v21952_v13, %v11141_v10  ;;  %v11143_v32 = vmax.f32 %v10054_v59, %v10962_v55  ;;  %v16722_v20 = vld [vmem:[%s21973_s23] ss:$8 sps:$4 sm:$0xff]   ;;  %v16724_v48 = vld [vmem:[%s21973_s23 + $0x4] ss:$8 sps:$4 sm:$0xff]  }
 0x786   : > { %11484 = vst.msk [vmem:[%s21973_s23 + $0x18] sm:$0xff] %vm18583_vm3, %v15008_v35  ;;  %v11210_v6 = vadd.f32 %v21958_v51, %v11142_v30  ;;  %v11144_v4 = vmax.f32 %v10055_v25, %v10964_v9  ;;  %14768 = vmatprep.mubr.msk.bf16.mxu1 %vm4889_vm5, %v16724_v48  ;;  %v16736_v55 = vld [vmem:[%s22720_s5 + $0xe8] sm:$0xff]   ;;  %v16741_v48 = vld [vmem:[%s22720_s5 + $0xf0] sm:$0xff]  }
 0x787   : > { %v11265_v14 = vmax.f32 %v11209_v24, 0.0  ;;  %v11211_v38 = vadd.f32 %v21952_v13, %v11143_v32  ;;  %11796 = vmatmul.mubr.bf16.vlgmr.msra.gmra.mrb[80].mxu1 %v16722_v20 }
 0x788   : > { %v11266_v46 = vmax.f32 %v11210_v6, 0.0  ;;  %v11212_v60 = vadd.f32 %v21958_v51, %v11144_v4  ;;  %v9879_v22 = vpop.f32.mrb[36].mxu0  ;;  %12072 = vmatpush1.bf16.msra.mxu1 %v16729_v58  ;;  %v23424_v58 = vmax.f32 %v21156_v45, %v21158_v36  ;;  %v23426_v45 = vmax.f32 %v21174_v26, %v21176_v42  ;;  %v16743_v42 = vld [vmem:[%s22720_s5 + $0xf8] sm:$0xff]  }
 0x789   : > { %v10968_v29 = vpop.f32.mrb[36].mxu1  ;;  %v11267_v2 = vmax.f32 %v11211_v38, 0.0  ;;  %v10056_v62 = vmax.f32 %v23420_v41, %v9879_v22  ;;  %v9881_v40 = vpop.f32.mrb[37].mxu0  ;;  %12073 = vmatprep.subr.bf16.mxu1 %v23406_v23 }
 0x78a   : > { %v10970_v53 = vpop.f32.mrb[37].mxu1  ;;  %v15009_v17 = vpack.c.bf16 %v11266_v46, %v11265_v14  ;;  %v11268_v21 = vmax.f32 %v11212_v60, 0.0  ;;  %v10057_v47 = vmax.f32 %v23421_v5, %v9881_v40  ;;  %v9883_v61 = vpop.f32.mrb[38].mxu0  ;;  %v23425_v14 = vmax.f32 %v21168_v43, %v21170_v19  ;;  %v16733_v40 = vld [vmem:[%s22720_s5 + $0x90] sm:$0xff]  }
 0x78b   : > { %v10972_v16 = vpop.f32.mrb[38].mxu1  ;;  %v11145_v18 = vmax.f32 %v10056_v62, %v10968_v29  ;;  %v10058_v56 = vmax.f32 %v23422_v28, %v9883_v61  ;;  %v9885_v39 = vpop.f32.mrb[39].mxu0  ;;  %v23427_v19 = vmax.f32 %v21180_v44, %v21182_v15 }
 0x78c   : > { %v10974_v63 = vpop.f32.mrb[39].mxu1  ;;  %11485 = vst.msk [vmem:[%s21973_s23 + $0x20] sm:$0xff] %vm18583_vm3, %v15009_v17  ;;  %v15010_v8 = vpack.c.bf16 %v11268_v21, %v11267_v2  ;;  %v11146_v52 = vmax.f32 %v10057_v47, %v10970_v53  ;;  %v10059_v0 = vmax.f32 %v23423_v54, %v9885_v39  ;;  %12074 = vmatpush1.bf16.msra.mxu1 %v16734_v57  ;;  %v16748_v54 = vld [vmem:[%s22720_s5 + $0x100] sm:$0xff]  }
 0x78d   : > { %v11213_v10 = vadd.f32 %v21952_v13, %v11145_v18  ;;  %v11147_v3 = vmax.f32 %v10058_v56, %v10972_v16  ;;  %v16726_v49 = vld [vmem:[%s21973_s23 + $0x10] ss:$8 sps:$4 sm:$0xff]   ;;  %v16728_v1 = vld [vmem:[%s21973_s23 + $0x14] ss:$8 sps:$4 sm:$0xff]   ;;  %12075 = vmatprep.subr.bf16.mxu1 %v23406_v23  ;;  %v23428_v56 = vmax.f32 %v21209_v33, %v21211_v31 }
 0x78e   : > { %11486 = vst.msk [vmem:[%s21973_s23 + $0x28] sm:$0xff] %vm18583_vm3, %v15010_v8  ;;  %v11214_v59 = vadd.f32 %v21958_v51, %v11146_v52  ;;  %v11148_v50 = vmax.f32 %v10059_v0, %v10974_v63  ;;  %14769 = vmatprep.mubr.msk.bf16.mxu1 %vm4889_vm5, %v16728_v1  ;;  %v16735_v52 = vld [vmem:[%s22720_s5 + $0x98] sm:$0xff]  }
 0x78f   : > { %v11269_v27 = vmax.f32 %v11213_v10, 0.0  ;;  %v11215_v11 = vadd.f32 %v21952_v13, %v11147_v3  ;;  %11804 = vmatmul.mubr.bf16.gmra.mrb[84].mxu1 %v16726_v49  ;;  %v23429_v10 = vmax.f32 %v21221_v12, %v21223_v7  ;;  %v23430_v1 = vld [vmem:[#allocation7_spill] sm:$0xff] }
 0x790   : > { %v11270_v9 = vmax.f32 %v11214_v59, 0.0  ;;  %v11216_v35 = vadd.f32 %v21958_v51, %v11148_v50  ;;  %v9889_v30 = vpop.f32.mrb[40].mxu0  ;;  %12076 = vmatpush1.bf16.msra.mxu1 %v16736_v55  ;;  %v23431_v59 = vld [vmem:[#allocation8_spill] sm:$0xff] }
 0x791   : > { %v10978_v37 = vpop.f32.mrb[40].mxu1  ;;  %v11271_v25 = vmax.f32 %v11215_v11, 0.0  ;;  %v10060_v24 = vmax.f32 %v23424_v58, %v9889_v30  ;;  %v9891_v32 = vpop.f32.mrb[41].mxu0  ;;  %12077 = vmatprep.subr.bf16.mxu1 %v23406_v23  ;;  %v23432_v50 = vmax.f32 %v23430_v1, %v23431_v59  ;;  %v23434_v30 = vld [vmem:[#allocation10_spill] sm:$0xff]  ;;  %v16740_v58 = vld [vmem:[%s22720_s5 + $0xa0] sm:$0xff]  }
 0x792   : > { %v10980_v20 = vpop.f32.mrb[41].mxu1  ;;  %v15011_v6 = vpack.c.bf16 %v11270_v9, %v11269_v27  ;;  %v11272_v4 = vmax.f32 %v11216_v35, 0.0  ;;  %v10061_v38 = vmax.f32 %v23425_v14, %v9891_v32  ;;  %v9893_v46 = vpop.f32.mrb[42].mxu0  ;;  %v23433_v35 = vld [vmem:[#allocation9_spill] sm:$0xff]  ;;  %v16747_v1 = vld [vmem:[%s22720_s5 + $0xb0] sm:$0xff]  }
 0x793   : > { %v10982_v60 = vpop.f32.mrb[42].mxu1  ;;  %v11149_v36 = vmax.f32 %v10060_v24, %v10978_v37  ;;  %v10062_v22 = vmax.f32 %v23426_v45, %v9893_v46  ;;  %v9895_v29 = vpop.f32.mrb[43].mxu0  ;;  %v23435_v37 = vmax.f32 %v23433_v35, %v23434_v30  ;;  %v16750_v24 = vld [vmem:[%s22720_s5 + $0x108] sm:$0xff]  }
 0x794   : > { %v10984_v2 = vpop.f32.mrb[43].mxu1  ;;  %11487 = vst.msk [vmem:[%s21973_s23 + $0x30] sm:$0xff] %vm18583_vm3, %v15011_v6  ;;  %v15012_v41 = vpack.c.bf16 %v11272_v4, %v11271_v25  ;;  %v11150_v43 = vmax.f32 %v10061_v38, %v10980_v20  ;;  %v10063_v62 = vmax.f32 %v23427_v19, %v9895_v29  ;;  %12078 = vmatpush1.bf16.msra.mxu1 %v16741_v48 }
 0x795   : > { %v11217_v26 = vadd.f32 %v21952_v13, %v11149_v36  ;;  %v11151_v53 = vmax.f32 %v10062_v22, %v10982_v60  ;;  %v16730_v57 = vld [vmem:[%s21973_s23 + $0x20] ss:$8 sps:$4 sm:$0xff]   ;;  %v16732_v17 = vld [vmem:[%s21973_s23 + $0x24] ss:$8 sps:$4 sm:$0xff]   ;;  %12079 = vmatprep.subr.bf16.mxu1 %v23406_v23 }
 0x796   : > { %11488 = vst.msk [vmem:[%s21973_s23 + $0x38] sm:$0xff] %vm18583_vm3, %v15012_v41  ;;  %v11218_v44 = vadd.f32 %v21958_v51, %v11150_v43  ;;  %v11152_v15 = vmax.f32 %v10063_v62, %v10984_v2  ;;  %14753 = vmatprep.mubr.msk.bf16.mxu0 %vm4889_vm5, %v16732_v17  ;;  %v23436_v2 = vld [vmem:[#allocation11_spill] sm:$0xff]  ;;  %v23437_v41 = vld [vmem:[#allocation12_spill] sm:$0xff]  ;;  %v23439_v17 = vld [vmem:[#allocation13_spill] sm:$0xff] }
 0x797   : > { %v11273_v21 = vmax.f32 %v11217_v26, 0.0  ;;  %v11219_v5 = vadd.f32 %v21952_v13, %v11151_v53  ;;  %11667 = vmatmul.mubr.bf16.vlgmr.msra.gmra.mrb[80].mxu0 %v16730_v57  ;;  %v23438_v43 = vmax.f32 %v23436_v2, %v23437_v41  ;;  %v16752_v26 = vld [vmem:[%s22720_s5 + $0x110] sm:$0xff]   ;;  %v23454_v2 = vld [vmem:[#allocation23_spill] sm:$0xff]  ;;  %v23455_v41 = vld [vmem:[#allocation24_spill] sm:$0xff] }
 0x798   : > { %v11274_v47 = vmax.f32 %v11218_v44, 0.0  ;;  %v11220_v61 = vadd.f32 %v21958_v51, %v11152_v15  ;;  %v9899_v16 = vpop.f32.mrb[44].mxu0  ;;  %11916 = vmatpush1.bf16.msra.mxu0 %v16733_v40  ;;  %12080 = vmatpush1.bf16.msra.mxu1 %v16743_v42  ;;  %v16742_v42 = vld [vmem:[%s22720_s5 + $0xa8] sm:$0xff]   ;;  %v23440_v44 = vld [vmem:[#allocation14_spill] sm:$0xff] }
 0x799   : > { %v10988_v18 = vpop.f32.mrb[44].mxu1  ;;  %v11275_v28 = vmax.f32 %v11219_v5, 0.0  ;;  %v10064_v39 = vmax.f32 %v23428_v56, %v9899_v16  ;;  %v9901_v63 = vpop.f32.mrb[45].mxu0  ;;  %11917 = vmatprep.subr.bf16.mxu0 %v23406_v23  ;;  %12081 = vmatprep.subr.bf16.mxu1 %v23406_v23  ;;  %v23441_v15 = vmax.f32 %v23439_v17, %v23440_v44 }
 0x79a   : > { %v10990_v8 = vpop.f32.mrb[45].mxu1  ;;  %v15013_v0 = vpack.c.bf16 %v11274_v47, %v11273_v21  ;;  %v11276_v55 = vmax.f32 %v11220_v61, 0.0  ;;  %v10065_v31 = vmax.f32 %v23429_v10, %v9901_v63  ;;  %v9903_v33 = vpop.f32.mrb[46].mxu0  ;;  %v16754_v61 = vld [vmem:[%s22720_s5 + $0x118] sm:$0x3f]  }
 0x79b   : > { %v10992_v3 = vpop.f32.mrb[46].mxu1  ;;  %v11153_v49 = vmax.f32 %v10064_v39, %v10988_v18  ;;  %v10066_v27 = vmax.f32 %v23432_v50, %v9903_v33  ;;  %v9905_v11 = vpop.f32.mrb[47].mxu0  ;;  %v23442_v18 = vld [vmem:[#allocation15_spill] sm:$0xff] }
 0x79c   : > { %v10994_v9 = vpop.f32.mrb[47].mxu1  ;;  %11489 = vst.msk [vmem:[%s21973_s23 + $0x40] sm:$0xff] %vm18583_vm3, %v15013_v0  ;;  %v15014_v12 = vpack.c.bf16 %v11276_v55, %v11275_v28  ;;  %v11154_v7 = vmax.f32 %v10065_v31, %v10990_v8  ;;  %v10067_v25 = vmax.f32 %v23435_v37, %v9905_v11  ;;  %11918 = vmatpush1.bf16.msra.mxu0 %v16735_v52  ;;  %v23443_v28 = vld [vmem:[#allocation16_spill] sm:$0xff]  ;;  %v23445_v0 = vld [vmem:[#allocation17_spill] sm:$0xff]  ;;  %v23446_v55 = vld [vmem:[#allocation18_spill] sm:$0xff] }
 0x79d   : > { %v11221_v32 = vadd.f32 %v21952_v13, %v11153_v49  ;;  %v11155_v20 = vmax.f32 %v10066_v27, %v10992_v3  ;;  %v16737_v48 = vld [vmem:[%s21973_s23 + $0x30] ss:$8 sps:$4 sm:$0xff]   ;;  %v16739_v6 = vld [vmem:[%s21973_s23 + $0x34] ss:$8 sps:$4 sm:$0xff]   ;;  %12082 = vmatpush1.bf16.msra.mxu1 %v16748_v54  ;;  %11919 = vmatprep.subr.bf16.mxu0 %v23406_v23  ;;  %v23444_v56 = vmax.f32 %v23442_v18, %v23443_v28  ;;  %v12069_v27 = vsel %vm4932_vm4, %v16754_v61, 0 }
 0x79e   : > { %11490 = vst.msk [vmem:[%s21973_s23 + $0x48] sm:$0xff] %vm18583_vm3, %v15014_v12  ;;  %v11222_v4 = vadd.f32 %v21958_v51, %v11154_v7  ;;  %v11156_v14 = vmax.f32 %v10067_v25, %v10994_v9  ;;  %12083 = vmatprep.subr.bf16.mxu1 %v23406_v23  ;;  %14754 = vmatprep.mubr.msk.bf16.mxu0 %vm4889_vm5, %v16739_v6  ;;  %v23448_v25 = vld [vmem:[#allocation19_spill] sm:$0xff] }
 0x79f   : > { %v11277_v38 = vmax.f32 %v11221_v32, 0.0  ;;  %v11223_v46 = vadd.f32 %v21952_v13, %v11155_v20  ;;  %11675 = vmatmul.mubr.bf16.gmra.mrb[84].mxu0 %v16737_v48  ;;  %v23447_v10 = vmax.f32 %v23445_v0, %v23446_v55  ;;  %v16749_v6 = vld [vmem:[%s22720_s5 + $0xb8] sm:$0xff]  }
 0x7a0   : > { %v11278_v60 = vmax.f32 %v11222_v4, 0.0  ;;  %v11224_v36 = vadd.f32 %v21958_v51, %v11156_v14  ;;  %v9909_v45 = vpop.f32.mrb[48].mxu0  ;;  %11920 = vmatpush1.bf16.msra.mxu0 %v16740_v58  ;;  %v23449_v58 = vld [vmem:[#allocation20_spill] sm:$0xff] }
 0x7a1   : > { %v10998_v22 = vpop.f32.mrb[48].mxu1  ;;  %v11279_v29 = vmax.f32 %v11223_v46, 0.0  ;;  %v10068_v19 = vmax.f32 %v23438_v43, %v9909_v45  ;;  %v9911_v62 = vpop.f32.mrb[49].mxu0  ;;  %12084 = vmatpush1.bf16.msra.mxu1 %v16750_v24  ;;  %11921 = vmatprep.subr.bf16.mxu0 %v23406_v23  ;;  %v23450_v24 = vmax.f32 %v23448_v25, %v23449_v58  ;;  %v23452_v46 = vld [vmem:[#allocation22_spill] sm:$0xff]  ;;  %v23456_v43 = vmax.f32 %v23454_v2, %v23455_v41 }
 0x7a2   : > { %v11000_v40 = vpop.f32.mrb[49].mxu1  ;;  %v15015_v53 = vpack.c.bf16 %v11278_v60, %v11277_v38  ;;  %v11280_v57 = vmax.f32 %v11224_v36, 0.0  ;;  %v10069_v21 = vmax.f32 %v23441_v15, %v9911_v62  ;;  %v9913_v5 = vpop.f32.mrb[50].mxu0  ;;  %12085 = vmatprep.subr.bf16.mxu1 %v23406_v23  ;;  %v23451_v38 = vld [vmem:[#allocation21_spill] sm:$0xff] }
 0x7a3   : > { %v11002_v47 = vpop.f32.mrb[50].mxu1  ;;  %v11157_v16 = vmax.f32 %v10068_v19, %v10998_v22  ;;  %v10070_v39 = vmax.f32 %v23444_v56, %v9913_v5  ;;  %v9915_v63 = vpop.f32.mrb[51].mxu0  ;;  %v23453_v60 = vmax.f32 %v23451_v38, %v23452_v46  ;;  %v16751_v5 = vld [vmem:[%s22720_s5 + $0xc0] sm:$0xff]   ;;  %v16759_v38 = vld [vmem:[%s22720_s5 + $0x168] sm:$0xff]  }
 0x7a4   : > { %v11004_v8 = vpop.f32.mrb[51].mxu1  ;;  %11491 = vst.msk [vmem:[%s21973_s23 + $0x50] sm:$0xff] %vm18583_vm3, %v15015_v53  ;;  %v15016_v52 = vpack.c.bf16 %v11280_v57, %v11279_v29  ;;  %v11158_v54 = vmax.f32 %v10069_v21, %v11000_v40  ;;  %v10071_v31 = vmax.f32 %v23447_v10, %v9915_v63  ;;  %11922 = vmatpush1.bf16.msra.mxu0 %v16742_v42  ;;  %v23457_v53 = vld [vmem:[#allocation25_spill] sm:$0xff]  ;;  %v23458_v57 = vld [vmem:[#allocation26_spill] sm:$0xff] }
 0x7a5   : > { %v11225_v33 = vadd.f32 %v21952_v13, %v11157_v16  ;;  %v11159_v3 = vmax.f32 %v10070_v39, %v11002_v47  ;;  %v16746_v49 = vld [vmem:[%s21973_s23 + $0x44] ss:$8 sps:$4 sm:$0xff]   ;;  %12086 = vmatpush1.bf16.msra.mxu1 %v16752_v26  ;;  %11923 = vmatprep.subr.bf16.mxu0 %v23406_v23  ;;  %v23459_v17 = vmax.f32 %v23457_v53, %v23458_v57  ;;  %v23472_v53 = vld [vmem:[#allocation35_spill] sm:$0xff] }
 0x7a6   : > { %11492 = vst.msk [vmem:[%s21973_s23 + $0x58] sm:$0xff] %vm18583_vm3, %v15016_v52  ;;  %v11226_v59 = vadd.f32 %v21958_v51, %v11158_v54  ;;  %v11160_v50 = vmax.f32 %v10071_v31, %v11004_v8  ;;  %12087 = vmatprep.subr.bf16.mxu1 %v23406_v23  ;;  %14801 = vmatprep.mubr.msk.bf16.mxu0 %vm4889_vm5, %v16746_v49  ;;  %v23460_v52 = vld [vmem:[#allocation27_spill] sm:$0xff]  ;;  %v23461_v54 = vld [vmem:[#allocation28_spill] sm:$0xff] }
 0x7a7   : > { %v11281_v11 = vmax.f32 %v11225_v33, 0.0  ;;  %v11227_v9 = vadd.f32 %v21952_v13, %v11159_v3  ;;  %v23462_v0 = vmax.f32 %v23460_v52, %v23461_v54  ;;  %v16753_v33 = vld [vmem:[%s22720_s5 + $0xc8] sm:$0xff]   ;;  %v23473_v57 = vld [vmem:[#allocation36_spill] sm:$0xff]  ;;  %v16764_v52 = vld [vmem:[%s22720_s5 + $0x170] sm:$0xff]  }
 0x7a8   : > { %v11282_v12 = vmax.f32 %v11226_v59, 0.0  ;;  %v11228_v7 = vadd.f32 %v21958_v51, %v11160_v50  ;;  %v9919_v35 = vpop.f32.mrb[52].mxu0  ;;  %11924 = vmatpush1.bf16.msra.mxu0 %v16747_v1  ;;  %v23463_v1 = vld [vmem:[#allocation29_spill] sm:$0xff]  ;;  %v23464_v59 = vld [vmem:[#allocation30_spill] sm:$0xff] }
 0x7a9   : > { %v11008_v30 = vpop.f32.mrb[52].mxu1  ;;  %v11283_v37 = vmax.f32 %v11227_v9, 0.0  ;;  %v10072_v32 = vmax.f32 %v23450_v24, %v9919_v35  ;;  %v9921_v20 = vpop.f32.mrb[53].mxu0  ;;  %12088 = vmatpush1.bf16.msra.mxu1 %v12069_v27  ;;  %11925 = vmatprep.subr.bf16.mxu0 %v23406_v23  ;;  %v23465_v50 = vmax.f32 %v23463_v1, %v23464_v59  ;;  %v23466_v35 = vld [vmem:[#allocation31_spill] sm:$0xff] }
 0x7aa   : > { %v11010_v48 = vpop.f32.mrb[53].mxu1  ;;  %v15017_v4 = vpack.c.bf16 %v11282_v12, %v11281_v11  ;;  %v11284_v14 = vmax.f32 %v11228_v7, 0.0  ;;  %v10073_v36 = vmax.f32 %v23453_v60, %v9921_v20  ;;  %v9923_v45 = vpop.f32.mrb[54].mxu0  ;;  %12383 = vmatprep.subr.bf16.mxu1 %v23406_v23  ;;  %v16758_v12 = vld [vmem:[%s22720_s5 + $0xd0] sm:$0x3f]  }
 0x7ab   : > { %v11012_v22 = vpop.f32.mrb[54].mxu1  ;;  %v11161_v29 = vmax.f32 %v10072_v32, %v11008_v30  ;;  %v10074_v19 = vmax.f32 %v23456_v43, %v9923_v45  ;;  %v9925_v62 = vpop.f32.mrb[55].mxu0  ;;  %v23467_v30 = vld [vmem:[#allocation32_spill] sm:$0xff]  ;;  %v11913_v2 = vsel %vm4932_vm4, %v16758_v12, 0  ;;  %v16768_v12 = vld [vmem:[%s22720_s5 + $0x128] sm:$0xff]  }
 0x7ac   : > { %v11014_v40 = vpop.f32.mrb[55].mxu1  ;;  %11493 = vst.msk [vmem:[%s21973_s23 + $0x60] sm:$0xff] %vm18583_vm3, %v15017_v4  ;;  %v15018_v42 = vpack.c.bf16 %v11284_v14, %v11283_v37  ;;  %v11162_v26 = vmax.f32 %v10073_v36, %v11010_v48  ;;  %v10075_v44 = vmax.f32 %v23459_v17, %v9925_v62  ;;  %11926 = vmatpush1.bf16.msra.mxu0 %v16749_v6  ;;  %v23469_v48 = vld [vmem:[#allocation33_spill] sm:$0xff]  ;;  %v23470_v6 = vld [vmem:[#allocation34_spill] sm:$0xff] }
 0x7ad   : > { %v11229_v15 = vadd.f32 %v21952_v13, %v11161_v29  ;;  %v11163_v21 = vmax.f32 %v10074_v19, %v11012_v22  ;;  %11927 = vmatprep.subr.bf16.mxu0 %v23406_v23  ;;  %v23468_v37 = vmax.f32 %v23466_v35, %v23467_v30  ;;  %v23471_v4 = vmax.f32 %v23469_v48, %v23470_v6 }
 0x7ae   : > { %11494 = vst.msk [vmem:[%s21973_s23 + $0x68] sm:$0xff] %vm18583_vm3, %v15018_v42  ;;  %v11230_v47 = vadd.f32 %v21958_v51, %v11162_v26  ;;  %v11164_v61 = vmax.f32 %v10075_v44, %v11014_v40  ;;  %v23474_v17 = vmax.f32 %v23472_v53, %v23473_v57 }
 0x7af   : > { %v11285_v16 = vmax.f32 %v11229_v15, 0.0  ;;  %v11231_v18 = vadd.f32 %v21952_v13, %v11163_v21 }
 0x7b0   : > { %v11286_v28 = vmax.f32 %v11230_v47, 0.0  ;;  %v11232_v56 = vadd.f32 %v21958_v51, %v11164_v61  ;;  %v9929_v39 = vpop.f32.mrb[56].mxu0  ;;  %11928 = vmatpush1.bf16.msra.mxu0 %v16751_v5  ;;  %v16763_v5 = vld [vmem:[%s22720_s5 + $0x120] sm:$0xff]  }
 0x7b1   : > { %v11018_v63 = vpop.f32.mrb[56].mxu1  ;;  %v11287_v8 = vmax.f32 %v11231_v18, 0.0  ;;  %v10076_v55 = vmax.f32 %v23462_v0, %v9929_v39  ;;  %v9931_v10 = vpop.f32.mrb[57].mxu0  ;;  %11929 = vmatprep.subr.bf16.mxu0 %v23406_v23  ;;  %v16744_v47 = vld [vmem:[%s21973_s23 + $0x40] ss:$8 sps:$4 sm:$0xff]   ;;  %v23478_v0 = vld [vmem:[#allocation39_spill] sm:$0xff] }
 0x7b2   : > { %v11020_v31 = vpop.f32.mrb[57].mxu1  ;;  %v15019_v3 = vpack.c.bf16 %v11286_v28, %v11285_v16  ;;  %v11288_v49 = vmax.f32 %v11232_v56, 0.0  ;;  %v10077_v27 = vmax.f32 %v23465_v50, %v9931_v10  ;;  %v9933_v11 = vpop.f32.mrb[58].mxu0  ;;  %v23475_v18 = vld [vmem:[#allocation37_spill] sm:$0xff]  ;;  %v23476_v28 = vld [vmem:[#allocation38_spill] sm:$0xff] }
 0x7b3   : > { %v11022_v9 = vpop.f32.mrb[58].mxu1  ;;  %v11165_v7 = vmax.f32 %v10076_v55, %v11018_v63  ;;  %v10078_v25 = vmax.f32 %v23468_v37, %v9933_v11  ;;  %v9935_v58 = vpop.f32.mrb[59].mxu0  ;;  %v23477_v56 = vmax.f32 %v23475_v18, %v23476_v28  ;;  %v23479_v55 = vld [vmem:[#allocation40_spill] sm:$0xff]  ;;  %v23481_v50 = vld [vmem:[#allocation41_spill] sm:$0xff] }
 0x7b4   : > { %v11024_v24 = vpop.f32.mrb[59].mxu1  ;;  %11495 = vst.msk [vmem:[%s21973_s23 + $0x70] sm:$0xff] %vm18583_vm3, %v15019_v3  ;;  %v15020_v32 = vpack.c.bf16 %v11288_v49, %v11287_v8  ;;  %v11166_v20 = vmax.f32 %v10077_v27, %v11020_v31  ;;  %v10079_v14 = vmax.f32 %v23471_v4, %v9935_v58  ;;  %11930 = vmatpush1.bf16.msra.mxu0 %v16753_v33  ;;  %v16762_v49 = vld [vmem:[%s21973_s23 + $0x54] ss:$8 sps:$4 sm:$0xff]  }
 0x7b5   : > { %v11233_v46 = vadd.f32 %v21952_v13, %v11165_v7  ;;  %v11167_v60 = vmax.f32 %v10078_v25, %v11022_v9  ;;  %v16755_v36 = vld [vmem:[%s21973_s23 + $0x60] ss:$8 sps:$4 sm:$0xff]   ;;  %v16757_v45 = vld [vmem:[%s21973_s23 + $0x64] ss:$8 sps:$4 sm:$0xff]   ;;  %11931 = vmatprep.subr.bf16.mxu0 %v23406_v23  ;;  %v23480_v10 = vmax.f32 %v23478_v0, %v23479_v55  ;;  %v23482_v27 = vld [vmem:[#allocation42_spill] sm:$0xff] }
 0x7b6   : > { %11496 = vst.msk [vmem:[%s21973_s23 + $0x78] sm:$0xff] %vm18583_vm3, %v15020_v32  ;;  %v11234_v22 = vadd.f32 %v21958_v51, %v11166_v20  ;;  %v11168_v29 = vmax.f32 %v10079_v14, %v11024_v24  ;;  %14834 = vmatprep.mubr.msk.bf16.mxu1 %vm4889_vm5, %v16757_v45  ;;  %v23483_v11 = vmax.f32 %v23481_v50, %v23482_v27  ;;  %v16769_v24 = vld [vmem:[%s22720_s5 + $0x178] sm:$0xff]  }
 0x7b7   : > { %v11289_v41 = vmax.f32 %v11233_v46, 0.0  ;;  %v11235_v43 = vadd.f32 %v21952_v13, %v11167_v60  ;;  %12104 = vmatmul.mubr.bf16.vlgmr.msra.gmra.mrb[88].mxu1 %v16755_v36  ;;  %v23484_v46 = vld [vmem:[#allocation43_spill] sm:$0xff]  ;;  %v23485_v60 = vld [vmem:[#allocation44_spill] sm:$0xff] }
 0x7b8   : > { %v11290_v19 = vmax.f32 %v11234_v22, 0.0  ;;  %v11236_v62 = vadd.f32 %v21958_v51, %v11168_v29  ;;  %v9939_v40 = vpop.f32.mrb[60].mxu0  ;;  %11932 = vmatpush1.bf16.msra.mxu0 %v11913_v2  ;;  %12384 = vmatpush1.bf16.msra.mxu1 %v16759_v38  ;;  %v23486_v36 = vmax.f32 %v23484_v46, %v23485_v60  ;;  %v16770_v2 = vld [vmem:[%s22720_s5 + $0x130] sm:$0xff]   ;;  %v16775_v55 = vld [vmem:[%s22720_s5 + $0x138] sm:$0xff]  }
 0x7b9   : > { %v11028_v42 = vpop.f32.mrb[60].mxu1  ;;  %v11291_v26 = vmax.f32 %v11235_v43, 0.0  ;;  %v10080_v44 = vmax.f32 %v23474_v17, %v9939_v40  ;;  %v9941_v15 = vpop.f32.mrb[61].mxu0  ;;  %12227 = vmatprep.subr.bf16.mxu0 %v23406_v23  ;;  %12385 = vmatprep.subr.bf16.mxu1 %v23406_v23  ;;  %v23488_v40 = vld [vmem:[#allocation46_spill] sm:$0xff]  ;;  %v16771_v17 = vld [vmem:[%s22720_s5 + $0x180] sm:$0xff]   ;;  %v23502_v60 = vld [vmem:[#allocation55_spill] sm:$0xff] }
 0x7ba   : > { %v11030_v21 = vpop.f32.mrb[61].mxu1  ;;  %v15021_v61 = vpack.c.bf16 %v11290_v19, %v11289_v41  ;;  %v11292_v16 = vmax.f32 %v11236_v62, 0.0  ;;  %v10081_v39 = vmax.f32 %v23477_v56, %v9941_v15  ;;  %v9943_v63 = vpop.f32.mrb[62].mxu0  ;;  %v16760_v19 = vld [vmem:[%s21973_s23 + $0x50] ss:$8 sps:$4 sm:$0xff]   ;;  %v23487_v62 = vld [vmem:[#allocation45_spill] sm:$0xff] }
 0x7bb   : > { %v11032_v8 = vpop.f32.mrb[62].mxu1  ;;  %v11169_v54 = vmax.f32 %v10080_v44, %v11028_v42  ;;  %v10082_v31 = vmax.f32 %v23480_v10, %v9943_v63  ;;  %v9945_v33 = vpop.f32.mrb[63].mxu0  ;;  %11948 = vmatmul.mubr.bf16.vlgmr.msra.gmra.mrb[88].mxu0 %v16744_v47  ;;  %v23489_v42 = vmax.f32 %v23487_v62, %v23488_v40  ;;  %v23490_v15 = vld [vmem:[#allocation47_spill] sm:$0xff]  ;;  %v23493_v56 = vld [vmem:[#allocation49_spill] sm:$0xff]  ;;  %v23506_v62 = vld [vmem:[#allocation58_spill] sm:$0xff] }
 0x7bc   : > { %v11034_v3 = vpop.f32.mrb[63].mxu1  ;;  %11497 = vst.msk [vmem:[%s21973_s23 + $0x80] sm:$0xff] %vm18583_vm3, %v15021_v61  ;;  %v15022_v1 = vpack.c.bf16 %v11292_v16, %v11291_v26  ;;  %v11170_v59 = vmax.f32 %v10081_v39, %v11030_v21  ;;  %v10083_v9 = vmax.f32 %v23483_v11, %v9945_v33  ;;  %14802 = vmatprep.mubr.msk.bf16.mxu0 %vm4889_vm5, %v16762_v49  ;;  %v23491_v21 = vld [vmem:[#allocation48_spill] sm:$0xff]  ;;  %v23494_v39 = vld [vmem:[#allocation50_spill] sm:$0xff]  ;;  %v16776_v33 = vld [vmem:[%s22720_s5 + $0x188] sm:$0xff]  }
 0x7bd   : > { %v11237_v7 = vadd.f32 %v21952_v13, %v11169_v54  ;;  %v11171_v35 = vmax.f32 %v10082_v31, %v11032_v8  ;;  %12228 = vmatpush1.bf16.msra.mxu0 %v16763_v5  ;;  %v16765_v30 = vld [vmem:[%s21973_s23 + $0x70] ss:$8 sps:$4 sm:$0xff]   ;;  %v16767_v37 = vld [vmem:[%s21973_s23 + $0x74] ss:$8 sps:$4 sm:$0xff]   ;;  %12386 = vmatpush1.bf16.msra.mxu1 %v16764_v52  ;;  %v23492_v5 = vmax.f32 %v23490_v15, %v23491_v21 }
 0x7be   : > { %11498 = vst.msk [vmem:[%s21973_s23 + $0x88] sm:$0xff] %vm18583_vm3, %v15022_v1  ;;  %v11238_v25 = vadd.f32 %v21958_v51, %v11170_v59  ;;  %v11172_v58 = vmax.f32 %v10083_v9, %v11034_v3  ;;  %12229 = vmatprep.subr.bf16.mxu0 %v23406_v23  ;;  %14835 = vmatprep.mubr.msk.bf16.mxu1 %vm4889_vm5, %v16767_v37  ;;  %v23496_v9 = vld [vmem:[#allocation51_spill] sm:$0xff] }
 0x7bf   : > { %v11293_v32 = vmax.f32 %v11237_v7, 0.0  ;;  %v11239_v20 = vadd.f32 %v21952_v13, %v11171_v35  ;;  %12387 = vmatprep.subr.bf16.mxu1 %v23406_v23  ;;  %12112 = vmatmul.mubr.bf16.gmra.mrb[92].mxu1 %v16765_v30  ;;  %v23495_v63 = vmax.f32 %v23493_v56, %v23494_v39  ;;  %v16780_v15 = vld [vmem:[%s22720_s5 + $0x198] sm:$0xff]   ;;  %v23509_v39 = vld [vmem:[#allocation60_spill] sm:$0xff] }
 0x7c0   : > { %v11294_v48 = vmax.f32 %v11238_v25, 0.0  ;;  %v11240_v6 = vadd.f32 %v21958_v51, %v11172_v58  ;;  %v9949_v4 = vpop.f32.mrb[64].mxu0  ;;  %v16777_v25 = vld [vmem:[%s22720_s5 + $0x140] sm:$0xff]   ;;  %v23508_v56 = vld [vmem:[#allocation59_spill] sm:$0xff] }
 0x7c1   : > { %v11038_v14 = vpop.f32.mrb[64].mxu1  ;;  %v11295_v38 = vmax.f32 %v11239_v20, 0.0  ;;  %v10084_v45 = vmax.f32 %v23486_v36, %v9949_v4  ;;  %v9951_v22 = vpop.f32.mrb[65].mxu0  ;;  %12230 = vmatpush1.bf16.msra.mxu0 %v16768_v12  ;;  %12388 = vmatpush1.bf16.msra.mxu1 %v16769_v24  ;;  %v23497_v12 = vld [vmem:[#allocation52_spill] sm:$0xff]  ;;  %v23500_v20 = vld [vmem:[#allocation54_spill] sm:$0xff] }
 0x7c2   : > { %v11040_v29 = vpop.f32.mrb[65].mxu1  ;;  %v15023_v41 = vpack.c.bf16 %v11294_v48, %v11293_v32  ;;  %v11296_v43 = vmax.f32 %v11240_v6, 0.0  ;;  %v10085_v26 = vmax.f32 %v23489_v42, %v9951_v22  ;;  %v9953_v53 = vpop.f32.mrb[66].mxu0  ;;  %12231 = vmatprep.subr.bf16.mxu0 %v23406_v23  ;;  %12389 = vmatprep.subr.bf16.mxu1 %v23406_v23  ;;  %v23498_v7 = vmax.f32 %v23496_v9, %v23497_v12  ;;  %v23499_v32 = vld [vmem:[#allocation53_spill] sm:$0xff]  ;;  %v23503_v36 = vld [vmem:[#allocation56_spill] sm:$0xff] }
 0x7c3   : > { %v11042_v57 = vpop.f32.mrb[66].mxu1  ;;  %v11173_v44 = vmax.f32 %v10084_v45, %v11038_v14  ;;  %v10086_v47 = vmax.f32 %v23492_v5, %v9953_v53  ;;  %v9955_v61 = vpop.f32.mrb[67].mxu0  ;;  %11956 = vmatmul.mubr.bf16.gmra.mrb[92].mxu0 %v16760_v19  ;;  %v23501_v48 = vmax.f32 %v23499_v32, %v23500_v20  ;;  %v23504_v45 = vmax.f32 %v23502_v60, %v23503_v36  ;;  %v23505_v19 = vld [vmem:[#allocation57_spill] sm:$0xff]  ;;  %v23515_v9 = vld [vmem:[#allocation64_spill] sm:$0xff] }
 0x7c4   : > { %v11044_v16 = vpop.f32.mrb[67].mxu1  ;;  %11499 = vst.msk [vmem:[%s21973_s23 + $0x90] sm:$0xff] %vm18583_vm3, %v15023_v41  ;;  %v15024_v18 = vpack.c.bf16 %v11296_v43, %v11295_v38  ;;  %v11174_v28 = vmax.f32 %v10085_v26, %v11040_v29  ;;  %v10087_v8 = vmax.f32 %v23495_v63, %v9955_v61  ;;  %v16778_v38 = vld [vmem:[%s22720_s5 + $0x190] sm:$0xff]   ;;  %v23507_v40 = vmax.f32 %v23505_v19, %v23506_v62  ;;  %v23518_v32 = vld [vmem:[#allocation68_spill] sm:$0xff] }
 0x7c5   : > { %v11241_v52 = vadd.f32 %v21952_v13, %v11173_v44  ;;  %v11175_v54 = vmax.f32 %v10086_v47, %v11042_v57  ;;  %12232 = vmatpush1.bf16.msra.mxu0 %v16770_v2  ;;  %v16774_v0 = vld [vmem:[%s21973_s23 + $0x84] ss:$8 sps:$4 sm:$0xff]   ;;  %12390 = vmatpush1.bf16.msra.mxu1 %v16771_v17  ;;  %v23510_v63 = vmax.f32 %v23508_v56, %v23509_v39 }
 0x7c6   : > { %11500 = vst.msk [vmem:[%s21973_s23 + $0x98] sm:$0xff] %vm18583_vm3, %v15024_v18  ;;  %v11242_v10 = vadd.f32 %v21958_v51, %v11174_v28  ;;  %v11176_v31 = vmax.f32 %v10087_v8, %v11044_v16  ;;  %12233 = vmatprep.subr.bf16.mxu0 %v23406_v23  ;;  %14867 = vmatprep.mubr.msk.bf16.mxu0 %vm4889_vm5, %v16774_v0  ;;  %v16779_v57 = vld [vmem:[%s22720_s5 + $0x148] sm:$0xff]   ;;  %v16781_v0 = vld [vmem:[%s22720_s5 + $0x150] sm:$0xff]   ;;  %v16788_v36 = vld [vmem:[%s22720_s5 + $0x160] sm:$0x3f]  }
 0x7c7   : > { %v11297_v3 = vmax.f32 %v11241_v52, 0.0  ;;  %v11243_v49 = vadd.f32 %v21952_v13, %v11175_v54  ;;  %12391 = vmatprep.subr.bf16.mxu1 %v23406_v23 }
 0x7c8   : > { %v11298_v1 = vmax.f32 %v11242_v10, 0.0  ;;  %v11244_v59 = vadd.f32 %v21958_v51, %v11176_v31  ;;  %v9959_v50 = vpop.f32.mrb[68].mxu0  ;;  %v23511_v31 = vld [vmem:[#allocation61_spill] sm:$0xff] }
 0x7c9   : > { %v11048_v27 = vpop.f32.mrb[68].mxu1  ;;  %v11299_v11 = vmax.f32 %v11243_v49, 0.0  ;;  %v10088_v35 = vmax.f32 %v23498_v7, %v9959_v50  ;;  %v9961_v30 = vpop.f32.mrb[69].mxu0  ;;  %12234 = vmatpush1.bf16.msra.mxu0 %v16775_v55  ;;  %12392 = vmatpush1.bf16.msra.mxu1 %v16776_v33  ;;  %v23512_v33 = vld [vmem:[#allocation62_spill] sm:$0xff]  ;;  %v16782_v50 = vld [vmem:[%s22720_s5 + $0x1a0] sm:$0xff]  }
 0x7ca   : > { %v11050_v37 = vpop.f32.mrb[69].mxu1  ;;  %v15025_v58 = vpack.c.bf16 %v11298_v1, %v11297_v3  ;;  %v11300_v24 = vmax.f32 %v11244_v59, 0.0  ;;  %v10089_v6 = vmax.f32 %v23501_v48, %v9961_v30  ;;  %v9963_v4 = vpop.f32.mrb[70].mxu0  ;;  %12235 = vmatprep.subr.bf16.mxu0 %v23406_v23  ;;  %12393 = vmatprep.subr.bf16.mxu1 %v23406_v23  ;;  %v23513_v3 = vmax.f32 %v23511_v31, %v23512_v33  ;;  %v23529_v33 = vld [vmem:[#allocation76_spill] sm:$0xff] }
 0x7cb   : > { %v11052_v14 = vpop.f32.mrb[70].mxu1  ;;  %v11177_v46 = vmax.f32 %v10088_v35, %v11048_v27  ;;  %v10090_v22 = vmax.f32 %v23504_v45, %v9963_v4  ;;  %v9965_v29 = vpop.f32.mrb[71].mxu0 }
 0x7cc   : > { %v11054_v2 = vpop.f32.mrb[71].mxu1  ;;  %11501 = vst.msk [vmem:[%s21973_s23 + $0xa0] sm:$0xff] %vm18583_vm3, %v15025_v58  ;;  %v15026_v41 = vpack.c.bf16 %v11300_v24, %v11299_v11  ;;  %v11178_v43 = vmax.f32 %v10089_v6, %v11050_v37  ;;  %v10091_v42 = vmax.f32 %v23507_v40, %v9965_v29  ;;  %v23514_v11 = vld [vmem:[#allocation63_spill] sm:$0xff]  ;;  %v16787_v37 = vld [vmem:[%s22720_s5 + $0x1a8] sm:$0x3f]  }
 0x7cd   : > { %v11245_v26 = vadd.f32 %v21952_v13, %v11177_v46  ;;  %v11179_v53 = vmax.f32 %v10090_v22, %v11052_v14  ;;  %12236 = vmatpush1.bf16.msra.mxu0 %v16777_v25  ;;  %12394 = vmatpush1.bf16.msra.mxu1 %v16778_v38  ;;  %v23516_v12 = vmax.f32 %v23514_v11, %v23515_v9  ;;  %v23517_v24 = vld [vmem:[#allocation65_spill] sm:$0xff]  ;;  %v16786_v38 = vld [vmem:[%s22720_s5 + $0x158] sm:$0xff]   ;;  %v12381_v29 = vsel %vm4932_vm4, %v16787_v37, 0  ;;  %v16795_v11 = vld [vmem:[%s22720_s5 + $0x1b0] sm:$0xff]  }
 0x7ce   : > { %11502 = vst.msk [vmem:[%s21973_s23 + $0xa8] sm:$0xff] %vm18583_vm3, %v15026_v41  ;;  %v11246_v17 = vadd.f32 %v21958_v51, %v11178_v43  ;;  %v11180_v44 = vmax.f32 %v10091_v42, %v11054_v2  ;;  %12237 = vmatprep.subr.bf16.mxu0 %v23406_v23  ;;  %12395 = vmatprep.subr.bf16.mxu1 %v23406_v23  ;;  %v23520_v40 = vld [vmem:[#allocation69_spill] sm:$0xff]  ;;  %v23521_v42 = vld [vmem:[#allocation70_spill] sm:$0xff] }
 0x7cf   : > { %v11301_v21 = vmax.f32 %v11245_v26, 0.0  ;;  %v11247_v5 = vadd.f32 %v21952_v13, %v11179_v53  ;;  %v23519_v20 = vmax.f32 %v23517_v24, %v23518_v32  ;;  %v23522_v26 = vmax.f32 %v23520_v40, %v23521_v42  ;;  %v16772_v9 = vld [vmem:[%s21973_s23 + $0x80] ss:$8 sps:$4 sm:$0xff]   ;;  %v16794_v37 = vld [vmem:[%s21973_s23 + $0x94] ss:$8 sps:$4 sm:$0xff]  }
 0x7d0   : > { %v11302_v47 = vmax.f32 %v11246_v17, 0.0  ;;  %v11248_v61 = vadd.f32 %v21958_v51, %v11180_v44  ;;  %v9969_v16 = vpop.f32.mrb[72].mxu0  ;;  %v16796_v32 = vld [vmem:[%s22720_s5 + $0x1b8] sm:$0xff]  }
 0x7d1   : > { %v11058_v18 = vpop.f32.mrb[72].mxu1  ;;  %v11303_v28 = vmax.f32 %v11247_v5, 0.0  ;;  %v10092_v8 = vmax.f32 %v23510_v63, %v9969_v16  ;;  %v9971_v52 = vpop.f32.mrb[73].mxu0  ;;  %12238 = vmatpush1.bf16.msra.mxu0 %v16779_v57  ;;  %12396 = vmatpush1.bf16.msra.mxu1 %v16780_v15  ;;  %v23524_v5 = vld [vmem:[#allocation73_spill] sm:$0xff]  ;;  %v23526_v63 = vld [vmem:[#allocation74_spill] sm:$0xff]  ;;  %v12615_v40 = vld [vmem:[%s22722_s7 + $0x18] sm:$0xff] }
 0x7d2   : > { %v11060_v54 = vpop.f32.mrb[73].mxu1  ;;  %v15027_v55 = vpack.c.bf16 %v11302_v47, %v11301_v21  ;;  %v11304_v10 = vmax.f32 %v11248_v61, 0.0  ;;  %v10093_v49 = vmax.f32 %v23513_v3, %v9971_v52  ;;  %v9973_v1 = vpop.f32.mrb[74].mxu0  ;;  %12239 = vmatprep.subr.bf16.mxu0 %v23406_v23  ;;  %12397 = vmatprep.subr.bf16.mxu1 %v23406_v23  ;;  %v23523_v21 = vld [vmem:[#allocation71_spill] sm:$0xff]  ;;  %v23530_v3 = vld [vmem:[#allocation4_spill] sm:$0xff] }
 0x7d3   : > { %v11062_v59 = vpop.f32.mrb[74].mxu1  ;;  %v11181_v27 = vmax.f32 %v10092_v8, %v11058_v18  ;;  %v10094_v7 = vmax.f32 %v23516_v12, %v9973_v1  ;;  %v9975_v35 = vpop.f32.mrb[75].mxu0  ;;  %v23525_v47 = vmax.f32 %v23523_v21, %v23524_v5  ;;  %v23527_v8 = vld [vmem:[#allocation75_spill] sm:$0xff]  ;;  %v12618_v5 = vld [vmem:[%s22722_s7 + $0x30] sm:$0x3] }
 0x7d4   : > { %v11064_v30 = vpop.f32.mrb[75].mxu1  ;;  %11503 = vst.msk [vmem:[%s21973_s23 + $0xb0] sm:$0xff] %vm18583_vm3, %v15027_v55  ;;  %v15028_v25 = vpack.c.bf16 %v11304_v10, %v11303_v28  ;;  %v11182_v58 = vmax.f32 %v10093_v49, %v11060_v54  ;;  %v10095_v48 = vmax.f32 %v23519_v20, %v9975_v35  ;;  %v12225_v28 = vsel %vm4932_vm4, %v16788_v36, 0  ;;  %v16805_v36 = vld [vmem:[%s22720_s5 + $0x1e8] sm:$0xff]  }
 0x7d5   : > { %v11249_v6 = vadd.f32 %v21952_v13, %v11181_v27  ;;  %v11183_v4 = vmax.f32 %v10094_v7, %v11062_v59  ;;  %12240 = vmatpush1.bf16.msra.mxu0 %v16781_v0  ;;  %v16785_v14 = vld [vmem:[%s21973_s23 + $0xa4] ss:$8 sps:$4 sm:$0xff]   ;;  %12398 = vmatpush1.bf16.msra.mxu1 %v16782_v50  ;;  %v16783_v39 = vld [vmem:[%s21973_s23 + $0xa0] ss:$8 sps:$4 sm:$0xff]   ;;  %v23528_v52 = vmax.f32 %v23526_v63, %v23527_v8 }
 0x7d6   : > { %11504 = vst.msk [vmem:[%s21973_s23 + $0xb8] sm:$0xff] %vm18583_vm3, %v15028_v25  ;;  %v11250_v46 = vadd.f32 %v21958_v51, %v11182_v58  ;;  %v11184_v60 = vmax.f32 %v10095_v48, %v11064_v30  ;;  %12241 = vmatprep.subr.bf16.mxu0 %v23406_v23  ;;  %12399 = vmatprep.subr.bf16.mxu1 %v23406_v23 }
 0x7d7   : > { %v11305_v45 = vmax.f32 %v11249_v6, 0.0  ;;  %v11251_v22 = vadd.f32 %v21952_v13, %v11183_v4  ;;  %14900 = vmatprep.mubr.msk.bf16.mxu1 %vm4889_vm5, %v16785_v14  ;;  %v23531_v49 = vmax.f32 %v23529_v33, %v23530_v3  ;;  %v16797_v6 = vld [vmem:[%s22720_s5 + $0x1c0] sm:$0xff]   ;;  %v16792_v14 = vld [vmem:[%s21973_s23 + $0x90] ss:$8 sps:$4 sm:$0xff]  }
 0x7d8   : > { %v11306_v2 = vmax.f32 %v11250_v46, 0.0  ;;  %v11252_v41 = vadd.f32 %v21958_v51, %v11184_v60  ;;  %v9979_v43 = vpop.f32.mrb[76].mxu0  ;;  %v16802_v46 = vld [vmem:[%s22720_s5 + $0x1d0] sm:$0xff]   ;;  %v16804_v60 = vld [vmem:[%s22720_s5 + $0x1e0] sm:$0xff]  }
 0x7d9   : > { %v11068_v19 = vpop.f32.mrb[76].mxu1  ;;  %v11307_v62 = vmax.f32 %v11251_v22, 0.0  ;;  %v10096_v53 = vmax.f32 %v23522_v26, %v9979_v43  ;;  %v9981_v57 = vpop.f32.mrb[77].mxu0  ;;  %12242 = vmatpush1.bf16.msra.mxu0 %v16786_v38  ;;  %12400 = vmatpush1.bf16.msra.mxu1 %v12381_v29  ;;  %v16801_v38 = vld [vmem:[%s22720_s5 + $0x1c8] sm:$0xff]   ;;  %v12612_v43 = vld [vmem:[%s22722_s7] sm:$0xff] }
 0x7da   : > { %v11070_v17 = vpop.f32.mrb[77].mxu1  ;;  %v15029_v44 = vpack.c.bf16 %v11306_v2, %v11305_v45  ;;  %v11308_v15 = vmax.f32 %v11252_v41, 0.0  ;;  %v10097_v61 = vmax.f32 %v23525_v47, %v9981_v57  ;;  %v9983_v16 = vpop.f32.mrb[78].mxu0  ;;  %12243 = vmatprep.subr.bf16.mxu0 %v23406_v23  ;;  %v16806_v45 = vld [vmem:[%s22720_s5 + $0x1f0] sm:$0x3f]   ;;  %v12617_v57 = vld [vmem:[%s22722_s7 + $0x28] sm:$0xff] }
 0x7db   : > { %v11072_v18 = vpop.f32.mrb[78].mxu1  ;;  %v11185_v56 = vmax.f32 %v10096_v53, %v11068_v19  ;;  %v10098_v54 = vmax.f32 %v23528_v52, %v9983_v16  ;;  %v9985_v0 = vpop.f32.mrb[79].mxu0  ;;  %v12537_v22 = vsel %vm4932_vm4, %v16806_v45, 0  ;;  %v12613_v19 = vld [vmem:[%s22722_s7 + $0x8] sm:$0xff]  ;;  %v12616_v53 = vld [vmem:[%s22722_s7 + $0x20] sm:$0xff] }
 0x7dc   : > { %v11074_v55 = vpop.f32.mrb[79].mxu1  ;;  %11505 = vst.msk [vmem:[%s21973_s23 + $0xc0] sm:$0xff] %vm18583_vm3, %v15029_v44  ;;  %v15030_v10 = vpack.c.bf16 %v11308_v15, %v11307_v62  ;;  %v11186_v31 = vmax.f32 %v10097_v61, %v11070_v17  ;;  %v10099_v1 = vmax.f32 %v23531_v49, %v9985_v0  ;;  %12416 = vmatmul.mubr.bf16.vlgmr.msra.gmra.mrb[96].mxu1 %v16783_v39 }
 0x7dd   : > { %v11253_v59 = vadd.f32 %v21952_v13, %v11185_v56  ;;  %v11187_v50 = vmax.f32 %v10098_v54, %v11072_v18  ;;  %12244 = vmatpush1.bf16.msra.mxu0 %v12225_v28  ;;  %v16791_v27 = vld [vmem:[%s21973_s23 + $0xb4] ss:$8 sps:$4 sm:$0xff]   ;;  %v16789_v48 = vld [vmem:[%s21973_s23 + $0xb0] ss:$8 sps:$4 sm:$0xff]   ;;  %v15068_v62 = vpack.c.bf16 %v12613_v19, %v12612_v43  ;;  %v15076_v44 = vpack.c.bf16 %v12617_v57, %v12616_v53 }
 0x7de   : > { %11506 = vst.msk [vmem:[%s21973_s23 + $0xc8] sm:$0xff] %vm18583_vm3, %v15030_v10  ;;  %v11254_v12 = vadd.f32 %v21958_v51, %v11186_v31  ;;  %v11188_v7 = vmax.f32 %v10099_v1, %v11074_v55  ;;  %12539 = vmatprep.subr.bf16.mxu0 %v23406_v23  ;;  %14901 = vmatprep.mubr.msk.bf16.mxu1 %vm4889_vm5, %v16791_v27 }
 0x7df   : > { %v11309_v35 = vmax.f32 %v11253_v59, 0.0  ;;  %v11255_v30 = vadd.f32 %v21952_v13, %v11187_v50  ;;  %15069 = vmatprep.subr.bf16.mxu1 %v15068_v62 }
 0x7e0   : > { %v11310_v25 = vmax.f32 %v11254_v12, 0.0  ;;  %v11256_v58 = vadd.f32 %v21958_v51, %v11188_v7  ;;  %12260 = vmatmul.mubr.bf16.vlgmr.msra.gmra.mrb[96].mxu0 %v16772_v9  ;;  %15071 = vmatpush3.bf16.msra.mxu1 %v15068_v62 }
 0x7e1   : > { %v11311_v24 = vmax.f32 %v11255_v30, 0.0  ;;  %14868 = vmatprep.mubr.msk.bf16.mxu0 %vm4889_vm5, %v16794_v37  ;;  %12540 = vmatpush1.bf16.msra.mxu0 %v16795_v11 }
 0x7e2   : > { %v15031_v20 = vpack.c.bf16 %v11310_v25, %v11309_v35  ;;  %v11312_v13 = vmax.f32 %v11256_v58, 0.0  ;;  %12541 = vmatprep.subr.bf16.mxu0 %v23406_v23 }
 0x7e4   : > { %11507 = vst.msk [vmem:[%s21973_s23 + $0xd0] sm:$0xff] %vm18583_vm3, %v15031_v20  ;;  %v15032_v51 = vpack.c.bf16 %v11312_v13, %v11311_v24  ;;  %12424 = vmatmul.mubr.bf16.gmra.mrb[100].mxu1 %v16789_v48 }
 0x7e5   : > { %12542 = vmatpush1.bf16.msra.mxu0 %v16796_v32  ;;  %v16800_v4 = vld [vmem:[%s21973_s23 + $0xc4] ss:$8 sps:$4 sm:$0xff]   ;;  %v16798_v29 = vld [vmem:[%s21973_s23 + $0xc0] ss:$8 sps:$4 sm:$0xff]  }
 0x7e6   : > { %11508 = vst.msk [vmem:[%s21973_s23 + $0xd8] sm:$0xff] %vm18583_vm3, %v15032_v51  ;;  %12543 = vmatprep.subr.bf16.mxu0 %v23406_v23 }
 0x7e8   : > { %12268 = vmatmul.mubr.bf16.gmra.mrb[100].mxu0 %v16792_v14 }
 0x7e9   : > { %12544 = vmatpush1.bf16.msra.mxu0 %v16797_v6  ;;  %14933 = vmatprep.mubr.msk.bf16.mxu0 %vm4889_vm5, %v16800_v4 }
 0x7ea   : > { %12545 = vmatprep.subr.bf16.mxu0 %v23406_v23 }
 0x7ed   : > { %12546 = vmatpush1.bf16.msra.mxu0 %v16801_v38  ;;  %v16809_v2 = vld [vmem:[%s21973_s23 + $0xd4] ss:$8 sps:$4 sm:$0xff]   ;;  %v16807_v41 = vld [vmem:[%s21973_s23 + $0xd0] ss:$8 sps:$4 sm:$0xff]   ;;  %s930_s23 = scalar_lea.vmem %s22727_s12, %s13275_s18 }
 0x7ee   : > { %12547 = vmatprep.subr.bf16.mxu0 %v23406_v23 }
 0x7f1   : > { %12548 = vmatpush1.bf16.msra.mxu0 %v16802_v46 }
 0x7f2   : > { %12549 = vmatprep.subr.bf16.mxu0 %v23406_v23 }
 0x7f5   : > { %12550 = vmatpush1.bf16.msra.mxu0 %v16803_v34 }
 0x7f6   : > { %12551 = vmatprep.subr.bf16.mxu0 %v23406_v23 }
 0x7f9   : > { %12552 = vmatpush1.bf16.msra.mxu0 %v16804_v60 }
 0x7fa   : > { %12553 = vmatprep.subr.bf16.mxu0 %v23406_v23 }
 0x7fd   : > { %12554 = vmatpush1.bf16.msra.mxu0 %v16805_v36 }
 0x7fe   : > { %12555 = vmatprep.subr.bf16.mxu0 %v23406_v23  ;;  %v12614_v23 = vld [vmem:[%s22722_s7 + $0x10] sm:$0xff] }
 0x7ff   : > { %v15072_v42 = vpack.c.bf16 %v12615_v40, %v12614_v23 }
 0x801   : > { %12556 = vmatpush1.bf16.msra.mxu0 %v12537_v22  ;;  %15073 = vmatprep.subr.bf16.mxu1 %v15072_v42 }
 0x802   : > { %15075 = vmatpush3.bf16.msra.mxu1 %v15072_v42 }
 0x803   : > { %15077 = vmatprep.subr.bf16.mxu1 %v15076_v44 }
 0x804   : > { %12572 = vmatmul.mubr.bf16.vlgmr.msra.gmra.mrb[104].mxu0 %v16798_v29 }
 0x805   : > { %14934 = vmatprep.mubr.msk.bf16.mxu0 %vm4889_vm5, %v16809_v2 }
 0x806   : > { %15079 = vmatpush3.bf16.msra.mxu1 %v15076_v44 }
 0x807   : > { %15060 = vmatprep.subr.msk.mxu1 %vm12638_vm6, %v12618_v5 }
 0x80a   : > { %15061 = vmatpush3.msk.msra.mxu1 %vm12638_vm6, %v12618_v5 }
 0x80c   : > { %12580 = vmatmul.mubr.bf16.gmra.mrb[108].mxu0 %v16807_v41 }
 0x85a   : > { %v11797_v26 = vpop.f32.mrb[80].mxu1 }
 0x85b   : > { %v11799_v17 = vpop.f32.mrb[81].mxu1 }
 0x85c   : > { %v11800_v15 = vpop.f32.mrb[82].mxu1 }
 0x85d   : > { %v11802_v21 = vpop.f32.mrb[83].mxu1 }
 0x862   : > { %v11805_v47 = vpop.f32.mrb[84].mxu1 }
 0x863   : > { %v11807_v61 = vpop.f32.mrb[85].mxu1 }
 0x864   : > { %v11808_v16 = vpop.f32.mrb[86].mxu1  ;;  %v14935_v61 = vld [vmem:[%s22721_s6] ss:$0 sm:$0xff] }
 0x865   : > { %v11810_v18 = vpop.f32.mrb[87].mxu1 }
 0x86a   : > { %v11668_v28 = vpop.f32.mrb[80].mxu0 }
 0x86b   : > { %v11798_v56 = vadd.f32 %v11797_v26, %v11668_v28  ;;  %v11670_v39 = vpop.f32.mrb[81].mxu0 }
 0x86c   : > { %v11671_v63 = vpop.f32.mrb[82].mxu0 }
 0x86d   : > { %v11801_v8 = vadd.f32 %v11800_v15, %v11671_v63  ;;  %v11673_v52 = vpop.f32.mrb[83].mxu0 }
 0x872   : > { %v11676_v54 = vpop.f32.mrb[84].mxu0 }
 0x873   : > { %v11806_v0 = vadd.f32 %v11805_v47, %v11676_v54  ;;  %v11678_v55 = vpop.f32.mrb[85].mxu0 }
 0x874   : > { %v11679_v10 = vpop.f32.mrb[86].mxu0 }
 0x875   : > { %v11809_v31 = vadd.f32 %v11808_v16, %v11679_v10  ;;  %v11681_v33 = vpop.f32.mrb[87].mxu0 }
 0x88a   : > { %v12105_v3 = vpop.f32.mrb[88].mxu1 }
 0x88b   : > { %v12107_v49 = vpop.f32.mrb[89].mxu1 }
 0x88c   : > { %v12108_v1 = vpop.f32.mrb[90].mxu1 }
 0x88d   : > { %v12110_v59 = vpop.f32.mrb[91].mxu1 }
 0x88e   : > { %v11949_v50 = vpop.f32.mrb[88].mxu0 }
 0x88f   : > { %v11964_v27 = vadd.f32 %v11949_v50, %v11798_v56  ;;  %v11951_v11 = vpop.f32.mrb[89].mxu0 }
 0x890   : > { %v11952_v9 = vpop.f32.mrb[90].mxu0 }
 0x891   : > { %v11965_v12 = vadd.f32 %v11952_v9, %v11801_v8  ;;  %v11954_v7 = vpop.f32.mrb[91].mxu0  ;;  %v12120_v35 = vadd.f32 %v12105_v3, %v11964_v27  ;;  %v14936_v27 = vld [vmem:[%s22723_s8] ss:$0 sm:$0xff] }
 0x892   : > { %v12113_v30 = vpop.f32.mrb[92].mxu1 }
 0x893   : > { %v12115_v37 = vpop.f32.mrb[93].mxu1  ;;  %v12121_v25 = vadd.f32 %v12108_v1, %v11965_v12 }
 0x894   : > { %v12116_v58 = vpop.f32.mrb[94].mxu1 }
 0x895   : > { %v12118_v24 = vpop.f32.mrb[95].mxu1 }
 0x896   : > { %v11957_v32 = vpop.f32.mrb[92].mxu0 }
 0x897   : > { %v11966_v20 = vadd.f32 %v11957_v32, %v11806_v0  ;;  %v11959_v13 = vpop.f32.mrb[93].mxu0 }
 0x898   : > { %v11960_v48 = vpop.f32.mrb[94].mxu0 }
 0x899   : > { %v11967_v51 = vadd.f32 %v11960_v48, %v11809_v31  ;;  %v11962_v6 = vpop.f32.mrb[95].mxu0  ;;  %v12122_v4 = vadd.f32 %v12113_v30, %v11966_v20 }
 0x89b   : > { %v12123_v14 = vadd.f32 %v12116_v58, %v11967_v51 }
 0x8af   : > { %v12417_v38 = vpop.f32.mrb[96].mxu1 }
 0x8b0   : > { %v12419_v46 = vpop.f32.mrb[97].mxu1 }
 0x8b1   : > { %v12420_v34 = vpop.f32.mrb[98].mxu1 }
 0x8b2   : > { %v12422_v60 = vpop.f32.mrb[99].mxu1 }
 0x8b3   : > { %v12261_v36 = vpop.f32.mrb[96].mxu0 }
 0x8b4   : > { %v12276_v45 = vadd.f32 %v12261_v36, %v12120_v35  ;;  %v12263_v22 = vpop.f32.mrb[97].mxu0 }
 0x8b5   : > { %v12264_v29 = vpop.f32.mrb[98].mxu0 }
 0x8b6   : > { %v12277_v2 = vadd.f32 %v12264_v29, %v12121_v25  ;;  %v12266_v41 = vpop.f32.mrb[99].mxu0  ;;  %v12432_v43 = vadd.f32 %v12417_v38, %v12276_v45 }
 0x8b7   : > { %v12425_v19 = vpop.f32.mrb[100].mxu1 }
 0x8b8   : > { %v12433_v23 = vadd.f32 %v12420_v34, %v12277_v2  ;;  %v12427_v62 = vpop.f32.mrb[101].mxu1 }
 0x8b9   : > { %v12428_v40 = vpop.f32.mrb[102].mxu1 }
 0x8ba   : > { %v12430_v42 = vpop.f32.mrb[103].mxu1 }
 0x8bb   : > { %v12269_v26 = vpop.f32.mrb[100].mxu0 }
 0x8bc   : > { %v12278_v53 = vadd.f32 %v12269_v26, %v12122_v4  ;;  %v12271_v57 = vpop.f32.mrb[101].mxu0 }
 0x8bd   : > { %v12272_v17 = vpop.f32.mrb[102].mxu0 }
 0x8be   : > { %v12279_v44 = vadd.f32 %v12272_v17, %v12123_v14  ;;  %v12274_v15 = vpop.f32.mrb[103].mxu0  ;;  %v12434_v21 = vadd.f32 %v12425_v19, %v12278_v53 }
 0x8c0   : > { %v12435_v5 = vadd.f32 %v12428_v40, %v12279_v44 }
 0x8d7   : > { %v12573_v47 = vpop.f32.mrb[104].mxu0 }
 0x8d8   : > { %v12588_v16 = vadd.f32 %v12573_v47, %v12432_v43  ;;  %v12575_v18 = vpop.f32.mrb[105].mxu0 }
 0x8d9   : > { %v12576_v28 = vpop.f32.mrb[106].mxu0 }
 0x8da   : > { %v12599_v56 = vadd.f32 %v14935_v61, %v12588_v16  ;;  %v12589_v39 = vadd.f32 %v12576_v28, %v12433_v23  ;;  %v12578_v63 = vpop.f32.mrb[107].mxu0 }
 0x8db   : > { %v12982_v63 = vld [vmem:[%s18605_s26 + $0x8] sm:$0xff] (%p17238_p5) }
 0x8dc   : > { %v12603_v8 = vmax.f32 %v12599_v56, 0.0  ;;  %v12600_v52 = vadd.f32 %v14935_v61, %v12589_v39  ;;  %v12980_v39 = vld [vmem:[%s18605_s26] sm:$0xff] (%p17238_p5)  ;;  %12983 = vst [vmem:[%s22565_s17 + $0x8] sm:$0xff] (%p17238_p5), %v12982_v63  ;;  %v13110_v63 = vld [vmem:[%s18605_s26 + $0x208] sm:$0xff] (%p17238_p5) }
 0x8dd   : > { %12981 = vst [vmem:[%s22565_s17] sm:$0xff] (%p17238_p5), %v12980_v39  ;;  %v13108_v39 = vld [vmem:[%s18605_s26 + $0x200] sm:$0xff] (%p17238_p5)  ;;  %13111 = vst [vmem:[%s22565_s17 + $0x328] sm:$0xff] (%p17238_p5), %v13110_v63 }
 0x8de   : > { %12608 = vst.msk [vmem:[%s930_s23] sm:$0xff] %vm12607_vm7, %v12603_v8  ;;  %v12604_v54 = vmax.f32 %v12600_v52, 0.0  ;;  %15062 = vmatprep.mubr.msk.f32.mxu1 %vm12607_vm7, %v12603_v8  ;;  %v12984_v8 = vld [vmem:[%s18605_s26 + $0x10] sm:$0xff] (%p17238_p5)  ;;  %v12986_v52 = vld [vmem:[%s18605_s26 + $0x18] sm:$0xff] (%p17238_p5)  ;;  %13109 = vst [vmem:[%s22565_s17 + $0x320] sm:$0xff] (%p17238_p5), %v13108_v39 }
 0x8df   : > { %v12581_v0 = vpop.f32.mrb[108].mxu0  ;;  %12985 = vst [vmem:[%s22565_s17 + $0x10] sm:$0xff] (%p17238_p5), %v12984_v8  ;;  %12987 = vst [vmem:[%s22565_s17 + $0x18] sm:$0xff] (%p17238_p5), %v12986_v52  ;;  %v13112_v8 = vld [vmem:[%s18605_s26 + $0x210] sm:$0xff] (%p17238_p5)  ;;  %v13114_v52 = vld [vmem:[%s18605_s26 + $0x218] sm:$0xff] (%p17238_p5) }
 0x8e0   : > { %12609 = vst.msk [vmem:[%s930_s23 + $0x8] sm:$0xff] %vm12607_vm7, %v12604_v54  ;;  %v12590_v55 = vadd.f32 %v12581_v0, %v12434_v21  ;;  %v12583_v10 = vpop.f32.mrb[109].mxu0  ;;  %15063 = vmatmul.mubr.msk.f32.vlgmr.msra.gmra.mrb[104].mxu1 %vm12607_vm7, %v12604_v54  ;;  %v12988_v54 = vld [vmem:[%s18605_s26 + $0x20] sm:$0xff] (%p17238_p5)  ;;  %v12990_v0 = vld [vmem:[%s18605_s26 + $0x28] sm:$0xff] (%p17238_p5)  ;;  %13113 = vst [vmem:[%s22565_s17 + $0x330] sm:$0xff] (%p17238_p5), %v13112_v8 }
 0x8e1   : > { %v12584_v31 = vpop.f32.mrb[110].mxu0  ;;  %v12994_v10 = vld [vmem:[%s18605_s26 + $0x38] sm:$0xff] (%p17238_p5)  ;;  %12989 = vst [vmem:[%s22565_s17 + $0x20] sm:$0xff] (%p17238_p5), %v12988_v54  ;;  %12991 = vst [vmem:[%s22565_s17 + $0x28] sm:$0xff] (%p17238_p5), %v12990_v0  ;;  %v13116_v54 = vld [vmem:[%s18605_s26 + $0x220] sm:$0xff] (%p17238_p5) }
 0x8e2   : > { %v12601_v33 = vadd.f32 %v14935_v61, %v12590_v55  ;;  %v12591_v3 = vadd.f32 %v12584_v31, %v12435_v5  ;;  %v12586_v49 = vpop.f32.mrb[111].mxu0  ;;  %v12992_v55 = vld [vmem:[%s18605_s26 + $0x30] sm:$0xff] (%p17238_p5)  ;;  %v12996_v31 = vld [vmem:[%s18605_s26 + $0x40] sm:$0xff] (%p17238_p5)  ;;  %12995 = vst [vmem:[%s22565_s17 + $0x38] sm:$0xff] (%p17238_p5), %v12994_v10  ;;  %13115 = vst [vmem:[%s22565_s17 + $0x338] sm:$0xff] (%p17238_p5), %v13114_v52 }
 0x8e3   : > { %12993 = vst [vmem:[%s22565_s17 + $0x30] sm:$0xff] (%p17238_p5), %v12992_v55  ;;  %12997 = vst [vmem:[%s22565_s17 + $0x40] sm:$0xff] (%p17238_p5), %v12996_v31  ;;  %v13002_v49 = vld [vmem:[%s18605_s26 + $0x58] sm:$0xff] (%p17238_p5)  ;;  %v13118_v0 = vld [vmem:[%s18605_s26 + $0x228] sm:$0xff] (%p17238_p5) }
 0x8e4   : > { %v12605_v1 = vmax.f32 %v12601_v33, 0.0  ;;  %v12602_v59 = vadd.f32 %v14935_v61, %v12591_v3  ;;  %v12998_v33 = vld [vmem:[%s18605_s26 + $0x48] sm:$0xff] (%p17238_p5)  ;;  %v13000_v3 = vld [vmem:[%s18605_s26 + $0x50] sm:$0xff] (%p17238_p5)  ;;  %13003 = vst [vmem:[%s22565_s17 + $0x58] sm:$0xff] (%p17238_p5), %v13002_v49  ;;  %13117 = vst [vmem:[%s22565_s17 + $0x340] sm:$0xff] (%p17238_p5), %v13116_v54 }
 0x8e5   : > { %12999 = vst [vmem:[%s22565_s17 + $0x48] sm:$0xff] (%p17238_p5), %v12998_v33  ;;  %13001 = vst [vmem:[%s22565_s17 + $0x50] sm:$0xff] (%p17238_p5), %v13000_v3  ;;  %v13120_v55 = vld [vmem:[%s18605_s26 + $0x230] sm:$0xff] (%p17238_p5)  ;;  %v13122_v10 = vld [vmem:[%s18605_s26 + $0x238] sm:$0xff] (%p17238_p5) }
 0x8e6   : > { %12610 = vst.msk [vmem:[%s930_s23 + $0x10] sm:$0xff] %vm12607_vm7, %v12605_v1  ;;  %v12606_v50 = vmax.f32 %v12602_v59, 0.0  ;;  %15065 = vmatprep.mubr.msk.f32.mxu1 %vm12607_vm7, %v12605_v1  ;;  %v13004_v1 = vld [vmem:[%s18605_s26 + $0x60] sm:$0xff] (%p17238_p5)  ;;  %v13006_v59 = vld [vmem:[%s18605_s26 + $0x68] sm:$0xff] (%p17238_p5)  ;;  %13119 = vst [vmem:[%s22565_s17 + $0x348] sm:$0xff] (%p17238_p5), %v13118_v0 }
 0x8e7   : > { %13005 = vst [vmem:[%s22565_s17 + $0x60] sm:$0xff] (%p17238_p5), %v13004_v1  ;;  %13007 = vst [vmem:[%s22565_s17 + $0x68] sm:$0xff] (%p17238_p5), %v13006_v59 }
 0x8e8   : > { %12611 = vst.msk [vmem:[%s930_s23 + $0x18] sm:$0xff] %vm12607_vm7, %v12606_v50  ;;  %15066 = vmatmul.mubr.msk.f32.gmra.mrb[106].mxu1 %vm12607_vm7, %v12606_v50  ;;  %v13008_v50 = vld [vmem:[%s18605_s26 + $0x70] sm:$0xff] (%p17238_p5)  ;;  %13121 = vst [vmem:[%s22565_s17 + $0x350] sm:$0xff] (%p17238_p5), %v13120_v55 }
 0x8e9   : > { %13009 = vst [vmem:[%s22565_s17 + $0x70] sm:$0xff] (%p17238_p5), %v13008_v50  ;;  %13123 = vst [vmem:[%s22565_s17 + $0x358] sm:$0xff] (%p17238_p5), %v13122_v10 }
 0x9b3   : > { %v15064_v11 = vpop.f32.mrb[104].mxu1 }
 0x9b4   : > { %v12708_v9 = vpop.f32.mrb[105].mxu1  ;;  %v12714_v7 = vadd.f32 %v15064_v11, %v14936_v27  ;;  %v13012_v11 = vld [vmem:[%s18605_s26 + $0x80] sm:$0xff] (%p17238_p5) }
 0x9b5   : > { %v12709_v12 = vadd.f32 %v14936_v27, %v12708_v9  ;;  %v13014_v9 = vld [vmem:[%s18605_s26 + $0x88] sm:$0xff] (%p17238_p5)  ;;  %13013 = vst [vmem:[%s22565_s17 + $0x80] sm:$0xff] (%p17238_p5), %v13012_v11 }
 0x9b6   : > { %v12731_v37 = vsel %vm12727_vm8, %v12714_v7, -inf  ;;  %13015 = vst [vmem:[%s22565_s17 + $0x88] sm:$0xff] (%p17238_p5), %v13014_v9 }
 0x9b7   : > { %v12728_v35 = vsel %vm12727_vm8, %v12709_v12, -inf }
 0x9b8   : > { %12729 = vmax.xlane.f32.xlu0 %v12728_v35  ;;  %v13020_v35 = vld [vmem:[%s18605_s26 + $0xa0] sm:$0xff] (%p17238_p5) }
 0x9b9   : > { %13021 = vst [vmem:[%s22565_s17 + $0xa0] sm:$0xff] (%p17238_p5), %v13020_v35 }
 0x9bb   : > { %v15067_v30 = vpop.f32.mrb[106].mxu1 }
 0x9bc   : > { %12732 = vmax.xlane.f32.xlu0 %v12731_v37  ;;  %v12718_v25 = vpop.f32.mrb[107].mxu1  ;;  %v12724_v24 = vadd.f32 %v15067_v30, %v14936_v27  ;;  %v13022_v30 = vld [vmem:[%s18605_s26 + $0xa8] sm:$0xff] (%p17238_p5)  ;;  %v13024_v37 = vld [vmem:[%s18605_s26 + $0xb0] sm:$0xff] (%p17238_p5) }
 0x9bd   : > { %v12719_v58 = vadd.f32 %v14936_v27, %v12718_v25  ;;  %v13010_v27 = vld [vmem:[%s18605_s26 + $0x78] sm:$0xff] (%p17238_p5)  ;;  %13023 = vst [vmem:[%s22565_s17 + $0xa8] sm:$0xff] (%p17238_p5), %v13022_v30  ;;  %13025 = vst [vmem:[%s22565_s17 + $0xb0] sm:$0xff] (%p17238_p5), %v13024_v37 }
 0x9be   : > { %v12737_v20 = vsel %vm12727_vm8, %v12724_v24, -inf  ;;  %13011 = vst [vmem:[%s22565_s17 + $0x78] sm:$0xff] (%p17238_p5), %v13010_v27  ;;  %v13026_v25 = vld [vmem:[%s18605_s26 + $0xb8] sm:$0xff] (%p17238_p5) }
 0x9bf   : > { %v12734_v32 = vsel %vm12727_vm8, %v12719_v58, -inf  ;;  %13027 = vst [vmem:[%s22565_s17 + $0xb8] sm:$0xff] (%p17238_p5), %v13026_v25 }
 0x9c0   : > { %12735 = vmax.xlane.f32.xlu1 %v12734_v32  ;;  %v13032_v32 = vld [vmem:[%s18605_s26 + $0xd0] sm:$0xff] (%p17238_p5) }
 0x9c1   : > { %13033 = vst [vmem:[%s22565_s17 + $0xd0] sm:$0xff] (%p17238_p5), %v13032_v32 }
 0x9c4   : > { %12738 = vmax.xlane.f32.xlu1 %v12737_v20  ;;  %v13034_v20 = vld [vmem:[%s18605_s26 + $0xd8] sm:$0xff] (%p17238_p5) }
 0x9c5   : > { %13035 = vst [vmem:[%s22565_s17 + $0xd8] sm:$0xff] (%p17238_p5), %v13034_v20 }
 0xa45   : > { %v12730_v13 = vpop.xlane.xlu0 %12729 }
 0xa46   : > { %v12740_v48 = vsub.f32 %v12709_v12, %v12730_v13  ;;  %v13016_v12 = vld [vmem:[%s18605_s26 + $0x90] sm:$0xff] (%p17238_p5)  ;;  %v13036_v13 = vld [vmem:[%s18605_s26 + $0xe0] sm:$0xff] (%p17238_p5) }
 0xa47   : > { %13017 = vst [vmem:[%s22565_s17 + $0x90] sm:$0xff] (%p17238_p5), %v13016_v12  ;;  %13037 = vst [vmem:[%s22565_s17 + $0xe0] sm:$0xff] (%p17238_p5), %v13036_v13 }
 0xa48   : > { %v12744_v51 = vmul.f32 1.442695, %v12740_v48 }
 0xa49   : > { %v12733_v6 = vpop.xlane.xlu0 %12732 }
 0xa4a   : > { %16810 = vpow2.f32 %v12744_v51  ;;  %v12741_v4 = vsub.f32 %v12714_v7, %v12733_v6  ;;  %v13018_v7 = vld [vmem:[%s18605_s26 + $0x98] sm:$0xff] (%p17238_p5)  ;;  %v13040_v51 = vld [vmem:[%s18605_s26 + $0xf0] sm:$0xff] (%p17238_p5) }
 0xa4b   : > { %13019 = vst [vmem:[%s22565_s17 + $0x98] sm:$0xff] (%p17238_p5), %v13018_v7  ;;  %v13042_v6 = vld [vmem:[%s18605_s26 + $0xf8] sm:$0xff] (%p17238_p5)  ;;  %13041 = vst [vmem:[%s22565_s17 + $0xf0] sm:$0xff] (%p17238_p5), %v13040_v51 }
 0xa4c   : > { %v12746_v14 = vmul.f32 1.442695, %v12741_v4  ;;  %13043 = vst [vmem:[%s22565_s17 + $0xf8] sm:$0xff] (%p17238_p5), %v13042_v6 }
 0xa4d   : > { %v12736_v38 = vpop.xlane.xlu1 %12735 }
 0xa4e   : > { %16812 = vpow2.f32 %v12746_v14  ;;  %v12742_v46 = vsub.f32 %v12719_v58, %v12736_v38  ;;  %v13028_v58 = vld [vmem:[%s18605_s26 + $0xc0] sm:$0xff] (%p17238_p5)  ;;  %v13046_v14 = vld [vmem:[%s18605_s26 + $0x108] sm:$0xff] (%p17238_p5)  ;;  %v13048_v38 = vld [vmem:[%s18605_s26 + $0x110] sm:$0xff] (%p17238_p5) }
 0xa4f   : > { %13029 = vst [vmem:[%s22565_s17 + $0xc0] sm:$0xff] (%p17238_p5), %v13028_v58  ;;  %13047 = vst [vmem:[%s22565_s17 + $0x108] sm:$0xff] (%p17238_p5), %v13046_v14 }
 0xa50   : > { %v12748_v34 = vmul.f32 1.442695, %v12742_v46  ;;  %13049 = vst [vmem:[%s22565_s17 + $0x110] sm:$0xff] (%p17238_p5), %v13048_v38 }
 0xa51   : > { %v12739_v60 = vpop.xlane.xlu1 %12738 }
 0xa52   : > { %16814 = vpow2.f32 %v12748_v34  ;;  %v12743_v36 = vsub.f32 %v12724_v24, %v12739_v60  ;;  %v13030_v24 = vld [vmem:[%s18605_s26 + $0xc8] sm:$0xff] (%p17238_p5)  ;;  %v13052_v34 = vld [vmem:[%s18605_s26 + $0x120] sm:$0xff] (%p17238_p5) }
 0xa53   : > { %13031 = vst [vmem:[%s22565_s17 + $0xc8] sm:$0xff] (%p17238_p5), %v13030_v24  ;;  %v13054_v60 = vld [vmem:[%s18605_s26 + $0x128] sm:$0xff] (%p17238_p5)  ;;  %13053 = vst [vmem:[%s22565_s17 + $0x240] sm:$0xff] (%p17238_p5), %v13052_v34 }
 0xa54   : > { %v16811_v45 = vpop.eup %16810  ;;  %v12750_v22 = vmul.f32 1.442695, %v12743_v36  ;;  %13055 = vst [vmem:[%s22565_s17 + $0x248] sm:$0xff] (%p17238_p5), %v13054_v60 }
 0xa55   : > { %v12752_v29 = vsel %vm12727_vm8, %v16811_v45, 0.0  ;;  %v13058_v45 = vld [vmem:[%s18605_s26 + $0x138] sm:$0xff] (%p17238_p5) }
 0xa56   : > { %16816 = vpow2.f32 %v12750_v22  ;;  %12753 = vadd.xlane.f32.xlu0 %v12752_v29  ;;  %v13060_v22 = vld [vmem:[%s18605_s26 + $0x140] sm:$0xff] (%p17238_p5)  ;;  %v13062_v29 = vld [vmem:[%s18605_s26 + $0x148] sm:$0xff] (%p17238_p5)  ;;  %13059 = vst [vmem:[%s22565_s17 + $0x258] sm:$0xff] (%p17238_p5), %v13058_v45 }
 0xa57   : > { %13061 = vst [vmem:[%s22565_s17 + $0x260] sm:$0xff] (%p17238_p5), %v13060_v22  ;;  %13063 = vst [vmem:[%s22565_s17 + $0x268] sm:$0xff] (%p17238_p5), %v13062_v29 }
 0xa58   : > { %v16813_v2 = vpop.eup %16812 }
 0xa59   : > { %v12755_v41 = vsel %vm12727_vm8, %v16813_v2, 0.0  ;;  %v13064_v2 = vld [vmem:[%s18605_s26 + $0x150] sm:$0xff] (%p17238_p5) }
 0xa5a   : > { %12756 = vadd.xlane.f32.xlu1 %v12755_v41  ;;  %v13066_v41 = vld [vmem:[%s18605_s26 + $0x158] sm:$0xff] (%p17238_p5)  ;;  %13065 = vst [vmem:[%s22565_s17 + $0x270] sm:$0xff] (%p17238_p5), %v13064_v2 }
 0xa5b   : > { %13067 = vst [vmem:[%s22565_s17 + $0x278] sm:$0xff] (%p17238_p5), %v13066_v41 }
 0xa5c   : > { %v16815_v43 = vpop.eup %16814 }
 0xa5d   : > { %v12758_v19 = vsel %vm12727_vm8, %v16815_v43, 0.0  ;;  %v13068_v43 = vld [vmem:[%s18605_s26 + $0x160] sm:$0xff] (%p17238_p5) }
 0xa5e   : > { %12759 = vadd.xlane.f32.xlu0 %v12758_v19  ;;  %13069 = vst [vmem:[%s22565_s17 + $0x280] sm:$0xff] (%p17238_p5), %v13068_v43  ;;  %v13070_v19 = vld [vmem:[%s18605_s26 + $0x168] sm:$0xff] (%p17238_p5) }
 0xa5f   : > { %13071 = vst [vmem:[%s22565_s17 + $0x288] sm:$0xff] (%p17238_p5), %v13070_v19 }
 0xa60   : > { %v16817_v23 = vpop.eup %16816 }
 0xa61   : > { %v12761_v62 = vsel %vm12727_vm8, %v16817_v23, 0.0  ;;  %v13072_v23 = vld [vmem:[%s18605_s26 + $0x170] sm:$0xff] (%p17238_p5) }
 0xa62   : > { %12762 = vadd.xlane.f32.xlu1 %v12761_v62  ;;  %v13074_v62 = vld [vmem:[%s18605_s26 + $0x178] sm:$0xff] (%p17238_p5)  ;;  %13073 = vst [vmem:[%s22565_s17 + $0x290] sm:$0xff] (%p17238_p5), %v13072_v23 }
 0xa63   : > { %13075 = vst [vmem:[%s22565_s17 + $0x298] sm:$0xff] (%p17238_p5), %v13074_v62 }
 0xae3   : > { %v12754_v40 = vpop.xlane.xlu0 %12753 }
 0xae4   : > { %16818 = vlog2.f32 %v12754_v40  ;;  %v13076_v40 = vld [vmem:[%s18605_s26 + $0x180] sm:$0xff] (%p17238_p5) }
 0xae5   : > { %13077 = vst [vmem:[%s22565_s17 + $0x2a0] sm:$0xff] (%p17238_p5), %v13076_v40 }
 0xae7   : > { %v12757_v42 = vpop.xlane.xlu1 %12756 }
 0xae8   : > { %16820 = vlog2.f32 %v12757_v42  ;;  %v13078_v42 = vld [vmem:[%s18605_s26 + $0x188] sm:$0xff] (%p17238_p5) }
 0xae9   : > { %13079 = vst [vmem:[%s22565_s17 + $0x2a8] sm:$0xff] (%p17238_p5), %v13078_v42 }
 0xaeb   : > { %v12760_v26 = vpop.xlane.xlu0 %12759 }
 0xaec   : > { %16822 = vlog2.f32 %v12760_v26  ;;  %v13080_v26 = vld [vmem:[%s18605_s26 + $0x190] sm:$0xff] (%p17238_p5) }
 0xaed   : > { %13081 = vst [vmem:[%s22565_s17 + $0x2b0] sm:$0xff] (%p17238_p5), %v13080_v26 }
 0xaee   : > { %v16819_v53 = vpop.eup %16818 }
 0xaef   : > { %v12765_v57 = vmul.f32 0.6931472, %v16819_v53  ;;  %v12763_v17 = vpop.xlane.xlu1 %12762  ;;  %v13082_v53 = vld [vmem:[%s18605_s26 + $0x198] sm:$0xff] (%p17238_p5) }
 0xaf0   : > { %16824 = vlog2.f32 %v12763_v17  ;;  %v13086_v17 = vld [vmem:[%s18605_s26 + $0x1a8] sm:$0xff] (%p17238_p5)  ;;  %13083 = vst [vmem:[%s22565_s17 + $0x2b8] sm:$0xff] (%p17238_p5), %v13082_v53 }
 0xaf1   : > { %v12772_v44 = vsub.f32 %v12740_v48, %v12765_v57  ;;  %v13038_v48 = vld [vmem:[%s18605_s26 + $0xe8] sm:$0xff] (%p17238_p5)  ;;  %v13084_v57 = vld [vmem:[%s18605_s26 + $0x1a0] sm:$0xff] (%p17238_p5)  ;;  %13087 = vst [vmem:[%s22565_s17 + $0x2c8] sm:$0xff] (%p17238_p5), %v13086_v17 }
 0xaf2   : > { %v16821_v15 = vpop.eup %16820  ;;  %13039 = vst [vmem:[%s22565_s17 + $0xe8] sm:$0xff] (%p17238_p5), %v13038_v48  ;;  %13085 = vst [vmem:[%s22565_s17 + $0x2c0] sm:$0xff] (%p17238_p5), %v13084_v57 }
 0xaf3   : > { %12776 = vst.msk [vmem:[%s916_s13] sm:$0xff] %vm12727_vm8, %v12772_v44  ;;  %v12767_v21 = vmul.f32 0.6931472, %v16821_v15  ;;  %v13088_v44 = vld [vmem:[%s18605_s26 + $0x1b0] sm:$0xff] (%p17238_p5)  ;;  %v13090_v15 = vld [vmem:[%s18605_s26 + $0x1b8] sm:$0xff] (%p17238_p5) }
 0xaf4   : > { %13089 = vst [vmem:[%s22565_s17 + $0x2d0] sm:$0xff] (%p17238_p5), %v13088_v44  ;;  %13091 = vst [vmem:[%s22565_s17 + $0x2d8] sm:$0xff] (%p17238_p5), %v13090_v15 }
 0xaf5   : > { %v12773_v5 = vsub.f32 %v12741_v4, %v12767_v21  ;;  %v13044_v4 = vld [vmem:[%s18605_s26 + $0x100] sm:$0xff] (%p17238_p5) }
 0xaf6   : > { %v16823_v47 = vpop.eup %16822  ;;  %13045 = vst [vmem:[%s22565_s17 + $0x100] sm:$0xff] (%p17238_p5), %v13044_v4  ;;  %v13092_v21 = vld [vmem:[%s18605_s26 + $0x1c0] sm:$0xff] (%p17238_p5) }
 0xaf7   : > { %12777 = vst.msk [vmem:[%s916_s13 + $0x8] sm:$0xff] %vm12727_vm8, %v12773_v5  ;;  %v12769_v61 = vmul.f32 0.6931472, %v16823_v47  ;;  %13093 = vst [vmem:[%s22565_s17 + $0x2e0] sm:$0xff] (%p17238_p5), %v13092_v21  ;;  %v13094_v5 = vld [vmem:[%s18605_s26 + $0x1c8] sm:$0xff] (%p17238_p5)  ;;  %v13096_v47 = vld [vmem:[%s18605_s26 + $0x1d0] sm:$0xff] (%p17238_p5) }
 0xaf8   : > { %13095 = vst [vmem:[%s22565_s17 + $0x2e8] sm:$0xff] (%p17238_p5), %v13094_v5  ;;  %13097 = vst [vmem:[%s22565_s17 + $0x2f0] sm:$0xff] (%p17238_p5), %v13096_v47 }
 0xaf9   : > { %v12774_v16 = vsub.f32 %v12742_v46, %v12769_v61  ;;  %12806 = sbr.rel (!%p17238_p5) target bundleno = 2817 (0xb01), region = 102  ;;  %v13050_v46 = vld [vmem:[%s18605_s26 + $0x118] sm:$0xff] (%p17238_p5) }
 0xafa   : > { %v16825_v18 = vpop.eup %16824  ;;  %13051 = vst [vmem:[%s22565_s17 + $0x118] sm:$0xff] (%p17238_p5), %v13050_v46  ;;  %v13098_v61 = vld [vmem:[%s18605_s26 + $0x1d8] sm:$0xff] (%p17238_p5) }
 0xafb   : > { %12778 = vst.msk [vmem:[%s916_s13 + $0x10] sm:$0xff] %vm12727_vm8, %v12774_v16  ;;  %v12771_v28 = vmul.f32 0.6931472, %v16825_v18  ;;  %13099 = vst [vmem:[%s22565_s17 + $0x2f8] sm:$0xff] (%p17238_p5), %v13098_v61  ;;  %v13100_v16 = vld [vmem:[%s18605_s26 + $0x1e0] sm:$0xff] (%p17238_p5)  ;;  %v13102_v18 = vld [vmem:[%s18605_s26 + $0x1e8] sm:$0xff] (%p17238_p5) }
 0xafc   : > { %13101 = vst [vmem:[%s22565_s17 + $0x300] sm:$0xff] (%p17238_p5), %v13100_v16  ;;  %13103 = vst [vmem:[%s22565_s17 + $0x308] sm:$0xff] (%p17238_p5), %v13102_v18 }
 0xafd   : > { %v12775_v56 = vsub.f32 %v12743_v36, %v12771_v28  ;;  %v13056_v36 = vld [vmem:[%s18605_s26 + $0x130] sm:$0xff] (%p17238_p5) }
 0xafe   : > { %13057 = vst [vmem:[%s22565_s17 + $0x250] sm:$0xff] (%p17238_p5), %v13056_v36  ;;  %v13104_v28 = vld [vmem:[%s18605_s26 + $0x1f0] sm:$0xff] (%p17238_p5) }
 0xaff   : > { %12779 = vst.msk [vmem:[%s916_s13 + $0x18] sm:$0xff] %vm12727_vm8, %v12775_v56  ;;  %13105 = vst [vmem:[%s22565_s17 + $0x310] sm:$0xff] (%p17238_p5), %v13104_v28  ;;  %v13106_v56 = vld [vmem:[%s18605_s26 + $0x1f8] sm:$0xff] (%p17238_p5) }
 0xb00   : > { %13107 = vst [vmem:[%s22565_s17 + $0x318] sm:$0xff] %v13106_v56 }
 0xb01 PF: > { %p20_p12 = scmp.ge.s32.totalorder %s17226_s25, 4   ;;  %s23532_s21 = smov %s17135_s22 }
 0xb02   : > { %s23533_s22 = smov %s17236_s28  ;;  %s23534_s23 = smov %s17226_s25 }
 0xb03   :  { %22 = sbr.rel (!%p20_p12) target bundleno = 2 (0x2), region = 223 }

</bundles_post_ra>
